<compile_context>
chip_gen: v6e
topology: v6e:2x2x1
jax: 0.10.0
libtpu: 0.0.40
codegen_flags: <defaults>
</compile_context>

<pallas_src>
import functools

import jax
import jax.numpy as jnp
from jax.experimental import pallas as pl
from jax.experimental.pallas import tpu as pltpu

BN_EPS = 1e-5


# ----------------------------------------------------------------------------
# Fused per-layer Pallas kernel:
#   y = W(Cout,K) @ patches(K,M) + bias
#   mode == "conv":  y = BN(ReLU(y))            (Conv module: bn(relu(conv(x))))
#   mode == "up":    y = ReLU(BN(y))            (upSampleTransposeConv)
#   mode == "plain": y = y                      (segmenter 1x1 conv)
#   optional fused residual add (skip connections of the decoder).
# ----------------------------------------------------------------------------
def _fused_layer_kernel(*refs, mode, has_residual, eps):
    p_ref, w_ref, b_ref = refs[0], refs[1], refs[2]
    o_ref = refs[-1]
    nxt = 3
    g_ref = be_ref = r_ref = None
    if mode != "plain":
        g_ref, be_ref = refs[nxt], refs[nxt + 1]
        nxt += 2
    if has_residual:
        r_ref = refs[nxt]

    # bf16 x bf16 -> f32 accumulation on the MXU.
    y = jnp.dot(w_ref[...], p_ref[...], preferred_element_type=jnp.float32)
    y = y + b_ref[...]

    def batchnorm(v):
        # Training-mode BatchNorm2d: biased batch stats over M = N*H*W
        # (single pass: E[v^2] - mean^2), per-channel affine.
        mean = jnp.mean(v, axis=1, keepdims=True)
        var = jnp.maximum(jnp.mean(v * v, axis=1, keepdims=True) - mean * mean, 0.0)
        return (v - mean) * jax.lax.rsqrt(var + eps) * g_ref[...] + be_ref[...]

    if mode == "conv":        # Conv block: bn(relu(conv(x) + b))
        y = batchnorm(jnp.maximum(y, 0.0))
    elif mode == "up":        # upSample block: relu(bn(convT(x) + b))
        y = jnp.maximum(batchnorm(y), 0.0)

    if has_residual:
        y = y + r_ref[...]

    o_ref[...] = y.astype(o_ref.dtype)


def fused_layer(patches_t, w_t, bias, gamma=None, beta=None, residual=None,
                mode="plain"):
    """patches_t: (K, M), w_t: (Cout, K) -> f32 (Cout, M)."""
    _, m = patches_t.shape
    cout = w_t.shape[0]
    args = [patches_t.astype(jnp.bfloat16),
            w_t.astype(jnp.bfloat16),
            bias.reshape(cout, 1).astype(jnp.float32)]
    if mode != "plain":
        args += [gamma.reshape(cout, 1).astype(jnp.float32),
                 beta.reshape(cout, 1).astype(jnp.float32)]
    has_res = residual is not None
    if has_res:
        args.append(residual.astype(jnp.float32))

    kernel = functools.partial(_fused_layer_kernel, mode=mode,
                               has_residual=has_res, eps=BN_EPS)
    return pl.pallas_call(
        kernel,
        out_shape=jax.ShapeDtypeStruct((cout, m), jnp.float32),
        in_specs=[pl.BlockSpec(memory_space=pltpu.MemorySpace.VMEM)] * len(args),
        out_specs=pl.BlockSpec(memory_space=pltpu.MemorySpace.VMEM),
        compiler_params=pltpu.CompilerParams(vmem_limit_bytes=32 * 1024 * 1024),
    )(*args)


# ----------------------------------------------------------------------------
# XLA glue: im2col in channel-major layout (activations are (C, N, H, W)).
# Row order of patches_t matches weight flattening (kh, kw) major, cin minor.
# ----------------------------------------------------------------------------
def _im2col_t(x_cnhw, k, stride, padding):
    c, n, h, w = x_cnhw.shape
    ho = (h + 2 * padding - k) // stride + 1
    wo = (w + 2 * padding - k) // stride + 1
    xp = jnp.pad(x_cnhw, ((0, 0), (0, 0), (padding, padding), (padding, padding)))
    taps = []
    for kh in range(k):
        for kw in range(k):
            taps.append(xp[:, :,
                           kh:kh + (ho - 1) * stride + 1:stride,
                           kw:kw + (wo - 1) * stride + 1:stride])
    pt = jnp.stack(taps, axis=0)                      # (k*k, C, N, Ho, Wo)
    return pt.reshape(k * k * c, n * ho * wo), (n, ho, wo)


# ----------------------------------------------------------------------------
# PB_FCN_2 blocks (activations carried as (C, N, H, W) f32)
# ----------------------------------------------------------------------------
def conv_block(x_cnhw, lp, stride):
    # Conv module: bn(relu(conv3x3(x) + bias)), padding=1.
    cout = lp['w'].shape[0]
    pt, (n, ho, wo) = _im2col_t(x_cnhw, 3, stride, 1)
    wt = jnp.transpose(lp['w'], (0, 2, 3, 1)).reshape(cout, -1)   # (Cout, 9*Cin)
    out = fused_layer(pt, wt, lp['b'], lp['g'], lp['be'], mode="conv")
    return out.reshape(cout, n, ho, wo)


def up_block(x_cnhw, lp, skip_cnhw):
    # upSampleTransposeConv: relu(bn(convT3x3_s2_p1_op1(x) + bias)) + skip (fused).
    c, n, h, w = x_cnhw.shape
    cout = lp['w'].shape[1]
    # ConvTranspose2d(k=3, stride=2, pad=1, output_padding=1) == regular stride-1
    # conv of the zero-dilated, (1,2)-padded input with the flipped kernel.
    xd = jnp.zeros((c, n, 2 * h - 1, 2 * w - 1), x_cnhw.dtype)
    xd = xd.at[:, :, ::2, ::2].set(x_cnhw)
    xp = jnp.pad(xd, ((0, 0), (0, 0), (1, 2), (1, 2)))
    w_eq = jnp.transpose(lp['w'][:, :, ::-1, ::-1], (1, 0, 2, 3))  # (Cout, Cin, 3, 3)
    pt, (n2, ho, wo) = _im2col_t(xp, 3, 1, 0)
    wt = jnp.transpose(w_eq, (0, 2, 3, 1)).reshape(cout, -1)
    res = skip_cnhw.reshape(cout, n2 * ho * wo)
    out = fused_layer(pt, wt, lp['b'], lp['g'], lp['be'], residual=res, mode="up")
    return out.reshape(cout, n2, ho, wo)


def segment_block(x_cnhw, sp):
    # UltClassifier(pool=False): Conv2d(planes, nClass, k=1, pad=0) with bias.
    c, n, h, w = x_cnhw.shape
    ncls = sp['w'].shape[0]
    pt = x_cnhw.reshape(c, n * h * w)
    wt = sp['w'].reshape(ncls, c)
    out = fused_layer(pt, wt, sp['b'], mode="plain")
    return out.reshape(ncls, n, h, w)


def pb_fcn2_forward(params, x_nchw):
    """PB_FCN_2(classify=False, nClass=5, planes=8, depth=4, levels=2,
    bellySize=5, bellyPlanes=128) forward pass."""
    x = jnp.transpose(x_nchw, (1, 0, 2, 3)).astype(jnp.float32)   # NCHW -> (C,N,H,W)
    downs = [x]
    # DownSampler: Level0..Level3 (stride-2 on the first conv of levels >= 1).
    for li, level in enumerate(params['down']):
        h = downs[-1]
        for ci, layer in enumerate(level):
            stride = 2 if (li > 0 and ci == 0) else 1
            h = conv_block(h, layer, stride)
        downs.append(h)
    # Power belly (PB_1 + PB_2), all stride 1.
    h = downs[-1]
    for layer in params['pb']:
        h = conv_block(h, layer, 1)
    downs[-1] = h
    # Decoder with fused skip connections.
    up = downs[-1]
    for i, layer in enumerate(params['up']):
        up = up_block(up, layer, downs[-(i + 2)])
    seg = segment_block(up, params['seg'])
    return jnp.transpose(seg, (1, 0, 2, 3))                       # (C,N,H,W) -> NCHW


# ----------------------------------------------------------------------------
# Deterministic synthetic parameters
# ----------------------------------------------------------------------------
def init_params(key, planes=8, depth=4, levels=2, belly_size=5,
                belly_planes=128, n_class=5):
    keys = iter(jax.random.split(key, 128))

    def rnd(shape, scale=0.1):
        return scale * jax.random.normal(next(keys), shape, jnp.float32)

    def conv_layer(cin, cout):
        return dict(w=rnd((cout, cin, 3, 3)), b=rnd((cout,)),
                    g=1.0 + rnd((cout,)), be=rnd((cout,)))

    def up_layer(cin, cout):
        return dict(w=rnd((cin, cout, 3, 3)), b=rnd((cout,)),
                    g=1.0 + rnd((cout,)), be=rnd((cout,)))

    max_depth = planes * 2 ** (depth - 1)
    down = [[conv_layer(3, planes)]]                     # Level0
    for i in range(depth - 1):                           # Level1..Level3
        nch = planes * 2 ** i
        lvl = [conv_layer(nch, nch * 2)]
        for _ in range(levels - 1):
            lvl.append(conv_layer(nch * 2, nch * 2))
        down.append(lvl)
    pb = [conv_layer(max_depth, belly_planes)]           # PB_1 (bellySize-1 convs)
    for _ in range(belly_size - 2):
        pb.append(conv_layer(belly_planes, belly_planes))
    pb.append(conv_layer(belly_planes, max_depth))       # PB_2
    ups = []
    for i in range(depth - 1):
        nch = planes * 2 ** (depth - 1 - i)
        ups.append(up_layer(nch, nch // 2))
    seg = dict(w=rnd((n_class, planes, 1, 1)), b=rnd((n_class,)))
    return dict(down=down, pb=pb, up=ups, seg=seg)


if __name__ == "__main__":
    key = jax.random.PRNGKey(0)
    k_param, k_x = jax.random.split(key)
    params = init_params(k_param, planes=8, depth=4, levels=2,
                         belly_size=5, belly_planes=128, n_class=5)
    x = jax.random.normal(k_x, (2, 3, 16, 16), jnp.float32)   # NCHW, 3-ch input

    fwd = jax.jit(pb_fcn2_forward)
    out = jax.block_until_ready(fwd(params, x))
    assert out.shape == (2, 5, 16, 16), out.shape
    assert bool(jnp.all(jnp.isfinite(out)))
    print("KERNEL_OK")
</pallas_src>

<mosaic_0001>
module attributes {stable_mosaic.version = 11 : i64} {
  func.func @_fused_layer_kernel(%arg0: memref<27x512xbf16, #tpu.memory_space<vmem>>, %arg1: memref<8x27xbf16, #tpu.memory_space<vmem>>, %arg2: memref<8x1xf32, #tpu.memory_space<vmem>>, %arg3: memref<8x1xf32, #tpu.memory_space<vmem>>, %arg4: memref<8x1xf32, #tpu.memory_space<vmem>>, %arg5: memref<8x512xf32, #tpu.memory_space<vmem>>) attributes {dimension_semantics = [], scalar_prefetch = 0 : i64, scratch_operands = 0 : i64, tpu.core_type = #tpu.core_type<tc>} {
    %c0 = arith.constant 0 : index
    %c0_0 = arith.constant 0 : index
    %0 = vector.load %arg1[%c0, %c0_0] : memref<8x27xbf16, #tpu.memory_space<vmem>>, vector<8x27xbf16>
    %c0_1 = arith.constant 0 : index
    %c0_2 = arith.constant 0 : index
    %1 = vector.load %arg0[%c0_1, %c0_2] : memref<27x512xbf16, #tpu.memory_space<vmem>>, vector<27x512xbf16>
    %cst = arith.constant dense<0.000000e+00> : vector<8x512xf32>
    %2 = tpu.matmul %0, %1, %cst {dimension_numbers = #tpu.dot_dimension_numbers<[1], [0], [0], [1], [0, 0, 1, 1], [], []>} : vector<8x27xbf16>, vector<27x512xbf16>, vector<8x512xf32> -> vector<8x512xf32>
    %c0_3 = arith.constant 0 : index
    %c0_4 = arith.constant 0 : index
    %3 = vector.load %arg2[%c0_3, %c0_4] : memref<8x1xf32, #tpu.memory_space<vmem>>, vector<8x1xf32>
    %4 = vector.broadcast %3 : vector<8x1xf32> to vector<8x512xf32>
    %5 = arith.addf %2, %4 : vector<8x512xf32>
    %cst_5 = arith.constant 0.000000e+00 : f32
    %6 = vector.broadcast %cst_5 : f32 to vector<8x512xf32>
    %7 = arith.maximumf %5, %6 : vector<8x512xf32>
    %cst_6 = arith.constant dense<0.000000e+00> : vector<8xf32>
    %8 = vector.multi_reduction <add>, %7, %cst_6 [1] : vector<8x512xf32> to vector<8xf32>
    %9 = vector.shape_cast %8 : vector<8xf32> to vector<8x1xf32>
    %cst_7 = arith.constant 5.120000e+02 : f32
    %10 = vector.broadcast %cst_7 : f32 to vector<8x1xf32>
    %11 = arith.divf %9, %10 : vector<8x1xf32>
    %12 = arith.mulf %7, %7 : vector<8x512xf32>
    %cst_8 = arith.constant dense<0.000000e+00> : vector<8xf32>
    %13 = vector.multi_reduction <add>, %12, %cst_8 [1] : vector<8x512xf32> to vector<8xf32>
    %14 = vector.shape_cast %13 : vector<8xf32> to vector<8x1xf32>
    %cst_9 = arith.constant 5.120000e+02 : f32
    %15 = vector.broadcast %cst_9 : f32 to vector<8x1xf32>
    %16 = arith.divf %14, %15 : vector<8x1xf32>
    %17 = arith.mulf %11, %11 : vector<8x1xf32>
    %18 = arith.subf %16, %17 : vector<8x1xf32>
    %cst_10 = arith.constant 0.000000e+00 : f32
    %19 = vector.broadcast %cst_10 : f32 to vector<8x1xf32>
    %20 = arith.maximumf %18, %19 : vector<8x1xf32>
    %21 = vector.broadcast %11 : vector<8x1xf32> to vector<8x512xf32>
    %22 = arith.subf %7, %21 : vector<8x512xf32>
    %cst_11 = arith.constant 9.99999974E-6 : f32
    %23 = vector.broadcast %cst_11 : f32 to vector<8x1xf32>
    %24 = arith.addf %20, %23 : vector<8x1xf32>
    %25 = math.rsqrt %24 : vector<8x1xf32>
    %26 = vector.broadcast %25 : vector<8x1xf32> to vector<8x512xf32>
    %27 = arith.mulf %22, %26 : vector<8x512xf32>
    %c0_12 = arith.constant 0 : index
    %c0_13 = arith.constant 0 : index
    %28 = vector.load %arg3[%c0_12, %c0_13] : memref<8x1xf32, #tpu.memory_space<vmem>>, vector<8x1xf32>
    %29 = vector.broadcast %28 : vector<8x1xf32> to vector<8x512xf32>
    %30 = arith.mulf %27, %29 : vector<8x512xf32>
    %c0_14 = arith.constant 0 : index
    %c0_15 = arith.constant 0 : index
    %31 = vector.load %arg4[%c0_14, %c0_15] : memref<8x1xf32, #tpu.memory_space<vmem>>, vector<8x1xf32>
    %32 = vector.broadcast %31 : vector<8x1xf32> to vector<8x512xf32>
    %33 = arith.addf %30, %32 : vector<8x512xf32>
    %c0_16 = arith.constant 0 : index
    %c0_17 = arith.constant 0 : index
    %34 = vector.load %arg5[%c0_16, %c0_17] : memref<8x512xf32, #tpu.memory_space<vmem>>, vector<8x512xf32>
    tpu.vector_store %arg5[%c0_16, %c0_17], %33 {strides = array<i32>} : memref<8x512xf32, #tpu.memory_space<vmem>>, vector<8x512xf32>,
    return
  }
}

module attributes {stable_mosaic.version = 11 : i64} {
  func.func @_fused_layer_kernel(%arg0: memref<72x128xbf16, #tpu.memory_space<vmem>>, %arg1: memref<16x72xbf16, #tpu.memory_space<vmem>>, %arg2: memref<16x1xf32, #tpu.memory_space<vmem>>, %arg3: memref<16x1xf32, #tpu.memory_space<vmem>>, %arg4: memref<16x1xf32, #tpu.memory_space<vmem>>, %arg5: memref<16x128xf32, #tpu.memory_space<vmem>>) attributes {dimension_semantics = [], scalar_prefetch = 0 : i64, scratch_operands = 0 : i64, tpu.core_type = #tpu.core_type<tc>} {
    %c0 = arith.constant 0 : index
    %c0_0 = arith.constant 0 : index
    %0 = vector.load %arg1[%c0, %c0_0] : memref<16x72xbf16, #tpu.memory_space<vmem>>, vector<16x72xbf16>
    %c0_1 = arith.constant 0 : index
    %c0_2 = arith.constant 0 : index
    %1 = vector.load %arg0[%c0_1, %c0_2] : memref<72x128xbf16, #tpu.memory_space<vmem>>, vector<72x128xbf16>
    %cst = arith.constant dense<0.000000e+00> : vector<16x128xf32>
    %2 = tpu.matmul %0, %1, %cst {dimension_numbers = #tpu.dot_dimension_numbers<[1], [0], [0], [1], [0, 0, 1, 1], [], []>} : vector<16x72xbf16>, vector<72x128xbf16>, vector<16x128xf32> -> vector<16x128xf32>
    %c0_3 = arith.constant 0 : index
    %c0_4 = arith.constant 0 : index
    %3 = vector.load %arg2[%c0_3, %c0_4] : memref<16x1xf32, #tpu.memory_space<vmem>>, vector<16x1xf32>
    %4 = vector.broadcast %3 : vector<16x1xf32> to vector<16x128xf32>
    %5 = arith.addf %2, %4 : vector<16x128xf32>
    %cst_5 = arith.constant 0.000000e+00 : f32
    %6 = vector.broadcast %cst_5 : f32 to vector<16x128xf32>
    %7 = arith.maximumf %5, %6 : vector<16x128xf32>
    %cst_6 = arith.constant dense<0.000000e+00> : vector<16xf32>
    %8 = vector.multi_reduction <add>, %7, %cst_6 [1] : vector<16x128xf32> to vector<16xf32>
    %9 = vector.shape_cast %8 : vector<16xf32> to vector<16x1xf32>
    %cst_7 = arith.constant 1.280000e+02 : f32
    %10 = vector.broadcast %cst_7 : f32 to vector<16x1xf32>
    %11 = arith.divf %9, %10 : vector<16x1xf32>
    %12 = arith.mulf %7, %7 : vector<16x128xf32>
    %cst_8 = arith.constant dense<0.000000e+00> : vector<16xf32>
    %13 = vector.multi_reduction <add>, %12, %cst_8 [1] : vector<16x128xf32> to vector<16xf32>
    %14 = vector.shape_cast %13 : vector<16xf32> to vector<16x1xf32>
    %cst_9 = arith.constant 1.280000e+02 : f32
    %15 = vector.broadcast %cst_9 : f32 to vector<16x1xf32>
    %16 = arith.divf %14, %15 : vector<16x1xf32>
    %17 = arith.mulf %11, %11 : vector<16x1xf32>
    %18 = arith.subf %16, %17 : vector<16x1xf32>
    %cst_10 = arith.constant 0.000000e+00 : f32
    %19 = vector.broadcast %cst_10 : f32 to vector<16x1xf32>
    %20 = arith.maximumf %18, %19 : vector<16x1xf32>
    %21 = vector.broadcast %11 : vector<16x1xf32> to vector<16x128xf32>
    %22 = arith.subf %7, %21 : vector<16x128xf32>
    %cst_11 = arith.constant 9.99999974E-6 : f32
    %23 = vector.broadcast %cst_11 : f32 to vector<16x1xf32>
    %24 = arith.addf %20, %23 : vector<16x1xf32>
    %25 = math.rsqrt %24 : vector<16x1xf32>
    %26 = vector.broadcast %25 : vector<16x1xf32> to vector<16x128xf32>
    %27 = arith.mulf %22, %26 : vector<16x128xf32>
    %c0_12 = arith.constant 0 : index
    %c0_13 = arith.constant 0 : index
    %28 = vector.load %arg3[%c0_12, %c0_13] : memref<16x1xf32, #tpu.memory_space<vmem>>, vector<16x1xf32>
    %29 = vector.broadcast %28 : vector<16x1xf32> to vector<16x128xf32>
    %30 = arith.mulf %27, %29 : vector<16x128xf32>
    %c0_14 = arith.constant 0 : index
    %c0_15 = arith.constant 0 : index
    %31 = vector.load %arg4[%c0_14, %c0_15] : memref<16x1xf32, #tpu.memory_space<vmem>>, vector<16x1xf32>
    %32 = vector.broadcast %31 : vector<16x1xf32> to vector<16x128xf32>
    %33 = arith.addf %30, %32 : vector<16x128xf32>
    %c0_16 = arith.constant 0 : index
    %c0_17 = arith.constant 0 : index
    %34 = vector.load %arg5[%c0_16, %c0_17] : memref<16x128xf32, #tpu.memory_space<vmem>>, vector<16x128xf32>
    tpu.vector_store %arg5[%c0_16, %c0_17], %33 {strides = array<i32>} : memref<16x128xf32, #tpu.memory_space<vmem>>, vector<16x128xf32>,
    return
  }
}

module attributes {stable_mosaic.version = 11 : i64} {
  func.func @_fused_layer_kernel(%arg0: memref<144x128xbf16, #tpu.memory_space<vmem>>, %arg1: memref<16x144xbf16, #tpu.memory_space<vmem>>, %arg2: memref<16x1xf32, #tpu.memory_space<vmem>>, %arg3: memref<16x1xf32, #tpu.memory_space<vmem>>, %arg4: memref<16x1xf32, #tpu.memory_space<vmem>>, %arg5: memref<16x128xf32, #tpu.memory_space<vmem>>) attributes {dimension_semantics = [], scalar_prefetch = 0 : i64, scratch_operands = 0 : i64, tpu.core_type = #tpu.core_type<tc>} {
    %c0 = arith.constant 0 : index
    %c0_0 = arith.constant 0 : index
    %0 = vector.load %arg1[%c0, %c0_0] : memref<16x144xbf16, #tpu.memory_space<vmem>>, vector<16x144xbf16>
    %c0_1 = arith.constant 0 : index
    %c0_2 = arith.constant 0 : index
    %1 = vector.load %arg0[%c0_1, %c0_2] : memref<144x128xbf16, #tpu.memory_space<vmem>>, vector<144x128xbf16>
    %cst = arith.constant dense<0.000000e+00> : vector<16x128xf32>
    %2 = tpu.matmul %0, %1, %cst {dimension_numbers = #tpu.dot_dimension_numbers<[1], [0], [0], [1], [0, 0, 1, 1], [], []>} : vector<16x144xbf16>, vector<144x128xbf16>, vector<16x128xf32> -> vector<16x128xf32>
    %c0_3 = arith.constant 0 : index
    %c0_4 = arith.constant 0 : index
    %3 = vector.load %arg2[%c0_3, %c0_4] : memref<16x1xf32, #tpu.memory_space<vmem>>, vector<16x1xf32>
    %4 = vector.broadcast %3 : vector<16x1xf32> to vector<16x128xf32>
    %5 = arith.addf %2, %4 : vector<16x128xf32>
    %cst_5 = arith.constant 0.000000e+00 : f32
    %6 = vector.broadcast %cst_5 : f32 to vector<16x128xf32>
    %7 = arith.maximumf %5, %6 : vector<16x128xf32>
    %cst_6 = arith.constant dense<0.000000e+00> : vector<16xf32>
    %8 = vector.multi_reduction <add>, %7, %cst_6 [1] : vector<16x128xf32> to vector<16xf32>
    %9 = vector.shape_cast %8 : vector<16xf32> to vector<16x1xf32>
    %cst_7 = arith.constant 1.280000e+02 : f32
    %10 = vector.broadcast %cst_7 : f32 to vector<16x1xf32>
    %11 = arith.divf %9, %10 : vector<16x1xf32>
    %12 = arith.mulf %7, %7 : vector<16x128xf32>
    %cst_8 = arith.constant dense<0.000000e+00> : vector<16xf32>
    %13 = vector.multi_reduction <add>, %12, %cst_8 [1] : vector<16x128xf32> to vector<16xf32>
    %14 = vector.shape_cast %13 : vector<16xf32> to vector<16x1xf32>
    %cst_9 = arith.constant 1.280000e+02 : f32
    %15 = vector.broadcast %cst_9 : f32 to vector<16x1xf32>
    %16 = arith.divf %14, %15 : vector<16x1xf32>
    %17 = arith.mulf %11, %11 : vector<16x1xf32>
    %18 = arith.subf %16, %17 : vector<16x1xf32>
    %cst_10 = arith.constant 0.000000e+00 : f32
    %19 = vector.broadcast %cst_10 : f32 to vector<16x1xf32>
    %20 = arith.maximumf %18, %19 : vector<16x1xf32>
    %21 = vector.broadcast %11 : vector<16x1xf32> to vector<16x128xf32>
    %22 = arith.subf %7, %21 : vector<16x128xf32>
    %cst_11 = arith.constant 9.99999974E-6 : f32
    %23 = vector.broadcast %cst_11 : f32 to vector<16x1xf32>
    %24 = arith.addf %20, %23 : vector<16x1xf32>
    %25 = math.rsqrt %24 : vector<16x1xf32>
    %26 = vector.broadcast %25 : vector<16x1xf32> to vector<16x128xf32>
    %27 = arith.mulf %22, %26 : vector<16x128xf32>
    %c0_12 = arith.constant 0 : index
    %c0_13 = arith.constant 0 : index
    %28 = vector.load %arg3[%c0_12, %c0_13] : memref<16x1xf32, #tpu.memory_space<vmem>>, vector<16x1xf32>
    %29 = vector.broadcast %28 : vector<16x1xf32> to vector<16x128xf32>
    %30 = arith.mulf %27, %29 : vector<16x128xf32>
    %c0_14 = arith.constant 0 : index
    %c0_15 = arith.constant 0 : index
    %31 = vector.load %arg4[%c0_14, %c0_15] : memref<16x1xf32, #tpu.memory_space<vmem>>, vector<16x1xf32>
    %32 = vector.broadcast %31 : vector<16x1xf32> to vector<16x128xf32>
    %33 = arith.addf %30, %32 : vector<16x128xf32>
    %c0_16 = arith.constant 0 : index
    %c0_17 = arith.constant 0 : index
    %34 = vector.load %arg5[%c0_16, %c0_17] : memref<16x128xf32, #tpu.memory_space<vmem>>, vector<16x128xf32>
    tpu.vector_store %arg5[%c0_16, %c0_17], %33 {strides = array<i32>} : memref<16x128xf32, #tpu.memory_space<vmem>>, vector<16x128xf32>,
    return
  }
}

module attributes {stable_mosaic.version = 11 : i64} {
  func.func @_fused_layer_kernel(%arg0: memref<144x32xbf16, #tpu.memory_space<vmem>>, %arg1: memref<32x144xbf16, #tpu.memory_space<vmem>>, %arg2: memref<32x1xf32, #tpu.memory_space<vmem>>, %arg3: memref<32x1xf32, #tpu.memory_space<vmem>>, %arg4: memref<32x1xf32, #tpu.memory_space<vmem>>, %arg5: memref<32x32xf32, #tpu.memory_space<vmem>>) attributes {dimension_semantics = [], scalar_prefetch = 0 : i64, scratch_operands = 0 : i64, tpu.core_type = #tpu.core_type<tc>} {
    %c0 = arith.constant 0 : index
    %c0_0 = arith.constant 0 : index
    %0 = vector.load %arg1[%c0, %c0_0] : memref<32x144xbf16, #tpu.memory_space<vmem>>, vector<32x144xbf16>
    %c0_1 = arith.constant 0 : index
    %c0_2 = arith.constant 0 : index
    %1 = vector.load %arg0[%c0_1, %c0_2] : memref<144x32xbf16, #tpu.memory_space<vmem>>, vector<144x32xbf16>
    %cst = arith.constant dense<0.000000e+00> : vector<32x32xf32>
    %2 = tpu.matmul %0, %1, %cst {dimension_numbers = #tpu.dot_dimension_numbers<[1], [0], [0], [1], [0, 0, 1, 1], [], []>} : vector<32x144xbf16>, vector<144x32xbf16>, vector<32x32xf32> -> vector<32x32xf32>
    %c0_3 = arith.constant 0 : index
    %c0_4 = arith.constant 0 : index
    %3 = vector.load %arg2[%c0_3, %c0_4] : memref<32x1xf32, #tpu.memory_space<vmem>>, vector<32x1xf32>
    %4 = vector.broadcast %3 : vector<32x1xf32> to vector<32x32xf32>
    %5 = arith.addf %2, %4 : vector<32x32xf32>
    %cst_5 = arith.constant 0.000000e+00 : f32
    %6 = vector.broadcast %cst_5 : f32 to vector<32x32xf32>
    %7 = arith.maximumf %5, %6 : vector<32x32xf32>
    %cst_6 = arith.constant dense<0.000000e+00> : vector<32xf32>
    %8 = vector.multi_reduction <add>, %7, %cst_6 [1] : vector<32x32xf32> to vector<32xf32>
    %9 = vector.shape_cast %8 : vector<32xf32> to vector<32x1xf32>
    %cst_7 = arith.constant 3.200000e+01 : f32
    %10 = vector.broadcast %cst_7 : f32 to vector<32x1xf32>
    %11 = arith.divf %9, %10 : vector<32x1xf32>
    %12 = arith.mulf %7, %7 : vector<32x32xf32>
    %cst_8 = arith.constant dense<0.000000e+00> : vector<32xf32>
    %13 = vector.multi_reduction <add>, %12, %cst_8 [1] : vector<32x32xf32> to vector<32xf32>
    %14 = vector.shape_cast %13 : vector<32xf32> to vector<32x1xf32>
    %cst_9 = arith.constant 3.200000e+01 : f32
    %15 = vector.broadcast %cst_9 : f32 to vector<32x1xf32>
    %16 = arith.divf %14, %15 : vector<32x1xf32>
    %17 = arith.mulf %11, %11 : vector<32x1xf32>
    %18 = arith.subf %16, %17 : vector<32x1xf32>
    %cst_10 = arith.constant 0.000000e+00 : f32
    %19 = vector.broadcast %cst_10 : f32 to vector<32x1xf32>
    %20 = arith.maximumf %18, %19 : vector<32x1xf32>
    %21 = vector.broadcast %11 : vector<32x1xf32> to vector<32x32xf32>
    %22 = arith.subf %7, %21 : vector<32x32xf32>
    %cst_11 = arith.constant 9.99999974E-6 : f32
    %23 = vector.broadcast %cst_11 : f32 to vector<32x1xf32>
    %24 = arith.addf %20, %23 : vector<32x1xf32>
    %25 = math.rsqrt %24 : vector<32x1xf32>
    %26 = vector.broadcast %25 : vector<32x1xf32> to vector<32x32xf32>
    %27 = arith.mulf %22, %26 : vector<32x32xf32>
    %c0_12 = arith.constant 0 : index
    %c0_13 = arith.constant 0 : index
    %28 = vector.load %arg3[%c0_12, %c0_13] : memref<32x1xf32, #tpu.memory_space<vmem>>, vector<32x1xf32>
    %29 = vector.broadcast %28 : vector<32x1xf32> to vector<32x32xf32>
    %30 = arith.mulf %27, %29 : vector<32x32xf32>
    %c0_14 = arith.constant 0 : index
    %c0_15 = arith.constant 0 : index
    %31 = vector.load %arg4[%c0_14, %c0_15] : memref<32x1xf32, #tpu.memory_space<vmem>>, vector<32x1xf32>
    %32 = vector.broadcast %31 : vector<32x1xf32> to vector<32x32xf32>
    %33 = arith.addf %30, %32 : vector<32x32xf32>
    %c0_16 = arith.constant 0 : index
    %c0_17 = arith.constant 0 : index
    %34 = vector.load %arg5[%c0_16, %c0_17] : memref<32x32xf32, #tpu.memory_space<vmem>>, vector<32x32xf32>
    tpu.vector_store %arg5[%c0_16, %c0_17], %33 {strides = array<i32>} : memref<32x32xf32, #tpu.memory_space<vmem>>, vector<32x32xf32>,
    return
  }
}

module attributes {stable_mosaic.version = 11 : i64} {
  func.func @_fused_layer_kernel(%arg0: memref<288x32xbf16, #tpu.memory_space<vmem>>, %arg1: memref<32x288xbf16, #tpu.memory_space<vmem>>, %arg2: memref<32x1xf32, #tpu.memory_space<vmem>>, %arg3: memref<32x1xf32, #tpu.memory_space<vmem>>, %arg4: memref<32x1xf32, #tpu.memory_space<vmem>>, %arg5: memref<32x32xf32, #tpu.memory_space<vmem>>) attributes {dimension_semantics = [], scalar_prefetch = 0 : i64, scratch_operands = 0 : i64, tpu.core_type = #tpu.core_type<tc>} {
    %c0 = arith.constant 0 : index
    %c0_0 = arith.constant 0 : index
    %0 = vector.load %arg1[%c0, %c0_0] : memref<32x288xbf16, #tpu.memory_space<vmem>>, vector<32x288xbf16>
    %c0_1 = arith.constant 0 : index
    %c0_2 = arith.constant 0 : index
    %1 = vector.load %arg0[%c0_1, %c0_2] : memref<288x32xbf16, #tpu.memory_space<vmem>>, vector<288x32xbf16>
    %cst = arith.constant dense<0.000000e+00> : vector<32x32xf32>
    %2 = tpu.matmul %0, %1, %cst {dimension_numbers = #tpu.dot_dimension_numbers<[1], [0], [0], [1], [0, 0, 1, 1], [], []>} : vector<32x288xbf16>, vector<288x32xbf16>, vector<32x32xf32> -> vector<32x32xf32>
    %c0_3 = arith.constant 0 : index
    %c0_4 = arith.constant 0 : index
    %3 = vector.load %arg2[%c0_3, %c0_4] : memref<32x1xf32, #tpu.memory_space<vmem>>, vector<32x1xf32>
    %4 = vector.broadcast %3 : vector<32x1xf32> to vector<32x32xf32>
    %5 = arith.addf %2, %4 : vector<32x32xf32>
    %cst_5 = arith.constant 0.000000e+00 : f32
    %6 = vector.broadcast %cst_5 : f32 to vector<32x32xf32>
    %7 = arith.maximumf %5, %6 : vector<32x32xf32>
    %cst_6 = arith.constant dense<0.000000e+00> : vector<32xf32>
    %8 = vector.multi_reduction <add>, %7, %cst_6 [1] : vector<32x32xf32> to vector<32xf32>
    %9 = vector.shape_cast %8 : vector<32xf32> to vector<32x1xf32>
    %cst_7 = arith.constant 3.200000e+01 : f32
    %10 = vector.broadcast %cst_7 : f32 to vector<32x1xf32>
    %11 = arith.divf %9, %10 : vector<32x1xf32>
    %12 = arith.mulf %7, %7 : vector<32x32xf32>
    %cst_8 = arith.constant dense<0.000000e+00> : vector<32xf32>
    %13 = vector.multi_reduction <add>, %12, %cst_8 [1] : vector<32x32xf32> to vector<32xf32>
    %14 = vector.shape_cast %13 : vector<32xf32> to vector<32x1xf32>
    %cst_9 = arith.constant 3.200000e+01 : f32
    %15 = vector.broadcast %cst_9 : f32 to vector<32x1xf32>
    %16 = arith.divf %14, %15 : vector<32x1xf32>
    %17 = arith.mulf %11, %11 : vector<32x1xf32>
    %18 = arith.subf %16, %17 : vector<32x1xf32>
    %cst_10 = arith.constant 0.000000e+00 : f32
    %19 = vector.broadcast %cst_10 : f32 to vector<32x1xf32>
    %20 = arith.maximumf %18, %19 : vector<32x1xf32>
    %21 = vector.broadcast %11 : vector<32x1xf32> to vector<32x32xf32>
    %22 = arith.subf %7, %21 : vector<32x32xf32>
    %cst_11 = arith.constant 9.99999974E-6 : f32
    %23 = vector.broadcast %cst_11 : f32 to vector<32x1xf32>
    %24 = arith.addf %20, %23 : vector<32x1xf32>
    %25 = math.rsqrt %24 : vector<32x1xf32>
    %26 = vector.broadcast %25 : vector<32x1xf32> to vector<32x32xf32>
    %27 = arith.mulf %22, %26 : vector<32x32xf32>
    %c0_12 = arith.constant 0 : index
    %c0_13 = arith.constant 0 : index
    %28 = vector.load %arg3[%c0_12, %c0_13] : memref<32x1xf32, #tpu.memory_space<vmem>>, vector<32x1xf32>
    %29 = vector.broadcast %28 : vector<32x1xf32> to vector<32x32xf32>
    %30 = arith.mulf %27, %29 : vector<32x32xf32>
    %c0_14 = arith.constant 0 : index
    %c0_15 = arith.constant 0 : index
    %31 = vector.load %arg4[%c0_14, %c0_15] : memref<32x1xf32, #tpu.memory_space<vmem>>, vector<32x1xf32>
    %32 = vector.broadcast %31 : vector<32x1xf32> to vector<32x32xf32>
    %33 = arith.addf %30, %32 : vector<32x32xf32>
    %c0_16 = arith.constant 0 : index
    %c0_17 = arith.constant 0 : index
    %34 = vector.load %arg5[%c0_16, %c0_17] : memref<32x32xf32, #tpu.memory_space<vmem>>, vector<32x32xf32>
    tpu.vector_store %arg5[%c0_16, %c0_17], %33 {strides = array<i32>} : memref<32x32xf32, #tpu.memory_space<vmem>>, vector<32x32xf32>,
    return
  }
}

module attributes {stable_mosaic.version = 11 : i64} {
  func.func @_fused_layer_kernel(%arg0: memref<288x8xbf16, #tpu.memory_space<vmem>>, %arg1: memref<64x288xbf16, #tpu.memory_space<vmem>>, %arg2: memref<64x1xf32, #tpu.memory_space<vmem>>, %arg3: memref<64x1xf32, #tpu.memory_space<vmem>>, %arg4: memref<64x1xf32, #tpu.memory_space<vmem>>, %arg5: memref<64x8xf32, #tpu.memory_space<vmem>>) attributes {dimension_semantics = [], scalar_prefetch = 0 : i64, scratch_operands = 0 : i64, tpu.core_type = #tpu.core_type<tc>} {
    %c0 = arith.constant 0 : index
    %c0_0 = arith.constant 0 : index
    %0 = vector.load %arg1[%c0, %c0_0] : memref<64x288xbf16, #tpu.memory_space<vmem>>, vector<64x288xbf16>
    %c0_1 = arith.constant 0 : index
    %c0_2 = arith.constant 0 : index
    %1 = vector.load %arg0[%c0_1, %c0_2] : memref<288x8xbf16, #tpu.memory_space<vmem>>, vector<288x8xbf16>
    %cst = arith.constant dense<0.000000e+00> : vector<64x8xf32>
    %2 = tpu.matmul %0, %1, %cst {dimension_numbers = #tpu.dot_dimension_numbers<[1], [0], [0], [1], [0, 0, 1, 1], [], []>} : vector<64x288xbf16>, vector<288x8xbf16>, vector<64x8xf32> -> vector<64x8xf32>
    %c0_3 = arith.constant 0 : index
    %c0_4 = arith.constant 0 : index
    %3 = vector.load %arg2[%c0_3, %c0_4] : memref<64x1xf32, #tpu.memory_space<vmem>>, vector<64x1xf32>
    %4 = vector.broadcast %3 : vector<64x1xf32> to vector<64x8xf32>
    %5 = arith.addf %2, %4 : vector<64x8xf32>
    %cst_5 = arith.constant 0.000000e+00 : f32
    %6 = vector.broadcast %cst_5 : f32 to vector<64x8xf32>
    %7 = arith.maximumf %5, %6 : vector<64x8xf32>
    %cst_6 = arith.constant dense<0.000000e+00> : vector<64xf32>
    %8 = vector.multi_reduction <add>, %7, %cst_6 [1] : vector<64x8xf32> to vector<64xf32>
    %9 = vector.shape_cast %8 : vector<64xf32> to vector<64x1xf32>
    %cst_7 = arith.constant 8.000000e+00 : f32
    %10 = vector.broadcast %cst_7 : f32 to vector<64x1xf32>
    %11 = arith.divf %9, %10 : vector<64x1xf32>
    %12 = arith.mulf %7, %7 : vector<64x8xf32>
    %cst_8 = arith.constant dense<0.000000e+00> : vector<64xf32>
    %13 = vector.multi_reduction <add>, %12, %cst_8 [1] : vector<64x8xf32> to vector<64xf32>
    %14 = vector.shape_cast %13 : vector<64xf32> to vector<64x1xf32>
    %cst_9 = arith.constant 8.000000e+00 : f32
    %15 = vector.broadcast %cst_9 : f32 to vector<64x1xf32>
    %16 = arith.divf %14, %15 : vector<64x1xf32>
    %17 = arith.mulf %11, %11 : vector<64x1xf32>
    %18 = arith.subf %16, %17 : vector<64x1xf32>
    %cst_10 = arith.constant 0.000000e+00 : f32
    %19 = vector.broadcast %cst_10 : f32 to vector<64x1xf32>
    %20 = arith.maximumf %18, %19 : vector<64x1xf32>
    %21 = vector.broadcast %11 : vector<64x1xf32> to vector<64x8xf32>
    %22 = arith.subf %7, %21 : vector<64x8xf32>
    %cst_11 = arith.constant 9.99999974E-6 : f32
    %23 = vector.broadcast %cst_11 : f32 to vector<64x1xf32>
    %24 = arith.addf %20, %23 : vector<64x1xf32>
    %25 = math.rsqrt %24 : vector<64x1xf32>
    %26 = vector.broadcast %25 : vector<64x1xf32> to vector<64x8xf32>
    %27 = arith.mulf %22, %26 : vector<64x8xf32>
    %c0_12 = arith.constant 0 : index
    %c0_13 = arith.constant 0 : index
    %28 = vector.load %arg3[%c0_12, %c0_13] : memref<64x1xf32, #tpu.memory_space<vmem>>, vector<64x1xf32>
    %29 = vector.broadcast %28 : vector<64x1xf32> to vector<64x8xf32>
    %30 = arith.mulf %27, %29 : vector<64x8xf32>
    %c0_14 = arith.constant 0 : index
    %c0_15 = arith.constant 0 : index
    %31 = vector.load %arg4[%c0_14, %c0_15] : memref<64x1xf32, #tpu.memory_space<vmem>>, vector<64x1xf32>
    %32 = vector.broadcast %31 : vector<64x1xf32> to vector<64x8xf32>
    %33 = arith.addf %30, %32 : vector<64x8xf32>
    %c0_16 = arith.constant 0 : index
    %c0_17 = arith.constant 0 : index
    %34 = vector.load %arg5[%c0_16, %c0_17] : memref<64x8xf32, #tpu.memory_space<vmem>>, vector<64x8xf32>
    tpu.vector_store %arg5[%c0_16, %c0_17], %33 {strides = array<i32>} : memref<64x8xf32, #tpu.memory_space<vmem>>, vector<64x8xf32>,
    return
  }
}

module attributes {stable_mosaic.version = 11 : i64} {
  func.func @_fused_layer_kernel(%arg0: memref<576x8xbf16, #tpu.memory_space<vmem>>, %arg1: memref<64x576xbf16, #tpu.memory_space<vmem>>, %arg2: memref<64x1xf32, #tpu.memory_space<vmem>>, %arg3: memref<64x1xf32, #tpu.memory_space<vmem>>, %arg4: memref<64x1xf32, #tpu.memory_space<vmem>>, %arg5: memref<64x8xf32, #tpu.memory_space<vmem>>) attributes {dimension_semantics = [], scalar_prefetch = 0 : i64, scratch_operands = 0 : i64, tpu.core_type = #tpu.core_type<tc>} {
    %c0 = arith.constant 0 : index
    %c0_0 = arith.constant 0 : index
    %0 = vector.load %arg1[%c0, %c0_0] : memref<64x576xbf16, #tpu.memory_space<vmem>>, vector<64x576xbf16>
    %c0_1 = arith.constant 0 : index
    %c0_2 = arith.constant 0 : index
    %1 = vector.load %arg0[%c0_1, %c0_2] : memref<576x8xbf16, #tpu.memory_space<vmem>>, vector<576x8xbf16>
    %cst = arith.constant dense<0.000000e+00> : vector<64x8xf32>
    %2 = tpu.matmul %0, %1, %cst {dimension_numbers = #tpu.dot_dimension_numbers<[1], [0], [0], [1], [0, 0, 1, 1], [], []>} : vector<64x576xbf16>, vector<576x8xbf16>, vector<64x8xf32> -> vector<64x8xf32>
    %c0_3 = arith.constant 0 : index
    %c0_4 = arith.constant 0 : index
    %3 = vector.load %arg2[%c0_3, %c0_4] : memref<64x1xf32, #tpu.memory_space<vmem>>, vector<64x1xf32>
    %4 = vector.broadcast %3 : vector<64x1xf32> to vector<64x8xf32>
    %5 = arith.addf %2, %4 : vector<64x8xf32>
    %cst_5 = arith.constant 0.000000e+00 : f32
    %6 = vector.broadcast %cst_5 : f32 to vector<64x8xf32>
    %7 = arith.maximumf %5, %6 : vector<64x8xf32>
    %cst_6 = arith.constant dense<0.000000e+00> : vector<64xf32>
    %8 = vector.multi_reduction <add>, %7, %cst_6 [1] : vector<64x8xf32> to vector<64xf32>
    %9 = vector.shape_cast %8 : vector<64xf32> to vector<64x1xf32>
    %cst_7 = arith.constant 8.000000e+00 : f32
    %10 = vector.broadcast %cst_7 : f32 to vector<64x1xf32>
    %11 = arith.divf %9, %10 : vector<64x1xf32>
    %12 = arith.mulf %7, %7 : vector<64x8xf32>
    %cst_8 = arith.constant dense<0.000000e+00> : vector<64xf32>
    %13 = vector.multi_reduction <add>, %12, %cst_8 [1] : vector<64x8xf32> to vector<64xf32>
    %14 = vector.shape_cast %13 : vector<64xf32> to vector<64x1xf32>
    %cst_9 = arith.constant 8.000000e+00 : f32
    %15 = vector.broadcast %cst_9 : f32 to vector<64x1xf32>
    %16 = arith.divf %14, %15 : vector<64x1xf32>
    %17 = arith.mulf %11, %11 : vector<64x1xf32>
    %18 = arith.subf %16, %17 : vector<64x1xf32>
    %cst_10 = arith.constant 0.000000e+00 : f32
    %19 = vector.broadcast %cst_10 : f32 to vector<64x1xf32>
    %20 = arith.maximumf %18, %19 : vector<64x1xf32>
    %21 = vector.broadcast %11 : vector<64x1xf32> to vector<64x8xf32>
    %22 = arith.subf %7, %21 : vector<64x8xf32>
    %cst_11 = arith.constant 9.99999974E-6 : f32
    %23 = vector.broadcast %cst_11 : f32 to vector<64x1xf32>
    %24 = arith.addf %20, %23 : vector<64x1xf32>
    %25 = math.rsqrt %24 : vector<64x1xf32>
    %26 = vector.broadcast %25 : vector<64x1xf32> to vector<64x8xf32>
    %27 = arith.mulf %22, %26 : vector<64x8xf32>
    %c0_12 = arith.constant 0 : index
    %c0_13 = arith.constant 0 : index
    %28 = vector.load %arg3[%c0_12, %c0_13] : memref<64x1xf32, #tpu.memory_space<vmem>>, vector<64x1xf32>
    %29 = vector.broadcast %28 : vector<64x1xf32> to vector<64x8xf32>
    %30 = arith.mulf %27, %29 : vector<64x8xf32>
    %c0_14 = arith.constant 0 : index
    %c0_15 = arith.constant 0 : index
    %31 = vector.load %arg4[%c0_14, %c0_15] : memref<64x1xf32, #tpu.memory_space<vmem>>, vector<64x1xf32>
    %32 = vector.broadcast %31 : vector<64x1xf32> to vector<64x8xf32>
    %33 = arith.addf %30, %32 : vector<64x8xf32>
    %c0_16 = arith.constant 0 : index
    %c0_17 = arith.constant 0 : index
    %34 = vector.load %arg5[%c0_16, %c0_17] : memref<64x8xf32, #tpu.memory_space<vmem>>, vector<64x8xf32>
    tpu.vector_store %arg5[%c0_16, %c0_17], %33 {strides = array<i32>} : memref<64x8xf32, #tpu.memory_space<vmem>>, vector<64x8xf32>,
    return
  }
}

module attributes {stable_mosaic.version = 11 : i64} {
  func.func @_fused_layer_kernel(%arg0: memref<576x8xbf16, #tpu.memory_space<vmem>>, %arg1: memref<128x576xbf16, #tpu.memory_space<vmem>>, %arg2: memref<128x1xf32, #tpu.memory_space<vmem>>, %arg3: memref<128x1xf32, #tpu.memory_space<vmem>>, %arg4: memref<128x1xf32, #tpu.memory_space<vmem>>, %arg5: memref<128x8xf32, #tpu.memory_space<vmem>>) attributes {dimension_semantics = [], scalar_prefetch = 0 : i64, scratch_operands = 0 : i64, tpu.core_type = #tpu.core_type<tc>} {
    %c0 = arith.constant 0 : index
    %c0_0 = arith.constant 0 : index
    %0 = vector.load %arg1[%c0, %c0_0] : memref<128x576xbf16, #tpu.memory_space<vmem>>, vector<128x576xbf16>
    %c0_1 = arith.constant 0 : index
    %c0_2 = arith.constant 0 : index
    %1 = vector.load %arg0[%c0_1, %c0_2] : memref<576x8xbf16, #tpu.memory_space<vmem>>, vector<576x8xbf16>
    %cst = arith.constant dense<0.000000e+00> : vector<128x8xf32>
    %2 = tpu.matmul %0, %1, %cst {dimension_numbers = #tpu.dot_dimension_numbers<[1], [0], [0], [1], [0, 0, 1, 1], [], []>} : vector<128x576xbf16>, vector<576x8xbf16>, vector<128x8xf32> -> vector<128x8xf32>
    %c0_3 = arith.constant 0 : index
    %c0_4 = arith.constant 0 : index
    %3 = vector.load %arg2[%c0_3, %c0_4] : memref<128x1xf32, #tpu.memory_space<vmem>>, vector<128x1xf32>
    %4 = vector.broadcast %3 : vector<128x1xf32> to vector<128x8xf32>
    %5 = arith.addf %2, %4 : vector<128x8xf32>
    %cst_5 = arith.constant 0.000000e+00 : f32
    %6 = vector.broadcast %cst_5 : f32 to vector<128x8xf32>
    %7 = arith.maximumf %5, %6 : vector<128x8xf32>
    %cst_6 = arith.constant dense<0.000000e+00> : vector<128xf32>
    %8 = vector.multi_reduction <add>, %7, %cst_6 [1] : vector<128x8xf32> to vector<128xf32>
    %9 = vector.shape_cast %8 : vector<128xf32> to vector<128x1xf32>
    %cst_7 = arith.constant 8.000000e+00 : f32
    %10 = vector.broadcast %cst_7 : f32 to vector<128x1xf32>
    %11 = arith.divf %9, %10 : vector<128x1xf32>
    %12 = arith.mulf %7, %7 : vector<128x8xf32>
    %cst_8 = arith.constant dense<0.000000e+00> : vector<128xf32>
    %13 = vector.multi_reduction <add>, %12, %cst_8 [1] : vector<128x8xf32> to vector<128xf32>
    %14 = vector.shape_cast %13 : vector<128xf32> to vector<128x1xf32>
    %cst_9 = arith.constant 8.000000e+00 : f32
    %15 = vector.broadcast %cst_9 : f32 to vector<128x1xf32>
    %16 = arith.divf %14, %15 : vector<128x1xf32>
    %17 = arith.mulf %11, %11 : vector<128x1xf32>
    %18 = arith.subf %16, %17 : vector<128x1xf32>
    %cst_10 = arith.constant 0.000000e+00 : f32
    %19 = vector.broadcast %cst_10 : f32 to vector<128x1xf32>
    %20 = arith.maximumf %18, %19 : vector<128x1xf32>
    %21 = vector.broadcast %11 : vector<128x1xf32> to vector<128x8xf32>
    %22 = arith.subf %7, %21 : vector<128x8xf32>
    %cst_11 = arith.constant 9.99999974E-6 : f32
    %23 = vector.broadcast %cst_11 : f32 to vector<128x1xf32>
    %24 = arith.addf %20, %23 : vector<128x1xf32>
    %25 = math.rsqrt %24 : vector<128x1xf32>
    %26 = vector.broadcast %25 : vector<128x1xf32> to vector<128x8xf32>
    %27 = arith.mulf %22, %26 : vector<128x8xf32>
    %c0_12 = arith.constant 0 : index
    %c0_13 = arith.constant 0 : index
    %28 = vector.load %arg3[%c0_12, %c0_13] : memref<128x1xf32, #tpu.memory_space<vmem>>, vector<128x1xf32>
    %29 = vector.broadcast %28 : vector<128x1xf32> to vector<128x8xf32>
    %30 = arith.mulf %27, %29 : vector<128x8xf32>
    %c0_14 = arith.constant 0 : index
    %c0_15 = arith.constant 0 : index
    %31 = vector.load %arg4[%c0_14, %c0_15] : memref<128x1xf32, #tpu.memory_space<vmem>>, vector<128x1xf32>
    %32 = vector.broadcast %31 : vector<128x1xf32> to vector<128x8xf32>
    %33 = arith.addf %30, %32 : vector<128x8xf32>
    %c0_16 = arith.constant 0 : index
    %c0_17 = arith.constant 0 : index
    %34 = vector.load %arg5[%c0_16, %c0_17] : memref<128x8xf32, #tpu.memory_space<vmem>>, vector<128x8xf32>
    tpu.vector_store %arg5[%c0_16, %c0_17], %33 {strides = array<i32>} : memref<128x8xf32, #tpu.memory_space<vmem>>, vector<128x8xf32>,
    return
  }
}

module attributes {stable_mosaic.version = 11 : i64} {
  func.func @_fused_layer_kernel(%arg0: memref<1152x8xbf16, #tpu.memory_space<vmem>>, %arg1: memref<128x1152xbf16, #tpu.memory_space<vmem>>, %arg2: memref<128x1xf32, #tpu.memory_space<vmem>>, %arg3: memref<128x1xf32, #tpu.memory_space<vmem>>, %arg4: memref<128x1xf32, #tpu.memory_space<vmem>>, %arg5: memref<128x8xf32, #tpu.memory_space<vmem>>) attributes {dimension_semantics = [], scalar_prefetch = 0 : i64, scratch_operands = 0 : i64, tpu.core_type = #tpu.core_type<tc>} {
    %c0 = arith.constant 0 : index
    %c0_0 = arith.constant 0 : index
    %0 = vector.load %arg1[%c0, %c0_0] : memref<128x1152xbf16, #tpu.memory_space<vmem>>, vector<128x1152xbf16>
    %c0_1 = arith.constant 0 : index
    %c0_2 = arith.constant 0 : index
    %1 = vector.load %arg0[%c0_1, %c0_2] : memref<1152x8xbf16, #tpu.memory_space<vmem>>, vector<1152x8xbf16>
    %cst = arith.constant dense<0.000000e+00> : vector<128x8xf32>
    %2 = tpu.matmul %0, %1, %cst {dimension_numbers = #tpu.dot_dimension_numbers<[1], [0], [0], [1], [0, 0, 1, 1], [], []>} : vector<128x1152xbf16>, vector<1152x8xbf16>, vector<128x8xf32> -> vector<128x8xf32>
    %c0_3 = arith.constant 0 : index
    %c0_4 = arith.constant 0 : index
    %3 = vector.load %arg2[%c0_3, %c0_4] : memref<128x1xf32, #tpu.memory_space<vmem>>, vector<128x1xf32>
    %4 = vector.broadcast %3 : vector<128x1xf32> to vector<128x8xf32>
    %5 = arith.addf %2, %4 : vector<128x8xf32>
    %cst_5 = arith.constant 0.000000e+00 : f32
    %6 = vector.broadcast %cst_5 : f32 to vector<128x8xf32>
    %7 = arith.maximumf %5, %6 : vector<128x8xf32>
    %cst_6 = arith.constant dense<0.000000e+00> : vector<128xf32>
    %8 = vector.multi_reduction <add>, %7, %cst_6 [1] : vector<128x8xf32> to vector<128xf32>
    %9 = vector.shape_cast %8 : vector<128xf32> to vector<128x1xf32>
    %cst_7 = arith.constant 8.000000e+00 : f32
    %10 = vector.broadcast %cst_7 : f32 to vector<128x1xf32>
    %11 = arith.divf %9, %10 : vector<128x1xf32>
    %12 = arith.mulf %7, %7 : vector<128x8xf32>
    %cst_8 = arith.constant dense<0.000000e+00> : vector<128xf32>
    %13 = vector.multi_reduction <add>, %12, %cst_8 [1] : vector<128x8xf32> to vector<128xf32>
    %14 = vector.shape_cast %13 : vector<128xf32> to vector<128x1xf32>
    %cst_9 = arith.constant 8.000000e+00 : f32
    %15 = vector.broadcast %cst_9 : f32 to vector<128x1xf32>
    %16 = arith.divf %14, %15 : vector<128x1xf32>
    %17 = arith.mulf %11, %11 : vector<128x1xf32>
    %18 = arith.subf %16, %17 : vector<128x1xf32>
    %cst_10 = arith.constant 0.000000e+00 : f32
    %19 = vector.broadcast %cst_10 : f32 to vector<128x1xf32>
    %20 = arith.maximumf %18, %19 : vector<128x1xf32>
    %21 = vector.broadcast %11 : vector<128x1xf32> to vector<128x8xf32>
    %22 = arith.subf %7, %21 : vector<128x8xf32>
    %cst_11 = arith.constant 9.99999974E-6 : f32
    %23 = vector.broadcast %cst_11 : f32 to vector<128x1xf32>
    %24 = arith.addf %20, %23 : vector<128x1xf32>
    %25 = math.rsqrt %24 : vector<128x1xf32>
    %26 = vector.broadcast %25 : vector<128x1xf32> to vector<128x8xf32>
    %27 = arith.mulf %22, %26 : vector<128x8xf32>
    %c0_12 = arith.constant 0 : index
    %c0_13 = arith.constant 0 : index
    %28 = vector.load %arg3[%c0_12, %c0_13] : memref<128x1xf32, #tpu.memory_space<vmem>>, vector<128x1xf32>
    %29 = vector.broadcast %28 : vector<128x1xf32> to vector<128x8xf32>
    %30 = arith.mulf %27, %29 : vector<128x8xf32>
    %c0_14 = arith.constant 0 : index
    %c0_15 = arith.constant 0 : index
    %31 = vector.load %arg4[%c0_14, %c0_15] : memref<128x1xf32, #tpu.memory_space<vmem>>, vector<128x1xf32>
    %32 = vector.broadcast %31 : vector<128x1xf32> to vector<128x8xf32>
    %33 = arith.addf %30, %32 : vector<128x8xf32>
    %c0_16 = arith.constant 0 : index
    %c0_17 = arith.constant 0 : index
    %34 = vector.load %arg5[%c0_16, %c0_17] : memref<128x8xf32, #tpu.memory_space<vmem>>, vector<128x8xf32>
    tpu.vector_store %arg5[%c0_16, %c0_17], %33 {strides = array<i32>} : memref<128x8xf32, #tpu.memory_space<vmem>>, vector<128x8xf32>,
    return
  }
}

module attributes {stable_mosaic.version = 11 : i64} {
  func.func @_fused_layer_kernel(%arg0: memref<1152x8xbf16, #tpu.memory_space<vmem>>, %arg1: memref<64x1152xbf16, #tpu.memory_space<vmem>>, %arg2: memref<64x1xf32, #tpu.memory_space<vmem>>, %arg3: memref<64x1xf32, #tpu.memory_space<vmem>>, %arg4: memref<64x1xf32, #tpu.memory_space<vmem>>, %arg5: memref<64x8xf32, #tpu.memory_space<vmem>>) attributes {dimension_semantics = [], scalar_prefetch = 0 : i64, scratch_operands = 0 : i64, tpu.core_type = #tpu.core_type<tc>} {
    %c0 = arith.constant 0 : index
    %c0_0 = arith.constant 0 : index
    %0 = vector.load %arg1[%c0, %c0_0] : memref<64x1152xbf16, #tpu.memory_space<vmem>>, vector<64x1152xbf16>
    %c0_1 = arith.constant 0 : index
    %c0_2 = arith.constant 0 : index
    %1 = vector.load %arg0[%c0_1, %c0_2] : memref<1152x8xbf16, #tpu.memory_space<vmem>>, vector<1152x8xbf16>
    %cst = arith.constant dense<0.000000e+00> : vector<64x8xf32>
    %2 = tpu.matmul %0, %1, %cst {dimension_numbers = #tpu.dot_dimension_numbers<[1], [0], [0], [1], [0, 0, 1, 1], [], []>} : vector<64x1152xbf16>, vector<1152x8xbf16>, vector<64x8xf32> -> vector<64x8xf32>
    %c0_3 = arith.constant 0 : index
    %c0_4 = arith.constant 0 : index
    %3 = vector.load %arg2[%c0_3, %c0_4] : memref<64x1xf32, #tpu.memory_space<vmem>>, vector<64x1xf32>
    %4 = vector.broadcast %3 : vector<64x1xf32> to vector<64x8xf32>
    %5 = arith.addf %2, %4 : vector<64x8xf32>
    %cst_5 = arith.constant 0.000000e+00 : f32
    %6 = vector.broadcast %cst_5 : f32 to vector<64x8xf32>
    %7 = arith.maximumf %5, %6 : vector<64x8xf32>
    %cst_6 = arith.constant dense<0.000000e+00> : vector<64xf32>
    %8 = vector.multi_reduction <add>, %7, %cst_6 [1] : vector<64x8xf32> to vector<64xf32>
    %9 = vector.shape_cast %8 : vector<64xf32> to vector<64x1xf32>
    %cst_7 = arith.constant 8.000000e+00 : f32
    %10 = vector.broadcast %cst_7 : f32 to vector<64x1xf32>
    %11 = arith.divf %9, %10 : vector<64x1xf32>
    %12 = arith.mulf %7, %7 : vector<64x8xf32>
    %cst_8 = arith.constant dense<0.000000e+00> : vector<64xf32>
    %13 = vector.multi_reduction <add>, %12, %cst_8 [1] : vector<64x8xf32> to vector<64xf32>
    %14 = vector.shape_cast %13 : vector<64xf32> to vector<64x1xf32>
    %cst_9 = arith.constant 8.000000e+00 : f32
    %15 = vector.broadcast %cst_9 : f32 to vector<64x1xf32>
    %16 = arith.divf %14, %15 : vector<64x1xf32>
    %17 = arith.mulf %11, %11 : vector<64x1xf32>
    %18 = arith.subf %16, %17 : vector<64x1xf32>
    %cst_10 = arith.constant 0.000000e+00 : f32
    %19 = vector.broadcast %cst_10 : f32 to vector<64x1xf32>
    %20 = arith.maximumf %18, %19 : vector<64x1xf32>
    %21 = vector.broadcast %11 : vector<64x1xf32> to vector<64x8xf32>
    %22 = arith.subf %7, %21 : vector<64x8xf32>
    %cst_11 = arith.constant 9.99999974E-6 : f32
    %23 = vector.broadcast %cst_11 : f32 to vector<64x1xf32>
    %24 = arith.addf %20, %23 : vector<64x1xf32>
    %25 = math.rsqrt %24 : vector<64x1xf32>
    %26 = vector.broadcast %25 : vector<64x1xf32> to vector<64x8xf32>
    %27 = arith.mulf %22, %26 : vector<64x8xf32>
    %c0_12 = arith.constant 0 : index
    %c0_13 = arith.constant 0 : index
    %28 = vector.load %arg3[%c0_12, %c0_13] : memref<64x1xf32, #tpu.memory_space<vmem>>, vector<64x1xf32>
    %29 = vector.broadcast %28 : vector<64x1xf32> to vector<64x8xf32>
    %30 = arith.mulf %27, %29 : vector<64x8xf32>
    %c0_14 = arith.constant 0 : index
    %c0_15 = arith.constant 0 : index
    %31 = vector.load %arg4[%c0_14, %c0_15] : memref<64x1xf32, #tpu.memory_space<vmem>>, vector<64x1xf32>
    %32 = vector.broadcast %31 : vector<64x1xf32> to vector<64x8xf32>
    %33 = arith.addf %30, %32 : vector<64x8xf32>
    %c0_16 = arith.constant 0 : index
    %c0_17 = arith.constant 0 : index
    %34 = vector.load %arg5[%c0_16, %c0_17] : memref<64x8xf32, #tpu.memory_space<vmem>>, vector<64x8xf32>
    tpu.vector_store %arg5[%c0_16, %c0_17], %33 {strides = array<i32>} : memref<64x8xf32, #tpu.memory_space<vmem>>, vector<64x8xf32>,
    return
  }
}

module attributes {stable_mosaic.version = 11 : i64} {
  func.func @_fused_layer_kernel(%arg0: memref<576x32xbf16, #tpu.memory_space<vmem>>, %arg1: memref<32x576xbf16, #tpu.memory_space<vmem>>, %arg2: memref<32x1xf32, #tpu.memory_space<vmem>>, %arg3: memref<32x1xf32, #tpu.memory_space<vmem>>, %arg4: memref<32x1xf32, #tpu.memory_space<vmem>>, %arg5: memref<32x32xf32, #tpu.memory_space<vmem>>, %arg6: memref<32x32xf32, #tpu.memory_space<vmem>>) attributes {dimension_semantics = [], scalar_prefetch = 0 : i64, scratch_operands = 0 : i64, tpu.core_type = #tpu.core_type<tc>} {
    %c0 = arith.constant 0 : index
    %c0_0 = arith.constant 0 : index
    %0 = vector.load %arg1[%c0, %c0_0] : memref<32x576xbf16, #tpu.memory_space<vmem>>, vector<32x576xbf16>
    %c0_1 = arith.constant 0 : index
    %c0_2 = arith.constant 0 : index
    %1 = vector.load %arg0[%c0_1, %c0_2] : memref<576x32xbf16, #tpu.memory_space<vmem>>, vector<576x32xbf16>
    %cst = arith.constant dense<0.000000e+00> : vector<32x32xf32>
    %2 = tpu.matmul %0, %1, %cst {dimension_numbers = #tpu.dot_dimension_numbers<[1], [0], [0], [1], [0, 0, 1, 1], [], []>} : vector<32x576xbf16>, vector<576x32xbf16>, vector<32x32xf32> -> vector<32x32xf32>
    %c0_3 = arith.constant 0 : index
    %c0_4 = arith.constant 0 : index
    %3 = vector.load %arg2[%c0_3, %c0_4] : memref<32x1xf32, #tpu.memory_space<vmem>>, vector<32x1xf32>
    %4 = vector.broadcast %3 : vector<32x1xf32> to vector<32x32xf32>
    %5 = arith.addf %2, %4 : vector<32x32xf32>
    %cst_5 = arith.constant dense<0.000000e+00> : vector<32xf32>
    %6 = vector.multi_reduction <add>, %5, %cst_5 [1] : vector<32x32xf32> to vector<32xf32>
    %7 = vector.shape_cast %6 : vector<32xf32> to vector<32x1xf32>
    %cst_6 = arith.constant 3.200000e+01 : f32
    %8 = vector.broadcast %cst_6 : f32 to vector<32x1xf32>
    %9 = arith.divf %7, %8 : vector<32x1xf32>
    %10 = arith.mulf %5, %5 : vector<32x32xf32>
    %cst_7 = arith.constant dense<0.000000e+00> : vector<32xf32>
    %11 = vector.multi_reduction <add>, %10, %cst_7 [1] : vector<32x32xf32> to vector<32xf32>
    %12 = vector.shape_cast %11 : vector<32xf32> to vector<32x1xf32>
    %cst_8 = arith.constant 3.200000e+01 : f32
    %13 = vector.broadcast %cst_8 : f32 to vector<32x1xf32>
    %14 = arith.divf %12, %13 : vector<32x1xf32>
    %15 = arith.mulf %9, %9 : vector<32x1xf32>
    %16 = arith.subf %14, %15 : vector<32x1xf32>
    %cst_9 = arith.constant 0.000000e+00 : f32
    %17 = vector.broadcast %cst_9 : f32 to vector<32x1xf32>
    %18 = arith.maximumf %16, %17 : vector<32x1xf32>
    %19 = vector.broadcast %9 : vector<32x1xf32> to vector<32x32xf32>
    %20 = arith.subf %5, %19 : vector<32x32xf32>
    %cst_10 = arith.constant 9.99999974E-6 : f32
    %21 = vector.broadcast %cst_10 : f32 to vector<32x1xf32>
    %22 = arith.addf %18, %21 : vector<32x1xf32>
    %23 = math.rsqrt %22 : vector<32x1xf32>
    %24 = vector.broadcast %23 : vector<32x1xf32> to vector<32x32xf32>
    %25 = arith.mulf %20, %24 : vector<32x32xf32>
    %c0_11 = arith.constant 0 : index
    %c0_12 = arith.constant 0 : index
    %26 = vector.load %arg3[%c0_11, %c0_12] : memref<32x1xf32, #tpu.memory_space<vmem>>, vector<32x1xf32>
    %27 = vector.broadcast %26 : vector<32x1xf32> to vector<32x32xf32>
    %28 = arith.mulf %25, %27 : vector<32x32xf32>
    %c0_13 = arith.constant 0 : index
    %c0_14 = arith.constant 0 : index
    %29 = vector.load %arg4[%c0_13, %c0_14] : memref<32x1xf32, #tpu.memory_space<vmem>>, vector<32x1xf32>
    %30 = vector.broadcast %29 : vector<32x1xf32> to vector<32x32xf32>
    %31 = arith.addf %28, %30 : vector<32x32xf32>
    %cst_15 = arith.constant 0.000000e+00 : f32
    %32 = vector.broadcast %cst_15 : f32 to vector<32x32xf32>
    %33 = arith.maximumf %31, %32 : vector<32x32xf32>
    %c0_16 = arith.constant 0 : index
    %c0_17 = arith.constant 0 : index
    %34 = vector.load %arg5[%c0_16, %c0_17] : memref<32x32xf32, #tpu.memory_space<vmem>>, vector<32x32xf32>
    %35 = arith.addf %33, %34 : vector<32x32xf32>
    %c0_18 = arith.constant 0 : index
    %c0_19 = arith.constant 0 : index
    %36 = vector.load %arg6[%c0_18, %c0_19] : memref<32x32xf32, #tpu.memory_space<vmem>>, vector<32x32xf32>
    tpu.vector_store %arg6[%c0_18, %c0_19], %35 {strides = array<i32>} : memref<32x32xf32, #tpu.memory_space<vmem>>, vector<32x32xf32>,
    return
  }
}

module attributes {stable_mosaic.version = 11 : i64} {
  func.func @_fused_layer_kernel(%arg0: memref<288x128xbf16, #tpu.memory_space<vmem>>, %arg1: memref<16x288xbf16, #tpu.memory_space<vmem>>, %arg2: memref<16x1xf32, #tpu.memory_space<vmem>>, %arg3: memref<16x1xf32, #tpu.memory_space<vmem>>, %arg4: memref<16x1xf32, #tpu.memory_space<vmem>>, %arg5: memref<16x128xf32, #tpu.memory_space<vmem>>, %arg6: memref<16x128xf32, #tpu.memory_space<vmem>>) attributes {dimension_semantics = [], scalar_prefetch = 0 : i64, scratch_operands = 0 : i64, tpu.core_type = #tpu.core_type<tc>} {
    %c0 = arith.constant 0 : index
    %c0_0 = arith.constant 0 : index
    %0 = vector.load %arg1[%c0, %c0_0] : memref<16x288xbf16, #tpu.memory_space<vmem>>, vector<16x288xbf16>
    %c0_1 = arith.constant 0 : index
    %c0_2 = arith.constant 0 : index
    %1 = vector.load %arg0[%c0_1, %c0_2] : memref<288x128xbf16, #tpu.memory_space<vmem>>, vector<288x128xbf16>
    %cst = arith.constant dense<0.000000e+00> : vector<16x128xf32>
    %2 = tpu.matmul %0, %1, %cst {dimension_numbers = #tpu.dot_dimension_numbers<[1], [0], [0], [1], [0, 0, 1, 1], [], []>} : vector<16x288xbf16>, vector<288x128xbf16>, vector<16x128xf32> -> vector<16x128xf32>
    %c0_3 = arith.constant 0 : index
    %c0_4 = arith.constant 0 : index
    %3 = vector.load %arg2[%c0_3, %c0_4] : memref<16x1xf32, #tpu.memory_space<vmem>>, vector<16x1xf32>
    %4 = vector.broadcast %3 : vector<16x1xf32> to vector<16x128xf32>
    %5 = arith.addf %2, %4 : vector<16x128xf32>
    %cst_5 = arith.constant dense<0.000000e+00> : vector<16xf32>
    %6 = vector.multi_reduction <add>, %5, %cst_5 [1] : vector<16x128xf32> to vector<16xf32>
    %7 = vector.shape_cast %6 : vector<16xf32> to vector<16x1xf32>
    %cst_6 = arith.constant 1.280000e+02 : f32
    %8 = vector.broadcast %cst_6 : f32 to vector<16x1xf32>
    %9 = arith.divf %7, %8 : vector<16x1xf32>
    %10 = arith.mulf %5, %5 : vector<16x128xf32>
    %cst_7 = arith.constant dense<0.000000e+00> : vector<16xf32>
    %11 = vector.multi_reduction <add>, %10, %cst_7 [1] : vector<16x128xf32> to vector<16xf32>
    %12 = vector.shape_cast %11 : vector<16xf32> to vector<16x1xf32>
    %cst_8 = arith.constant 1.280000e+02 : f32
    %13 = vector.broadcast %cst_8 : f32 to vector<16x1xf32>
    %14 = arith.divf %12, %13 : vector<16x1xf32>
    %15 = arith.mulf %9, %9 : vector<16x1xf32>
    %16 = arith.subf %14, %15 : vector<16x1xf32>
    %cst_9 = arith.constant 0.000000e+00 : f32
    %17 = vector.broadcast %cst_9 : f32 to vector<16x1xf32>
    %18 = arith.maximumf %16, %17 : vector<16x1xf32>
    %19 = vector.broadcast %9 : vector<16x1xf32> to vector<16x128xf32>
    %20 = arith.subf %5, %19 : vector<16x128xf32>
    %cst_10 = arith.constant 9.99999974E-6 : f32
    %21 = vector.broadcast %cst_10 : f32 to vector<16x1xf32>
    %22 = arith.addf %18, %21 : vector<16x1xf32>
    %23 = math.rsqrt %22 : vector<16x1xf32>
    %24 = vector.broadcast %23 : vector<16x1xf32> to vector<16x128xf32>
    %25 = arith.mulf %20, %24 : vector<16x128xf32>
    %c0_11 = arith.constant 0 : index
    %c0_12 = arith.constant 0 : index
    %26 = vector.load %arg3[%c0_11, %c0_12] : memref<16x1xf32, #tpu.memory_space<vmem>>, vector<16x1xf32>
    %27 = vector.broadcast %26 : vector<16x1xf32> to vector<16x128xf32>
    %28 = arith.mulf %25, %27 : vector<16x128xf32>
    %c0_13 = arith.constant 0 : index
    %c0_14 = arith.constant 0 : index
    %29 = vector.load %arg4[%c0_13, %c0_14] : memref<16x1xf32, #tpu.memory_space<vmem>>, vector<16x1xf32>
    %30 = vector.broadcast %29 : vector<16x1xf32> to vector<16x128xf32>
    %31 = arith.addf %28, %30 : vector<16x128xf32>
    %cst_15 = arith.constant 0.000000e+00 : f32
    %32 = vector.broadcast %cst_15 : f32 to vector<16x128xf32>
    %33 = arith.maximumf %31, %32 : vector<16x128xf32>
    %c0_16 = arith.constant 0 : index
    %c0_17 = arith.constant 0 : index
    %34 = vector.load %arg5[%c0_16, %c0_17] : memref<16x128xf32, #tpu.memory_space<vmem>>, vector<16x128xf32>
    %35 = arith.addf %33, %34 : vector<16x128xf32>
    %c0_18 = arith.constant 0 : index
    %c0_19 = arith.constant 0 : index
    %36 = vector.load %arg6[%c0_18, %c0_19] : memref<16x128xf32, #tpu.memory_space<vmem>>, vector<16x128xf32>
    tpu.vector_store %arg6[%c0_18, %c0_19], %35 {strides = array<i32>} : memref<16x128xf32, #tpu.memory_space<vmem>>, vector<16x128xf32>,
    return
  }
}

module attributes {stable_mosaic.version = 11 : i64} {
  func.func @_fused_layer_kernel(%arg0: memref<144x512xbf16, #tpu.memory_space<vmem>>, %arg1: memref<8x144xbf16, #tpu.memory_space<vmem>>, %arg2: memref<8x1xf32, #tpu.memory_space<vmem>>, %arg3: memref<8x1xf32, #tpu.memory_space<vmem>>, %arg4: memref<8x1xf32, #tpu.memory_space<vmem>>, %arg5: memref<8x512xf32, #tpu.memory_space<vmem>>, %arg6: memref<8x512xf32, #tpu.memory_space<vmem>>) attributes {dimension_semantics = [], scalar_prefetch = 0 : i64, scratch_operands = 0 : i64, tpu.core_type = #tpu.core_type<tc>} {
    %c0 = arith.constant 0 : index
    %c0_0 = arith.constant 0 : index
    %0 = vector.load %arg1[%c0, %c0_0] : memref<8x144xbf16, #tpu.memory_space<vmem>>, vector<8x144xbf16>
    %c0_1 = arith.constant 0 : index
    %c0_2 = arith.constant 0 : index
    %1 = vector.load %arg0[%c0_1, %c0_2] : memref<144x512xbf16, #tpu.memory_space<vmem>>, vector<144x512xbf16>
    %cst = arith.constant dense<0.000000e+00> : vector<8x512xf32>
    %2 = tpu.matmul %0, %1, %cst {dimension_numbers = #tpu.dot_dimension_numbers<[1], [0], [0], [1], [0, 0, 1, 1], [], []>} : vector<8x144xbf16>, vector<144x512xbf16>, vector<8x512xf32> -> vector<8x512xf32>
    %c0_3 = arith.constant 0 : index
    %c0_4 = arith.constant 0 : index
    %3 = vector.load %arg2[%c0_3, %c0_4] : memref<8x1xf32, #tpu.memory_space<vmem>>, vector<8x1xf32>
    %4 = vector.broadcast %3 : vector<8x1xf32> to vector<8x512xf32>
    %5 = arith.addf %2, %4 : vector<8x512xf32>
    %cst_5 = arith.constant dense<0.000000e+00> : vector<8xf32>
    %6 = vector.multi_reduction <add>, %5, %cst_5 [1] : vector<8x512xf32> to vector<8xf32>
    %7 = vector.shape_cast %6 : vector<8xf32> to vector<8x1xf32>
    %cst_6 = arith.constant 5.120000e+02 : f32
    %8 = vector.broadcast %cst_6 : f32 to vector<8x1xf32>
    %9 = arith.divf %7, %8 : vector<8x1xf32>
    %10 = arith.mulf %5, %5 : vector<8x512xf32>
    %cst_7 = arith.constant dense<0.000000e+00> : vector<8xf32>
    %11 = vector.multi_reduction <add>, %10, %cst_7 [1] : vector<8x512xf32> to vector<8xf32>
    %12 = vector.shape_cast %11 : vector<8xf32> to vector<8x1xf32>
    %cst_8 = arith.constant 5.120000e+02 : f32
    %13 = vector.broadcast %cst_8 : f32 to vector<8x1xf32>
    %14 = arith.divf %12, %13 : vector<8x1xf32>
    %15 = arith.mulf %9, %9 : vector<8x1xf32>
    %16 = arith.subf %14, %15 : vector<8x1xf32>
    %cst_9 = arith.constant 0.000000e+00 : f32
    %17 = vector.broadcast %cst_9 : f32 to vector<8x1xf32>
    %18 = arith.maximumf %16, %17 : vector<8x1xf32>
    %19 = vector.broadcast %9 : vector<8x1xf32> to vector<8x512xf32>
    %20 = arith.subf %5, %19 : vector<8x512xf32>
    %cst_10 = arith.constant 9.99999974E-6 : f32
    %21 = vector.broadcast %cst_10 : f32 to vector<8x1xf32>
    %22 = arith.addf %18, %21 : vector<8x1xf32>
    %23 = math.rsqrt %22 : vector<8x1xf32>
    %24 = vector.broadcast %23 : vector<8x1xf32> to vector<8x512xf32>
    %25 = arith.mulf %20, %24 : vector<8x512xf32>
    %c0_11 = arith.constant 0 : index
    %c0_12 = arith.constant 0 : index
    %26 = vector.load %arg3[%c0_11, %c0_12] : memref<8x1xf32, #tpu.memory_space<vmem>>, vector<8x1xf32>
    %27 = vector.broadcast %26 : vector<8x1xf32> to vector<8x512xf32>
    %28 = arith.mulf %25, %27 : vector<8x512xf32>
    %c0_13 = arith.constant 0 : index
    %c0_14 = arith.constant 0 : index
    %29 = vector.load %arg4[%c0_13, %c0_14] : memref<8x1xf32, #tpu.memory_space<vmem>>, vector<8x1xf32>
    %30 = vector.broadcast %29 : vector<8x1xf32> to vector<8x512xf32>
    %31 = arith.addf %28, %30 : vector<8x512xf32>
    %cst_15 = arith.constant 0.000000e+00 : f32
    %32 = vector.broadcast %cst_15 : f32 to vector<8x512xf32>
    %33 = arith.maximumf %31, %32 : vector<8x512xf32>
    %c0_16 = arith.constant 0 : index
    %c0_17 = arith.constant 0 : index
    %34 = vector.load %arg5[%c0_16, %c0_17] : memref<8x512xf32, #tpu.memory_space<vmem>>, vector<8x512xf32>
    %35 = arith.addf %33, %34 : vector<8x512xf32>
    %c0_18 = arith.constant 0 : index
    %c0_19 = arith.constant 0 : index
    %36 = vector.load %arg6[%c0_18, %c0_19] : memref<8x512xf32, #tpu.memory_space<vmem>>, vector<8x512xf32>
    tpu.vector_store %arg6[%c0_18, %c0_19], %35 {strides = array<i32>} : memref<8x512xf32, #tpu.memory_space<vmem>>, vector<8x512xf32>,
    return
  }
}

module attributes {stable_mosaic.version = 11 : i64} {
  func.func @_fused_layer_kernel(%arg0: memref<8x512xbf16, #tpu.memory_space<vmem>>, %arg1: memref<5x8xbf16, #tpu.memory_space<vmem>>, %arg2: memref<5x1xf32, #tpu.memory_space<vmem>>, %arg3: memref<5x512xf32, #tpu.memory_space<vmem>>) attributes {dimension_semantics = [], scalar_prefetch = 0 : i64, scratch_operands = 0 : i64, tpu.core_type = #tpu.core_type<tc>} {
    %c0 = arith.constant 0 : index
    %c0_0 = arith.constant 0 : index
    %0 = vector.load %arg1[%c0, %c0_0] : memref<5x8xbf16, #tpu.memory_space<vmem>>, vector<5x8xbf16>
    %c0_1 = arith.constant 0 : index
    %c0_2 = arith.constant 0 : index
    %1 = vector.load %arg0[%c0_1, %c0_2] : memref<8x512xbf16, #tpu.memory_space<vmem>>, vector<8x512xbf16>
    %cst = arith.constant dense<0.000000e+00> : vector<5x512xf32>
    %2 = tpu.matmul %0, %1, %cst {dimension_numbers = #tpu.dot_dimension_numbers<[1], [0], [0], [1], [0, 0, 1, 1], [], []>} : vector<5x8xbf16>, vector<8x512xbf16>, vector<5x512xf32> -> vector<5x512xf32>
    %c0_3 = arith.constant 0 : index
    %c0_4 = arith.constant 0 : index
    %3 = vector.load %arg2[%c0_3, %c0_4] : memref<5x1xf32, #tpu.memory_space<vmem>>, vector<5x1xf32>
    %4 = vector.broadcast %3 : vector<5x1xf32> to vector<5x512xf32>
    %5 = arith.addf %2, %4 : vector<5x512xf32>
    %c0_5 = arith.constant 0 : index
    %c0_6 = arith.constant 0 : index
    %6 = vector.load %arg3[%c0_5, %c0_6] : memref<5x512xf32, #tpu.memory_space<vmem>>, vector<5x512xf32>
    tpu.vector_store %arg3[%c0_5, %c0_6], %5 {strides = array<i32>} : memref<5x512xf32, #tpu.memory_space<vmem>>, vector<5x512xf32>,
    return
  }
}

</mosaic_0001>

<bundles_post_ra>
// kernel: pb_fcn2_forward.16
= control target key start
LH: loop header
LB: loop body
LE: loop exit
PB: predicated region body
PF: predicated region fallthrough
CT: control target
= control target key end

     0   :  { %vm76_vm0 = vcmask 1044480   ;;  %vm77_vm1 = vcmask 1045504   ;;  %v264_v1 = vmov 0   ;;  %v265_v2 = vmov 65535   ;;  %s344_s0 = inlined_call_operand.vmem [shape: bf16[27,512], index: 0, kind: input, shape index: {}]   ;;  %s345_s2 = inlined_call_operand.vmem [shape: f32[8,1], index: 2, kind: input, shape index: {}]   ;;  %s346_s3 = inlined_call_operand.vmem [shape: f32[8,1], index: 3, kind: input, shape index: {}]   ;;  %s347_s1 = inlined_call_operand.vmem [shape: bf16[8,27], index: 1, kind: input, shape index: {}]   ;;  %s348_s4 = inlined_call_operand.vmem [shape: f32[8,1], index: 4, kind: input, shape index: {}]   ;;  %s349_s5 = inlined_call_operand.vmem [shape: f32[8,512], index: 5, kind: output, shape index: {}]  }
   0x1   :  { %v250_v0 = vld [vmem:[%s344_s0 + $0x24] ss:$16 sps:$4 sm:$0x3f]   ;;  %124 = vmatprep.mubr.bf16.mxu0 %v264_v1  ;;  %165 = vmatprep.mubr.bf16.mxu1 %v264_v1  ;;  %v78_v3 = vsel %vm76_vm0, 4294967295, %v265_v2  ;;  %v258_v11 = vld [vmem:[%s344_s0 + $0xc] ss:$16 sps:$4 sm:$0xff]  }
   0x2   :  { %248 = vset.pattern.permute.xlu0 %v264_v1  ;;  %249 = vset.pattern.permute.xlu1 %v264_v1  ;;  %v79_v4 = vsel %vm77_vm1, %v78_v3, 0  ;;  %v252_v5 = vld [vmem:[%s344_s0 + $0x2c] ss:$16 sps:$4 sm:$0x3f]   ;;  %v256_v10 = vld [vmem:[%s344_s0 + $0x4] ss:$16 sps:$4 sm:$0xff]  }
   0x3   :  { %v84_v6 = vand.u32 %v250_v0, %v79_v4  ;;  %v254_v7 = vld [vmem:[%s344_s0 + $0x20] ss:$16 sps:$4 sm:$0x3f]   ;;  %v255_v8 = vld [vmem:[%s344_s0 + $0x28] ss:$16 sps:$4 sm:$0x3f]   ;;  %v90_v9 = vand.u32 %v252_v5, %v79_v4 }
   0x4   :  { %v81_v12 = vand.u32 %v254_v7, %v79_v4  ;;  %v87_v13 = vand.u32 %v255_v8, %v79_v4  ;;  %v30_v14 = vld [vmem:[%s345_s2] sm:$0xff]  ;;  %v261_v17 = vld [vmem:[%s344_s0 + $0x8] ss:$16 sps:$4 sm:$0xff]   ;;  %vm72_vm2 = vcmask 220160  }
   0x5   :  { %104 = vmatprep.subr.bf16.mxu0 %v84_v6  ;;  %145 = vmatprep.subr.bf16.mxu1 %v90_v9  ;;  %v208_v15 = vld [vmem:[%s346_s3] sm:$0xff] }
   0x6   :  { %105 = vmatpush1.bf16.msra.mxu0 %v81_v12  ;;  %146 = vmatpush1.bf16.msra.mxu1 %v87_v13  ;;  %v260_v16 = vld [vmem:[%s344_s0] ss:$16 sps:$4 sm:$0xff]  }
   0x7   :  { %106 = vmatprep.subr.bf16.mxu0 %v256_v10  ;;  %147 = vmatprep.subr.bf16.mxu1 %v258_v11  ;;  %v21_v18 = vld [vmem:[%s347_s1] sm:$0xf] }
   0x8   :  { %33 = vperm.xlu0 %248, %v30_v14   ;;  %211 = vperm.xlu1 %249, %v208_v15   ;;  %v218_v46 = vld [vmem:[%s348_s4] sm:$0xff] }
   0xa   :  { %107 = vmatpush1.bf16.msra.mxu0 %v260_v16  ;;  %148 = vmatpush1.bf16.msra.mxu1 %v261_v17 }
   0xd   :  { %244 = vmatmul.mubr.msk.bf16.vlgmr.msra.gmra.mxu0 %vm72_vm2, %v21_v18  ;;  %245 = vmatmul.mubr.msk.bf16.vlgmr.msra.gmra.mxu1 %vm72_vm2, %v21_v18 }
  0x83   :  { %v34_v19 = vpop.permute.xlu0 %33  ;;  %v212_v47 = vpop.permute.xlu1 %211 }
  0xcd   :  { %v126_v20 = vpop.f32.mrf.mxu0  ;;  %v167_v21 = vpop.f32.mrf.mxu1 }
  0xce   :  { %v127_v22 = vadd.f32 %v126_v20, %v34_v19  ;;  %v168_v23 = vadd.f32 %v167_v21, %v34_v19 }
  0xcf   :  { %v128_v24 = vpop.f32.mrf.mxu0  ;;  %v169_v25 = vpop.f32.mrf.mxu1 }
  0xd0   :  { %v174_v26 = vmax.f32 %v127_v22, 0.0  ;;  %v129_v27 = vadd.f32 %v128_v24, %v34_v19  ;;  %v170_v28 = vadd.f32 %v169_v25, %v34_v19  ;;  %v176_v31 = vmax.f32 %v168_v23, 0.0 }
  0xd1   :  { %v130_v29 = vpop.f32.mrf.mxu0  ;;  %v171_v30 = vpop.f32.mrf.mxu1 }
  0xd2   :  { %v175_v32 = vmax.f32 %v129_v27, 0.0  ;;  %v185_v35 = vmul.f32 %v174_v26, %v174_v26  ;;  %v177_v37 = vmax.f32 %v170_v28, 0.0  ;;  %v187_v40 = vmul.f32 %v176_v31, %v176_v31 }
  0xd3   :  { %v131_v33 = vpop.f32.mrf.mxu0  ;;  %v172_v34 = vpop.f32.mrf.mxu1 }
  0xd4   :  { %v186_v36 = vmul.f32 %v175_v32, %v175_v32  ;;  %v178_v38 = vadd.f32 %v175_v32, %v174_v26  ;;  %v188_v43 = vmul.f32 %v177_v37, %v177_v37 }
  0xd6   :  { %v179_v39 = vadd.f32 %v178_v38, %v176_v31  ;;  %v189_v41 = vadd.f32 %v186_v36, %v185_v35 }
  0xd8   :  { %v180_v42 = vadd.f32 %v179_v39, %v177_v37  ;;  %v190_v44 = vadd.f32 %v189_v41, %v187_v40 }
  0xda   :  { %181 = vadd.xlane.f32.xlu0 %v180_v42  ;;  %v191_v45 = vadd.f32 %v190_v44, %v188_v43 }
  0xdc   :  { %192 = vadd.xlane.f32.xlu1 %v191_v45 }
  0xed   :  { %221 = vperm.xlu1 %249, %v218_v46  }
 0x163   :  { %v182_v48 = vpop.xlane.xlu0 %181 }
 0x164   :  { %v184_v49 = vmul.f32 0.001953125, %v182_v48 }
 0x165   :  { %v193_v50 = vpop.xlane.xlu1 %192 }
 0x166   :  { %v194_v51 = vmul.f32 0.001953125, %v193_v50  ;;  %v195_v52 = vmul.f32 %v184_v49, %v184_v49  ;;  %v198_v56 = vsub.f32 %v174_v26, %v184_v49  ;;  %v199_v57 = vsub.f32 %v175_v32, %v184_v49 }
 0x167   :  { %v200_v58 = vsub.f32 %v176_v31, %v184_v49  ;;  %v201_v59 = vsub.f32 %v177_v37, %v184_v49 }
 0x168   :  { %v196_v53 = vsub.f32 %v194_v51, %v195_v52 }
 0x169   :  { %v222_v5 = vpop.permute.xlu1 %221 }
 0x16a   :  { %v197_v54 = vmax.f32 %v196_v53, 0.0 }
 0x16c   :  { %v202_v55 = vadd.f32 1e-05, %v197_v54 }
 0x16e   :  { %262 = vrsqrt.f32 %v202_v55 }
 0x17b   :  { %v263_v60 = vpop.eup %262 }
 0x17c   :  { %v204_v61 = vmul.f32 %v263_v60, %v198_v56  ;;  %v205_v62 = vmul.f32 %v263_v60, %v199_v57  ;;  %v206_v63 = vmul.f32 %v263_v60, %v200_v58  ;;  %v207_v0 = vmul.f32 %v263_v60, %v201_v59 }
 0x17e   :  { %v214_v1 = vmul.f32 %v212_v47, %v204_v61  ;;  %v215_v2 = vmul.f32 %v212_v47, %v205_v62  ;;  %v216_v3 = vmul.f32 %v212_v47, %v206_v63  ;;  %v217_v4 = vmul.f32 %v212_v47, %v207_v0 }
 0x180   :  { %v224_v6 = vadd.f32 %v222_v5, %v214_v1  ;;  %v225_v7 = vadd.f32 %v222_v5, %v215_v2  ;;  %v226_v8 = vadd.f32 %v222_v5, %v216_v3  ;;  %v227_v9 = vadd.f32 %v222_v5, %v217_v4 }
 0x182   :  { %228 = vst [vmem:[%s349_s5] sm:$0xff] %v224_v6  ;;  %229 = vst [vmem:[%s349_s5 + $0x8] sm:$0xff] %v225_v7 }
 0x183   :  { %230 = vst [vmem:[%s349_s5 + $0x10] sm:$0xff] %v226_v8  ;;  %231 = vst [vmem:[%s349_s5 + $0x18] sm:$0xff] %v227_v9 }

// kernel: pb_fcn2_forward.17
= control target key start
LH: loop header
LB: loop body
LE: loop exit
PB: predicated region body
PF: predicated region fallthrough
CT: control target
= control target key end

     0   :  { %vm80_vm0 = vcmask 1043456   ;;  %v232_v0 = vmov 0.0   ;;  %vm233_vm1 = vmmov 0   ;;  %v234_v3 = vmov 0   ;;  %s307_s0 = inlined_call_operand.vmem [shape: bf16[72,128], index: 0, kind: input, shape index: {}]   ;;  %s308_s2 = inlined_call_operand.vmem [shape: f32[16,1], index: 2, kind: input, shape index: {}]   ;;  %s309_s1 = inlined_call_operand.vmem [shape: bf16[16,72], index: 1, kind: input, shape index: {}]   ;;  %s310_s3 = inlined_call_operand.vmem [shape: f32[16,1], index: 3, kind: input, shape index: {}]   ;;  %s311_s4 = inlined_call_operand.vmem [shape: f32[16,1], index: 4, kind: input, shape index: {}]   ;;  %s312_s5 = inlined_call_operand.vmem [shape: f32[16,128], index: 5, kind: output, shape index: {}]  }
   0x1   :  { %203 = vmatprep.subr.bf16.mxu0 %v232_v0  ;;  %v222_v1 = vld [vmem:[%s307_s0 + $0x20] ss:$0 sps:$4 sm:$0xff]   ;;  %213 = vmatprep.mubr.msk.bf16.mxu0 %vm233_vm1, %v232_v0  ;;  %v223_v4 = vld [vmem:[%s307_s0 + $0x18] sm:$0xff]   ;;  %v224_v6 = vld [vmem:[%s307_s0 + $0x10] sm:$0xff]   ;;  %vm76_vm2 = vcmask 588800  }
   0x2   :  { %v82_v2 = vsel %vm80_vm0, %v222_v1, 0  ;;  %220 = vset.pattern.permute.xlu0 %v234_v3  ;;  %221 = vset.pattern.permute.xlu1 %v234_v3  ;;  %v32_v5 = vld [vmem:[%s308_s2] sm:$0xff]  ;;  %v33_v7 = vld [vmem:[%s308_s2 + $0x8] sm:$0xff] }
   0x3   :  { %204 = vmatpush3.bf16.msra.mxu0 %v82_v2  ;;  %36 = vperm.xlu0 %220, %v32_v5   ;;  %v225_v8 = vld [vmem:[%s307_s0 + $0x8] sm:$0xff]   ;;  %v226_v9 = vld [vmem:[%s307_s0] sm:$0xff]  }
   0x4   :  { %205 = vmatprep.subr.bf16.mxu0 %v232_v0  ;;  %v227_v10 = vld [vmem:[%s309_s1] sm:$0xff]   ;;  %v157_v20 = vld [vmem:[%s310_s3 + $0x8] sm:$0xff] }
   0x5   :  { %v156_v19 = vld [vmem:[%s310_s3] sm:$0xff]  ;;  %v171_v26 = vld [vmem:[%s311_s4 + $0x8] sm:$0xff] }
   0x6   :  { %v170_v21 = vld [vmem:[%s311_s4] sm:$0xff] }
   0x7   :  { %206 = vmatpush3.bf16.msra.mxu0 %v223_v4  ;;  %41 = vperm.xlu0 %220, %v33_v7  }
   0x8   :  { %207 = vmatprep.subr.bf16.mxu0 %v232_v0 }
   0xb   :  { %208 = vmatpush3.bf16.msra.mxu0 %v224_v6 }
   0xc   :  { %209 = vmatprep.subr.bf16.mxu0 %v232_v0 }
   0xf   :  { %210 = vmatpush3.bf16.msra.mxu0 %v225_v8 }
  0x10   :  { %211 = vmatprep.subr.bf16.mxu0 %v232_v0 }
  0x13   :  { %212 = vmatpush3.bf16.msra.mxu0 %v226_v9 }
  0x16   :  { %214 = vmatmul.mubr.msk.bf16.vlgmr.msra.gmra.mxu0 %vm76_vm2, %v227_v10 }
  0x7e   :  { %v37_v11 = vpop.permute.xlu0 %36 }
  0x82   :  { %v42_v22 = vpop.permute.xlu0 %41 }
  0xd6   :  { %v118_v12 = vpop.f32.mrf.mxu0 }
  0xd7   :  { %v119_v13 = vadd.f32 %v118_v12, %v37_v11 }
  0xd8   :  { %v215_v14 = vpop.f32.mrf.mxu0 }
  0xd9   :  { %v125_v15 = vmax.f32 %v119_v13, 0.0 }
  0xda   :  { %v121_v16 = vpop.f32.mrf.mxu0 }
  0xdb   :  { %127 = vadd.xlane.f32.xlu1 %v125_v15  ;;  %v134_v17 = vmul.f32 %v125_v15, %v125_v15  ;;  %v122_v23 = vadd.f32 %v121_v16, %v42_v22 }
  0xdc   :  { %v216_v18 = vpop.f32.mrf.mxu0 }
  0xdd   :  { %136 = vadd.xlane.f32.xlu0 %v134_v17  ;;  %v126_v24 = vmax.f32 %v122_v23, 0.0 }
  0xdf   :  { %v135_v25 = vmul.f32 %v126_v24, %v126_v24 }
  0xec   :  { %160 = vperm.xlu1 %221, %v156_v19  }
  0xf0   :  { %165 = vperm.xlu1 %221, %v157_v20  }
  0xf4   :  { %174 = vperm.xlu1 %221, %v170_v21  }
 0x118   :  { %129 = vadd.xlane.f32.xlu1 %v126_v24 }
 0x11c   :  { %138 = vadd.xlane.f32.xlu1 %v135_v25 }
 0x12d   :  { %179 = vperm.xlu1 %221, %v171_v26  }
 0x164   :  { %v128_v27 = vpop.xlane.xlu1 %127 }
 0x165   :  { %v132_v28 = vmul.f32 0.0078125, %v128_v27 }
 0x166   :  { %v137_v29 = vpop.xlane.xlu0 %136 }
 0x167   :  { %v142_v30 = vmul.f32 %v132_v28, %v132_v28  ;;  %v140_v31 = vmul.f32 0.0078125, %v137_v29  ;;  %v148_v37 = vsub.f32 %v125_v15, %v132_v28 }
 0x168   :  { %v161_v35 = vpop.permute.xlu1 %160 }
 0x169   :  { %v144_v32 = vsub.f32 %v140_v31, %v142_v30 }
 0x16b   :  { %v146_v33 = vmax.f32 %v144_v32, 0.0 }
 0x16c   :  { %v166_v36 = vpop.permute.xlu1 %165 }
 0x16d   :  { %v150_v34 = vadd.f32 1e-05, %v146_v33 }
 0x16f   :  { %228 = vrsqrt.f32 %v150_v34 }
 0x170   :  { %v175_v41 = vpop.permute.xlu1 %174 }
 0x17c   :  { %v229_v38 = vpop.eup %228 }
 0x17d   :  { %v154_v39 = vmul.f32 %v229_v38, %v148_v37 }
 0x17f   :  { %v168_v40 = vmul.f32 %v161_v35, %v154_v39 }
 0x181   :  { %v182_v42 = vadd.f32 %v175_v41, %v168_v40 }
 0x183   :  { %184 = vst [vmem:[%s312_s5] sm:$0xff] %v182_v42 }
 0x1a1   :  { %v130_v43 = vpop.xlane.xlu1 %129 }
 0x1a2   :  { %v133_v44 = vmul.f32 0.0078125, %v130_v43 }
 0x1a4   :  { %v143_v46 = vmul.f32 %v133_v44, %v133_v44  ;;  %v149_v51 = vsub.f32 %v126_v24, %v133_v44 }
 0x1a5   :  { %v139_v45 = vpop.xlane.xlu1 %138 }
 0x1a6   :  { %v141_v47 = vmul.f32 0.0078125, %v139_v45 }
 0x1a8   :  { %v145_v48 = vsub.f32 %v141_v47, %v143_v46 }
 0x1a9   :  { %v180_v55 = vpop.permute.xlu1 %179 }
 0x1aa   :  { %v147_v49 = vmax.f32 %v145_v48, 0.0 }
 0x1ac   :  { %v151_v50 = vadd.f32 1e-05, %v147_v49 }
 0x1ae   :  { %230 = vrsqrt.f32 %v151_v50 }
 0x1bb   :  { %v231_v52 = vpop.eup %230 }
 0x1bc   :  { %v155_v53 = vmul.f32 %v231_v52, %v149_v51 }
 0x1be   :  { %v169_v54 = vmul.f32 %v166_v36, %v155_v53 }
 0x1c0   :  { %v183_v56 = vadd.f32 %v180_v55, %v169_v54 }
 0x1c2   :  { %185 = vst [vmem:[%s312_s5 + $0x8] sm:$0xff] %v183_v56 }

// kernel: pb_fcn2_forward.18
= control target key start
LH: loop header
LB: loop body
LE: loop exit
PB: predicated region body
PF: predicated region fallthrough
CT: control target
= control target key end

     0   :  { %v257_v0 = vmov 0   ;;  %vm116_vm0 = vcmask 130048   ;;  %s345_s0 = inlined_call_operand.vmem [shape: bf16[144,128], index: 0, kind: input, shape index: {}]   ;;  %s346_s1 = inlined_call_operand.vmem [shape: bf16[16,144], index: 1, kind: input, shape index: {}]   ;;  %s347_s2 = inlined_call_operand.vmem [shape: f32[16,1], index: 2, kind: input, shape index: {}]   ;;  %s348_s3 = inlined_call_operand.vmem [shape: f32[16,1], index: 3, kind: input, shape index: {}]   ;;  %s349_s4 = inlined_call_operand.vmem [shape: f32[16,1], index: 4, kind: input, shape index: {}]   ;;  %s350_s5 = inlined_call_operand.vmem [shape: f32[16,128], index: 5, kind: output, shape index: {}]  }
   0x1   :  { %120 = vmatprep.subr.bf16.mxu0 %v257_v0  ;;  %v241_v1 = vld [vmem:[%s345_s0 + $0x38] sm:$0xff]   ;;  %239 = vset.pattern.permute.xlu0 %v257_v0  ;;  %v242_v2 = vld [vmem:[%s345_s0 + $0x30] sm:$0xff]   ;;  %v243_v3 = vld [vmem:[%s345_s0 + $0x28] sm:$0xff]  }
   0x2   :  { %240 = vset.pattern.permute.xlu1 %v257_v0  ;;  %121 = vmatpush1.bf16.msra.mxu0 %v241_v1  ;;  %v244_v4 = vld [vmem:[%s345_s0 + $0x20] sm:$0xff]   ;;  %v42_v7 = vld [vmem:[%s347_s2 + $0x8] sm:$0xff]  ;;  %v245_v8 = vld [vmem:[%s345_s0 + $0x18] sm:$0xff]  }
   0x3   :  { %122 = vmatprep.subr.bf16.mxu0 %v257_v0  ;;  %v252_v5 = vld [vmem:[%s346_s1 + $0x4] ss:$8 sps:$4 sm:$0xff]   ;;  %v246_v9 = vld [vmem:[%s345_s0 + $0x10] sm:$0xff]   ;;  %v250_v13 = vld [vmem:[%s346_s1] ss:$8 sps:$4 sm:$0xff]  }
   0x4   :  { %v41_v6 = vld [vmem:[%s347_s2] sm:$0xff]  ;;  %237 = vmatprep.mubr.msk.bf16.mxu0 %vm116_vm0, %v252_v5  ;;  %v247_v10 = vld [vmem:[%s345_s0 + $0x8] sm:$0xff]  }
   0x5   :  { %45 = vperm.xlu0 %239, %v41_v6   ;;  %v248_v11 = vld [vmem:[%s345_s0] sm:$0xff]   ;;  %v193_v23 = vld [vmem:[%s348_s3 + $0x8] sm:$0xff] }
   0x6   :  { %123 = vmatpush1.bf16.msra.mxu0 %v242_v2  ;;  %v249_v12 = vld [vmem:[%s345_s0 + $0x40] sm:$0xff]   ;;  %v207_v29 = vld [vmem:[%s349_s4 + $0x8] sm:$0xff] }
   0x7   :  { %124 = vmatprep.subr.bf16.mxu0 %v257_v0  ;;  %v192_v22 = vld [vmem:[%s348_s3] sm:$0xff] }
   0x8   :  { %v206_v24 = vld [vmem:[%s349_s4] sm:$0xff] }
   0x9   :  { %50 = vperm.xlu0 %239, %v42_v7  }
   0xa   :  { %125 = vmatpush1.bf16.msra.mxu0 %v243_v3 }
   0xb   :  { %126 = vmatprep.subr.bf16.mxu0 %v257_v0 }
   0xe   :  { %127 = vmatpush1.bf16.msra.mxu0 %v244_v4 }
   0xf   :  { %128 = vmatprep.subr.bf16.mxu0 %v257_v0 }
  0x12   :  { %129 = vmatpush1.bf16.msra.mxu0 %v245_v8 }
  0x13   :  { %130 = vmatprep.subr.bf16.mxu0 %v257_v0 }
  0x16   :  { %131 = vmatpush1.bf16.msra.mxu0 %v246_v9 }
  0x17   :  { %132 = vmatprep.subr.bf16.mxu0 %v257_v0 }
  0x1a   :  { %133 = vmatpush1.bf16.msra.mxu0 %v247_v10 }
  0x1b   :  { %134 = vmatprep.subr.bf16.mxu0 %v257_v0 }
  0x1e   :  { %135 = vmatpush1.bf16.msra.mxu0 %v248_v11 }
  0x1f   :  { %150 = vmatprep.subr.bf16.mxu0 %v257_v0 }
  0x22   :  { %151 = vmatpush2.bf16.msra.mxu0 %v249_v12 }
  0x25   :  { %153 = vmatmul.mubr.bf16.vlgmr.msra.gmra.mxu0 %v250_v13 }
  0x80   :  { %v46_v14 = vpop.permute.xlu0 %45 }
  0x84   :  { %v51_v25 = vpop.permute.xlu0 %50 }
  0xe5   :  { %v154_v15 = vpop.f32.mrf.mxu0 }
  0xe6   :  { %v155_v16 = vadd.f32 %v154_v15, %v46_v14 }
  0xe7   :  { %v156_v17 = vpop.f32.mrf.mxu0 }
  0xe8   :  { %v161_v18 = vmax.f32 %v155_v16, 0.0 }
  0xe9   :  { %v157_v19 = vpop.f32.mrf.mxu0 }
  0xea   :  { %163 = vadd.xlane.f32.xlu1 %v161_v18  ;;  %v170_v20 = vmul.f32 %v161_v18, %v161_v18  ;;  %v158_v26 = vadd.f32 %v157_v19, %v51_v25 }
  0xeb   :  { %v159_v21 = vpop.f32.mrf.mxu0 }
  0xec   :  { %172 = vadd.xlane.f32.xlu0 %v170_v20  ;;  %v162_v27 = vmax.f32 %v158_v26, 0.0 }
  0xee   :  { %v171_v28 = vmul.f32 %v162_v27, %v162_v27 }
  0xfb   :  { %196 = vperm.xlu1 %240, %v192_v22  }
  0xff   :  { %201 = vperm.xlu1 %240, %v193_v23  }
 0x103   :  { %210 = vperm.xlu1 %240, %v206_v24  }
 0x127   :  { %165 = vadd.xlane.f32.xlu1 %v162_v27 }
 0x12b   :  { %174 = vadd.xlane.f32.xlu1 %v171_v28 }
 0x13c   :  { %215 = vperm.xlu1 %240, %v207_v29  }
 0x173   :  { %v164_v30 = vpop.xlane.xlu1 %163 }
 0x174   :  { %v168_v31 = vmul.f32 0.0078125, %v164_v30 }
 0x175   :  { %v173_v32 = vpop.xlane.xlu0 %172 }
 0x176   :  { %v178_v33 = vmul.f32 %v168_v31, %v168_v31  ;;  %v176_v34 = vmul.f32 0.0078125, %v173_v32  ;;  %v184_v40 = vsub.f32 %v161_v18, %v168_v31 }
 0x177   :  { %v197_v38 = vpop.permute.xlu1 %196 }
 0x178   :  { %v180_v35 = vsub.f32 %v176_v34, %v178_v33 }
 0x17a   :  { %v182_v36 = vmax.f32 %v180_v35, 0.0 }
 0x17b   :  { %v202_v39 = vpop.permute.xlu1 %201 }
 0x17c   :  { %v186_v37 = vadd.f32 1e-05, %v182_v36 }
 0x17e   :  { %253 = vrsqrt.f32 %v186_v37 }
 0x17f   :  { %v211_v44 = vpop.permute.xlu1 %210 }
 0x18b   :  { %v254_v41 = vpop.eup %253 }
 0x18c   :  { %v190_v42 = vmul.f32 %v254_v41, %v184_v40 }
 0x18e   :  { %v204_v43 = vmul.f32 %v197_v38, %v190_v42 }
 0x190   :  { %v218_v45 = vadd.f32 %v211_v44, %v204_v43 }
 0x192   :  { %220 = vst [vmem:[%s350_s5] sm:$0xff] %v218_v45 }
 0x1b0   :  { %v166_v46 = vpop.xlane.xlu1 %165 }
 0x1b1   :  { %v169_v47 = vmul.f32 0.0078125, %v166_v46 }
 0x1b3   :  { %v179_v49 = vmul.f32 %v169_v47, %v169_v47  ;;  %v185_v54 = vsub.f32 %v162_v27, %v169_v47 }
 0x1b4   :  { %v175_v48 = vpop.xlane.xlu1 %174 }
 0x1b5   :  { %v177_v50 = vmul.f32 0.0078125, %v175_v48 }
 0x1b7   :  { %v181_v51 = vsub.f32 %v177_v50, %v179_v49 }
 0x1b8   :  { %v216_v58 = vpop.permute.xlu1 %215 }
 0x1b9   :  { %v183_v52 = vmax.f32 %v181_v51, 0.0 }
 0x1bb   :  { %v187_v53 = vadd.f32 1e-05, %v183_v52 }
 0x1bd   :  { %255 = vrsqrt.f32 %v187_v53 }
 0x1ca   :  { %v256_v55 = vpop.eup %255 }
 0x1cb   :  { %v191_v56 = vmul.f32 %v256_v55, %v185_v54 }
 0x1cd   :  { %v205_v57 = vmul.f32 %v202_v39, %v191_v56 }
 0x1cf   :  { %v219_v59 = vadd.f32 %v216_v58, %v205_v57 }
 0x1d1   :  { %221 = vst [vmem:[%s350_s5 + $0x8] sm:$0xff] %v219_v59 }

// kernel: pb_fcn2_forward.19
= control target key start
LH: loop header
LB: loop body
LE: loop exit
PB: predicated region body
PF: predicated region fallthrough
CT: control target
= control target key end

     0   :  { %v388_v0 = vmov 0   ;;  %vm139_vm0 = vcmask 130048   ;;  %vm199_vm1 = vcmask 261120   ;;  %s562_s0 = inlined_call_operand.vmem [shape: bf16[144,32], index: 0, kind: input, shape index: {}]   ;;  %s563_s1 = inlined_call_operand.vmem [shape: bf16[32,144], index: 1, kind: input, shape index: {}]   ;;  %s564_s2 = inlined_call_operand.vmem [shape: f32[32,1], index: 2, kind: input, shape index: {}]   ;;  %s565_s3 = inlined_call_operand.vmem [shape: f32[32,1], index: 3, kind: input, shape index: {}]   ;;  %s566_s4 = inlined_call_operand.vmem [shape: f32[32,1], index: 4, kind: input, shape index: {}]   ;;  %s567_s5 = inlined_call_operand.vmem [shape: f32[32,32], index: 5, kind: output, shape index: {}]  }
   0x1   :  { %146 = vmatprep.subr.bf16.mxu0 %v388_v0  ;;  %344 = vmatprep.subr.bf16.mxu1 %v388_v0  ;;  %v365_v1 = vld [vmem:[%s562_s0 + $0x38] sm:$0xff]   ;;  %v366_v2 = vld [vmem:[%s562_s0 + $0x30] sm:$0xff]   ;;  %v367_v3 = vld [vmem:[%s562_s0 + $0x28] sm:$0xff]  }
   0x2   :  { %364 = vset.pattern.permute.xlu1 %v388_v0  ;;  %363 = vset.pattern.permute.xlu0 %v388_v0  ;;  %v368_v4 = vld [vmem:[%s562_s0 + $0x20] sm:$0xff]   ;;  %v379_v6 = vld [vmem:[%s563_s1 + $0x14] ss:$8 sps:$4 sm:$0xff]   ;;  %v44_v11 = vld [vmem:[%s564_s2 + $0x8] sm:$0xff] }
   0x3   :  { %147 = vmatpush1.bf16.msra.mxu0 %v365_v1  ;;  %353 = vmatpush1.bf16.msra.mxu1 %v365_v1  ;;  %v376_v5 = vld [vmem:[%s563_s1 + $0x4] ss:$8 sps:$4 sm:$0xff]   ;;  %v45_v7 = vld [vmem:[%s564_s2 + $0x10] sm:$0xff]  ;;  %v46_v9 = vld [vmem:[%s564_s2 + $0x18] sm:$0xff] }
   0x4   :  { %148 = vmatprep.subr.bf16.mxu0 %v388_v0  ;;  %345 = vmatprep.subr.bf16.mxu1 %v388_v0  ;;  %v43_v8 = vld [vmem:[%s564_s2] sm:$0xff]  ;;  %v369_v10 = vld [vmem:[%s562_s0 + $0x18] sm:$0xff]   ;;  %v370_v13 = vld [vmem:[%s562_s0 + $0x10] sm:$0xff]  }
   0x5   :  { %342 = vmatprep.mubr.msk.bf16.mxu0 %vm139_vm0, %v376_v5  ;;  %59 = vperm.xlu1 %364, %v45_v7   ;;  %v265_v12 = vld [vmem:[%s565_s3] sm:$0xff]  ;;  %v266_v14 = vld [vmem:[%s565_s3 + $0x8] sm:$0xff]  ;;  %v267_v15 = vld [vmem:[%s565_s3 + $0x10] sm:$0xff] }
   0x6   :  { %343 = vmatprep.mubr.msk.bf16.mxu1 %vm139_vm0, %v379_v6  ;;  %49 = vperm.xlu0 %363, %v43_v8   ;;  %v371_v16 = vld [vmem:[%s562_s0 + $0x8] sm:$0xff]   ;;  %v268_v17 = vld [vmem:[%s565_s3 + $0x18] sm:$0xff]  ;;  %v372_v18 = vld [vmem:[%s562_s0] sm:$0xff]  }
   0x7   :  { %149 = vmatpush1.bf16.msra.mxu0 %v366_v2  ;;  %354 = vmatpush1.bf16.msra.mxu1 %v366_v2  ;;  %v373_v19 = vld [vmem:[%s562_s0 + $0x40] sm:$0xff]   ;;  %v377_v21 = vld [vmem:[%s563_s1 + $0x10] ss:$8 sps:$4 sm:$0xff]   ;;  %v294_v54 = vld [vmem:[%s566_s4 + $0x8] sm:$0xff] }
   0x8   :  { %150 = vmatprep.subr.bf16.mxu0 %v388_v0  ;;  %346 = vmatprep.subr.bf16.mxu1 %v388_v0  ;;  %v374_v20 = vld [vmem:[%s563_s1] ss:$8 sps:$4 sm:$0xff]   ;;  %v296_v55 = vld [vmem:[%s566_s4 + $0x18] sm:$0xff]  ;;  %v295_v57 = vld [vmem:[%s566_s4 + $0x10] sm:$0xff] }
   0x9   :  { %64 = vperm.xlu1 %364, %v46_v9   ;;  %v293_v56 = vld [vmem:[%s566_s4] sm:$0xff] }
   0xa   :  { %54 = vperm.xlu0 %363, %v44_v11  }
   0xb   :  { %151 = vmatpush1.bf16.msra.mxu0 %v367_v3  ;;  %355 = vmatpush1.bf16.msra.mxu1 %v367_v3 }
   0xc   :  { %152 = vmatprep.subr.bf16.mxu0 %v388_v0  ;;  %347 = vmatprep.subr.bf16.mxu1 %v388_v0 }
   0xd   :  { %271 = vperm.xlu1 %364, %v265_v12  }
   0xe   :  { %276 = vperm.xlu0 %363, %v266_v14  }
   0xf   :  { %153 = vmatpush1.bf16.msra.mxu0 %v368_v4  ;;  %356 = vmatpush1.bf16.msra.mxu1 %v368_v4 }
  0x10   :  { %154 = vmatprep.subr.bf16.mxu0 %v388_v0  ;;  %348 = vmatprep.subr.bf16.mxu1 %v388_v0 }
  0x11   :  { %281 = vperm.xlu1 %364, %v267_v15  }
  0x13   :  { %155 = vmatpush1.bf16.msra.mxu0 %v369_v10  ;;  %357 = vmatpush1.bf16.msra.mxu1 %v369_v10 }
  0x14   :  { %156 = vmatprep.subr.bf16.mxu0 %v388_v0  ;;  %349 = vmatprep.subr.bf16.mxu1 %v388_v0 }
  0x15   :  { %286 = vperm.xlu1 %364, %v268_v17  }
  0x17   :  { %157 = vmatpush1.bf16.msra.mxu0 %v370_v13  ;;  %358 = vmatpush1.bf16.msra.mxu1 %v370_v13 }
  0x18   :  { %158 = vmatprep.subr.bf16.mxu0 %v388_v0  ;;  %350 = vmatprep.subr.bf16.mxu1 %v388_v0 }
  0x1b   :  { %159 = vmatpush1.bf16.msra.mxu0 %v371_v16  ;;  %359 = vmatpush1.bf16.msra.mxu1 %v371_v16 }
  0x1c   :  { %160 = vmatprep.subr.bf16.mxu0 %v388_v0  ;;  %351 = vmatprep.subr.bf16.mxu1 %v388_v0 }
  0x1f   :  { %161 = vmatpush1.bf16.msra.mxu0 %v372_v18  ;;  %360 = vmatpush1.bf16.msra.mxu1 %v372_v18 }
  0x20   :  { %176 = vmatprep.subr.bf16.mxu0 %v388_v0  ;;  %352 = vmatprep.subr.bf16.mxu1 %v388_v0 }
  0x23   :  { %177 = vmatpush2.bf16.msra.mxu0 %v373_v19  ;;  %361 = vmatpush2.bf16.msra.mxu1 %v373_v19 }
  0x26   :  { %179 = vmatmul.mubr.bf16.vlgmr.msra.gmra.mxu0 %v374_v20  ;;  %187 = vmatmul.mubr.bf16.vlgmr.msra.gmra.mxu1 %v377_v21 }
  0x80   :  { %v60_v22 = vpop.permute.xlu1 %59 }
  0x81   :  { %v50_v23 = vpop.permute.xlu0 %49 }
  0x84   :  { %v65_v30 = vpop.permute.xlu1 %64 }
  0x85   :  { %v55_v31 = vpop.permute.xlu0 %54 }
  0x88   :  { %v272_v58 = vpop.permute.xlu1 %271 }
  0x89   :  { %v277_v60 = vpop.permute.xlu0 %276 }
  0x8c   :  { %v282_v59 = vpop.permute.xlu1 %281 }
  0x90   :  { %v287_v61 = vpop.permute.xlu1 %286 }
  0xe6   :  { %v180_v24 = vpop.f32.mrf.mxu0  ;;  %v188_v25 = vpop.f32.mrf.mxu1 }
  0xe7   :  { %v181_v26 = vadd.f32 %v180_v24, %v50_v23  ;;  %v189_v27 = vadd.f32 %v188_v25, %v60_v22 }
  0xe8   :  { %v182_v28 = vpop.f32.mrf.mxu0  ;;  %v190_v29 = vpop.f32.mrf.mxu1 }
  0xe9   :  { %v502_v32 = vmax.f32 %v181_v26, 0.0  ;;  %v504_v33 = vmax.f32 %v189_v27, 0.0 }
  0xea   :  { %v183_v34 = vpop.f32.mrf.mxu0  ;;  %v191_v35 = vpop.f32.mrf.mxu1 }
  0xeb   :  { %v184_v36 = vadd.f32 %v183_v34, %v55_v31  ;;  %v192_v37 = vadd.f32 %v191_v35, %v65_v30  ;;  %v200_v38 = vsel %vm199_vm1, %v502_v32, 0.0  ;;  %v217_v39 = vmul.f32 %v502_v32, %v502_v32 }
  0xec   :  { %v185_v40 = vpop.f32.mrf.mxu0  ;;  %v193_v41 = vpop.f32.mrf.mxu1  ;;  %201 = vadd.xlane.f32.xlu0 %v200_v38  ;;  %v219_v42 = vmul.f32 %v504_v33, %v504_v33  ;;  %v206_v44 = vsel %vm199_vm1, %v504_v33, 0.0 }
  0xed   :  { %v221_v43 = vsel %vm199_vm1, %v217_v39, 0.0  ;;  %v515_v45 = vmax.f32 %v184_v36, 0.0  ;;  %v517_v46 = vmax.f32 %v192_v37, 0.0 }
  0xee   :  { %222 = vadd.xlane.f32.xlu1 %v221_v43  ;;  %v227_v47 = vsel %vm199_vm1, %v219_v42, 0.0 }
  0xef   :  { %v209_v48 = vsel %vm199_vm1, %v517_v46, 0.0  ;;  %v218_v49 = vmul.f32 %v515_v45, %v515_v45  ;;  %v203_v50 = vsel %vm199_vm1, %v515_v45, 0.0  ;;  %v220_v52 = vmul.f32 %v517_v46, %v517_v46 }
  0xf0   :  { %207 = vadd.xlane.f32.xlu0 %v206_v44 }
  0xf1   :  { %v224_v51 = vsel %vm199_vm1, %v218_v49, 0.0  ;;  %v230_v53 = vsel %vm199_vm1, %v220_v52, 0.0 }
  0xf2   :  { %228 = vadd.xlane.f32.xlu1 %v227_v47 }
  0xf4   :  { %210 = vadd.xlane.f32.xlu0 %v209_v48 }
  0xf6   :  { %204 = vadd.xlane.f32.xlu1 %v203_v50 }
  0xf8   :  { %225 = vadd.xlane.f32.xlu0 %v224_v51 }
  0xfc   :  { %231 = vadd.xlane.f32.xlu0 %v230_v53 }
 0x107   :  { %304 = vperm.xlu1 %364, %v294_v54  }
 0x10b   :  { %314 = vperm.xlu1 %364, %v296_v55  }
 0x112   :  { %299 = vperm.xlu0 %363, %v293_v56  }
 0x116   :  { %309 = vperm.xlu0 %363, %v295_v57  }
 0x175   :  { %v202_v62 = vpop.xlane.xlu0 %201 }
 0x176   :  { %v213_v63 = vmul.f32 0.03125, %v202_v62 }
 0x177   :  { %v223_v0 = vpop.xlane.xlu1 %222 }
 0x178   :  { %v237_v1 = vmul.f32 %v213_v63, %v213_v63  ;;  %v233_v2 = vmul.f32 0.03125, %v223_v0  ;;  %v249_v29 = vsub.f32 %v502_v32, %v213_v63 }
 0x179   :  { %v208_v3 = vpop.xlane.xlu0 %207 }
 0x17a   :  { %v241_v4 = vsub.f32 %v233_v2, %v237_v1  ;;  %v215_v5 = vmul.f32 0.03125, %v208_v3 }
 0x17b   :  { %v229_v6 = vpop.xlane.xlu1 %228 }
 0x17c   :  { %v245_v7 = vmax.f32 %v241_v4, 0.0  ;;  %v239_v8 = vmul.f32 %v215_v5, %v215_v5  ;;  %v235_v9 = vmul.f32 0.03125, %v229_v6  ;;  %v251_v36 = vsub.f32 %v504_v33, %v215_v5 }
 0x17d   :  { %v211_v10 = vpop.xlane.xlu0 %210 }
 0x17e   :  { %v253_v11 = vadd.f32 1e-05, %v245_v7  ;;  %v243_v12 = vsub.f32 %v235_v9, %v239_v8  ;;  %v216_v18 = vmul.f32 0.03125, %v211_v10 }
 0x17f   :  { %v205_v13 = vpop.xlane.xlu1 %204 }
 0x180   :  { %380 = vrsqrt.f32 %v253_v11  ;;  %v247_v14 = vmax.f32 %v243_v12, 0.0  ;;  %v214_v15 = vmul.f32 0.03125, %v205_v13  ;;  %v240_v23 = vmul.f32 %v216_v18, %v216_v18 }
 0x181   :  { %v226_v16 = vpop.xlane.xlu0 %225  ;;  %v252_v48 = vsub.f32 %v517_v46, %v216_v18 }
 0x182   :  { %v255_v17 = vadd.f32 1e-05, %v247_v14  ;;  %v234_v19 = vmul.f32 0.03125, %v226_v16  ;;  %v238_v20 = vmul.f32 %v214_v15, %v214_v15  ;;  %v250_v32 = vsub.f32 %v515_v45, %v214_v15 }
 0x183   :  { %v305_v33 = vpop.permute.xlu1 %304 }
 0x184   :  { %382 = vrsqrt.f32 %v255_v17  ;;  %v242_v21 = vsub.f32 %v234_v19, %v238_v20 }
 0x185   :  { %v232_v22 = vpop.xlane.xlu0 %231 }
 0x186   :  { %v236_v24 = vmul.f32 0.03125, %v232_v22  ;;  %v246_v25 = vmax.f32 %v242_v21, 0.0 }
 0x187   :  { %v315_v45 = vpop.permute.xlu1 %314 }
 0x188   :  { %v244_v26 = vsub.f32 %v236_v24, %v240_v23  ;;  %v254_v27 = vadd.f32 1e-05, %v246_v25 }
 0x18a   :  { %v248_v28 = vmax.f32 %v244_v26, 0.0  ;;  %384 = vrsqrt.f32 %v254_v27 }
 0x18c   :  { %v256_v30 = vadd.f32 1e-05, %v248_v28 }
 0x18d   :  { %v381_v31 = vpop.eup %380  ;;  %v300_v35 = vpop.permute.xlu0 %299 }
 0x18e   :  { %386 = vrsqrt.f32 %v256_v30  ;;  %v261_v34 = vmul.f32 %v381_v31, %v249_v29 }
 0x190   :  { %v289_v37 = vmul.f32 %v272_v58, %v261_v34 }
 0x191   :  { %v383_v38 = vpop.eup %382  ;;  %v310_v42 = vpop.permute.xlu0 %309 }
 0x192   :  { %v317_v39 = vadd.f32 %v300_v35, %v289_v37  ;;  %v263_v40 = vmul.f32 %v383_v38, %v251_v36 }
 0x194   :  { %321 = vst.msk [vmem:[%s567_s5] sm:$0xff] %vm199_vm1, %v317_v39  ;;  %v291_v41 = vmul.f32 %v282_v59, %v263_v40 }
 0x196   :  { %v319_v43 = vadd.f32 %v310_v42, %v291_v41 }
 0x197   :  { %v385_v44 = vpop.eup %384 }
 0x198   :  { %323 = vst.msk [vmem:[%s567_s5 + $0x10] sm:$0xff] %vm199_vm1, %v319_v43  ;;  %v262_v47 = vmul.f32 %v385_v44, %v250_v32 }
 0x19a   :  { %v290_v50 = vmul.f32 %v277_v60, %v262_v47 }
 0x19b   :  { %v387_v49 = vpop.eup %386 }
 0x19c   :  { %v264_v51 = vmul.f32 %v387_v49, %v252_v48  ;;  %v318_v52 = vadd.f32 %v305_v33, %v290_v50 }
 0x19e   :  { %v292_v53 = vmul.f32 %v287_v61, %v264_v51  ;;  %322 = vst.msk [vmem:[%s567_s5 + $0x8] sm:$0xff] %vm199_vm1, %v318_v52 }
 0x1a0   :  { %v320_v54 = vadd.f32 %v315_v45, %v292_v53 }
 0x1a2   :  { %324 = vst.msk [vmem:[%s567_s5 + $0x18] sm:$0xff] %vm199_vm1, %v320_v54 }

// kernel: pb_fcn2_forward.20
= control target key start
LH: loop header
LB: loop body
LE: loop exit
PB: predicated region body
PF: predicated region fallthrough
CT: control target
= control target key end

     0   :  { %v568_v1 = vmov 0   ;;  %vm227_vm0 = vcmask 261120   ;;  %s757_s0 = inlined_call_operand.vmem [shape: bf16[288,32], index: 0, kind: input, shape index: {}]   ;;  %s758_s1 = inlined_call_operand.vmem [shape: bf16[32,288], index: 1, kind: input, shape index: {}]   ;;  %s759_s2 = inlined_call_operand.vmem [shape: f32[32,1], index: 2, kind: input, shape index: {}]   ;;  %s760_s3 = inlined_call_operand.vmem [shape: f32[32,1], index: 3, kind: input, shape index: {}]   ;;  %s761_s4 = inlined_call_operand.vmem [shape: f32[32,1], index: 4, kind: input, shape index: {}]   ;;  %s762_s5 = inlined_call_operand.vmem [shape: f32[32,32], index: 5, kind: output, shape index: {}]  }
   0x1   :  { %v534_v0 = vld [vmem:[%s757_s0 + $0x78] sm:$0xff]   ;;  %532 = vset.pattern.permute.xlu0 %v568_v1  ;;  %533 = vset.pattern.permute.xlu1 %v568_v1  ;;  %v536_v3 = vld [vmem:[%s757_s0 + $0x70] sm:$0xff]   ;;  %v538_v5 = vld [vmem:[%s757_s0 + $0x68] sm:$0xff]  }
   0x2   :  { %v535_v2 = vld [vmem:[%s757_s0 + $0x38] sm:$0xff]   ;;  %491 = vmatprep.subr.bf16.mxu0 %v534_v0  ;;  %v537_v4 = vld [vmem:[%s757_s0 + $0x30] sm:$0xff]   ;;  %v539_v6 = vld [vmem:[%s757_s0 + $0x28] sm:$0xff]  }
   0x3   :  { %492 = vmatpush3.bf16.msra.mxu0 %v535_v2  ;;  %v540_v7 = vld [vmem:[%s757_s0 + $0x60] sm:$0xff]   ;;  %v542_v9 = vld [vmem:[%s757_s0 + $0x58] sm:$0xff]   ;;  %v546_v10 = vld [vmem:[%s757_s0 + $0x88] sm:$0xff]  }
   0x4   :  { %493 = vmatprep.subr.bf16.mxu0 %v536_v3  ;;  %v541_v8 = vld [vmem:[%s757_s0 + $0x20] sm:$0xff]   ;;  %v543_v11 = vld [vmem:[%s757_s0 + $0x18] sm:$0xff]   ;;  %523 = vmatprep.subr.bf16.mxu1 %v546_v10  ;;  %v544_v13 = vld [vmem:[%s757_s0 + $0x50] sm:$0xff]  }
   0x5   :  { %524 = vmatpush3.bf16.msra.mxu1 %v546_v10  ;;  %v549_v12 = vld [vmem:[%s757_s0 + $0x80] sm:$0xff]   ;;  %v545_v14 = vld [vmem:[%s757_s0 + $0x10] sm:$0xff]   ;;  %v547_v17 = vld [vmem:[%s757_s0 + $0x48] sm:$0xff]  }
   0x6   :  { %525 = vmatprep.subr.bf16.mxu1 %v549_v12  ;;  %v552_v15 = vld [vmem:[%s758_s1 + $0x8] ss:$12 sps:$4 sm:$0xff]   ;;  %v553_v16 = vld [vmem:[%s758_s1 + $0x20] ss:$12 sps:$4 sm:$0xff]   ;;  %v556_v18 = vld [vmem:[%s758_s1 + $0x4] ss:$12 sps:$4 sm:$0xff]  }
   0x7   :  { %494 = vmatpush3.bf16.msra.mxu0 %v537_v4  ;;  %527 = vmatprep.mubr.msk.bf16.mxu1 %vm227_vm0, %v552_v15  ;;  %v65_v19 = vld [vmem:[%s759_s2] sm:$0xff]  ;;  %v548_v20 = vld [vmem:[%s757_s0 + $0x8] sm:$0xff]   ;;  %v67_v21 = vld [vmem:[%s759_s2 + $0x10] sm:$0xff] }
   0x8   :  { %495 = vmatprep.subr.bf16.mxu0 %v538_v5  ;;  %266 = vmatprep.mubr.bf16.mxu0 %v556_v18  ;;  %v550_v22 = vld [vmem:[%s757_s0 + $0x40] sm:$0xff]   ;;  %v66_v23 = vld [vmem:[%s759_s2 + $0x8] sm:$0xff]  ;;  %v68_v24 = vld [vmem:[%s759_s2 + $0x18] sm:$0xff] }
   0x9   :  { %526 = vmatpush3.bf16.msra.mxu1 %v549_v12  ;;  %71 = vperm.xlu0 %532, %v65_v19   ;;  %v551_v25 = vld [vmem:[%s757_s0] sm:$0xff]   ;;  %v402_v26 = vld [vmem:[%s760_s3 + $0x8] sm:$0xff]  ;;  %v403_v30 = vld [vmem:[%s760_s3 + $0x10] sm:$0xff] }
   0xa   :  { %81 = vperm.xlu1 %533, %v67_v21   ;;  %v554_v27 = vld [vmem:[%s758_s1] ss:$12 sps:$4 sm:$0xff]   ;;  %v557_v29 = vld [vmem:[%s758_s1 + $0x1c] ss:$12 sps:$4 sm:$0xff]   ;;  %v559_v31 = vld [vmem:[%s758_s1 + $0x18] ss:$12 sps:$4 sm:$0xff]  }
   0xb   :  { %496 = vmatpush3.bf16.msra.mxu0 %v539_v6  ;;  %v401_v28 = vld [vmem:[%s760_s3] sm:$0xff]  ;;  %v404_v32 = vld [vmem:[%s760_s3 + $0x18] sm:$0xff] }
   0xc   :  { %497 = vmatprep.subr.bf16.mxu0 %v540_v7  ;;  %528 = vmatmul.mubr.msk.bf16.vlgmr.msra.gmra.mxu1 %vm227_vm0, %v553_v16  ;;  %v429_v15 = vld [vmem:[%s761_s4] sm:$0xff]  ;;  %v431_v16 = vld [vmem:[%s761_s4 + $0x10] sm:$0xff] }
   0xd   :  { %76 = vperm.xlu0 %532, %v66_v23  }
   0xe   :  { %86 = vperm.xlu1 %533, %v68_v24  }
   0xf   :  { %498 = vmatpush3.bf16.msra.mxu0 %v541_v8 }
  0x10   :  { %499 = vmatprep.subr.bf16.mxu0 %v542_v9 }
  0x11   :  { %412 = vperm.xlu0 %532, %v402_v26  }
  0x12   :  { %407 = vperm.xlu1 %533, %v401_v28  }
  0x13   :  { %500 = vmatpush3.bf16.msra.mxu0 %v543_v11 }
  0x14   :  { %501 = vmatprep.subr.bf16.mxu0 %v544_v13  ;;  %v430_v13 = vld [vmem:[%s761_s4 + $0x8] sm:$0xff] }
  0x16   :  { %417 = vperm.xlu1 %533, %v403_v30  }
  0x17   :  { %502 = vmatpush3.bf16.msra.mxu0 %v545_v14  ;;  %v432_v14 = vld [vmem:[%s761_s4 + $0x18] sm:$0xff] }
  0x18   :  { %503 = vmatprep.subr.bf16.mxu0 %v547_v17 }
  0x1a   :  { %422 = vperm.xlu1 %533, %v404_v32  }
  0x1b   :  { %504 = vmatpush3.bf16.msra.mxu0 %v548_v20 }
  0x1c   :  { %505 = vmatprep.subr.bf16.mxu0 %v550_v22 }
  0x1f   :  { %506 = vmatpush3.bf16.msra.mxu0 %v551_v25 }
  0x22   :  { %267 = vmatmul.mubr.bf16.vlgmr.msra.gmra.mxu0 %v554_v27 }
  0x23   :  { %274 = vmatprep.mubr.bf16.mxu0 %v557_v29 }
  0x2a   :  { %275 = vmatmul.mubr.bf16.gmra.mxu0 %v559_v31 }
  0x84   :  { %v72_v35 = vpop.permute.xlu0 %71 }
  0x85   :  { %v82_v47 = vpop.permute.xlu1 %81 }
  0x88   :  { %v77_v45 = vpop.permute.xlu0 %76 }
  0x89   :  { %v87_v0 = vpop.permute.xlu1 %86 }
  0x8c   :  { %v413_v19 = vpop.permute.xlu0 %412 }
  0x8d   :  { %v408_v17 = vpop.permute.xlu1 %407 }
  0x91   :  { %v418_v18 = vpop.permute.xlu1 %417 }
  0x95   :  { %v423_v20 = vpop.permute.xlu1 %422 }
  0xcc   :  { %v529_v33 = vpop.f32.mrf.mxu1 }
  0xce   :  { %v317_v36 = vpop.f32.mrf.mxu1 }
  0xd0   :  { %v530_v41 = vpop.f32.mrf.mxu1 }
  0xd2   :  { %v320_v50 = vpop.f32.mrf.mxu1 }
  0xe2   :  { %v507_v34 = vpop.f32.mrf.mxu0 }
  0xe4   :  { %v508_v37 = vpop.f32.mrf.mxu0 }
  0xe5   :  { %v509_v38 = vadd.f32 %v508_v37, %v507_v34 }
  0xe6   :  { %v510_v39 = vpop.f32.mrf.mxu0 }
  0xe7   :  { %v269_v40 = vadd.f32 %v509_v38, %v72_v35 }
  0xe8   :  { %v511_v42 = vpop.f32.mrf.mxu0 }
  0xe9   :  { %v318_v43 = vadd.f32 %v317_v36, %v269_v40  ;;  %v512_v44 = vadd.f32 %v511_v42, %v510_v39 }
  0xea   :  { %v513_v46 = vpop.f32.mrf.mxu0 }
  0xeb   :  { %v272_v48 = vadd.f32 %v512_v44, %v77_v45  ;;  %v697_v49 = vmax.f32 %v318_v43, 0.0 }
  0xec   :  { %v514_v51 = vpop.f32.mrf.mxu0 }
  0xed   :  { %v321_v52 = vadd.f32 %v320_v50, %v272_v48  ;;  %v515_v53 = vadd.f32 %v514_v51, %v513_v46  ;;  %v336_v54 = vsel %vm227_vm0, %v697_v49, 0.0  ;;  %v353_v55 = vmul.f32 %v697_v49, %v697_v49 }
  0xee   :  { %v516_v56 = vpop.f32.mrf.mxu0  ;;  %337 = vadd.xlane.f32.xlu0 %v336_v54 }
  0xef   :  { %v277_v57 = vadd.f32 %v515_v53, %v82_v47  ;;  %v357_v58 = vsel %vm227_vm0, %v353_v55, 0.0  ;;  %v704_v59 = vmax.f32 %v321_v52, 0.0 }
  0xf0   :  { %v517_v60 = vpop.f32.mrf.mxu0  ;;  %358 = vadd.xlane.f32.xlu1 %v357_v58 }
  0xf1   :  { %v326_v61 = vadd.f32 %v529_v33, %v277_v57  ;;  %v518_v62 = vadd.f32 %v517_v60, %v516_v56  ;;  %v354_v63 = vmul.f32 %v704_v59, %v704_v59  ;;  %v339_v3 = vsel %vm227_vm0, %v704_v59, 0.0 }
  0xf3   :  { %v708_v1 = vmax.f32 %v326_v61, 0.0  ;;  %v280_v2 = vadd.f32 %v518_v62, %v87_v0  ;;  %v360_v4 = vsel %vm227_vm0, %v354_v63, 0.0 }
  0xf4   :  { %340 = vadd.xlane.f32.xlu1 %v339_v3  ;;  %361 = vadd.xlane.f32.xlu0 %v360_v4 }
  0xf5   :  { %v329_v5 = vadd.f32 %v530_v41, %v280_v2  ;;  %v355_v6 = vmul.f32 %v708_v1, %v708_v1  ;;  %v342_v8 = vsel %vm227_vm0, %v708_v1, 0.0 }
  0xf7   :  { %v363_v7 = vsel %vm227_vm0, %v355_v6, 0.0  ;;  %v718_v9 = vmax.f32 %v329_v5, 0.0 }
  0xf8   :  { %364 = vadd.xlane.f32.xlu1 %v363_v7  ;;  %343 = vadd.xlane.f32.xlu0 %v342_v8 }
  0xf9   :  { %v345_v10 = vsel %vm227_vm0, %v718_v9, 0.0  ;;  %v356_v11 = vmul.f32 %v718_v9, %v718_v9 }
  0xfb   :  { %v366_v12 = vsel %vm227_vm0, %v356_v11, 0.0 }
  0xfc   :  { %346 = vadd.xlane.f32.xlu0 %v345_v10 }
 0x100   :  { %367 = vadd.xlane.f32.xlu0 %v366_v12 }
 0x109   :  { %440 = vperm.xlu1 %533, %v430_v13  }
 0x10d   :  { %450 = vperm.xlu1 %533, %v432_v14  }
 0x116   :  { %435 = vperm.xlu0 %532, %v429_v15  }
 0x11a   :  { %445 = vperm.xlu0 %532, %v431_v16  }
 0x177   :  { %v338_v21 = vpop.xlane.xlu0 %337 }
 0x178   :  { %v349_v22 = vmul.f32 0.03125, %v338_v21 }
 0x179   :  { %v359_v23 = vpop.xlane.xlu1 %358 }
 0x17a   :  { %v373_v24 = vmul.f32 %v349_v22, %v349_v22  ;;  %v369_v25 = vmul.f32 0.03125, %v359_v23  ;;  %v385_v52 = vsub.f32 %v697_v49, %v349_v22 }
 0x17c   :  { %v377_v26 = vsub.f32 %v369_v25, %v373_v24 }
 0x17d   :  { %v341_v27 = vpop.xlane.xlu1 %340  ;;  %v362_v28 = vpop.xlane.xlu0 %361 }
 0x17e   :  { %v381_v29 = vmax.f32 %v377_v26, 0.0  ;;  %v350_v30 = vmul.f32 0.03125, %v341_v27  ;;  %v370_v33 = vmul.f32 0.03125, %v362_v28 }
 0x180   :  { %v389_v31 = vadd.f32 1e-05, %v381_v29  ;;  %v374_v32 = vmul.f32 %v350_v30, %v350_v30  ;;  %v386_v60 = vsub.f32 %v704_v59, %v350_v30 }
 0x181   :  { %v365_v34 = vpop.xlane.xlu1 %364  ;;  %v344_v35 = vpop.xlane.xlu0 %343 }
 0x182   :  { %560 = vrsqrt.f32 %v389_v31  ;;  %v378_v36 = vsub.f32 %v370_v33, %v374_v32  ;;  %v351_v37 = vmul.f32 0.03125, %v344_v35  ;;  %v371_v39 = vmul.f32 0.03125, %v365_v34 }
 0x184   :  { %v382_v38 = vmax.f32 %v378_v36, 0.0  ;;  %v375_v40 = vmul.f32 %v351_v37, %v351_v37  ;;  %v387_v0 = vsub.f32 %v708_v1, %v351_v37 }
 0x185   :  { %v347_v41 = vpop.xlane.xlu0 %346  ;;  %v441_v3 = vpop.permute.xlu1 %440 }
 0x186   :  { %v390_v42 = vadd.f32 1e-05, %v382_v38  ;;  %v379_v43 = vsub.f32 %v371_v39, %v375_v40  ;;  %v352_v44 = vmul.f32 0.03125, %v347_v41 }
 0x188   :  { %562 = vrsqrt.f32 %v390_v42  ;;  %v383_v45 = vmax.f32 %v379_v43, 0.0  ;;  %v376_v48 = vmul.f32 %v352_v44, %v352_v44  ;;  %v388_v7 = vsub.f32 %v718_v9, %v352_v44 }
 0x189   :  { %v368_v46 = vpop.xlane.xlu0 %367  ;;  %v451_v12 = vpop.permute.xlu1 %450 }
 0x18a   :  { %v391_v47 = vadd.f32 1e-05, %v383_v45  ;;  %v372_v50 = vmul.f32 0.03125, %v368_v46 }
 0x18c   :  { %564 = vrsqrt.f32 %v391_v47  ;;  %v380_v51 = vsub.f32 %v372_v50, %v376_v48 }
 0x18e   :  { %v384_v53 = vmax.f32 %v380_v51, 0.0 }
 0x18f   :  { %v561_v54 = vpop.eup %560 }
 0x190   :  { %v392_v55 = vadd.f32 1e-05, %v384_v53  ;;  %v397_v56 = vmul.f32 %v561_v54, %v385_v52 }
 0x191   :  { %v436_v58 = vpop.permute.xlu0 %435 }
 0x192   :  { %566 = vrsqrt.f32 %v392_v55  ;;  %v425_v57 = vmul.f32 %v408_v17, %v397_v56 }
 0x194   :  { %v453_v61 = vadd.f32 %v436_v58, %v425_v57 }
 0x195   :  { %v563_v62 = vpop.eup %562  ;;  %v446_v6 = vpop.permute.xlu0 %445 }
 0x196   :  { %v398_v63 = vmul.f32 %v563_v62, %v386_v60  ;;  %457 = vst.msk [vmem:[%s762_s5] sm:$0xff] %vm227_vm0, %v453_v61 }
 0x198   :  { %v426_v49 = vmul.f32 %v413_v19, %v398_v63 }
 0x199   :  { %v565_v2 = vpop.eup %564 }
 0x19a   :  { %v454_v4 = vadd.f32 %v441_v3, %v426_v49  ;;  %v399_v5 = vmul.f32 %v565_v2, %v387_v0 }
 0x19c   :  { %458 = vst.msk [vmem:[%s762_s5 + $0x8] sm:$0xff] %vm227_vm0, %v454_v4  ;;  %v427_v59 = vmul.f32 %v418_v18, %v399_v5 }
 0x19e   :  { %v455_v8 = vadd.f32 %v446_v6, %v427_v59 }
 0x19f   :  { %v567_v10 = vpop.eup %566 }
 0x1a0   :  { %v400_v11 = vmul.f32 %v567_v10, %v388_v7  ;;  %459 = vst.msk [vmem:[%s762_s5 + $0x10] sm:$0xff] %vm227_vm0, %v455_v8 }
 0x1a2   :  { %v428_v1 = vmul.f32 %v423_v20, %v400_v11 }
 0x1a4   :  { %v456_v13 = vadd.f32 %v451_v12, %v428_v1 }
 0x1a6   :  { %460 = vst.msk [vmem:[%s762_s5 + $0x18] sm:$0xff] %vm227_vm0, %v456_v13 }

// kernel: pb_fcn2_forward.21
= control target key start
LH: loop header
LB: loop body
LE: loop exit
PB: predicated region body
PF: predicated region fallthrough
CT: control target
= control target key end

     0   :  { %v855_v1 = vmov 0   ;;  %vm289_vm0 = vcmask 261120   ;;  %vm440_vm1 = vcmask 64512   ;;  %s1209_s0 = inlined_call_operand.vmem [shape: bf16[288,8], index: 0, kind: input, shape index: {}]   ;;  %s1210_s1 = inlined_call_operand.vmem [shape: bf16[64,288], index: 1, kind: input, shape index: {}]   ;;  %s1211_s2 = inlined_call_operand.vmem [shape: f32[64,1], index: 2, kind: input, shape index: {}]   ;;  %s1212_s3 = inlined_call_operand.vmem [shape: f32[64,1], index: 3, kind: input, shape index: {}]   ;;  %s1213_s4 = inlined_call_operand.vmem [shape: f32[64,1], index: 4, kind: input, shape index: {}]   ;;  %s1214_s5 = inlined_call_operand.vmem [shape: f32[64,8], index: 5, kind: output, shape index: {}]  }
   0x1   :  { %v805_v0 = vld [vmem:[%s1209_s0 + $0x78] sm:$0xff]   ;;  %804 = vset.pattern.permute.xlu1 %v855_v1  ;;  %803 = vset.pattern.permute.xlu0 %v855_v1  ;;  %v807_v3 = vld [vmem:[%s1209_s0 + $0x70] sm:$0xff]   ;;  %v809_v5 = vld [vmem:[%s1209_s0 + $0x68] sm:$0xff]  }
   0x2   :  { %v806_v2 = vld [vmem:[%s1209_s0 + $0x38] sm:$0xff]   ;;  %728 = vmatprep.subr.bf16.mxu0 %v805_v0  ;;  %786 = vmatprep.subr.bf16.mxu1 %v805_v0  ;;  %v808_v4 = vld [vmem:[%s1209_s0 + $0x30] sm:$0xff]   ;;  %v810_v6 = vld [vmem:[%s1209_s0 + $0x28] sm:$0xff]  }
   0x3   :  { %729 = vmatpush3.bf16.msra.mxu0 %v806_v2  ;;  %794 = vmatpush3.bf16.msra.mxu1 %v806_v2  ;;  %v811_v7 = vld [vmem:[%s1209_s0 + $0x60] sm:$0xff]   ;;  %v813_v9 = vld [vmem:[%s1209_s0 + $0x58] sm:$0xff]   ;;  %v815_v11 = vld [vmem:[%s1209_s0 + $0x50] sm:$0xff]  }
   0x4   :  { %730 = vmatprep.subr.bf16.mxu0 %v807_v3  ;;  %787 = vmatprep.subr.bf16.mxu1 %v807_v3  ;;  %v812_v8 = vld [vmem:[%s1209_s0 + $0x20] sm:$0xff]   ;;  %v814_v10 = vld [vmem:[%s1209_s0 + $0x18] sm:$0xff]   ;;  %v816_v14 = vld [vmem:[%s1209_s0 + $0x10] sm:$0xff]  }
   0x5   :  { %v823_v12 = vld [vmem:[%s1210_s1 + $0x4] ss:$12 sps:$4 sm:$0xff]   ;;  %v826_v13 = vld [vmem:[%s1210_s1 + $0x4c] ss:$12 sps:$4 sm:$0xff]   ;;  %v824_v23 = vld [vmem:[%s1210_s1 + $0x48] ss:$12 sps:$4 sm:$0xff]  }
   0x6   :  { %v817_v15 = vld [vmem:[%s1209_s0 + $0x48] sm:$0xff]   ;;  %334 = vmatprep.mubr.bf16.mxu0 %v823_v12  ;;  %358 = vmatprep.mubr.bf16.mxu1 %v826_v13  ;;  %v819_v17 = vld [vmem:[%s1209_s0 + $0x40] sm:$0xff]   ;;  %v75_v19 = vld [vmem:[%s1211_s2 + $0x10] sm:$0xff] }
   0x7   :  { %731 = vmatpush3.bf16.msra.mxu0 %v808_v4  ;;  %795 = vmatpush3.bf16.msra.mxu1 %v808_v4  ;;  %v818_v16 = vld [vmem:[%s1209_s0 + $0x8] sm:$0xff]   ;;  %v820_v18 = vld [vmem:[%s1209_s0] sm:$0xff]   ;;  %v76_v24 = vld [vmem:[%s1211_s2 + $0x18] sm:$0xff] }
   0x8   :  { %732 = vmatprep.subr.bf16.mxu0 %v809_v5  ;;  %788 = vmatprep.subr.bf16.mxu1 %v809_v5  ;;  %v827_v20 = vld [vmem:[%s1209_s0 + $0x88] sm:$0xff]   ;;  %v73_v21 = vld [vmem:[%s1211_s2] sm:$0xff]  ;;  %v80_v33 = vld [vmem:[%s1211_s2 + $0x38] sm:$0xff] }
   0x9   :  { %v821_v22 = vld [vmem:[%s1210_s1] ss:$12 sps:$4 sm:$0xff]   ;;  %93 = vperm.xlu1 %804, %v75_v19   ;;  %83 = vperm.xlu0 %803, %v73_v21   ;;  %v829_v26 = vld [vmem:[%s1210_s1 + $0x1c] ss:$12 sps:$4 sm:$0xff]   ;;  %v832_v31 = vld [vmem:[%s1210_s1 + $0x18] ss:$12 sps:$4 sm:$0xff]  }
   0xa   :  { %v74_v25 = vld [vmem:[%s1211_s2 + $0x8] sm:$0xff]  ;;  %v828_v27 = vld [vmem:[%s1209_s0 + $0x80] sm:$0xff]   ;;  %v79_v34 = vld [vmem:[%s1211_s2 + $0x30] sm:$0xff] }
   0xb   :  { %733 = vmatpush3.bf16.msra.mxu0 %v810_v6  ;;  %796 = vmatpush3.bf16.msra.mxu1 %v810_v6  ;;  %v831_v28 = vld [vmem:[%s1210_s1 + $0x8] ss:$12 sps:$4 sm:$0xff]   ;;  %v77_v30 = vld [vmem:[%s1211_s2 + $0x20] sm:$0xff]  ;;  %v837_v39 = vld [vmem:[%s1210_s1 + $0x30] ss:$12 sps:$4 sm:$0xff]  }
   0xc   :  { %734 = vmatprep.subr.bf16.mxu0 %v811_v7  ;;  %789 = vmatprep.subr.bf16.mxu1 %v811_v7  ;;  %v78_v29 = vld [vmem:[%s1211_s2 + $0x28] sm:$0xff]  ;;  %v834_v35 = vld [vmem:[%s1210_s1 + $0x34] ss:$12 sps:$4 sm:$0xff]   ;;  %v836_v36 = vld [vmem:[%s1210_s1 + $0x38] ss:$12 sps:$4 sm:$0xff]  }
   0xd   :  { %98 = vperm.xlu1 %804, %v76_v24   ;;  %88 = vperm.xlu0 %803, %v74_v25   ;;  %v833_v32 = vld [vmem:[%s1210_s1 + $0x20] ss:$12 sps:$4 sm:$0xff]   ;;  %v838_v40 = vld [vmem:[%s1210_s1 + $0x50] ss:$12 sps:$4 sm:$0xff]  }
   0xe   :  { %v570_v37 = vld [vmem:[%s1212_s3] sm:$0xff]  ;;  %v571_v38 = vld [vmem:[%s1212_s3 + $0x8] sm:$0xff]  ;;  %v572_v41 = vld [vmem:[%s1212_s3 + $0x10] sm:$0xff] }
   0xf   :  { %735 = vmatpush3.bf16.msra.mxu0 %v812_v8  ;;  %797 = vmatpush3.bf16.msra.mxu1 %v812_v8  ;;  %v574_v42 = vld [vmem:[%s1212_s3 + $0x20] sm:$0xff]  ;;  %v573_v43 = vld [vmem:[%s1212_s3 + $0x18] sm:$0xff]  ;;  %v576_v44 = vld [vmem:[%s1212_s3 + $0x30] sm:$0xff] }
  0x10   :  { %736 = vmatprep.subr.bf16.mxu0 %v813_v9  ;;  %790 = vmatprep.subr.bf16.mxu1 %v813_v9  ;;  %v575_v45 = vld [vmem:[%s1212_s3 + $0x28] sm:$0xff]  ;;  %v626_v46 = vld [vmem:[%s1213_s4] sm:$0xff]  ;;  %v577_v47 = vld [vmem:[%s1212_s3 + $0x38] sm:$0xff] }
  0x11   :  { %108 = vperm.xlu1 %804, %v78_v29   ;;  %103 = vperm.xlu0 %803, %v77_v30   ;;  %v628_v48 = vld [vmem:[%s1213_s4 + $0x10] sm:$0xff]  ;;  %v627_v49 = vld [vmem:[%s1213_s4 + $0x8] sm:$0xff]  ;;  %v629_v50 = vld [vmem:[%s1213_s4 + $0x18] sm:$0xff] }
  0x13   :  { %737 = vmatpush3.bf16.msra.mxu0 %v814_v10  ;;  %798 = vmatpush3.bf16.msra.mxu1 %v814_v10 }
  0x14   :  { %738 = vmatprep.subr.bf16.mxu0 %v815_v11  ;;  %791 = vmatprep.subr.bf16.mxu1 %v815_v11 }
  0x15   :  { %118 = vperm.xlu1 %804, %v80_v33   ;;  %113 = vperm.xlu0 %803, %v79_v34  }
  0x17   :  { %739 = vmatpush3.bf16.msra.mxu0 %v816_v14  ;;  %799 = vmatpush3.bf16.msra.mxu1 %v816_v14 }
  0x18   :  { %740 = vmatprep.subr.bf16.mxu0 %v817_v15  ;;  %792 = vmatprep.subr.bf16.mxu1 %v817_v15 }
  0x19   :  { %580 = vperm.xlu1 %804, %v570_v37   ;;  %585 = vperm.xlu0 %803, %v571_v38  }
  0x1b   :  { %741 = vmatpush3.bf16.msra.mxu0 %v818_v16  ;;  %800 = vmatpush3.bf16.msra.mxu1 %v818_v16 }
  0x1c   :  { %742 = vmatprep.subr.bf16.mxu0 %v819_v17  ;;  %793 = vmatprep.subr.bf16.mxu1 %v819_v17 }
  0x1d   :  { %590 = vperm.xlu1 %804, %v572_v41   ;;  %600 = vperm.xlu0 %803, %v574_v42  }
  0x1f   :  { %743 = vmatpush3.bf16.msra.mxu0 %v820_v18  ;;  %801 = vmatpush3.bf16.msra.mxu1 %v820_v18 }
  0x20   :  { %774 = vmatprep.subr.bf16.mxu1 %v827_v20 }
  0x21   :  { %595 = vperm.xlu1 %804, %v573_v43   ;;  %610 = vperm.xlu0 %803, %v576_v44  }
  0x22   :  { %335 = vmatmul.mubr.bf16.vlgmr.msra.gmra.mxu0 %v821_v22  ;;  %359 = vmatmul.mubr.bf16.vlgmr.msra.gmra.mxu1 %v824_v23 }
  0x23   :  { %775 = vmatpush3.bf16.msra.mxu1 %v827_v20  ;;  %342 = vmatprep.mubr.bf16.mxu0 %v829_v26 }
  0x24   :  { %776 = vmatprep.subr.bf16.mxu1 %v828_v27  ;;  %778 = vmatprep.mubr.msk.bf16.mxu1 %vm289_vm0, %v831_v28 }
  0x25   :  { %605 = vperm.xlu1 %804, %v575_v45   ;;  %636 = vperm.xlu0 %803, %v626_v46  }
  0x27   :  { %777 = vmatpush3.bf16.msra.mxu1 %v828_v27 }
  0x29   :  { %615 = vperm.xlu1 %804, %v577_v47   ;;  %646 = vperm.xlu0 %803, %v628_v48  }
  0x2a   :  { %343 = vmatmul.mubr.bf16.gmra.mxu0 %v832_v31  ;;  %779 = vmatmul.mubr.msk.bf16.vlgmr.msra.gmra.mxu1 %vm289_vm0, %v833_v32 }
  0x2b   :  { %350 = vmatprep.mubr.bf16.mxu0 %v834_v35  ;;  %782 = vmatprep.mubr.msk.bf16.mxu1 %vm289_vm0, %v836_v36 }
  0x2d   :  { %641 = vperm.xlu1 %804, %v627_v49  }
  0x31   :  { %651 = vperm.xlu1 %804, %v629_v50  }
  0x32   :  { %351 = vmatmul.mubr.bf16.gmra.mxu0 %v837_v39  ;;  %783 = vmatmul.mubr.msk.bf16.gmra.mxu1 %vm289_vm0, %v838_v40 }
  0x84   :  { %v84_v51 = vpop.permute.xlu0 %83  ;;  %v94_v54 = vpop.permute.xlu1 %93 }
  0x88   :  { %v89_v57 = vpop.permute.xlu0 %88  ;;  %v99_v63 = vpop.permute.xlu1 %98 }
  0x8c   :  { %v104_v2 = vpop.permute.xlu0 %103  ;;  %v109_v12 = vpop.permute.xlu1 %108 }
  0x90   :  { %v114_v18 = vpop.permute.xlu0 %113  ;;  %v119_v35 = vpop.permute.xlu1 %118 }
  0xe2   :  { %v744_v52 = vpop.f32.mrf.mxu0  ;;  %v762_v53 = vpop.f32.mrf.mxu1 }
  0xe4   :  { %v745_v55 = vpop.f32.mrf.mxu0  ;;  %v763_v56 = vpop.f32.mrf.mxu1 }
  0xe5   :  { %v746_v60 = vadd.f32 %v745_v55, %v744_v52  ;;  %v764_v9 = vadd.f32 %v763_v56, %v762_v53 }
  0xe6   :  { %v747_v58 = vpop.f32.mrf.mxu0  ;;  %v765_v59 = vpop.f32.mrf.mxu1 }
  0xe7   :  { %v337_v4 = vadd.f32 %v746_v60, %v84_v51  ;;  %v361_v24 = vadd.f32 %v764_v9, %v114_v18  ;;  %v1112_v18 = vpop.permute.xlu0 %585 }
  0xe8   :  { %v748_v61 = vpop.f32.mrf.mxu0  ;;  %v766_v62 = vpop.f32.mrf.mxu1 }
  0xe9   :  { %v749_v3 = vadd.f32 %v748_v61, %v747_v58  ;;  %v767_v27 = vadd.f32 %v766_v62, %v765_v59 }
  0xea   :  { %v750_v0 = vpop.f32.mrf.mxu0  ;;  %v780_v1 = vpop.f32.mrf.mxu1 }
  0xeb   :  { %v340_v15 = vadd.f32 %v749_v3, %v89_v57  ;;  %v364_v41 = vadd.f32 %v767_v27, %v119_v35 }
  0xec   :  { %v751_v5 = vpop.f32.mrf.mxu0  ;;  %v401_v6 = vpop.f32.mrf.mxu1 }
  0xed   :  { %v752_v7 = vadd.f32 %v751_v5, %v750_v0  ;;  %v402_v8 = vadd.f32 %v401_v6, %v337_v4 }
  0xee   :  { %v753_v10 = vpop.f32.mrf.mxu0  ;;  %v781_v11 = vpop.f32.mrf.mxu1 }
  0xef   :  { %v345_v13 = vadd.f32 %v752_v7, %v94_v54  ;;  %v1040_v14 = vmax.f32 %v402_v8, 0.0 }
  0xf0   :  { %v754_v16 = vpop.f32.mrf.mxu0  ;;  %v404_v17 = vpop.f32.mrf.mxu1 }
  0xf1   :  { %v410_v19 = vadd.f32 %v780_v1, %v345_v13  ;;  %v755_v20 = vadd.f32 %v754_v16, %v753_v10  ;;  %v405_v21 = vadd.f32 %v404_v17, %v340_v15  ;;  %v441_v22 = vsel %vm440_vm1, %v1040_v14, 0.0  ;;  %v630_v13 = vld [vmem:[%s1213_s4 + $0x20] sm:$0xff]  ;;  %v632_v15 = vld [vmem:[%s1213_s4 + $0x30] sm:$0xff]  ;;  %v1108_v16 = vpop.permute.xlu1 %580 }
  0xf2   :  { %v756_v23 = vpop.f32.mrf.mxu0  ;;  %v784_v25 = vpop.f32.mrf.mxu1  ;;  %442 = vadd.xlane.f32.xlu0 %v441_v22  ;;  %v474_v26 = vmul.f32 %v1040_v14, %v1040_v14 }
  0xf3   :  { %v348_v28 = vadd.f32 %v755_v20, %v99_v63  ;;  %v1046_v29 = vmax.f32 %v405_v21, 0.0  ;;  %v1048_v30 = vmax.f32 %v410_v19, 0.0  ;;  %v426_v31 = vadd.f32 %v784_v25, %v361_v24  ;;  %v1116_v20 = vpop.permute.xlu0 %600 }
  0xf4   :  { %v757_v32 = vpop.f32.mrf.mxu0  ;;  %v417_v33 = vpop.f32.mrf.mxu1  ;;  %v482_v34 = vsel %vm440_vm1, %v474_v26, 0.0 }
  0xf5   :  { %v413_v36 = vadd.f32 %v781_v11, %v348_v28  ;;  %483 = vadd.xlane.f32.xlu1 %v482_v34  ;;  %v447_v37 = vsel %vm440_vm1, %v1048_v30, 0.0  ;;  %v475_v40 = vmul.f32 %v1046_v29, %v1046_v29  ;;  %v1055_v42 = vmax.f32 %v426_v31, 0.0  ;;  %v631_v11 = vld [vmem:[%s1213_s4 + $0x28] sm:$0xff]  ;;  %v1110_v17 = vpop.permute.xlu1 %590 }
  0xf6   :  { %v759_v38 = vpop.f32.mrf.mxu0  ;;  %v785_v39 = vpop.f32.mrf.mxu1  ;;  %448 = vadd.xlane.f32.xlu0 %v447_v37  ;;  %v758_v43 = vadd.f32 %v757_v32, %v756_v23  ;;  %v444_v44 = vsel %vm440_vm1, %v1046_v29, 0.0  ;;  %v476_v51 = vmul.f32 %v1048_v30, %v1048_v30 }
  0xf7   :  { %v429_v45 = vadd.f32 %v785_v39, %v364_v41  ;;  %v485_v46 = vsel %vm440_vm1, %v475_v40, 0.0  ;;  %v1060_v47 = vmax.f32 %v413_v36, 0.0  ;;  %v459_v50 = vsel %vm440_vm1, %v1055_v42, 0.0  ;;  %v1120_v22 = vpop.permute.xlu0 %610 }
  0xf8   :  { %v760_v48 = vpop.f32.mrf.mxu0  ;;  %v353_v49 = vadd.f32 %v758_v43, %v104_v2  ;;  %v488_v56 = vsel %vm440_vm1, %v476_v51, 0.0  ;;  %v480_v57 = vmul.f32 %v1055_v42, %v1055_v42  ;;  %v420_v62 = vpop.f32.mrf.mxu1 }
  0xf9   :  { %445 = vadd.xlane.f32.xlu1 %v444_v44  ;;  %v1066_v52 = vmax.f32 %v429_v45, 0.0  ;;  %v761_v53 = vadd.f32 %v760_v48, %v759_v38  ;;  %v450_v54 = vsel %vm440_vm1, %v1060_v47, 0.0  ;;  %v477_v60 = vmul.f32 %v1060_v47, %v1060_v47  ;;  %v1114_v19 = vpop.permute.xlu1 %595 }
  0xfa   :  { %486 = vadd.xlane.f32.xlu0 %v485_v46  ;;  %v418_v55 = vadd.f32 %v417_v33, %v353_v49  ;;  %v500_v63 = vsel %vm440_vm1, %v480_v57, 0.0 }
  0xfb   :  { %v356_v58 = vadd.f32 %v761_v53, %v109_v12  ;;  %v462_v59 = vsel %vm440_vm1, %v1066_v52, 0.0  ;;  %v491_v1 = vsel %vm440_vm1, %v477_v60, 0.0  ;;  %v481_v2 = vmul.f32 %v1066_v52, %v1066_v52  ;;  %v633_v12 = vld [vmem:[%s1213_s4 + $0x38] sm:$0xff]  ;;  %v1124_v24 = vpop.permute.xlu0 %636 }
  0xfc   :  { %v1077_v61 = vmax.f32 %v418_v55, 0.0 }
  0xfd   :  { %460 = vadd.xlane.f32.xlu1 %v459_v50  ;;  %v421_v0 = vadd.f32 %v420_v62, %v356_v58  ;;  %v503_v6 = vsel %vm440_vm1, %v481_v2, 0.0  ;;  %v1118_v21 = vpop.permute.xlu1 %605 }
  0xfe   :  { %451 = vadd.xlane.f32.xlu0 %v450_v54  ;;  %v453_v3 = vsel %vm440_vm1, %v1077_v61, 0.0  ;;  %v478_v4 = vmul.f32 %v1077_v61, %v1077_v61 }
  0xff   :  { %v1087_v5 = vmax.f32 %v421_v0, 0.0  ;;  %v1128_v26 = vpop.permute.xlu0 %646 }
 0x100   :  { %v494_v7 = vsel %vm440_vm1, %v478_v4, 0.0 }
 0x101   :  { %489 = vadd.xlane.f32.xlu1 %v488_v56  ;;  %v456_v8 = vsel %vm440_vm1, %v1087_v5, 0.0  ;;  %v479_v9 = vmul.f32 %v1087_v5, %v1087_v5  ;;  %v1122_v23 = vpop.permute.xlu1 %615 }
 0x102   :  { %463 = vadd.xlane.f32.xlu0 %v462_v59 }
 0x103   :  { %v497_v10 = vsel %vm440_vm1, %v479_v9, 0.0 }
 0x105   :  { %501 = vadd.xlane.f32.xlu1 %v500_v63  ;;  %v1126_v25 = vpop.permute.xlu1 %641 }
 0x106   :  { %492 = vadd.xlane.f32.xlu0 %v491_v1 }
 0x109   :  { %454 = vadd.xlane.f32.xlu1 %v453_v3  ;;  %v1130_v27 = vpop.permute.xlu1 %651 }
 0x10a   :  { %504 = vadd.xlane.f32.xlu0 %v503_v6 }
 0x10d   :  { %495 = vadd.xlane.f32.xlu1 %v494_v7 }
 0x10e   :  { %457 = vadd.xlane.f32.xlu0 %v456_v8 }
 0x112   :  { %498 = vadd.xlane.f32.xlu0 %v497_v10 }
 0x11e   :  { %661 = vperm.xlu1 %804, %v631_v11  }
 0x122   :  { %671 = vperm.xlu1 %804, %v633_v12  }
 0x128   :  { %656 = vperm.xlu0 %803, %v630_v13  }
 0x12c   :  { %666 = vperm.xlu0 %803, %v632_v15  }
 0x17b   :  { %v443_v28 = vpop.xlane.xlu0 %442 }
 0x17c   :  { %v466_v31 = vmul.f32 0.125, %v443_v28 }
 0x17e   :  { %v514_v32 = vmul.f32 %v466_v31, %v466_v31  ;;  %v484_v33 = vpop.xlane.xlu1 %483  ;;  %v538_v10 = vsub.f32 %v1040_v14, %v466_v31 }
 0x17f   :  { %v506_v34 = vmul.f32 0.125, %v484_v33  ;;  %v449_v35 = vpop.xlane.xlu0 %448 }
 0x180   :  { %v1132_v46 = vmul.f32 0.125, %v449_v35 }
 0x181   :  { %v522_v36 = vsub.f32 %v506_v34, %v514_v32 }
 0x182   :  { %v446_v37 = vpop.xlane.xlu1 %445  ;;  %v516_v53 = vmul.f32 %v1132_v46, %v1132_v46 }
 0x183   :  { %v530_v38 = vmax.f32 %v522_v36, 0.0  ;;  %v467_v39 = vmul.f32 0.125, %v446_v37  ;;  %v487_v40 = vpop.xlane.xlu0 %486 }
 0x184   :  { %v507_v41 = vmul.f32 0.125, %v487_v40 }
 0x185   :  { %v546_v43 = vadd.f32 1e-05, %v530_v38  ;;  %v515_v44 = vmul.f32 %v467_v39, %v467_v39 }
 0x186   :  { %v461_v45 = vpop.xlane.xlu1 %460 }
 0x187   :  { %839 = vrsqrt.f32 %v546_v43  ;;  %v523_v48 = vsub.f32 %v507_v41, %v515_v44  ;;  %v452_v49 = vpop.xlane.xlu0 %451  ;;  %v1136_v55 = vmul.f32 0.125, %v461_v45 }
 0x188   :  { %v1138_v58 = vmul.f32 0.125, %v452_v49 }
 0x189   :  { %v531_v50 = vmax.f32 %v523_v48, 0.0  ;;  %v520_v62 = vmul.f32 %v1136_v55, %v1136_v55  ;;  %v539_v48 = vsub.f32 %v1046_v29, %v467_v39  ;;  %v540_v29 = vsub.f32 %v1048_v30, %v1132_v46 }
 0x18a   :  { %v490_v51 = vpop.xlane.xlu1 %489  ;;  %v517_v2 = vmul.f32 %v1138_v58, %v1138_v58  ;;  %v541_v30 = vsub.f32 %v1060_v47, %v1138_v58 }
 0x18b   :  { %v547_v54 = vadd.f32 1e-05, %v531_v50  ;;  %v508_v56 = vmul.f32 0.125, %v490_v51  ;;  %v464_v57 = vpop.xlane.xlu0 %463 }
 0x18c   :  { %v1144_v3 = vmul.f32 0.125, %v464_v57 }
 0x18d   :  { %841 = vrsqrt.f32 %v547_v54  ;;  %v524_v59 = vsub.f32 %v508_v56, %v516_v53 }
 0x18e   :  { %v502_v60 = vpop.xlane.xlu1 %501  ;;  %v521_v28 = vmul.f32 %v1144_v3, %v1144_v3 }
 0x18f   :  { %v532_v63 = vmax.f32 %v524_v59, 0.0  ;;  %v512_v0 = vmul.f32 0.125, %v502_v60  ;;  %v493_v1 = vpop.xlane.xlu0 %492 }
 0x190   :  { %v509_v4 = vmul.f32 0.125, %v493_v1 }
 0x191   :  { %v548_v6 = vadd.f32 1e-05, %v532_v63  ;;  %v528_v7 = vsub.f32 %v512_v0, %v520_v62 }
 0x192   :  { %v525_v8 = vsub.f32 %v509_v4, %v517_v2  ;;  %v455_v9 = vpop.xlane.xlu1 %454 }
 0x193   :  { %843 = vrsqrt.f32 %v548_v6  ;;  %v536_v11 = vmax.f32 %v528_v7, 0.0  ;;  %v1147_v12 = vmul.f32 0.125, %v455_v9  ;;  %v505_v13 = vpop.xlane.xlu0 %504 }
 0x194   :  { %v840_v15 = vpop.eup %839  ;;  %v533_v32 = vmax.f32 %v525_v8, 0.0  ;;  %v513_v33 = vmul.f32 0.125, %v505_v13 }
 0x195   :  { %v562_v34 = vmul.f32 %v840_v15, %v538_v10  ;;  %v552_v35 = vadd.f32 1e-05, %v536_v11  ;;  %v518_v14 = vmul.f32 %v1147_v12, %v1147_v12  ;;  %v542_v13 = vsub.f32 %v1077_v61, %v1147_v12 }
 0x196   :  { %v549_v36 = vadd.f32 1e-05, %v533_v32  ;;  %v529_v37 = vsub.f32 %v513_v33, %v521_v28  ;;  %v496_v38 = vpop.xlane.xlu1 %495 }
 0x197   :  { %v618_v40 = vmul.f32 %v1108_v16, %v562_v34  ;;  %845 = vrsqrt.f32 %v552_v35  ;;  %v510_v31 = vmul.f32 0.125, %v496_v38  ;;  %v458_v41 = vpop.xlane.xlu0 %457 }
 0x198   :  { %847 = vrsqrt.f32 %v549_v36  ;;  %v537_v43 = vmax.f32 %v529_v37, 0.0  ;;  %v471_v44 = vmul.f32 0.125, %v458_v41 }
 0x199   :  { %v674_v45 = vadd.f32 %v1124_v24, %v618_v40  ;;  %v526_v49 = vsub.f32 %v510_v31, %v518_v14 }
 0x19a   :  { %v842_v50 = vpop.eup %841  ;;  %v553_v51 = vadd.f32 1e-05, %v537_v43  ;;  %v519_v16 = vmul.f32 %v471_v44, %v471_v44  ;;  %v662_v9 = vpop.permute.xlu1 %661  ;;  %v543_v61 = vsub.f32 %v1087_v5, %v471_v44 }
 0x19b   :  { %v563_v53 = vmul.f32 %v842_v50, %v539_v48  ;;  %v534_v54 = vmax.f32 %v526_v49, 0.0  ;;  %v499_v56 = vpop.xlane.xlu0 %498  ;;  %682 = vst.msk [vmem:[%s1214_s5] sm:$0xff] %vm440_vm1, %v674_v45 }
 0x19c   :  { %849 = vrsqrt.f32 %v553_v51  ;;  %v511_v57 = vmul.f32 0.125, %v499_v56 }
 0x19d   :  { %v619_v59 = vmul.f32 %v1112_v18, %v563_v53  ;;  %v550_v60 = vadd.f32 1e-05, %v534_v54  ;;  %v544_v18 = vsub.f32 %v1055_v42, %v1136_v55  ;;  %v545_v55 = vsub.f32 %v1066_v52, %v1144_v3 }
 0x19e   :  { %v527_v24 = vsub.f32 %v511_v57, %v519_v16  ;;  %v672_v52 = vpop.permute.xlu1 %671 }
 0x19f   :  { %v675_v39 = vadd.f32 %v1126_v25, %v619_v59  ;;  %851 = vrsqrt.f32 %v550_v60 }
 0x1a0   :  { %v844_v62 = vpop.eup %843  ;;  %v535_v63 = vmax.f32 %v527_v24, 0.0 }
 0x1a1   :  { %v564_v0 = vmul.f32 %v844_v62, %v540_v29  ;;  %683 = vst.msk [vmem:[%s1214_s5 + $0x8] sm:$0xff] %vm440_vm1, %v675_v39 }
 0x1a2   :  { %v551_v1 = vadd.f32 1e-05, %v535_v63 }
 0x1a3   :  { %v620_v2 = vmul.f32 %v1110_v17, %v564_v0  ;;  %v657_v4 = vpop.permute.xlu0 %656 }
 0x1a4   :  { %v846_v6 = vpop.eup %845  ;;  %853 = vrsqrt.f32 %v551_v1 }
 0x1a5   :  { %v848_v25 = vpop.eup %847  ;;  %v676_v46 = vadd.f32 %v1128_v26, %v620_v2  ;;  %v568_v7 = vmul.f32 %v846_v6, %v544_v18 }
 0x1a6   :  { %v565_v8 = vmul.f32 %v848_v25, %v541_v30 }
 0x1a7   :  { %684 = vst.msk [vmem:[%s1214_s5 + $0x10] sm:$0xff] %vm440_vm1, %v676_v46  ;;  %v624_v42 = vmul.f32 %v1120_v22, %v568_v7  ;;  %v667_v17 = vpop.permute.xlu0 %666 }
 0x1a8   :  { %v621_v47 = vmul.f32 %v1114_v19, %v565_v8 }
 0x1a9   :  { %v850_v58 = vpop.eup %849  ;;  %v680_v10 = vadd.f32 %v667_v17, %v624_v42 }
 0x1aa   :  { %v677_v26 = vadd.f32 %v1130_v27, %v621_v47  ;;  %v569_v11 = vmul.f32 %v850_v58, %v545_v55 }
 0x1ab   :  { %688 = vst.msk [vmem:[%s1214_s5 + $0x30] sm:$0xff] %vm440_vm1, %v680_v10 }
 0x1ac   :  { %v852_v22 = vpop.eup %851  ;;  %v625_v15 = vmul.f32 %v1122_v23, %v569_v11  ;;  %685 = vst.msk [vmem:[%s1214_s5 + $0x18] sm:$0xff] %vm440_vm1, %v677_v26 }
 0x1ad   :  { %v566_v19 = vmul.f32 %v852_v22, %v542_v13 }
 0x1ae   :  { %v681_v27 = vadd.f32 %v672_v52, %v625_v15 }
 0x1af   :  { %v622_v3 = vmul.f32 %v1116_v20, %v566_v19 }
 0x1b0   :  { %689 = vst.msk [vmem:[%s1214_s5 + $0x38] sm:$0xff] %vm440_vm1, %v681_v27 }
 0x1b1   :  { %v854_v12 = vpop.eup %853  ;;  %v678_v28 = vadd.f32 %v657_v4, %v622_v3 }
 0x1b2   :  { %v567_v23 = vmul.f32 %v854_v12, %v543_v61 }
 0x1b3   :  { %686 = vst.msk [vmem:[%s1214_s5 + $0x20] sm:$0xff] %vm440_vm1, %v678_v28 }
 0x1b4   :  { %v623_v32 = vmul.f32 %v1118_v21, %v567_v23 }
 0x1b6   :  { %v679_v33 = vadd.f32 %v662_v9, %v623_v32 }
 0x1b8   :  { %687 = vst.msk [vmem:[%s1214_s5 + $0x28] sm:$0xff] %vm440_vm1, %v679_v33 }

// kernel: pb_fcn2_forward.22
= control target key start
LH: loop header
LB: loop body
LE: loop exit
PB: predicated region body
PF: predicated region fallthrough
CT: control target
= control target key end

     0   :  { %v1206_v1 = vmov 0   ;;  %vm481_vm0 = vcmask 523264   ;;  %vm697_vm1 = vcmask 64512   ;;  %s1663_s0 = inlined_call_operand.vmem [shape: bf16[576,8], index: 0, kind: input, shape index: {}]   ;;  %s1664_s1 = inlined_call_operand.vmem [shape: bf16[64,576], index: 1, kind: input, shape index: {}]   ;;  %s1665_s2 = inlined_call_operand.vmem [shape: f32[64,1], index: 2, kind: input, shape index: {}]   ;;  %s1666_s3 = inlined_call_operand.vmem [shape: f32[64,1], index: 3, kind: input, shape index: {}]   ;;  %s1667_s4 = inlined_call_operand.vmem [shape: f32[64,1], index: 4, kind: input, shape index: {}]   ;;  %s1668_s5 = inlined_call_operand.vmem [shape: f32[64,8], index: 5, kind: output, shape index: {}]  }
   0x1   :  { %v1126_v0 = vld [vmem:[%s1663_s0 + $0x78] sm:$0xff]   ;;  %1125 = vset.pattern.permute.xlu1 %v1206_v1  ;;  %1124 = vset.pattern.permute.xlu0 %v1206_v1  ;;  %v1130_v5 = vld [vmem:[%s1663_s0 + $0x70] sm:$0xff]   ;;  %v1134_v9 = vld [vmem:[%s1663_s0 + $0x68] sm:$0xff]  }
   0x2   :  { %v1127_v2 = vld [vmem:[%s1663_s0 + $0xf8] sm:$0xff]   ;;  %1011 = vmatprep.subr.bf16.mxu0 %v1126_v0  ;;  %v1131_v6 = vld [vmem:[%s1663_s0 + $0xf0] sm:$0xff]   ;;  %v1135_v10 = vld [vmem:[%s1663_s0 + $0xe8] sm:$0xff]  }
   0x3   :  { %v1128_v3 = vld [vmem:[%s1663_s0 + $0x38] sm:$0xff]   ;;  %1051 = vmatprep.subr.bf16.mxu1 %v1127_v2  ;;  %v1132_v7 = vld [vmem:[%s1663_s0 + $0x30] sm:$0xff]   ;;  %v1136_v11 = vld [vmem:[%s1663_s0 + $0x28] sm:$0xff]  }
   0x4   :  { %v1129_v4 = vld [vmem:[%s1663_s0 + $0xb8] sm:$0xff]   ;;  %1012 = vmatpush3.bf16.msra.mxu0 %v1128_v3  ;;  %v1133_v8 = vld [vmem:[%s1663_s0 + $0xb0] sm:$0xff]   ;;  %v1137_v12 = vld [vmem:[%s1663_s0 + $0xa8] sm:$0xff]  }
   0x5   :  { %1052 = vmatpush3.bf16.msra.mxu1 %v1129_v4  ;;  %1013 = vmatprep.subr.bf16.mxu0 %v1130_v5  ;;  %v1138_v13 = vld [vmem:[%s1663_s0 + $0x60] sm:$0xff]   ;;  %v1142_v17 = vld [vmem:[%s1663_s0 + $0x58] sm:$0xff]   ;;  %v1146_v21 = vld [vmem:[%s1663_s0 + $0x50] sm:$0xff]  }
   0x6   :  { %1053 = vmatprep.subr.bf16.mxu1 %v1131_v6  ;;  %v1139_v14 = vld [vmem:[%s1663_s0 + $0xe0] sm:$0xff]   ;;  %v1143_v18 = vld [vmem:[%s1663_s0 + $0xd8] sm:$0xff]   ;;  %v1147_v22 = vld [vmem:[%s1663_s0 + $0xd0] sm:$0xff]  }
   0x7   :  { %v1140_v15 = vld [vmem:[%s1663_s0 + $0x20] sm:$0xff]   ;;  %v1144_v19 = vld [vmem:[%s1663_s0 + $0x18] sm:$0xff]   ;;  %v1148_v23 = vld [vmem:[%s1663_s0 + $0x10] sm:$0xff]  }
   0x8   :  { %1014 = vmatpush3.bf16.msra.mxu0 %v1132_v7  ;;  %v1141_v16 = vld [vmem:[%s1663_s0 + $0xa0] sm:$0xff]   ;;  %v1145_v20 = vld [vmem:[%s1663_s0 + $0x98] sm:$0xff]   ;;  %v1149_v24 = vld [vmem:[%s1663_s0 + $0x90] sm:$0xff]  }
   0x9   :  { %1054 = vmatpush3.bf16.msra.mxu1 %v1133_v8  ;;  %1015 = vmatprep.subr.bf16.mxu0 %v1134_v9  ;;  %v1150_v25 = vld [vmem:[%s1663_s0 + $0x48] sm:$0xff]   ;;  %v1154_v29 = vld [vmem:[%s1663_s0 + $0x40] sm:$0xff]   ;;  %v1164_v37 = vld [vmem:[%s1663_s0 + $0x118] sm:$0xff]  }
   0xa   :  { %1055 = vmatprep.subr.bf16.mxu1 %v1135_v10  ;;  %v1151_v26 = vld [vmem:[%s1663_s0 + $0xc8] sm:$0xff]   ;;  %v1155_v30 = vld [vmem:[%s1663_s0 + $0xc0] sm:$0xff]   ;;  %v1171_v40 = vld [vmem:[%s1663_s0 + $0x110] sm:$0xff]  }
   0xb   :  { %v1152_v27 = vld [vmem:[%s1663_s0 + $0x8] sm:$0xff]   ;;  %v1156_v31 = vld [vmem:[%s1663_s0] sm:$0xff]   ;;  %v1174_v44 = vld [vmem:[%s1664_s1 + $0x5c] ss:$20 sps:$4 sm:$0xff]  }
   0xc   :  { %1016 = vmatpush3.bf16.msra.mxu0 %v1136_v11  ;;  %v1153_v28 = vld [vmem:[%s1663_s0 + $0x88] sm:$0xff]   ;;  %v1157_v32 = vld [vmem:[%s1663_s0 + $0x80] sm:$0xff]   ;;  %v1179_v49 = vld [vmem:[%s1664_s1 + $0x7c] ss:$20 sps:$4 sm:$0xff]  }
   0xd   :  { %1056 = vmatpush3.bf16.msra.mxu1 %v1137_v12  ;;  %1017 = vmatprep.subr.bf16.mxu0 %v1138_v13  ;;  %v1158_v33 = vld [vmem:[%s1664_s1] ss:$20 sps:$4 sm:$0xff]   ;;  %v1160_v34 = vld [vmem:[%s1664_s1 + $0x4] ss:$20 sps:$4 sm:$0xff]   ;;  %v1161_v35 = vld [vmem:[%s1664_s1 + $0x8] ss:$20 sps:$4 sm:$0xff]  }
   0xe   :  { %1057 = vmatprep.subr.bf16.mxu1 %v1139_v14  ;;  %v1163_v36 = vld [vmem:[%s1664_s1 + $0xc] ss:$20 sps:$4 sm:$0xff]   ;;  %526 = vmatprep.mubr.bf16.mxu0 %v1160_v34  ;;  %v1167_v39 = vld [vmem:[%s1664_s1 + $0x34] ss:$20 sps:$4 sm:$0xff]   ;;  %v1170_v42 = vld [vmem:[%s1664_s1 + $0x30] ss:$20 sps:$4 sm:$0xff]  }
   0xf   :  { %591 = vmatprep.mubr.bf16.mxu1 %v1163_v36  ;;  %v1165_v38 = vld [vmem:[%s1664_s1 + $0x2c] ss:$20 sps:$4 sm:$0xff]   ;;  %v1169_v41 = vld [vmem:[%s1664_s1 + $0x28] ss:$20 sps:$4 sm:$0xff]   ;;  %v1176_v47 = vld [vmem:[%s1664_s1 + $0x50] ss:$20 sps:$4 sm:$0xff]  }
  0x10   :  { %1018 = vmatpush3.bf16.msra.mxu0 %v1140_v15  ;;  %v1172_v43 = vld [vmem:[%s1664_s1 + $0x54] ss:$20 sps:$4 sm:$0xff]   ;;  %v1185_v46 = vld [vmem:[%s1663_s0 + $0x100] sm:$0xff]   ;;  %v1177_v48 = vld [vmem:[%s1664_s1 + $0x58] ss:$20 sps:$4 sm:$0xff]  }
  0x11   :  { %1058 = vmatpush3.bf16.msra.mxu1 %v1141_v16  ;;  %1019 = vmatprep.subr.bf16.mxu0 %v1142_v17  ;;  %v1178_v45 = vld [vmem:[%s1663_s0 + $0x108] sm:$0xff]   ;;  %v1181_v50 = vld [vmem:[%s1664_s1 + $0x84] ss:$20 sps:$4 sm:$0xff]   ;;  %v119_v51 = vld [vmem:[%s1665_s2 + $0x10] sm:$0xff] }
  0x12   :  { %1059 = vmatprep.subr.bf16.mxu1 %v1143_v18  ;;  %137 = vperm.xlu1 %1125, %v119_v51   ;;  %v117_v52 = vld [vmem:[%s1665_s2] sm:$0xff]  ;;  %v120_v53 = vld [vmem:[%s1665_s2 + $0x18] sm:$0xff]  ;;  %v118_v54 = vld [vmem:[%s1665_s2 + $0x8] sm:$0xff] }
  0x13   :  { %127 = vperm.xlu0 %1124, %v117_v52   ;;  %v1183_v55 = vld [vmem:[%s1664_s1 + $0x78] ss:$20 sps:$4 sm:$0xff]   ;;  %v1184_v57 = vld [vmem:[%s1664_s1 + $0x80] ss:$20 sps:$4 sm:$0xff]   ;;  %v1186_v58 = vld [vmem:[%s1664_s1 + $0x10] ss:$20 sps:$4 sm:$0xff]  }
  0x14   :  { %1020 = vmatpush3.bf16.msra.mxu0 %v1144_v19  ;;  %v122_v56 = vld [vmem:[%s1665_s2 + $0x28] sm:$0xff]  ;;  %v1187_v59 = vld [vmem:[%s1664_s1 + $0x60] ss:$20 sps:$4 sm:$0xff]   ;;  %v124_v61 = vld [vmem:[%s1665_s2 + $0x38] sm:$0xff] }
  0x15   :  { %1060 = vmatpush3.bf16.msra.mxu1 %v1145_v20  ;;  %1021 = vmatprep.subr.bf16.mxu0 %v1146_v21  ;;  %v121_v60 = vld [vmem:[%s1665_s2 + $0x20] sm:$0xff]  ;;  %v123_v62 = vld [vmem:[%s1665_s2 + $0x30] sm:$0xff]  ;;  %v1188_v63 = vld [vmem:[%s1664_s1 + $0x38] ss:$20 sps:$4 sm:$0xff]  }
  0x16   :  { %1061 = vmatprep.subr.bf16.mxu1 %v1147_v22  ;;  %142 = vperm.xlu1 %1125, %v120_v53   ;;  %v827_v0 = vld [vmem:[%s1666_s3] sm:$0xff]  ;;  %v1189_v1 = vld [vmem:[%s1664_s1 + $0x88] ss:$20 sps:$4 sm:$0xff]   ;;  %v829_v3 = vld [vmem:[%s1666_s3 + $0x10] sm:$0xff] }
  0x17   :  { %132 = vperm.xlu0 %1124, %v118_v54   ;;  %v828_v2 = vld [vmem:[%s1666_s3 + $0x8] sm:$0xff]  ;;  %v831_v4 = vld [vmem:[%s1666_s3 + $0x20] sm:$0xff]  ;;  %v830_v5 = vld [vmem:[%s1666_s3 + $0x18] sm:$0xff] }
  0x18   :  { %1022 = vmatpush3.bf16.msra.mxu0 %v1148_v23  ;;  %v833_v6 = vld [vmem:[%s1666_s3 + $0x30] sm:$0xff]  ;;  %v832_v7 = vld [vmem:[%s1666_s3 + $0x28] sm:$0xff]  ;;  %v883_v8 = vld [vmem:[%s1667_s4] sm:$0xff] }
  0x19   :  { %1062 = vmatpush3.bf16.msra.mxu1 %v1149_v24  ;;  %1023 = vmatprep.subr.bf16.mxu0 %v1150_v25  ;;  %v834_v9 = vld [vmem:[%s1666_s3 + $0x38] sm:$0xff]  ;;  %v885_v10 = vld [vmem:[%s1667_s4 + $0x10] sm:$0xff]  ;;  %v884_v11 = vld [vmem:[%s1667_s4 + $0x8] sm:$0xff] }
  0x1a   :  { %1063 = vmatprep.subr.bf16.mxu1 %v1151_v26  ;;  %152 = vperm.xlu1 %1125, %v122_v56   ;;  %v886_v12 = vld [vmem:[%s1667_s4 + $0x18] sm:$0xff] }
  0x1b   :  { %147 = vperm.xlu0 %1124, %v121_v60  }
  0x1c   :  { %1024 = vmatpush3.bf16.msra.mxu0 %v1152_v27 }
  0x1d   :  { %1064 = vmatpush3.bf16.msra.mxu1 %v1153_v28  ;;  %1025 = vmatprep.subr.bf16.mxu0 %v1154_v29 }
  0x1e   :  { %1065 = vmatprep.subr.bf16.mxu1 %v1155_v30  ;;  %162 = vperm.xlu1 %1125, %v124_v61  }
  0x1f   :  { %157 = vperm.xlu0 %1124, %v123_v62  }
  0x20   :  { %1026 = vmatpush3.bf16.msra.mxu0 %v1156_v31 }
  0x21   :  { %1066 = vmatpush3.bf16.msra.mxu1 %v1157_v32  ;;  %1099 = vmatprep.subr.bf16.mxu0 %v1164_v37 }
  0x22   :  { %1115 = vmatprep.subr.bf16.mxu1 %v1164_v37  ;;  %837 = vperm.xlu1 %1125, %v827_v0  }
  0x23   :  { %527 = vmatmul.mubr.bf16.vlgmr.msra.gmra.mxu0 %v1158_v33  ;;  %842 = vperm.xlu0 %1124, %v828_v2  }
  0x24   :  { %592 = vmatmul.mubr.bf16.vlgmr.msra.gmra.mxu1 %v1161_v35  ;;  %1100 = vmatpush3.bf16.msra.mxu0 %v1164_v37 }
  0x25   :  { %534 = vmatprep.mubr.bf16.mxu0 %v1165_v38  ;;  %599 = vmatprep.mubr.bf16.mxu1 %v1167_v39 }
  0x26   :  { %1119 = vmatpush3.bf16.msra.mxu1 %v1164_v37  ;;  %1101 = vmatprep.subr.bf16.mxu0 %v1171_v40 }
  0x27   :  { %1116 = vmatprep.subr.bf16.mxu1 %v1171_v40  ;;  %847 = vperm.xlu1 %1125, %v829_v3  }
  0x28   :  { %1102 = vmatpush3.bf16.msra.mxu0 %v1171_v40  ;;  %857 = vperm.xlu0 %1124, %v831_v4  }
  0x29   :  { %1103 = vmatprep.subr.bf16.mxu0 %v1178_v45 }
  0x2a   :  { %1120 = vmatpush3.bf16.msra.mxu1 %v1171_v40 }
  0x2b   :  { %535 = vmatmul.mubr.bf16.gmra.mxu0 %v1169_v41  ;;  %1117 = vmatprep.subr.bf16.mxu1 %v1178_v45 }
  0x2c   :  { %600 = vmatmul.mubr.bf16.gmra.mxu1 %v1170_v42  ;;  %542 = vmatprep.mubr.bf16.mxu0 %v1172_v43 }
  0x2d   :  { %607 = vmatprep.mubr.bf16.mxu1 %v1174_v44  ;;  %1104 = vmatpush3.bf16.msra.mxu0 %v1178_v45 }
  0x2e   :  { %1121 = vmatpush3.bf16.msra.mxu1 %v1178_v45  ;;  %1105 = vmatprep.subr.bf16.mxu0 %v1185_v46 }
  0x2f   :  { %1118 = vmatprep.subr.bf16.mxu1 %v1185_v46  ;;  %852 = vperm.xlu1 %1125, %v830_v5  }
  0x30   :  { %867 = vperm.xlu0 %1124, %v833_v6  }
  0x31   :  { %1106 = vmatpush3.bf16.msra.mxu0 %v1185_v46 }
  0x32   :  { %1122 = vmatpush3.bf16.msra.mxu1 %v1185_v46 }
  0x33   :  { %543 = vmatmul.mubr.bf16.gmra.mxu0 %v1176_v47  ;;  %862 = vperm.xlu1 %1125, %v832_v7  }
  0x34   :  { %608 = vmatmul.mubr.bf16.gmra.mxu1 %v1177_v48  ;;  %550 = vmatprep.mubr.bf16.mxu0 %v1179_v49 }
  0x35   :  { %615 = vmatprep.mubr.bf16.mxu1 %v1181_v50  ;;  %893 = vperm.xlu0 %1124, %v883_v8  }
  0x37   :  { %872 = vperm.xlu1 %1125, %v834_v9  }
  0x39   :  { %903 = vperm.xlu0 %1124, %v885_v10  }
  0x3b   :  { %551 = vmatmul.mubr.bf16.gmra.mxu0 %v1183_v55  ;;  %898 = vperm.xlu1 %1125, %v884_v11  }
  0x3c   :  { %616 = vmatmul.mubr.bf16.gmra.mxu1 %v1184_v57  ;;  %1107 = vmatprep.mubr.msk.bf16.mxu0 %vm481_vm0, %v1186_v58 }
  0x3d   :  { %1111 = vmatprep.mubr.msk.bf16.mxu1 %vm481_vm0, %v1187_v59 }
  0x3f   :  { %908 = vperm.xlu1 %1125, %v886_v12  }
  0x43   :  { %1108 = vmatmul.mubr.msk.bf16.vlgmr.msra.gmra.mxu0 %vm481_vm0, %v1188_v63 }
  0x44   :  { %1112 = vmatmul.mubr.msk.bf16.vlgmr.msra.gmra.mxu1 %vm481_vm0, %v1189_v1 }
  0x8d   :  { %v138_v28 = vpop.permute.xlu1 %137 }
  0x8e   :  { %v128_v23 = vpop.permute.xlu0 %127 }
  0x91   :  { %v143_v36 = vpop.permute.xlu1 %142 }
  0x92   :  { %v1477_v31 = vpop.permute.xlu0 %132 }
  0x95   :  { %v153_v46 = vpop.permute.xlu1 %152 }
  0x96   :  { %v148_v39 = vpop.permute.xlu0 %147 }
  0x99   :  { %v163_v5 = vpop.permute.xlu1 %162 }
  0x9a   :  { %v158_v54 = vpop.permute.xlu0 %157 }
  0xe3   :  { %v1027_v13 = vpop.f32.mrf.mxu0 }
  0xe4   :  { %v1067_v14 = vpop.f32.mrf.mxu1 }
  0xe5   :  { %v1028_v15 = vpop.f32.mrf.mxu0 }
  0xe6   :  { %v1068_v16 = vpop.f32.mrf.mxu1  ;;  %v1029_v44 = vadd.f32 %v1028_v15, %v1027_v13 }
  0xe7   :  { %v1469_v17 = vpop.f32.mrf.mxu0  ;;  %v1069_v58 = vadd.f32 %v1068_v16, %v1067_v14 }
  0xe8   :  { %v1471_v18 = vpop.f32.mrf.mxu1  ;;  %v529_v57 = vadd.f32 %v1029_v44, %v128_v23 }
  0xe9   :  { %v1473_v19 = vpop.f32.mrf.mxu0 }
  0xea   :  { %v1475_v20 = vpop.f32.mrf.mxu1  ;;  %v594_v11 = vadd.f32 %v1069_v58, %v529_v57 }
  0xeb   :  { %v1033_v21 = vpop.f32.mrf.mxu0 }
  0xec   :  { %v1073_v22 = vpop.f32.mrf.mxu1 }
  0xed   :  { %v1034_v24 = vpop.f32.mrf.mxu0 }
  0xee   :  { %v1074_v25 = vpop.f32.mrf.mxu1  ;;  %v1035_v41 = vadd.f32 %v1034_v24, %v1033_v21 }
  0xef   :  { %v1036_v26 = vpop.f32.mrf.mxu0  ;;  %v1075_v51 = vadd.f32 %v1074_v25, %v1073_v22 }
  0xf0   :  { %v1076_v27 = vpop.f32.mrf.mxu1  ;;  %v537_v50 = vadd.f32 %v1035_v41, %v138_v28 }
  0xf1   :  { %v1037_v29 = vpop.f32.mrf.mxu0 }
  0xf2   :  { %v1077_v30 = vpop.f32.mrf.mxu1  ;;  %v1038_v47 = vadd.f32 %v1037_v29, %v1036_v26  ;;  %v602_v3 = vadd.f32 %v1075_v51, %v537_v50 }
  0xf3   :  { %v1039_v32 = vpop.f32.mrf.mxu0  ;;  %v1078_v6 = vadd.f32 %v1077_v30, %v1076_v27 }
  0xf4   :  { %v1079_v33 = vpop.f32.mrf.mxu1  ;;  %v540_v61 = vadd.f32 %v1038_v47, %v143_v36  ;;  %v1032_v47 = vadd.f32 %v1473_v19, %v1469_v17  ;;  %v1072_v17 = vadd.f32 %v1475_v20, %v1471_v18 }
  0xf5   :  { %v1040_v34 = vpop.f32.mrf.mxu0 }
  0xf6   :  { %v1080_v35 = vpop.f32.mrf.mxu1  ;;  %v1041_v48 = vadd.f32 %v1040_v34, %v1039_v32  ;;  %v605_v15 = vadd.f32 %v1078_v6, %v540_v61  ;;  %v532_v51 = vadd.f32 %v1032_v47, %v1477_v31  ;;  %v890_v6 = vld [vmem:[%s1667_s4 + $0x38] sm:$0xff] }
  0xf7   :  { %v1042_v37 = vpop.f32.mrf.mxu0  ;;  %v1081_v63 = vadd.f32 %v1080_v35, %v1079_v33 }
  0xf8   :  { %v1082_v38 = vpop.f32.mrf.mxu1  ;;  %v545_v62 = vadd.f32 %v1041_v48, %v148_v39 }
  0xf9   :  { %v1043_v40 = vpop.f32.mrf.mxu0 }
  0xfa   :  { %v1083_v42 = vpop.f32.mrf.mxu1  ;;  %v610_v14 = vadd.f32 %v1081_v63, %v545_v62  ;;  %v1044_v16 = vadd.f32 %v1043_v40, %v1042_v37 }
  0xfb   :  { %v1045_v43 = vpop.f32.mrf.mxu0  ;;  %v1084_v37 = vadd.f32 %v1083_v42, %v1082_v38 }
  0xfc   :  { %v1085_v45 = vpop.f32.mrf.mxu1  ;;  %v548_v36 = vadd.f32 %v1044_v16, %v153_v46 }
  0xfd   :  { %v1046_v49 = vpop.f32.mrf.mxu0 }
  0xfe   :  { %v1047_v52 = vadd.f32 %v1046_v49, %v1045_v43  ;;  %v1086_v53 = vpop.f32.mrf.mxu1  ;;  %v613_v46 = vadd.f32 %v1084_v37, %v548_v36 }
  0xff   :  { %v1087_v55 = vadd.f32 %v1086_v53, %v1085_v45  ;;  %v1048_v56 = vpop.f32.mrf.mxu0 }
 0x100   :  { %v553_v59 = vadd.f32 %v1047_v52, %v158_v54  ;;  %v1088_v60 = vpop.f32.mrf.mxu1 }
 0x101   :  { %v1049_v0 = vpop.f32.mrf.mxu0 }
 0x102   :  { %v1050_v1 = vadd.f32 %v1049_v0, %v1048_v56  ;;  %v1089_v2 = vpop.f32.mrf.mxu1  ;;  %v618_v4 = vadd.f32 %v1087_v55, %v553_v59  ;;  %v597_v56 = vadd.f32 %v1072_v17, %v532_v51 }
 0x103   :  { %v1109_v7 = vpop.f32.mrf.mxu0  ;;  %v1090_v21 = vadd.f32 %v1089_v2, %v1088_v60 }
 0x104   :  { %v556_v8 = vadd.f32 %v1050_v1, %v163_v5  ;;  %v667_v9 = vadd.f32 %v1109_v7, %v602_v3  ;;  %v1113_v10 = vpop.f32.mrf.mxu1  ;;  %v888_v5 = vld [vmem:[%s1667_s4 + $0x28] sm:$0xff]  ;;  %v887_v7 = vld [vmem:[%s1667_s4 + $0x20] sm:$0xff] }
 0x105   :  { %v683_v12 = vadd.f32 %v1113_v10, %v618_v4  ;;  %v658_v13 = vpop.f32.mrf.mxu0 }
 0x106   :  { %v1479_v22 = vmax.f32 %v667_v9, 0.0  ;;  %v659_v23 = vadd.f32 %v658_v13, %v594_v11  ;;  %v674_v24 = vpop.f32.mrf.mxu1  ;;  %v621_v30 = vadd.f32 %v1090_v21, %v556_v8  ;;  %v889_v8 = vld [vmem:[%s1667_s4 + $0x30] sm:$0xff]  ;;  %v1552_v9 = vpop.permute.xlu1 %837 }
 0x107   :  { %v1481_v25 = vmax.f32 %v683_v12, 0.0  ;;  %v675_v26 = vadd.f32 %v674_v24, %v610_v14  ;;  %v1110_v27 = vpop.f32.mrf.mxu0  ;;  %v1556_v11 = vpop.permute.xlu0 %842 }
 0x108   :  { %v1483_v28 = vmax.f32 %v659_v23, 0.0  ;;  %v670_v29 = vadd.f32 %v1110_v27, %v605_v15  ;;  %v704_v32 = vsel %vm697_vm1, %v1479_v22, 0.0  ;;  %v1114_v34 = vpop.f32.mrf.mxu1  ;;  %v733_v45 = vmul.f32 %v1479_v22, %v1479_v22 }
 0x109   :  { %v1487_v33 = vmax.f32 %v675_v26, 0.0  ;;  %v716_v35 = vsel %vm697_vm1, %v1481_v25, 0.0  ;;  %705 = vadd.xlane.f32.xlu0 %v704_v32  ;;  %v686_v40 = vadd.f32 %v1114_v34, %v621_v30  ;;  %v737_v50 = vmul.f32 %v1481_v25, %v1481_v25  ;;  %v661_v53 = vpop.f32.mrf.mxu0 }
 0x10a   :  { %717 = vadd.xlane.f32.xlu1 %v716_v35  ;;  %v1491_v39 = vmax.f32 %v670_v29, 0.0  ;;  %v698_v41 = vsel %vm697_vm1, %v1483_v28, 0.0  ;;  %v677_v43 = vpop.f32.mrf.mxu1  ;;  %v745_v49 = vsel %vm697_vm1, %v733_v45, 0.0  ;;  %v731_v55 = vmul.f32 %v1483_v28, %v1483_v28  ;;  %v1554_v10 = vpop.permute.xlu1 %847 }
 0x10b   :  { %v710_v44 = vsel %vm697_vm1, %v1487_v33, 0.0  ;;  %v1501_v38 = vmax.f32 %v686_v40, 0.0  ;;  %v678_v42 = vadd.f32 %v677_v43, %v613_v46  ;;  %v757_v54 = vsel %vm697_vm1, %v737_v50, 0.0  ;;  %v1560_v13 = vpop.permute.xlu0 %857 }
 0x10c   :  { %v707_v48 = vsel %vm697_vm1, %v1491_v39, 0.0  ;;  %v662_v57 = vadd.f32 %v661_v53, %v597_v56  ;;  %v734_v18 = vmul.f32 %v1491_v39, %v1491_v39  ;;  %v739_v20 = vsel %vm697_vm1, %v731_v55, 0.0 }
 0x10d   :  { %699 = vadd.xlane.f32.xlu0 %v698_v41  ;;  %v1511_v19 = vmax.f32 %v678_v42, 0.0  ;;  %v719_v52 = vsel %vm697_vm1, %v1501_v38, 0.0  ;;  %v735_v58 = vmul.f32 %v1487_v33, %v1487_v33  ;;  %v738_v61 = vmul.f32 %v1501_v38, %v1501_v38 }
 0x10e   :  { %711 = vadd.xlane.f32.xlu1 %v710_v44  ;;  %v1525_v59 = vmax.f32 %v662_v57, 0.0  ;;  %v748_v60 = vsel %vm697_vm1, %v734_v18, 0.0  ;;  %v1558_v12 = vpop.permute.xlu1 %852 }
 0x10f   :  { %v713_v31 = vsel %vm697_vm1, %v1511_v19, 0.0  ;;  %v751_v62 = vsel %vm697_vm1, %v735_v58, 0.0  ;;  %v760_v63 = vsel %vm697_vm1, %v738_v61, 0.0  ;;  %v736_v3 = vmul.f32 %v1511_v19, %v1511_v19  ;;  %v1564_v15 = vpop.permute.xlu0 %867 }
 0x110   :  { %v732_v0 = vmul.f32 %v1525_v59, %v1525_v59  ;;  %v701_v1 = vsel %vm697_vm1, %v1525_v59, 0.0 }
 0x111   :  { %708 = vadd.xlane.f32.xlu0 %v707_v48  ;;  %v754_v4 = vsel %vm697_vm1, %v736_v3, 0.0 }
 0x112   :  { %746 = vadd.xlane.f32.xlu1 %v745_v49  ;;  %v742_v2 = vsel %vm697_vm1, %v732_v0, 0.0  ;;  %v1562_v14 = vpop.permute.xlu1 %862 }
 0x113   :  { %v1568_v21 = vpop.permute.xlu0 %893 }
 0x115   :  { %720 = vadd.xlane.f32.xlu0 %v719_v52 }
 0x116   :  { %758 = vadd.xlane.f32.xlu1 %v757_v54  ;;  %v1566_v16 = vpop.permute.xlu1 %872 }
 0x117   :  { %v1572_v24 = vpop.permute.xlu0 %903 }
 0x119   :  { %714 = vadd.xlane.f32.xlu0 %v713_v31 }
 0x11a   :  { %740 = vadd.xlane.f32.xlu1 %v739_v20  ;;  %v1570_v23 = vpop.permute.xlu1 %898 }
 0x11d   :  { %749 = vadd.xlane.f32.xlu0 %v748_v60 }
 0x11e   :  { %752 = vadd.xlane.f32.xlu1 %v751_v62  ;;  %v1574_v26 = vpop.permute.xlu1 %908 }
 0x121   :  { %761 = vadd.xlane.f32.xlu0 %v760_v63 }
 0x122   :  { %702 = vadd.xlane.f32.xlu1 %v701_v1 }
 0x125   :  { %743 = vadd.xlane.f32.xlu0 %v742_v2 }
 0x129   :  { %755 = vadd.xlane.f32.xlu0 %v754_v4 }
 0x133   :  { %918 = vperm.xlu1 %1125, %v888_v5  }
 0x137   :  { %928 = vperm.xlu1 %1125, %v890_v6  }
 0x13f   :  { %913 = vperm.xlu0 %1124, %v887_v7  }
 0x143   :  { %923 = vperm.xlu0 %1124, %v889_v8  }
 0x192   :  { %v706_v27 = vpop.xlane.xlu0 %705 }
 0x193   :  { %v718_v29 = vpop.xlane.xlu1 %717  ;;  %v725_v34 = vmul.f32 0.125, %v706_v27 }
 0x194   :  { %v1576_v37 = vmul.f32 0.125, %v718_v29 }
 0x195   :  { %v773_v40 = vmul.f32 %v725_v34, %v725_v34 }
 0x196   :  { %v700_v30 = vpop.xlane.xlu0 %699  ;;  %v777_v47 = vmul.f32 %v1576_v37, %v1576_v37 }
 0x197   :  { %v712_v32 = vpop.xlane.xlu1 %711  ;;  %v1580_v46 = vmul.f32 0.125, %v700_v30 }
 0x198   :  { %v1582_v17 = vmul.f32 0.125, %v712_v32 }
 0x199   :  { %v771_v54 = vmul.f32 %v1580_v46, %v1580_v46 }
 0x19a   :  { %v709_v35 = vpop.xlane.xlu0 %708  ;;  %v775_v62 = vmul.f32 %v1582_v17, %v1582_v17 }
 0x19b   :  { %v747_v36 = vpop.xlane.xlu1 %746  ;;  %v1584_v52 = vmul.f32 0.125, %v709_v35 }
 0x19c   :  { %v765_v41 = vmul.f32 0.125, %v747_v36 }
 0x19d   :  { %v774_v20 = vmul.f32 %v1584_v52, %v1584_v52 }
 0x19e   :  { %v781_v43 = vsub.f32 %v765_v41, %v773_v40  ;;  %v721_v44 = vpop.xlane.xlu0 %720 }
 0x19f   :  { %v759_v45 = vpop.xlane.xlu1 %758  ;;  %v1590_v58 = vmul.f32 0.125, %v721_v44 }
 0x1a0   :  { %v789_v42 = vmax.f32 %v781_v43, 0.0  ;;  %v769_v48 = vmul.f32 0.125, %v759_v45  ;;  %v797_v45 = vsub.f32 %v1479_v22, %v725_v34  ;;  %v801_v22 = vsub.f32 %v1481_v25, %v1576_v37 }
 0x1a1   :  { %v778_v5 = vmul.f32 %v1590_v58, %v1590_v58  ;;  %v799_v37 = vsub.f32 %v1487_v33, %v1582_v17 }
 0x1a2   :  { %v805_v49 = vadd.f32 1e-05, %v789_v42  ;;  %v785_v50 = vsub.f32 %v769_v48, %v777_v47  ;;  %v715_v51 = vpop.xlane.xlu0 %714 }
 0x1a3   :  { %v741_v53 = vpop.xlane.xlu1 %740  ;;  %v1598_v35 = vmul.f32 0.125, %v715_v51 }
 0x1a4   :  { %1190 = vrsqrt.f32 %v805_v49  ;;  %v793_v55 = vmax.f32 %v785_v50, 0.0  ;;  %v763_v56 = vmul.f32 0.125, %v741_v53 }
 0x1a5   :  { %v776_v51 = vmul.f32 %v1598_v35, %v1598_v35 }
 0x1a6   :  { %v809_v57 = vadd.f32 1e-05, %v793_v55  ;;  %v779_v31 = vsub.f32 %v763_v56, %v771_v54  ;;  %v750_v18 = vpop.xlane.xlu0 %749 }
 0x1a7   :  { %v753_v60 = vpop.xlane.xlu1 %752  ;;  %v766_v61 = vmul.f32 0.125, %v750_v18 }
 0x1a8   :  { %v787_v63 = vmax.f32 %v779_v31, 0.0  ;;  %v767_v0 = vmul.f32 0.125, %v753_v60  ;;  %1192 = vrsqrt.f32 %v809_v57 }
 0x1a9   :  { %v782_v1 = vsub.f32 %v766_v61, %v774_v20  ;;  %v795_v20 = vsub.f32 %v1483_v28, %v1580_v46 }
 0x1aa   :  { %v803_v2 = vadd.f32 1e-05, %v787_v63  ;;  %v783_v3 = vsub.f32 %v767_v0, %v775_v62  ;;  %v762_v4 = vpop.xlane.xlu0 %761 }
 0x1ab   :  { %v790_v6 = vmax.f32 %v782_v1, 0.0  ;;  %v703_v7 = vpop.xlane.xlu1 %702  ;;  %v770_v8 = vmul.f32 0.125, %v762_v4 }
 0x1ac   :  { %1194 = vrsqrt.f32 %v803_v2  ;;  %v791_v27 = vmax.f32 %v783_v3, 0.0  ;;  %v1596_v29 = vmul.f32 0.125, %v703_v7 }
 0x1ad   :  { %v806_v30 = vadd.f32 1e-05, %v790_v6  ;;  %v786_v32 = vsub.f32 %v770_v8, %v778_v5  ;;  %v802_v6 = vsub.f32 %v1501_v38, %v1590_v58  ;;  %v800_v8 = vsub.f32 %v1511_v19, %v1598_v35 }
 0x1ae   :  { %v807_v36 = vadd.f32 1e-05, %v791_v27  ;;  %v744_v40 = vpop.xlane.xlu0 %743  ;;  %v772_v41 = vmul.f32 %v1596_v29, %v1596_v29 }
 0x1af   :  { %1196 = vrsqrt.f32 %v806_v30  ;;  %v794_v43 = vmax.f32 %v786_v32, 0.0  ;;  %v764_v44 = vmul.f32 0.125, %v744_v40  ;;  %v919_v3 = vpop.permute.xlu1 %918 }
 0x1b0   :  { %1198 = vrsqrt.f32 %v807_v36 }
 0x1b1   :  { %v1191_v47 = vpop.eup %1190  ;;  %v810_v42 = vadd.f32 1e-05, %v794_v43  ;;  %v780_v48 = vsub.f32 %v764_v44, %v772_v41 }
 0x1b2   :  { %v821_v49 = vmul.f32 %v1191_v47, %v797_v45  ;;  %v756_v50 = vpop.xlane.xlu0 %755 }
 0x1b3   :  { %1200 = vrsqrt.f32 %v810_v42  ;;  %v788_v53 = vmax.f32 %v780_v48, 0.0  ;;  %v768_v54 = vmul.f32 0.125, %v756_v50  ;;  %v929_v17 = vpop.permute.xlu1 %928 }
 0x1b4   :  { %v877_v55 = vmul.f32 %v1554_v10, %v821_v49 }
 0x1b5   :  { %v804_v56 = vadd.f32 1e-05, %v788_v53  ;;  %v784_v57 = vsub.f32 %v768_v54, %v776_v51  ;;  %v1193_v31 = vpop.eup %1192 }
 0x1b6   :  { %v933_v18 = vadd.f32 %v1572_v24, %v877_v55  ;;  %v825_v61 = vmul.f32 %v1193_v31, %v801_v22  ;;  %v798_v24 = vsub.f32 %v1491_v39, %v1584_v52 }
 0x1b7   :  { %1202 = vrsqrt.f32 %v804_v56  ;;  %v792_v34 = vmax.f32 %v784_v57, 0.0 }
 0x1b8   :  { %941 = vst.msk [vmem:[%s1668_s5 + $0x10] sm:$0xff] %vm697_vm1, %v933_v18  ;;  %v881_v1 = vmul.f32 %v1564_v15, %v825_v61 }
 0x1b9   :  { %v1195_v60 = vpop.eup %1194  ;;  %v808_v10 = vadd.f32 1e-05, %v792_v34 }
 0x1ba   :  { %v819_v62 = vmul.f32 %v1195_v60, %v795_v20  ;;  %v914_v63 = vpop.permute.xlu0 %913 }
 0x1bb   :  { %1204 = vrsqrt.f32 %v808_v10 }
 0x1bc   :  { %v1197_v25 = vpop.eup %1196  ;;  %v875_v28 = vmul.f32 %v1552_v9, %v819_v62 }
 0x1bd   :  { %v1199_v46 = vpop.eup %1198  ;;  %v822_v0 = vmul.f32 %v1197_v25, %v798_v24 }
 0x1be   :  { %v931_v2 = vadd.f32 %v1568_v21, %v875_v28  ;;  %v823_v4 = vmul.f32 %v1199_v46, %v799_v37  ;;  %v924_v5 = vpop.permute.xlu0 %923 }
 0x1bf   :  { %v878_v39 = vmul.f32 %v1558_v12, %v822_v0  ;;  %v937_v52 = vadd.f32 %v924_v5, %v881_v1  ;;  %v796_v12 = vsub.f32 %v1525_v59, %v1596_v29 }
 0x1c0   :  { %v1201_v7 = vpop.eup %1200  ;;  %939 = vst.msk [vmem:[%s1668_s5] sm:$0xff] %vm697_vm1, %v931_v2  ;;  %v879_v33 = vmul.f32 %v1560_v13, %v823_v4 }
 0x1c1   :  { %v934_v9 = vadd.f32 %v1574_v26, %v878_v39  ;;  %v826_v15 = vmul.f32 %v1201_v7, %v802_v6  ;;  %945 = vst.msk [vmem:[%s1668_s5 + $0x30] sm:$0xff] %vm697_vm1, %v937_v52 }
 0x1c2   :  { %v935_v38 = vadd.f32 %v914_v63, %v879_v33 }
 0x1c3   :  { %v882_v21 = vmul.f32 %v1566_v16, %v826_v15  ;;  %942 = vst.msk [vmem:[%s1668_s5 + $0x18] sm:$0xff] %vm697_vm1, %v934_v9 }
 0x1c4   :  { %v1203_v13 = vpop.eup %1202  ;;  %943 = vst.msk [vmem:[%s1668_s5 + $0x20] sm:$0xff] %vm697_vm1, %v935_v38 }
 0x1c5   :  { %v820_v26 = vmul.f32 %v1203_v13, %v796_v12  ;;  %v938_v58 = vadd.f32 %v929_v17, %v882_v21 }
 0x1c7   :  { %v876_v59 = vmul.f32 %v1556_v11, %v820_v26  ;;  %946 = vst.msk [vmem:[%s1668_s5 + $0x38] sm:$0xff] %vm697_vm1, %v938_v58 }
 0x1c8   :  { %v1205_v16 = vpop.eup %1204 }
 0x1c9   :  { %v932_v27 = vadd.f32 %v1570_v23, %v876_v59  ;;  %v824_v29 = vmul.f32 %v1205_v16, %v800_v8 }
 0x1cb   :  { %940 = vst.msk [vmem:[%s1668_s5 + $0x8] sm:$0xff] %vm697_vm1, %v932_v27  ;;  %v880_v30 = vmul.f32 %v1562_v14, %v824_v29 }
 0x1cd   :  { %v936_v32 = vadd.f32 %v919_v3, %v880_v30 }
 0x1cf   :  { %944 = vst.msk [vmem:[%s1668_s5 + $0x28] sm:$0xff] %vm697_vm1, %v936_v32 }

// kernel: pb_fcn2_forward.23
= control target key start
LH: loop header
LB: loop body
LE: loop exit
PB: predicated region body
PF: predicated region fallthrough
CT: control target
= control target key end

     0   :  { %v1870_v1 = vmov 0   ;;  %vm653_vm0 = vcmask 523264   ;;  %vm985_vm1 = vcmask 64512   ;;  %s2758_s0 = inlined_call_operand.vmem [shape: bf16[576,8], index: 0, kind: input, shape index: {}]   ;;  %s2759_s1 = inlined_call_operand.vmem [shape: bf16[128,576], index: 1, kind: input, shape index: {}]   ;;  %s2760_s2 = inlined_call_operand.vmem [shape: f32[128,1], index: 2, kind: input, shape index: {}]   ;;  %s2761_s3 = inlined_call_operand.vmem [shape: f32[128,1], index: 3, kind: input, shape index: {}]   ;;  %s2762_s4 = inlined_call_operand.vmem [shape: f32[128,1], index: 4, kind: input, shape index: {}]   ;;  %s2763_s5 = inlined_call_operand.vmem [shape: f32[128,8], index: 5, kind: output, shape index: {}]  }
   0x1   :  { %v1746_v0 = vld [vmem:[%s2758_s0 + $0x78] sm:$0xff]   ;;  %1745 = vset.pattern.permute.xlu1 %v1870_v1  ;;  %1744 = vset.pattern.permute.xlu0 %v1870_v1  ;;  %v1750_v5 = vld [vmem:[%s2758_s0 + $0x70] sm:$0xff]   ;;  %v1754_v9 = vld [vmem:[%s2758_s0 + $0x68] sm:$0xff]  }
   0x2   :  { %v1747_v2 = vld [vmem:[%s2758_s0 + $0xf8] sm:$0xff]   ;;  %1571 = vmatprep.subr.bf16.mxu0 %v1746_v0  ;;  %v1751_v6 = vld [vmem:[%s2758_s0 + $0xf0] sm:$0xff]   ;;  %v1755_v10 = vld [vmem:[%s2758_s0 + $0xe8] sm:$0xff]  }
   0x3   :  { %v1748_v3 = vld [vmem:[%s2758_s0 + $0x38] sm:$0xff]   ;;  %1635 = vmatprep.subr.bf16.mxu1 %v1747_v2  ;;  %v1752_v7 = vld [vmem:[%s2758_s0 + $0x30] sm:$0xff]   ;;  %v1756_v11 = vld [vmem:[%s2758_s0 + $0x28] sm:$0xff]  }
   0x4   :  { %v1749_v4 = vld [vmem:[%s2758_s0 + $0xb8] sm:$0xff]   ;;  %1572 = vmatpush3.bf16.msra.mxu0 %v1748_v3  ;;  %v1753_v8 = vld [vmem:[%s2758_s0 + $0xb0] sm:$0xff]   ;;  %v1757_v12 = vld [vmem:[%s2758_s0 + $0xa8] sm:$0xff]  }
   0x5   :  { %1636 = vmatpush3.bf16.msra.mxu1 %v1749_v4  ;;  %1573 = vmatprep.subr.bf16.mxu0 %v1750_v5  ;;  %v1758_v13 = vld [vmem:[%s2758_s0 + $0x60] sm:$0xff]   ;;  %v1762_v17 = vld [vmem:[%s2758_s0 + $0x58] sm:$0xff]   ;;  %v1766_v21 = vld [vmem:[%s2758_s0 + $0x50] sm:$0xff]  }
   0x6   :  { %1637 = vmatprep.subr.bf16.mxu1 %v1751_v6  ;;  %v1759_v14 = vld [vmem:[%s2758_s0 + $0xe0] sm:$0xff]   ;;  %v1763_v18 = vld [vmem:[%s2758_s0 + $0xd8] sm:$0xff]   ;;  %v1767_v22 = vld [vmem:[%s2758_s0 + $0xd0] sm:$0xff]  }
   0x7   :  { %v1760_v15 = vld [vmem:[%s2758_s0 + $0x20] sm:$0xff]   ;;  %v1764_v19 = vld [vmem:[%s2758_s0 + $0x18] sm:$0xff]   ;;  %v1768_v23 = vld [vmem:[%s2758_s0 + $0x10] sm:$0xff]  }
   0x8   :  { %1574 = vmatpush3.bf16.msra.mxu0 %v1752_v7  ;;  %v1761_v16 = vld [vmem:[%s2758_s0 + $0xa0] sm:$0xff]   ;;  %v1765_v20 = vld [vmem:[%s2758_s0 + $0x98] sm:$0xff]   ;;  %v1769_v24 = vld [vmem:[%s2758_s0 + $0x90] sm:$0xff]  }
   0x9   :  { %1638 = vmatpush3.bf16.msra.mxu1 %v1753_v8  ;;  %1575 = vmatprep.subr.bf16.mxu0 %v1754_v9  ;;  %v1770_v25 = vld [vmem:[%s2758_s0 + $0x48] sm:$0xff]   ;;  %v1774_v29 = vld [vmem:[%s2758_s0 + $0x40] sm:$0xff]   ;;  %v1784_v37 = vld [vmem:[%s2758_s0 + $0x118] sm:$0xff]  }
   0xa   :  { %1639 = vmatprep.subr.bf16.mxu1 %v1755_v10  ;;  %v1771_v26 = vld [vmem:[%s2758_s0 + $0xc8] sm:$0xff]   ;;  %v1775_v30 = vld [vmem:[%s2758_s0 + $0xc0] sm:$0xff]   ;;  %v1797_v43 = vld [vmem:[%s2758_s0 + $0x110] sm:$0xff]  }
   0xb   :  { %v1772_v27 = vld [vmem:[%s2758_s0 + $0x8] sm:$0xff]   ;;  %v1776_v31 = vld [vmem:[%s2758_s0] sm:$0xff]   ;;  %v1793_v44 = vld [vmem:[%s2759_s1 + $0x5c] ss:$20 sps:$4 sm:$0xff]  }
   0xc   :  { %1576 = vmatpush3.bf16.msra.mxu0 %v1756_v11  ;;  %v1773_v28 = vld [vmem:[%s2758_s0 + $0x88] sm:$0xff]   ;;  %v1777_v32 = vld [vmem:[%s2758_s0 + $0x80] sm:$0xff]   ;;  %v1798_v47 = vld [vmem:[%s2759_s1 + $0x7c] ss:$20 sps:$4 sm:$0xff]  }
   0xd   :  { %1640 = vmatpush3.bf16.msra.mxu1 %v1757_v12  ;;  %1577 = vmatprep.subr.bf16.mxu0 %v1758_v13  ;;  %v1778_v33 = vld [vmem:[%s2759_s1] ss:$20 sps:$4 sm:$0xff]   ;;  %v1780_v34 = vld [vmem:[%s2759_s1 + $0x4] ss:$20 sps:$4 sm:$0xff]   ;;  %v1781_v35 = vld [vmem:[%s2759_s1 + $0x8] ss:$20 sps:$4 sm:$0xff]  }
   0xe   :  { %1641 = vmatprep.subr.bf16.mxu1 %v1759_v14  ;;  %v1783_v36 = vld [vmem:[%s2759_s1 + $0xc] ss:$20 sps:$4 sm:$0xff]   ;;  %710 = vmatprep.mubr.bf16.mxu0 %v1780_v34  ;;  %v1787_v39 = vld [vmem:[%s2759_s1 + $0x34] ss:$20 sps:$4 sm:$0xff]   ;;  %v1790_v41 = vld [vmem:[%s2759_s1 + $0x30] ss:$20 sps:$4 sm:$0xff]  }
   0xf   :  { %807 = vmatprep.mubr.bf16.mxu1 %v1783_v36  ;;  %v1785_v38 = vld [vmem:[%s2759_s1 + $0x2c] ss:$20 sps:$4 sm:$0xff]   ;;  %v1789_v40 = vld [vmem:[%s2759_s1 + $0x28] ss:$20 sps:$4 sm:$0xff]   ;;  %v1795_v45 = vld [vmem:[%s2759_s1 + $0x50] ss:$20 sps:$4 sm:$0xff]  }
  0x10   :  { %1578 = vmatpush3.bf16.msra.mxu0 %v1760_v15  ;;  %v1791_v42 = vld [vmem:[%s2759_s1 + $0x54] ss:$20 sps:$4 sm:$0xff]   ;;  %v1796_v46 = vld [vmem:[%s2759_s1 + $0x58] ss:$20 sps:$4 sm:$0xff]   ;;  %v141_v50 = vld [vmem:[%s2760_s2] sm:$0xff] }
  0x11   :  { %1642 = vmatpush3.bf16.msra.mxu1 %v1761_v16  ;;  %1579 = vmatprep.subr.bf16.mxu0 %v1762_v17  ;;  %v1810_v48 = vld [vmem:[%s2758_s0 + $0x108] sm:$0xff]   ;;  %v143_v49 = vld [vmem:[%s2760_s2 + $0x10] sm:$0xff]  ;;  %v1800_v51 = vld [vmem:[%s2759_s1 + $0x84] ss:$20 sps:$4 sm:$0xff]  }
  0x12   :  { %1643 = vmatprep.subr.bf16.mxu1 %v1763_v18  ;;  %169 = vperm.xlu1 %1745, %v143_v49   ;;  %v144_v52 = vld [vmem:[%s2760_s2 + $0x18] sm:$0xff]  ;;  %v142_v53 = vld [vmem:[%s2760_s2 + $0x8] sm:$0xff]  ;;  %v145_v56 = vld [vmem:[%s2760_s2 + $0x20] sm:$0xff] }
  0x13   :  { %159 = vperm.xlu0 %1744, %v141_v50   ;;  %v1802_v54 = vld [vmem:[%s2759_s1 + $0x78] ss:$20 sps:$4 sm:$0xff]   ;;  %v1823_v57 = vld [vmem:[%s2758_s0 + $0x100] sm:$0xff]   ;;  %v147_v62 = vld [vmem:[%s2760_s2 + $0x30] sm:$0xff] }
  0x14   :  { %1580 = vmatpush3.bf16.msra.mxu0 %v1764_v19  ;;  %v146_v55 = vld [vmem:[%s2760_s2 + $0x28] sm:$0xff]  ;;  %v1803_v58 = vld [vmem:[%s2759_s1 + $0x80] ss:$20 sps:$4 sm:$0xff]   ;;  %v1804_v59 = vld [vmem:[%s2759_s1 + $0xa4] ss:$20 sps:$4 sm:$0xff]  }
  0x15   :  { %1644 = vmatpush3.bf16.msra.mxu1 %v1765_v20  ;;  %1581 = vmatprep.subr.bf16.mxu0 %v1766_v21  ;;  %v1806_v60 = vld [vmem:[%s2759_s1 + $0xac] ss:$20 sps:$4 sm:$0xff]   ;;  %v148_v61 = vld [vmem:[%s2760_s2 + $0x38] sm:$0xff]  ;;  %v1813_v4 = vld [vmem:[%s2759_s1 + $0xd4] ss:$20 sps:$4 sm:$0xff]  }
  0x16   :  { %1645 = vmatprep.subr.bf16.mxu1 %v1767_v22  ;;  %174 = vperm.xlu1 %1745, %v144_v52   ;;  %v1808_v63 = vld [vmem:[%s2759_s1 + $0xa0] ss:$20 sps:$4 sm:$0xff]   ;;  %v1809_v0 = vld [vmem:[%s2759_s1 + $0xa8] ss:$20 sps:$4 sm:$0xff]   ;;  %v1816_v10 = vld [vmem:[%s2759_s1 + $0xd0] ss:$20 sps:$4 sm:$0xff]  }
  0x17   :  { %164 = vperm.xlu0 %1744, %v142_v53   ;;  %v150_v1 = vld [vmem:[%s2760_s2 + $0x48] sm:$0xff]  ;;  %v149_v2 = vld [vmem:[%s2760_s2 + $0x40] sm:$0xff]  ;;  %v152_v5 = vld [vmem:[%s2760_s2 + $0x58] sm:$0xff] }
  0x18   :  { %1582 = vmatpush3.bf16.msra.mxu0 %v1768_v23  ;;  %v1811_v3 = vld [vmem:[%s2759_s1 + $0xcc] ss:$20 sps:$4 sm:$0xff]   ;;  %v151_v6 = vld [vmem:[%s2760_s2 + $0x50] sm:$0xff]  ;;  %v1815_v8 = vld [vmem:[%s2759_s1 + $0xc8] ss:$20 sps:$4 sm:$0xff]  }
  0x19   :  { %1646 = vmatpush3.bf16.msra.mxu1 %v1769_v24  ;;  %1583 = vmatprep.subr.bf16.mxu0 %v1770_v25  ;;  %v154_v7 = vld [vmem:[%s2760_s2 + $0x68] sm:$0xff]  ;;  %v153_v9 = vld [vmem:[%s2760_s2 + $0x60] sm:$0xff]  ;;  %v1819_v12 = vld [vmem:[%s2759_s1 + $0xfc] ss:$20 sps:$4 sm:$0xff]  }
  0x1a   :  { %1647 = vmatprep.subr.bf16.mxu1 %v1771_v26  ;;  %184 = vperm.xlu1 %1745, %v146_v55   ;;  %v1817_v11 = vld [vmem:[%s2759_s1 + $0xf4] ss:$20 sps:$4 sm:$0xff]   ;;  %v156_v13 = vld [vmem:[%s2760_s2 + $0x78] sm:$0xff]  ;;  %v1243_v15 = vld [vmem:[%s2761_s3] sm:$0xff] }
  0x1b   :  { %179 = vperm.xlu0 %1744, %v145_v56   ;;  %v155_v14 = vld [vmem:[%s2760_s2 + $0x70] sm:$0xff]  ;;  %v1244_v17 = vld [vmem:[%s2761_s3 + $0x8] sm:$0xff]  ;;  %v1826_v20 = vld [vmem:[%s2759_s1 + $0x124] ss:$20 sps:$4 sm:$0xff]  }
  0x1c   :  { %1584 = vmatpush3.bf16.msra.mxu0 %v1772_v27  ;;  %v1821_v16 = vld [vmem:[%s2759_s1 + $0xf0] ss:$20 sps:$4 sm:$0xff]   ;;  %v1822_v18 = vld [vmem:[%s2759_s1 + $0xf8] ss:$20 sps:$4 sm:$0xff]   ;;  %v1829_v26 = vld [vmem:[%s2759_s1 + $0x120] ss:$20 sps:$4 sm:$0xff]  }
  0x1d   :  { %1648 = vmatpush3.bf16.msra.mxu1 %v1773_v28  ;;  %1585 = vmatprep.subr.bf16.mxu0 %v1774_v29  ;;  %v1824_v19 = vld [vmem:[%s2759_s1 + $0x11c] ss:$20 sps:$4 sm:$0xff]   ;;  %v1247_v22 = vld [vmem:[%s2761_s3 + $0x20] sm:$0xff]  ;;  %v1828_v24 = vld [vmem:[%s2759_s1 + $0x118] ss:$20 sps:$4 sm:$0xff]  }
  0x1e   :  { %1649 = vmatprep.subr.bf16.mxu1 %v1775_v30  ;;  %194 = vperm.xlu1 %1745, %v148_v61   ;;  %v1245_v21 = vld [vmem:[%s2761_s3 + $0x10] sm:$0xff]  ;;  %v1246_v23 = vld [vmem:[%s2761_s3 + $0x18] sm:$0xff]  ;;  %v1248_v29 = vld [vmem:[%s2761_s3 + $0x28] sm:$0xff] }
  0x1f   :  { %189 = vperm.xlu0 %1744, %v147_v62   ;;  %v1249_v25 = vld [vmem:[%s2761_s3 + $0x30] sm:$0xff]  ;;  %v1251_v30 = vld [vmem:[%s2761_s3 + $0x40] sm:$0xff]  ;;  %v1833_v34 = vld [vmem:[%s2759_s1 + $0xd8] ss:$20 sps:$4 sm:$0xff]  }
  0x20   :  { %1586 = vmatpush3.bf16.msra.mxu0 %v1776_v31  ;;  %v1830_v27 = vld [vmem:[%s2759_s1 + $0x10] ss:$20 sps:$4 sm:$0xff]   ;;  %v1250_v31 = vld [vmem:[%s2761_s3 + $0x38] sm:$0xff]  ;;  %v1835_v36 = vld [vmem:[%s2759_s1 + $0x100] ss:$20 sps:$4 sm:$0xff]  }
  0x21   :  { %1650 = vmatpush3.bf16.msra.mxu1 %v1777_v32  ;;  %1711 = vmatprep.subr.bf16.mxu0 %v1784_v37  ;;  %v1831_v28 = vld [vmem:[%s2759_s1 + $0xb0] ss:$20 sps:$4 sm:$0xff]   ;;  %v1832_v32 = vld [vmem:[%s2759_s1 + $0x38] ss:$20 sps:$4 sm:$0xff]  }
  0x22   :  { %1735 = vmatprep.subr.bf16.mxu1 %v1784_v37  ;;  %204 = vperm.xlu1 %1745, %v150_v1   ;;  %v1358_v49 = vld [vmem:[%s2762_s4 + $0x18] sm:$0xff]  ;;  %v1361_v50 = vld [vmem:[%s2762_s4 + $0x30] sm:$0xff]  ;;  %v1363_v52 = vld [vmem:[%s2762_s4 + $0x40] sm:$0xff] }
  0x23   :  { %711 = vmatmul.mubr.bf16.vlgmr.msra.gmra.mxu0 %v1778_v33  ;;  %199 = vperm.xlu0 %1744, %v149_v2   ;;  %v1253_v33 = vld [vmem:[%s2761_s3 + $0x50] sm:$0xff]  ;;  %v1362_v53 = vld [vmem:[%s2762_s4 + $0x38] sm:$0xff]  ;;  %v1364_v55 = vld [vmem:[%s2762_s4 + $0x48] sm:$0xff] }
  0x24   :  { %808 = vmatmul.mubr.bf16.vlgmr.msra.gmra.mxu1 %v1781_v35  ;;  %1712 = vmatpush3.bf16.msra.mxu0 %v1784_v37  ;;  %v1834_v35 = vld [vmem:[%s2759_s1 + $0x60] ss:$20 sps:$4 sm:$0xff]   ;;  %v1366_v56 = vld [vmem:[%s2762_s4 + $0x58] sm:$0xff] }
  0x25   :  { %718 = vmatprep.mubr.bf16.mxu0 %v1785_v38  ;;  %815 = vmatprep.mubr.bf16.mxu1 %v1787_v39  ;;  %v1255_v38 = vld [vmem:[%s2761_s3 + $0x60] sm:$0xff]  ;;  %v1254_v39 = vld [vmem:[%s2761_s3 + $0x58] sm:$0xff] }
  0x26   :  { %1739 = vmatpush3.bf16.msra.mxu1 %v1784_v37  ;;  %1713 = vmatprep.subr.bf16.mxu0 %v1797_v43  ;;  %v1252_v37 = vld [vmem:[%s2761_s3 + $0x48] sm:$0xff] }
  0x27   :  { %1736 = vmatprep.subr.bf16.mxu1 %v1797_v43  ;;  %214 = vperm.xlu1 %1745, %v152_v5  }
  0x28   :  { %1714 = vmatpush3.bf16.msra.mxu0 %v1797_v43  ;;  %209 = vperm.xlu0 %1744, %v151_v6  }
  0x29   :  { %1715 = vmatprep.subr.bf16.mxu0 %v1810_v48 }
  0x2a   :  { %1740 = vmatpush3.bf16.msra.mxu1 %v1797_v43  ;;  %v1256_v43 = vld [vmem:[%s2761_s3 + $0x68] sm:$0xff] }
  0x2b   :  { %719 = vmatmul.mubr.bf16.gmra.mxu0 %v1789_v40  ;;  %1737 = vmatprep.subr.bf16.mxu1 %v1810_v48  ;;  %v1836_v40 = vld [vmem:[%s2759_s1 + $0x88] ss:$20 sps:$4 sm:$0xff]  }
  0x2c   :  { %816 = vmatmul.mubr.bf16.gmra.mxu1 %v1790_v41  ;;  %726 = vmatprep.mubr.bf16.mxu0 %v1791_v42  ;;  %v1257_v41 = vld [vmem:[%s2761_s3 + $0x70] sm:$0xff]  ;;  %v1837_v42 = vld [vmem:[%s2759_s1 + $0x128] ss:$20 sps:$4 sm:$0xff]  }
  0x2d   :  { %823 = vmatprep.mubr.bf16.mxu1 %v1793_v44  ;;  %1716 = vmatpush3.bf16.msra.mxu0 %v1810_v48  ;;  %v1355_v44 = vld [vmem:[%s2762_s4] sm:$0xff] }
  0x2e   :  { %1741 = vmatpush3.bf16.msra.mxu1 %v1810_v48  ;;  %1717 = vmatprep.subr.bf16.mxu0 %v1823_v57  ;;  %v1359_v48 = vld [vmem:[%s2762_s4 + $0x20] sm:$0xff] }
  0x2f   :  { %1738 = vmatprep.subr.bf16.mxu1 %v1823_v57  ;;  %224 = vperm.xlu1 %1745, %v154_v7  }
  0x30   :  { %219 = vperm.xlu0 %1744, %v153_v9  }
  0x31   :  { %1718 = vmatpush3.bf16.msra.mxu0 %v1823_v57 }
  0x32   :  { %1742 = vmatpush3.bf16.msra.mxu1 %v1823_v57 }
  0x33   :  { %727 = vmatmul.mubr.bf16.gmra.mxu0 %v1795_v45  ;;  %234 = vperm.xlu1 %1745, %v156_v13   ;;  %v1258_v45 = vld [vmem:[%s2761_s3 + $0x78] sm:$0xff] }
  0x34   :  { %824 = vmatmul.mubr.bf16.gmra.mxu1 %v1796_v46  ;;  %734 = vmatprep.mubr.bf16.mxu0 %v1798_v47  ;;  %v1357_v46 = vld [vmem:[%s2762_s4 + $0x10] sm:$0xff]  ;;  %v1356_v47 = vld [vmem:[%s2762_s4 + $0x8] sm:$0xff] }
  0x35   :  { %831 = vmatprep.mubr.bf16.mxu1 %v1800_v51  ;;  %229 = vperm.xlu0 %1744, %v155_v14   ;;  %v1360_v51 = vld [vmem:[%s2762_s4 + $0x28] sm:$0xff] }
  0x37   :  { %1261 = vperm.xlu1 %1745, %v1243_v15  }
  0x39   :  { %1266 = vperm.xlu0 %1744, %v1244_v17  }
  0x3b   :  { %735 = vmatmul.mubr.bf16.gmra.mxu0 %v1802_v54  ;;  %1271 = vperm.xlu1 %1745, %v1245_v21   ;;  %v1365_v54 = vld [vmem:[%s2762_s4 + $0x50] sm:$0xff] }
  0x3c   :  { %832 = vmatmul.mubr.bf16.gmra.mxu1 %v1803_v58  ;;  %742 = vmatprep.mubr.bf16.mxu0 %v1804_v59 }
  0x3d   :  { %839 = vmatprep.mubr.bf16.mxu1 %v1806_v60  ;;  %1281 = vperm.xlu0 %1744, %v1247_v22  }
  0x3f   :  { %1276 = vperm.xlu1 %1745, %v1246_v23  }
  0x41   :  { %1291 = vperm.xlu0 %1744, %v1249_v25  }
  0x43   :  { %743 = vmatmul.mubr.bf16.gmra.mxu0 %v1808_v63  ;;  %1286 = vperm.xlu1 %1745, %v1248_v29  }
  0x44   :  { %840 = vmatmul.mubr.bf16.gmra.mxu1 %v1809_v0  ;;  %750 = vmatprep.mubr.bf16.mxu0 %v1811_v3 }
  0x45   :  { %847 = vmatprep.mubr.bf16.mxu1 %v1813_v4  ;;  %1301 = vperm.xlu0 %1744, %v1251_v30  }
  0x47   :  { %1296 = vperm.xlu1 %1745, %v1250_v31  }
  0x49   :  { %1311 = vperm.xlu0 %1744, %v1253_v33  }
  0x4b   :  { %751 = vmatmul.mubr.bf16.gmra.mxu0 %v1815_v8  ;;  %1306 = vperm.xlu1 %1745, %v1252_v37  }
  0x4c   :  { %848 = vmatmul.mubr.bf16.gmra.mxu1 %v1816_v10  ;;  %758 = vmatprep.mubr.bf16.mxu0 %v1817_v11 }
  0x4d   :  { %855 = vmatprep.mubr.bf16.mxu1 %v1819_v12  ;;  %1321 = vperm.xlu0 %1744, %v1255_v38  }
  0x4f   :  { %1316 = vperm.xlu1 %1745, %v1254_v39  }
  0x51   :  { %1331 = vperm.xlu0 %1744, %v1257_v41  }
  0x53   :  { %759 = vmatmul.mubr.bf16.gmra.mxu0 %v1821_v16  ;;  %1326 = vperm.xlu1 %1745, %v1256_v43  }
  0x54   :  { %856 = vmatmul.mubr.bf16.gmra.mxu1 %v1822_v18  ;;  %766 = vmatprep.mubr.bf16.mxu0 %v1824_v19 }
  0x55   :  { %863 = vmatprep.mubr.bf16.mxu1 %v1826_v20  ;;  %1373 = vperm.xlu0 %1744, %v1355_v44  }
  0x57   :  { %1336 = vperm.xlu1 %1745, %v1258_v45  }
  0x59   :  { %1383 = vperm.xlu0 %1744, %v1357_v46  }
  0x5b   :  { %767 = vmatmul.mubr.bf16.gmra.mxu0 %v1828_v24  ;;  %1378 = vperm.xlu1 %1745, %v1356_v47  }
  0x5c   :  { %864 = vmatmul.mubr.bf16.gmra.mxu1 %v1829_v26  ;;  %1719 = vmatprep.mubr.msk.bf16.mxu0 %vm653_vm0, %v1830_v27 }
  0x5d   :  { %1727 = vmatprep.mubr.msk.bf16.mxu1 %vm653_vm0, %v1831_v28  ;;  %1393 = vperm.xlu0 %1744, %v1359_v48  }
  0x5f   :  { %1388 = vperm.xlu1 %1745, %v1358_v49  }
  0x61   :  { %1403 = vperm.xlu0 %1744, %v1361_v50  }
  0x63   :  { %1720 = vmatmul.mubr.msk.bf16.vlgmr.msra.gmra.mxu0 %vm653_vm0, %v1832_v32  ;;  %1398 = vperm.xlu1 %1745, %v1360_v51  }
  0x64   :  { %1728 = vmatmul.mubr.msk.bf16.vlgmr.msra.gmra.mxu1 %vm653_vm0, %v1833_v34  ;;  %1723 = vmatprep.mubr.msk.bf16.mxu0 %vm653_vm0, %v1834_v35 }
  0x65   :  { %1731 = vmatprep.mubr.msk.bf16.mxu1 %vm653_vm0, %v1835_v36  ;;  %1413 = vperm.xlu0 %1744, %v1363_v52  }
  0x67   :  { %1408 = vperm.xlu1 %1745, %v1362_v53  }
  0x69   :  { %1423 = vperm.xlu0 %1744, %v1365_v54  }
  0x6b   :  { %1724 = vmatmul.mubr.msk.bf16.gmra.mxu0 %vm653_vm0, %v1836_v40  ;;  %1418 = vperm.xlu1 %1745, %v1364_v55  }
  0x6c   :  { %1732 = vmatmul.mubr.msk.bf16.gmra.mxu1 %vm653_vm0, %v1837_v42 }
  0x6f   :  { %1428 = vperm.xlu1 %1745, %v1366_v56  }
  0x8d   :  { %v2289_v11 = vpop.permute.xlu1 %169 }
  0x8e   :  { %v2273_v59 = vpop.permute.xlu0 %159 }
  0x91   :  { %v2299_v18 = vpop.permute.xlu1 %174 }
  0x92   :  { %v165_v3 = vpop.permute.xlu0 %164 }
  0x95   :  { %v185_v31 = vpop.permute.xlu1 %184 }
  0x96   :  { %v180_v22 = vpop.permute.xlu0 %179 }
  0x99   :  { %v195_v44 = vpop.permute.xlu1 %194 }
  0xe3   :  { %v2269_v57 = vpop.f32.mrf.mxu0 }
  0xe4   :  { %v2271_v58 = vpop.f32.mrf.mxu1 }
  0xe5   :  { %v2275_v60 = vpop.f32.mrf.mxu0 }
  0xe6   :  { %v2277_v61 = vpop.f32.mrf.mxu1 }
  0xe7   :  { %v1590_v62 = vpop.f32.mrf.mxu0 }
  0xe8   :  { %v1654_v63 = vpop.f32.mrf.mxu1 }
  0xe9   :  { %v1591_v0 = vpop.f32.mrf.mxu0 }
  0xea   :  { %v1592_v1 = vadd.f32 %v1591_v0, %v1590_v62  ;;  %v1655_v2 = vpop.f32.mrf.mxu1 }
  0xeb   :  { %v1656_v4 = vadd.f32 %v1655_v2, %v1654_v63  ;;  %v2279_v5 = vpop.f32.mrf.mxu0 }
  0xec   :  { %v716_v6 = vadd.f32 %v1592_v1, %v165_v3  ;;  %v2281_v7 = vpop.f32.mrf.mxu1 }
  0xed   :  { %v2283_v8 = vpop.f32.mrf.mxu0 }
  0xee   :  { %v2285_v9 = vpop.f32.mrf.mxu1  ;;  %v2287_v10 = vadd.f32 %v1656_v4, %v716_v6  ;;  %v2319_v4 = vpop.permute.xlu0 %189 }
  0xef   :  { %v2291_v12 = vpop.f32.mrf.mxu0 }
  0xf0   :  { %v2293_v13 = vpop.f32.mrf.mxu1 }
  0xf1   :  { %v2295_v14 = vpop.f32.mrf.mxu0 }
  0xf2   :  { %v2297_v15 = vpop.f32.mrf.mxu1 }
  0xf3   :  { %v1599_v16 = vpop.f32.mrf.mxu0 }
  0xf4   :  { %v1663_v17 = vpop.f32.mrf.mxu1 }
  0xf5   :  { %v1600_v19 = vpop.f32.mrf.mxu0 }
  0xf6   :  { %v1601_v20 = vadd.f32 %v1600_v19, %v1599_v16  ;;  %v1664_v21 = vpop.f32.mrf.mxu1 }
  0xf7   :  { %v1665_v23 = vadd.f32 %v1664_v21, %v1663_v17  ;;  %v1602_v24 = vpop.f32.mrf.mxu0 }
  0xf8   :  { %v729_v25 = vadd.f32 %v1601_v20, %v180_v22  ;;  %v1666_v26 = vpop.f32.mrf.mxu1  ;;  %v200_v22 = vpop.permute.xlu0 %199 }
  0xf9   :  { %v1603_v27 = vpop.f32.mrf.mxu0 }
  0xfa   :  { %v1604_v28 = vadd.f32 %v1603_v27, %v1602_v24  ;;  %v1667_v29 = vpop.f32.mrf.mxu1  ;;  %v2301_v30 = vadd.f32 %v1665_v23, %v729_v25  ;;  %v1595_v25 = vadd.f32 %v2283_v8, %v2279_v5  ;;  %v1659_v5 = vadd.f32 %v2285_v9, %v2281_v7 }
  0xfb   :  { %v1668_v32 = vadd.f32 %v1667_v29, %v1666_v26  ;;  %v2303_v33 = vpop.f32.mrf.mxu0  ;;  %v1589_v29 = vadd.f32 %v2275_v60, %v2269_v57 }
  0xfc   :  { %v732_v34 = vadd.f32 %v1604_v28, %v185_v31  ;;  %v2305_v35 = vpop.f32.mrf.mxu1 }
  0xfd   :  { %v2307_v36 = vpop.f32.mrf.mxu0  ;;  %v713_v60 = vadd.f32 %v1589_v29, %v2273_v59 }
  0xfe   :  { %v2309_v37 = vpop.f32.mrf.mxu1  ;;  %v2311_v38 = vadd.f32 %v1668_v32, %v732_v34  ;;  %v1598_v32 = vadd.f32 %v2295_v14, %v2291_v12  ;;  %v1653_v12 = vadd.f32 %v2277_v61, %v2271_v58 }
  0xff   :  { %v1608_v39 = vpop.f32.mrf.mxu0 }
 0x100   :  { %v1672_v40 = vpop.f32.mrf.mxu1  ;;  %v810_v58 = vadd.f32 %v1653_v12, %v713_v60 }
 0x101   :  { %v1609_v41 = vpop.f32.mrf.mxu0 }
 0x102   :  { %v1610_v42 = vadd.f32 %v1609_v41, %v1608_v39  ;;  %v1673_v43 = vpop.f32.mrf.mxu1  ;;  %v721_v41 = vadd.f32 %v1595_v25, %v2289_v11  ;;  %v1662_v11 = vadd.f32 %v2297_v15, %v2293_v13 }
 0x103   :  { %v1674_v45 = vadd.f32 %v1673_v43, %v1672_v40  ;;  %v1611_v46 = vpop.f32.mrf.mxu0  ;;  %v210_v40 = vpop.permute.xlu0 %209 }
 0x104   :  { %v740_v47 = vadd.f32 %v1610_v42, %v195_v44  ;;  %v1675_v48 = vpop.f32.mrf.mxu1  ;;  %v205_v42 = vpop.permute.xlu1 %204 }
 0x105   :  { %v1612_v49 = vpop.f32.mrf.mxu0 }
 0x106   :  { %v1676_v50 = vpop.f32.mrf.mxu1  ;;  %v2313_v51 = vadd.f32 %v1674_v45, %v740_v47  ;;  %v1613_v34 = vadd.f32 %v1612_v49, %v1611_v46  ;;  %v724_v45 = vadd.f32 %v1598_v32, %v2299_v18 }
 0x107   :  { %v1614_v52 = vpop.f32.mrf.mxu0  ;;  %v1677_v9 = vadd.f32 %v1676_v50, %v1675_v48 }
 0x108   :  { %v2315_v53 = vpop.f32.mrf.mxu1  ;;  %v745_v7 = vadd.f32 %v1613_v34, %v200_v22  ;;  %v215_v61 = vpop.permute.xlu1 %214  ;;  %v821_v13 = vadd.f32 %v1662_v11, %v724_v45 }
 0x109   :  { %v1615_v54 = vpop.f32.mrf.mxu0 }
 0x10a   :  { %v2317_v55 = vpop.f32.mrf.mxu1  ;;  %v1616_v25 = vadd.f32 %v1615_v54, %v1614_v52  ;;  %v842_v29 = vadd.f32 %v1677_v9, %v745_v7 }
 0x10b   :  { %v1617_v56 = vpop.f32.mrf.mxu0 }
 0x10c   :  { %v1681_v62 = vpop.f32.mrf.mxu1 }
 0x10d   :  { %v1618_v63 = vpop.f32.mrf.mxu0 }
 0x10e   :  { %v1682_v0 = vpop.f32.mrf.mxu1  ;;  %v1619_v27 = vadd.f32 %v1618_v63, %v1617_v56  ;;  %v818_v56 = vadd.f32 %v1659_v5, %v721_v41 }
 0x10f   :  { %v1620_v1 = vpop.f32.mrf.mxu0  ;;  %v1683_v44 = vadd.f32 %v1682_v0, %v1681_v62 }
 0x110   :  { %v1684_v2 = vpop.f32.mrf.mxu1  ;;  %v753_v43 = vadd.f32 %v1619_v27, %v210_v40 }
 0x111   :  { %v1621_v3 = vpop.f32.mrf.mxu0 }
 0x112   :  { %v1685_v6 = vpop.f32.mrf.mxu1  ;;  %v1622_v47 = vadd.f32 %v1621_v3, %v1620_v1  ;;  %v850_v59 = vadd.f32 %v1683_v44, %v753_v43  ;;  %v1680_v43 = vadd.f32 %v2317_v55, %v2315_v53 }
 0x113   :  { %v2321_v16 = vpop.f32.mrf.mxu0  ;;  %v1686_v48 = vadd.f32 %v1685_v6, %v1684_v2  ;;  %v748_v6 = vadd.f32 %v1616_v25, %v205_v42 }
 0x114   :  { %v2323_v17 = vpop.f32.mrf.mxu1  ;;  %v756_v15 = vadd.f32 %v1622_v47, %v215_v61 }
 0x115   :  { %v2325_v19 = vpop.f32.mrf.mxu0  ;;  %v845_v42 = vadd.f32 %v1680_v43, %v748_v6 }
 0x116   :  { %v2327_v20 = vpop.f32.mrf.mxu1  ;;  %v853_v44 = vadd.f32 %v1686_v48, %v756_v15 }
 0x117   :  { %v2329_v21 = vpop.f32.mrf.mxu0 }
 0x118   :  { %v2331_v23 = vpop.f32.mrf.mxu1 }
 0x119   :  { %v2333_v24 = vpop.f32.mrf.mxu0 }
 0x11a   :  { %v2337_v26 = vpop.f32.mrf.mxu1 }
 0x11b   :  { %v2339_v28 = vpop.f32.mrf.mxu0 }
 0x11c   :  { %v2343_v31 = vpop.f32.mrf.mxu1 }
 0x11d   :  { %v2347_v39 = vpop.f32.mrf.mxu0 }
 0x11e   :  { %v2352_v8 = vpop.f32.mrf.mxu1 }
 0x11f   :  { %v2354_v57 = vpop.f32.mrf.mxu0 }
 0x120   :  { %v2359_v14 = vpop.f32.mrf.mxu1 }
 0x121   :  { %v2364_v46 = vpop.f32.mrf.mxu0 }
 0x122   :  { %v2366_v49 = vpop.f32.mrf.mxu1  ;;  %v1634_v6 = vadd.f32 %v2364_v46, %v2354_v57  ;;  %v1689_v46 = vadd.f32 %v2327_v20, %v2323_v17 }
 0x123   :  { %v1721_v62 = vpop.f32.mrf.mxu0 }
 0x124   :  { %v915_v63 = vadd.f32 %v1721_v62, %v818_v56  ;;  %v1729_v0 = vpop.f32.mrf.mxu1 }
 0x125   :  { %v947_v18 = vadd.f32 %v1729_v0, %v850_v59  ;;  %v906_v27 = vpop.f32.mrf.mxu0  ;;  %v1607_v59 = vadd.f32 %v2307_v36, %v2303_v33  ;;  %v1631_v33 = vadd.f32 %v2347_v39, %v2339_v28 }
 0x126   :  { %v2368_v50 = vmax.f32 %v915_v63, 0.0  ;;  %v907_v1 = vadd.f32 %v906_v27, %v810_v58  ;;  %v938_v3 = vpop.f32.mrf.mxu1  ;;  %v220_v63 = vpop.permute.xlu0 %219 }
 0x127   :  { %v2370_v22 = vmax.f32 %v947_v18, 0.0  ;;  %v939_v32 = vadd.f32 %v938_v3, %v842_v29  ;;  %v1722_v34 = vpop.f32.mrf.mxu0  ;;  %v737_v27 = vadd.f32 %v1607_v59, %v2319_v4  ;;  %v1671_v29 = vadd.f32 %v2309_v37, %v2305_v35  ;;  %v225_v3 = vpop.permute.xlu1 %224 }
 0x128   :  { %v2372_v40 = vmax.f32 %v907_v1, 0.0  ;;  %v918_v41 = vadd.f32 %v1722_v34, %v821_v13  ;;  %v992_v52 = vsel %vm985_vm1, %v2368_v50, 0.0  ;;  %v1730_v5 = vpop.f32.mrf.mxu1  ;;  %v1053_v9 = vmul.f32 %v2368_v50, %v2368_v50 }
 0x129   :  { %v2376_v54 = vmax.f32 %v939_v32, 0.0  ;;  %v1016_v2 = vsel %vm985_vm1, %v2370_v22, 0.0  ;;  %993 = vadd.xlane.f32.xlu0 %v992_v52  ;;  %v950_v12 = vadd.f32 %v1730_v5, %v853_v44  ;;  %v1061_v62 = vmul.f32 %v2370_v22, %v2370_v22  ;;  %v909_v61 = vpop.f32.mrf.mxu0 }
 0x12a   :  { %1017 = vadd.xlane.f32.xlu1 %v1016_v2  ;;  %v2382_v60 = vmax.f32 %v918_v41, 0.0  ;;  %v986_v45 = vsel %vm985_vm1, %v2372_v40, 0.0  ;;  %v941_v11 = vpop.f32.mrf.mxu1  ;;  %v1073_v56 = vsel %vm985_vm1, %v1053_v9, 0.0  ;;  %v1051_v18 = vmul.f32 %v2372_v40, %v2372_v40  ;;  %v230_v35 = vpop.permute.xlu0 %229 }
 0x12b   :  { %v1010_v7 = vsel %vm985_vm1, %v2376_v54, 0.0  ;;  %v2390_v47 = vmax.f32 %v950_v12, 0.0  ;;  %v942_v53 = vadd.f32 %v941_v11, %v845_v42  ;;  %v1097_v25 = vsel %vm985_vm1, %v1061_v62, 0.0  ;;  %v1725_v48 = vpop.f32.mrf.mxu0  ;;  %v235_v43 = vpop.permute.xlu1 %234 }
 0x12c   :  { %v995_v55 = vsel %vm985_vm1, %v2382_v60, 0.0  ;;  %v910_v36 = vadd.f32 %v909_v61, %v2287_v10  ;;  %v1054_v15 = vmul.f32 %v2382_v60, %v2382_v60  ;;  %v1067_v1 = vsel %vm985_vm1, %v1051_v18, 0.0  ;;  %v1733_v52 = vpop.f32.mrf.mxu1 }
 0x12d   :  { %987 = vadd.xlane.f32.xlu0 %v986_v45  ;;  %v2399_v0 = vmax.f32 %v942_v53, 0.0  ;;  %v1019_v58 = vsel %vm985_vm1, %v2390_v47, 0.0  ;;  %v1059_v4 = vmul.f32 %v2376_v54, %v2376_v54  ;;  %v769_v37 = vadd.f32 %v1631_v33, %v230_v35  ;;  %v922_v5 = vpop.f32.mrf.mxu0 }
 0x12e   :  { %1011 = vadd.xlane.f32.xlu1 %v1010_v7  ;;  %v1695_v10 = vadd.f32 %v2352_v8, %v2343_v31  ;;  %v834_v28 = vadd.f32 %v1671_v29, %v737_v27  ;;  %v2421_v39 = vmax.f32 %v910_v36, 0.0  ;;  %v1076_v32 = vsel %vm985_vm1, %v1054_v15, 0.0  ;;  %v954_v7 = vpop.f32.mrf.mxu1 }
 0x12f   :  { %v1013_v13 = vsel %vm985_vm1, %v2399_v0, 0.0  ;;  %v1062_v34 = vmul.f32 %v2390_v47, %v2390_v47  ;;  %v1091_v2 = vsel %vm985_vm1, %v1059_v4, 0.0  ;;  %v1625_v31 = vadd.f32 %v2325_v19, %v2321_v16  ;;  %v1726_v9 = vpop.f32.mrf.mxu0 }
 0x130   :  { %v931_v41 = vadd.f32 %v1725_v48, %v834_v28  ;;  %v866_v8 = vadd.f32 %v1695_v10, %v769_v37  ;;  %v1052_v12 = vmul.f32 %v2421_v39, %v2421_v39  ;;  %v989_v42 = vsel %vm985_vm1, %v2421_v39, 0.0 }
 0x131   :  { %996 = vadd.xlane.f32.xlu0 %v995_v55  ;;  %v1100_v44 = vsel %vm985_vm1, %v1062_v34, 0.0  ;;  %v772_v57 = vadd.f32 %v1634_v6, %v235_v43  ;;  %v1698_v16 = vadd.f32 %v2366_v49, %v2359_v14  ;;  %v761_v19 = vadd.f32 %v1625_v31, %v220_v63 }
 0x132   :  { %1074 = vadd.xlane.f32.xlu1 %v1073_v56  ;;  %v2434_v45 = vmax.f32 %v931_v41, 0.0  ;;  %v963_v11 = vadd.f32 %v1733_v52, %v866_v8  ;;  %v934_v53 = vadd.f32 %v1726_v9, %v2313_v51  ;;  %v1070_v55 = vsel %vm985_vm1, %v1052_v12, 0.0 }
 0x133   :  { %v1060_v56 = vmul.f32 %v2399_v0, %v2399_v0  ;;  %v923_v59 = vadd.f32 %v922_v5, %v2301_v30  ;;  %v1628_v49 = vadd.f32 %v2333_v24, %v2329_v21  ;;  %v869_v17 = vadd.f32 %v1698_v16, %v772_v57  ;;  %v925_v30 = vpop.f32.mrf.mxu0  ;;  %v2493_v5 = vpop.permute.xlu1 %1261 }
 0x134   :  { %v2446_v62 = vmax.f32 %v963_v11, 0.0  ;;  %v1004_v14 = vsel %vm985_vm1, %v2434_v45, 0.0  ;;  %v858_v51 = vadd.f32 %v1689_v46, %v761_v19  ;;  %v2453_v20 = vmax.f32 %v934_v53, 0.0  ;;  %v1368_v53 = vld [vmem:[%s2762_s4 + $0x68] sm:$0xff] }
 0x135   :  { %1020 = vadd.xlane.f32.xlu0 %v1019_v58  ;;  %v1734_v58 = vpop.f32.mrf.mxu1  ;;  %v1094_v61 = vsel %vm985_vm1, %v1060_v56, 0.0  ;;  %v764_v29 = vadd.f32 %v1628_v49, %v225_v3  ;;  %v1692_v21 = vadd.f32 %v2337_v26, %v2331_v23  ;;  %v926_v33 = vadd.f32 %v925_v30, %v2311_v38  ;;  %v1367_v49 = vld [vmem:[%s2762_s4 + $0x60] sm:$0xff] }
 0x136   :  { %1098 = vadd.xlane.f32.xlu1 %v1097_v25  ;;  %v966_v63 = vadd.f32 %v1734_v58, %v869_v17  ;;  %v2456_v25 = vmax.f32 %v923_v59, 0.0  ;;  %v955_v18 = vadd.f32 %v954_v7, %v858_v51  ;;  %v1028_v27 = vsel %vm985_vm1, %v2446_v62, 0.0  ;;  %v1370_v59 = vld [vmem:[%s2762_s4 + $0x78] sm:$0xff] }
 0x137   :  { %v1007_v36 = vsel %vm985_vm1, %v2453_v20, 0.0  ;;  %v957_v15 = vpop.f32.mrf.mxu1  ;;  %v2471_v4 = vmax.f32 %v926_v33, 0.0  ;;  %v1057_v3 = vmul.f32 %v2434_v45, %v2434_v45  ;;  %v1065_v28 = vmul.f32 %v2446_v62, %v2446_v62  ;;  %v2504_v12 = vpop.permute.xlu1 %1271 }
 0x138   :  { %v2462_v24 = vmax.f32 %v966_v63, 0.0  ;;  %v998_v48 = vsel %vm985_vm1, %v2456_v25, 0.0  ;;  %v1058_v34 = vmul.f32 %v2453_v20, %v2453_v20  ;;  %v1055_v52 = vmul.f32 %v2456_v25, %v2456_v25  ;;  %v1369_v63 = vld [vmem:[%s2762_s4 + $0x70] sm:$0xff] }
 0x139   :  { %1014 = vadd.xlane.f32.xlu0 %v1013_v13  ;;  %v2467_v13 = vmax.f32 %v955_v18, 0.0  ;;  %2766 = vst [vmem:[#allocation2_spill] sm:$0xff] %v2471_v4  ;;  %v1001_v37 = vsel %vm985_vm1, %v2471_v4, 0.0  ;;  %v1085_v10 = vsel %vm985_vm1, %v1057_v3, 0.0  ;;  %v1109_v41 = vsel %vm985_vm1, %v1065_v28, 0.0 }
 0x13a   :  { %1068 = vadd.xlane.f32.xlu1 %v1067_v1  ;;  %v861_v1 = vadd.f32 %v1692_v21, %v764_v29  ;;  %v1031_v26 = vsel %vm985_vm1, %v2462_v24, 0.0  ;;  %v1066_v6 = vmul.f32 %v2462_v24, %v2462_v24  ;;  %v1079_v31 = vsel %vm985_vm1, %v1055_v52, 0.0 }
 0x13b   :  { %v1022_v38 = vsel %vm985_vm1, %v2467_v13, 0.0  ;;  %v1063_v8 = vmul.f32 %v2467_v13, %v2467_v13  ;;  %v2512_v57 = vpop.permute.xlu1 %1276 }
 0x13c   :  { %v958_v23 = vadd.f32 %v957_v15, %v861_v1  ;;  %v1112_v43 = vsel %vm985_vm1, %v1066_v6, 0.0 }
 0x13d   :  { %1077 = vadd.xlane.f32.xlu0 %v1076_v32  ;;  %v1103_v11 = vsel %vm985_vm1, %v1063_v8, 0.0 }
 0x13e   :  { %1092 = vadd.xlane.f32.xlu1 %v1091_v2  ;;  %v2479_v35 = vmax.f32 %v958_v23, 0.0  ;;  %v1088_v2 = vsel %vm985_vm1, %v1058_v34, 0.0 }
 0x13f   :  { %v2517_v46 = vpop.permute.xlu1 %1286 }
 0x140   :  { %2767 = vst [vmem:[#allocation3_spill] sm:$0xff] %v2479_v35  ;;  %v1025_v32 = vsel %vm985_vm1, %v2479_v35, 0.0  ;;  %v1064_v9 = vmul.f32 %v2479_v35, %v2479_v35  ;;  %2768 = vst [vmem:[#allocation4_spill] sm:$0xff] %v2517_v46 }
 0x141   :  { %1101 = vadd.xlane.f32.xlu0 %v1100_v44  ;;  %v1056_v44 = vmul.f32 %v2471_v4, %v2471_v4 }
 0x142   :  { %990 = vadd.xlane.f32.xlu1 %v989_v42  ;;  %v2510_v42 = vpop.permute.xlu0 %1266  ;;  %v1106_v16 = vsel %vm985_vm1, %v1064_v9, 0.0 }
 0x143   :  { %v1082_v7 = vsel %vm985_vm1, %v1056_v44, 0.0  ;;  %v2524_v56 = vpop.permute.xlu1 %1296 }
 0x145   :  { %1071 = vadd.xlane.f32.xlu0 %v1070_v55 }
 0x146   :  { %1005 = vadd.xlane.f32.xlu1 %v1004_v14  ;;  %v2515_v19 = vpop.permute.xlu0 %1281 }
 0x147   :  { %v2531_v14 = vpop.permute.xlu1 %1306 }
 0x149   :  { %1095 = vadd.xlane.f32.xlu0 %v1094_v61 }
 0x14a   :  { %1029 = vadd.xlane.f32.xlu1 %v1028_v27  ;;  %v2522_v55 = vpop.permute.xlu0 %1291 }
 0x14b   :  { %v2538_v51 = vpop.permute.xlu1 %1316 }
 0x14d   :  { %1008 = vadd.xlane.f32.xlu0 %v1007_v36 }
 0x14e   :  { %999 = vadd.xlane.f32.xlu1 %v998_v48  ;;  %v2529_v58 = vpop.permute.xlu0 %1301 }
 0x14f   :  { %v2545_v18 = vpop.permute.xlu1 %1326 }
 0x150   :  { %2770 = vst [vmem:[#allocation6_spill] sm:$0xff] %v2545_v18 }
 0x151   :  { %1032 = vadd.xlane.f32.xlu0 %v1031_v26 }
 0x152   :  { %1023 = vadd.xlane.f32.xlu1 %v1022_v38  ;;  %v2536_v17 = vpop.permute.xlu0 %1311 }
 0x153   :  { %v2549_v27 = vpop.permute.xlu1 %1336 }
 0x154   :  { %2771 = vst [vmem:[#allocation7_spill] sm:$0xff] %v2549_v27 }
 0x155   :  { %1002 = vadd.xlane.f32.xlu0 %v1001_v37 }
 0x156   :  { %1086 = vadd.xlane.f32.xlu1 %v1085_v10  ;;  %v2543_v61 = vpop.permute.xlu0 %1321 }
 0x157   :  { %2769 = vst [vmem:[#allocation5_spill] sm:$0xff] %v2543_v61  ;;  %v2553_v21 = vpop.permute.xlu1 %1378 }
 0x159   :  { %1026 = vadd.xlane.f32.xlu0 %v1025_v32 }
 0x15a   :  { %1110 = vadd.xlane.f32.xlu1 %v1109_v41  ;;  %v2547_v30 = vpop.permute.xlu0 %1331 }
 0x15b   :  { %v2557_v36 = vpop.permute.xlu1 %1388 }
 0x15d   :  { %1089 = vadd.xlane.f32.xlu0 %v1088_v2 }
 0x15e   :  { %1080 = vadd.xlane.f32.xlu1 %v1079_v31  ;;  %v2551_v29 = vpop.permute.xlu0 %1373 }
 0x15f   :  { %v2561_v48 = vpop.permute.xlu1 %1398 }
 0x160   :  { %2773 = vst [vmem:[#allocation9_spill] sm:$0xff] %v2561_v48 }
 0x161   :  { %1113 = vadd.xlane.f32.xlu0 %v1112_v43 }
 0x162   :  { %1104 = vadd.xlane.f32.xlu1 %v1103_v11  ;;  %v2555_v33 = vpop.permute.xlu0 %1383 }
 0x163   :  { %v2565_v23 = vpop.permute.xlu1 %1408 }
 0x165   :  { %1083 = vadd.xlane.f32.xlu0 %v1082_v7 }
 0x166   :  { %v2559_v15 = vpop.permute.xlu0 %1393 }
 0x167   :  { %2772 = vst [vmem:[#allocation8_spill] sm:$0xff] %v2559_v15  ;;  %v2569_v38 = vpop.permute.xlu1 %1418 }
 0x169   :  { %1107 = vadd.xlane.f32.xlu0 %v1106_v16 }
 0x16a   :  { %v2563_v1 = vpop.permute.xlu0 %1403 }
 0x16b   :  { %v2573_v37 = vpop.permute.xlu1 %1428 }
 0x16e   :  { %v2567_v26 = vpop.permute.xlu0 %1413 }
 0x172   :  { %v2571_v3 = vpop.permute.xlu0 %1423 }
 0x173   :  { %1438 = vperm.xlu1 %1745, %v1368_v53  }
 0x177   :  { %1448 = vperm.xlu1 %1745, %v1370_v59  }
 0x17f   :  { %1433 = vperm.xlu0 %1744, %v1367_v49  }
 0x183   :  { %1443 = vperm.xlu0 %1744, %v1369_v63  }
 0x1b2   :  { %v994_v10 = vpop.xlane.xlu0 %993 }
 0x1b3   :  { %v1018_v28 = vpop.xlane.xlu1 %1017  ;;  %v1037_v41 = vmul.f32 0.125, %v994_v10 }
 0x1b4   :  { %v2575_v6 = vmul.f32 0.125, %v1018_v28 }
 0x1b5   :  { %v1133_v31 = vmul.f32 %v1037_v41, %v1037_v41 }
 0x1b6   :  { %v988_v32 = vpop.xlane.xlu0 %987  ;;  %v1141_v7 = vmul.f32 %v2575_v6, %v2575_v6 }
 0x1b7   :  { %v1012_v34 = vpop.xlane.xlu1 %1011  ;;  %v2579_v9 = vmul.f32 0.125, %v988_v32 }
 0x1b8   :  { %v2581_v10 = vmul.f32 0.125, %v1012_v34 }
 0x1ba   :  { %v997_v52 = vpop.xlane.xlu0 %996 }
 0x1bb   :  { %v1075_v2 = vpop.xlane.xlu1 %1074  ;;  %v2583_v18 = vmul.f32 0.125, %v997_v52  ;;  %v1139_v52 = vmul.f32 %v2581_v10, %v2581_v10 }
 0x1bc   :  { %v1117_v8 = vmul.f32 0.125, %v1075_v2  ;;  %v1131_v2 = vmul.f32 %v2579_v9, %v2579_v9 }
 0x1be   :  { %v1149_v43 = vsub.f32 %v1117_v8, %v1133_v31  ;;  %v1021_v44 = vpop.xlane.xlu0 %1020 }
 0x1bf   :  { %v1099_v11 = vpop.xlane.xlu1 %1098 }
 0x1c0   :  { %v1165_v16 = vmax.f32 %v1149_v43, 0.0  ;;  %v1125_v53 = vmul.f32 0.125, %v1099_v11  ;;  %v1134_v43 = vmul.f32 %v2583_v18, %v2583_v18  ;;  %v2589_v11 = vmul.f32 0.125, %v1021_v44 }
 0x1c2   :  { %v1197_v59 = vadd.f32 1e-05, %v1165_v16  ;;  %v1157_v49 = vsub.f32 %v1125_v53, %v1141_v7  ;;  %v1015_v63 = vpop.xlane.xlu0 %1014 }
 0x1c3   :  { %v1069_v28 = vpop.xlane.xlu1 %1068  ;;  %v2597_v15 = vmul.f32 0.125, %v1015_v63 }
 0x1c4   :  { %1838 = vrsqrt.f32 %v1197_v59  ;;  %v1173_v31 = vmax.f32 %v1157_v49, 0.0  ;;  %v1115_v8 = vmul.f32 0.125, %v1069_v28 }
 0x1c6   :  { %v1205_v48 = vadd.f32 1e-05, %v1173_v31  ;;  %v1147_v46 = vsub.f32 %v1115_v8, %v1131_v2  ;;  %v1078_v32 = vpop.xlane.xlu0 %1077  ;;  %v1142_v2 = vmul.f32 %v2589_v11, %v2589_v11 }
 0x1c7   :  { %v1093_v7 = vpop.xlane.xlu1 %1092  ;;  %v1118_v34 = vmul.f32 0.125, %v1078_v32 }
 0x1c8   :  { %1840 = vrsqrt.f32 %v1205_v48  ;;  %v1163_v16 = vmax.f32 %v1147_v46, 0.0  ;;  %v1123_v53 = vmul.f32 0.125, %v1093_v7 }
 0x1c9   :  { %v1150_v35 = vsub.f32 %v1118_v34, %v1134_v43 }
 0x1ca   :  { %v1195_v59 = vadd.f32 1e-05, %v1163_v16  ;;  %v1155_v49 = vsub.f32 %v1123_v53, %v1139_v52  ;;  %v1102_v28 = vpop.xlane.xlu0 %1101 }
 0x1cb   :  { %v1166_v31 = vmax.f32 %v1150_v35, 0.0  ;;  %v991_v8 = vpop.xlane.xlu1 %990  ;;  %v1126_v61 = vmul.f32 0.125, %v1102_v28  ;;  %v1181_v35 = vsub.f32 %v2368_v50, %v1037_v41 }
 0x1cc   :  { %1842 = vrsqrt.f32 %v1195_v59  ;;  %v1171_v44 = vmax.f32 %v1155_v49, 0.0  ;;  %v2595_v27 = vmul.f32 0.125, %v991_v8 }
 0x1cd   :  { %v1198_v32 = vadd.f32 1e-05, %v1166_v31  ;;  %v1158_v4 = vsub.f32 %v1126_v61, %v1142_v2  ;;  %v1140_v61 = vmul.f32 %v2597_v15, %v2597_v15 }
 0x1ce   :  { %v1203_v46 = vadd.f32 1e-05, %v1171_v44  ;;  %v1072_v48 = vpop.xlane.xlu0 %1071  ;;  %v1132_v43 = vmul.f32 %v2595_v27, %v2595_v27 }
 0x1cf   :  { %1844 = vrsqrt.f32 %v1198_v32  ;;  %v1174_v7 = vmax.f32 %v1158_v4, 0.0  ;;  %v1006_v34 = vpop.xlane.xlu1 %1005  ;;  %v1116_v52 = vmul.f32 0.125, %v1072_v48  ;;  %v1189_v4 = vsub.f32 %v2370_v22, %v2575_v6 }
 0x1d0   :  { %1846 = vrsqrt.f32 %v1203_v46 }
 0x1d1   :  { %v1839_v16 = vpop.eup %1838  ;;  %v1206_v53 = vadd.f32 1e-05, %v1174_v7  ;;  %v1148_v59 = vsub.f32 %v1116_v52, %v1132_v43  ;;  %v1179_v52 = vsub.f32 %v2372_v40, %v2579_v9  ;;  %v1187_v40 = vsub.f32 %v2376_v54, %v2581_v10 }
 0x1d2   :  { %v1229_v49 = vmul.f32 %v1839_v16, %v1181_v35  ;;  %v1096_v28 = vpop.xlane.xlu0 %1095  ;;  %v2625_v9 = vmul.f32 0.125, %v1006_v34 }
 0x1d3   :  { %1848 = vrsqrt.f32 %v1206_v53  ;;  %v1164_v63 = vmax.f32 %v1148_v59, 0.0  ;;  %v1030_v2 = vpop.xlane.xlu1 %1029  ;;  %v1124_v31 = vmul.f32 0.125, %v1096_v28  ;;  %v1182_v53 = vsub.f32 %v2382_v60, %v2583_v18 }
 0x1d4   :  { %v1341_v8 = vmul.f32 %v2504_v12, %v1229_v49  ;;  %v1137_v34 = vmul.f32 %v2625_v9, %v2625_v9 }
 0x1d5   :  { %v1841_v44 = vpop.eup %1840  ;;  %v1196_v50 = vadd.f32 1e-05, %v1164_v63  ;;  %v1156_v41 = vsub.f32 %v1124_v31, %v1140_v61  ;;  %v1190_v63 = vsub.f32 %v2390_v47, %v2589_v11 }
 0x1d6   :  { %v1453_v32 = vadd.f32 %v2555_v33, %v1341_v8  ;;  %v1237_v46 = vmul.f32 %v1841_v44, %v1189_v4  ;;  %v1009_v48 = vpop.xlane.xlu0 %1008 }
 0x1d7   :  { %1850 = vrsqrt.f32 %v1196_v50  ;;  %v1172_v43 = vmax.f32 %v1156_v41, 0.0  ;;  %v1000_v7 = vpop.xlane.xlu1 %999  ;;  %v2642_v11 = vmul.f32 0.125, %v1009_v48 }
 0x1d8   :  { %1469 = vst.msk [vmem:[%s2763_s5 + $0x10] sm:$0xff] %vm985_vm1, %v1453_v32  ;;  %v1349_v22 = vmul.f32 %v2536_v17, %v1237_v46  ;;  %v2651_v41 = vmul.f32 0.125, %v1000_v7 }
 0x1d9   :  { %v1843_v12 = vpop.eup %1842  ;;  %v1204_v6 = vadd.f32 1e-05, %v1172_v43 }
 0x1da   :  { %v1461_v35 = vadd.f32 %v2571_v3, %v1349_v22  ;;  %v1227_v33 = vmul.f32 %v1843_v12, %v1179_v52  ;;  %v1033_v16 = vpop.xlane.xlu0 %1032 }
 0x1db   :  { %1852 = vrsqrt.f32 %v1204_v6  ;;  %v1024_v59 = vpop.xlane.xlu1 %1023  ;;  %v2671_v6 = vmul.f32 0.125, %v1033_v16 }
 0x1dc   :  { %v1845_v49 = vpop.eup %1844  ;;  %1477 = vst.msk [vmem:[%s2763_s5 + $0x50] sm:$0xff] %vm985_vm1, %v1461_v35  ;;  %v1339_v17 = vmul.f32 %v2493_v5, %v1227_v33  ;;  %v2673_v33 = vmul.f32 0.125, %v1024_v59 }
 0x1dd   :  { %v1847_v3 = vpop.eup %1846  ;;  %v1230_v28 = vmul.f32 %v1845_v49, %v1182_v53  ;;  %v1146_v59 = vmul.f32 %v2671_v6, %v2671_v6 }
 0x1de   :  { %v1451_v61 = vadd.f32 %v2551_v29, %v1339_v17  ;;  %v1235_v60 = vmul.f32 %v1847_v3, %v1187_v40  ;;  %v1003_v18 = vpop.xlane.xlu0 %1002  ;;  %v2638_v29 = vmul.f32 0.125, %v1030_v2 }
 0x1df   :  { %v1342_v54 = vmul.f32 %v2512_v57, %v1230_v28  ;;  %v1087_v10 = vpop.xlane.xlu1 %1086  ;;  %v2676_v28 = vmul.f32 0.125, %v1003_v18  ;;  %v1143_v18 = vmul.f32 %v2673_v33, %v2673_v33 }
 0x1e0   :  { %v1849_v31 = vpop.eup %1848  ;;  %1467 = vst.msk [vmem:[%s2763_s5] sm:$0xff] %vm985_vm1, %v1451_v61  ;;  %v1347_v5 = vmul.f32 %v2529_v58, %v1235_v60  ;;  %v1121_v4 = vmul.f32 0.125, %v1087_v10  ;;  %v1180_v58 = vsub.f32 %v2421_v39, %v2595_v27  ;;  %v1188_v39 = vsub.f32 %v2399_v0, %v2597_v15 }
 0x1e1   :  { %v1454_v8 = vadd.f32 %v2557_v36, %v1342_v54  ;;  %v1238_v47 = vmul.f32 %v1849_v31, %v1190_v63 }
 0x1e2   :  { %v1459_v57 = vadd.f32 %v2567_v26, %v1347_v5  ;;  %v1153_v44 = vsub.f32 %v1121_v4, %v1137_v34  ;;  %v1027_v50 = vpop.xlane.xlu0 %1026  ;;  %v1145_v26 = vmul.f32 %v2638_v29, %v2638_v29 }
 0x1e3   :  { %1470 = vst.msk [vmem:[%s2763_s5 + $0x18] sm:$0xff] %vm985_vm1, %v1454_v8  ;;  %v1350_v2 = vmul.f32 %v2538_v51, %v1238_v47  ;;  %v1111_v36 = vpop.xlane.xlu1 %1110  ;;  %v1138_v51 = vmul.f32 %v2642_v11, %v2642_v11  ;;  %v1136_v8 = vmul.f32 %v2676_v28, %v2676_v28 }
 0x1e4   :  { %v1851_v32 = vpop.eup %1850  ;;  %1475 = vst.msk [vmem:[%s2763_s5 + $0x40] sm:$0xff] %vm985_vm1, %v1459_v57  ;;  %v1169_v46 = vmax.f32 %v1153_v44, 0.0  ;;  %v1129_v48 = vmul.f32 0.125, %v1111_v36  ;;  %v2694_v44 = vmul.f32 0.125, %v1027_v50 }
 0x1e5   :  { %v1462_v43 = vadd.f32 %v2573_v37, %v1350_v2  ;;  %v1228_v52 = vmul.f32 %v1851_v32, %v1180_v58  ;;  %v1135_v37 = vmul.f32 %v2651_v41, %v2651_v41 }
 0x1e6   :  { %v1201_v27 = vadd.f32 1e-05, %v1169_v46  ;;  %v1161_v7 = vsub.f32 %v1129_v48, %v1145_v26  ;;  %v1090_v22 = vpop.xlane.xlu0 %1089  ;;  %v1144_v48 = vmul.f32 %v2694_v44, %v2694_v44 }
 0x1e7   :  { %1478 = vst.msk [vmem:[%s2763_s5 + $0x58] sm:$0xff] %vm985_vm1, %v1462_v43  ;;  %v1340_v12 = vmul.f32 %v2510_v42, %v1228_v52  ;;  %v1081_v35 = vpop.xlane.xlu1 %1080  ;;  %v1122_v0 = vmul.f32 0.125, %v1090_v22 }
 0x1e8   :  { %v1853_v15 = vpop.eup %1852  ;;  %1854 = vrsqrt.f32 %v1201_v27  ;;  %v1177_v53 = vmax.f32 %v1161_v7, 0.0  ;;  %v1119_v49 = vmul.f32 0.125, %v1081_v35 }
 0x1e9   :  { %v1452_v40 = vadd.f32 %v2553_v21, %v1340_v12  ;;  %v1236_v17 = vmul.f32 %v1853_v15, %v1188_v39  ;;  %v1154_v3 = vsub.f32 %v1122_v0, %v1138_v51  ;;  %v1185_v39 = vsub.f32 %v2434_v45, %v2625_v9 }
 0x1ea   :  { %v1209_v42 = vadd.f32 1e-05, %v1177_v53  ;;  %v1151_v61 = vsub.f32 %v1119_v49, %v1135_v37  ;;  %v1114_v60 = vpop.xlane.xlu0 %1113  ;;  %v1193_v12 = vsub.f32 %v2446_v62, %v2638_v29  ;;  %v1186_v45 = vsub.f32 %v2453_v20, %v2642_v11 }
 0x1eb   :  { %1468 = vst.msk [vmem:[%s2763_s5 + $0x8] sm:$0xff] %vm985_vm1, %v1452_v40  ;;  %v1348_v16 = vmul.f32 %v2531_v14, %v1236_v17  ;;  %v1170_v63 = vmax.f32 %v1154_v3, 0.0  ;;  %v1105_v54 = vpop.xlane.xlu1 %1104  ;;  %v1130_v21 = vmul.f32 0.125, %v1114_v60  ;;  %v1183_v40 = vsub.f32 %v2456_v25, %v2651_v41 }
 0x1ec   :  { %1856 = vrsqrt.f32 %v1209_v42  ;;  %v1167_v10 = vmax.f32 %v1151_v61, 0.0  ;;  %v1127_v31 = vmul.f32 0.125, %v1105_v54  ;;  %v1194_v20 = vsub.f32 %v2462_v24, %v2671_v6  ;;  %v2777_v54 = vld [vmem:[#allocation5_spill] sm:$0xff] }
 0x1ed   :  { %v1460_v5 = vadd.f32 %v2569_v38, %v1348_v16  ;;  %v1202_v34 = vadd.f32 1e-05, %v1170_v63  ;;  %v1162_v4 = vsub.f32 %v1130_v21, %v1146_v59  ;;  %v1191_v25 = vsub.f32 %v2467_v13, %v2673_v33  ;;  %v2776_v13 = vld [vmem:[#allocation7_spill] sm:$0xff] }
 0x1ee   :  { %v1199_v14 = vadd.f32 1e-05, %v1167_v10  ;;  %v1159_v47 = vsub.f32 %v1127_v31, %v1143_v18  ;;  %v1084_v57 = vpop.xlane.xlu0 %1083 }
 0x1ef   :  { %1476 = vst.msk [vmem:[%s2763_s5 + $0x48] sm:$0xff] %vm985_vm1, %v1460_v5  ;;  %1858 = vrsqrt.f32 %v1202_v34  ;;  %v1178_v58 = vmax.f32 %v1162_v4, 0.0  ;;  %v1120_v2 = vmul.f32 0.125, %v1084_v57  ;;  %v1439_v17 = vpop.permute.xlu1 %1438  ;;  %v2779_v34 = vld [vmem:[#allocation4_spill] sm:$0xff] }
 0x1f0   :  { %1860 = vrsqrt.f32 %v1199_v14  ;;  %v1175_v38 = vmax.f32 %v1159_v47, 0.0  ;;  %v2780_v14 = vld [vmem:[#allocation9_spill] sm:$0xff] }
 0x1f1   :  { %v1210_v36 = vadd.f32 1e-05, %v1178_v58  ;;  %v1152_v32 = vsub.f32 %v1120_v2, %v1136_v8 }
 0x1f2   :  { %v1207_v26 = vadd.f32 1e-05, %v1175_v38  ;;  %v1108_v46 = vpop.xlane.xlu0 %1107 }
 0x1f3   :  { %1862 = vrsqrt.f32 %v1210_v36  ;;  %v1168_v43 = vmax.f32 %v1152_v32, 0.0  ;;  %v1128_v52 = vmul.f32 0.125, %v1108_v46  ;;  %v1449_v33 = vpop.permute.xlu1 %1448 }
 0x1f4   :  { %1864 = vrsqrt.f32 %v1207_v26 }
 0x1f5   :  { %v1855_v50 = vpop.eup %1854  ;;  %v1200_v51 = vadd.f32 1e-05, %v1168_v43  ;;  %v1160_v27 = vsub.f32 %v1128_v52, %v1144_v48 }
 0x1f6   :  { %v1233_v7 = vmul.f32 %v1855_v50, %v1185_v39 }
 0x1f7   :  { %1866 = vrsqrt.f32 %v1200_v51  ;;  %v1176_v22 = vmax.f32 %v1160_v27, 0.0 }
 0x1f8   :  { %v1345_v37 = vmul.f32 %v2522_v55, %v1233_v7 }
 0x1f9   :  { %v1857_v35 = vpop.eup %1856  ;;  %v1208_v0 = vadd.f32 1e-05, %v1176_v22 }
 0x1fa   :  { %v1457_v15 = vadd.f32 %v2563_v1, %v1345_v37  ;;  %v1434_v53 = vpop.permute.xlu0 %1433  ;;  %v1241_v49 = vmul.f32 %v1857_v35, %v1193_v12 }
 0x1fb   :  { %1868 = vrsqrt.f32 %v1208_v0 }
 0x1fc   :  { %v1859_v9 = vpop.eup %1858  ;;  %1473 = vst.msk [vmem:[%s2763_s5 + $0x30] sm:$0xff] %vm985_vm1, %v1457_v15  ;;  %v1353_v29 = vmul.f32 %v2547_v30, %v1241_v49  ;;  %v2774_v30 = vld [vmem:[#allocation8_spill] sm:$0xff] }
 0x1fd   :  { %v1861_v62 = vpop.eup %1860  ;;  %v1234_v55 = vmul.f32 %v1859_v9, %v1186_v45 }
 0x1fe   :  { %v1231_v1 = vmul.f32 %v1861_v62, %v1183_v40  ;;  %v1444_v3 = vpop.permute.xlu0 %1443 }
 0x1ff   :  { %v1346_v11 = vmul.f32 %v2524_v56, %v1234_v55  ;;  %v1465_v42 = vadd.f32 %v1444_v3, %v1353_v29  ;;  %v2775_v56 = vld [vmem:[#allocation2_spill] sm:$0xff] }
 0x200   :  { %v1863_v61 = vpop.eup %1862  ;;  %v1343_v41 = vmul.f32 %v2515_v19, %v1231_v1  ;;  %v1184_v63 = vsub.f32 %v2775_v56, %v2676_v28  ;;  %v2778_v28 = vld [vmem:[#allocation3_spill] sm:$0xff] }
 0x201   :  { %v1865_v60 = vpop.eup %1864  ;;  %v1458_v16 = vadd.f32 %v2565_v23, %v1346_v11  ;;  %v1242_v59 = vmul.f32 %v1863_v61, %v1194_v20  ;;  %1481 = vst.msk [vmem:[%s2763_s5 + $0x70] sm:$0xff] %vm985_vm1, %v1465_v42  ;;  %v1192_v5 = vsub.f32 %v2778_v28, %v2694_v44  ;;  %v2781_v44 = vld [vmem:[#allocation6_spill] sm:$0xff] }
 0x202   :  { %v1455_v24 = vadd.f32 %v2774_v30, %v1343_v41  ;;  %v1239_v6 = vmul.f32 %v1865_v60, %v1191_v25 }
 0x203   :  { %1474 = vst.msk [vmem:[%s2763_s5 + $0x38] sm:$0xff] %vm985_vm1, %v1458_v16  ;;  %v1354_v19 = vmul.f32 %v2776_v13, %v1242_v59 }
 0x204   :  { %v1867_v23 = vpop.eup %1866  ;;  %1471 = vst.msk [vmem:[%s2763_s5 + $0x20] sm:$0xff] %vm985_vm1, %v1455_v24  ;;  %v1351_v21 = vmul.f32 %v2777_v54, %v1239_v6 }
 0x205   :  { %v1232_v18 = vmul.f32 %v1867_v23, %v1184_v63  ;;  %v1466_v10 = vadd.f32 %v1449_v33, %v1354_v19 }
 0x206   :  { %v1463_v31 = vadd.f32 %v1434_v53, %v1351_v21 }
 0x207   :  { %v1344_v4 = vmul.f32 %v2779_v34, %v1232_v18  ;;  %1482 = vst.msk [vmem:[%s2763_s5 + $0x78] sm:$0xff] %vm985_vm1, %v1466_v10 }
 0x208   :  { %v1869_v8 = vpop.eup %1868  ;;  %1479 = vst.msk [vmem:[%s2763_s5 + $0x60] sm:$0xff] %vm985_vm1, %v1463_v31 }
 0x209   :  { %v1456_v47 = vadd.f32 %v2780_v14, %v1344_v4  ;;  %v1240_v57 = vmul.f32 %v1869_v8, %v1192_v5 }
 0x20b   :  { %1472 = vst.msk [vmem:[%s2763_s5 + $0x28] sm:$0xff] %vm985_vm1, %v1456_v47  ;;  %v1352_v58 = vmul.f32 %v2781_v44, %v1240_v57 }
 0x20d   :  { %v1464_v2 = vadd.f32 %v1439_v17, %v1352_v58 }
 0x20f   :  { %1480 = vst.msk [vmem:[%s2763_s5 + $0x68] sm:$0xff] %vm985_vm1, %v1464_v2 }

// kernel: pb_fcn2_forward.24
= control target key start
LH: loop header
LB: loop body
LE: loop exit
PB: predicated region body
PF: predicated region fallthrough
CT: control target
= control target key end

     0   :  { %v2819_v1 = vmov 0   ;;  %vm1642_vm0 = vcmask 64512   ;;  %s3927_s0 = inlined_call_operand.vmem [shape: bf16[1152,8], index: 0, kind: input, shape index: {}]   ;;  %s3928_s1 = inlined_call_operand.vmem [shape: bf16[128,1152], index: 1, kind: input, shape index: {}]   ;;  %s3929_s2 = inlined_call_operand.vmem [shape: f32[128,1], index: 2, kind: input, shape index: {}]   ;;  %s3930_s3 = inlined_call_operand.vmem [shape: f32[128,1], index: 3, kind: input, shape index: {}]   ;;  %s3931_s4 = inlined_call_operand.vmem [shape: f32[128,1], index: 4, kind: input, shape index: {}]   ;;  %s3932_s5 = inlined_call_operand.vmem [shape: f32[128,8], index: 5, kind: output, shape index: {}]  }
   0x1   :  { %v2611_v0 = vld [vmem:[%s3927_s0 + $0x78] sm:$0xff]   ;;  %2609 = vset.pattern.permute.xlu0 %v2819_v1  ;;  %2610 = vset.pattern.permute.xlu1 %v2819_v1  ;;  %v2615_v5 = vld [vmem:[%s3927_s0 + $0x70] sm:$0xff]   ;;  %v2619_v9 = vld [vmem:[%s3927_s0 + $0x68] sm:$0xff]  }
   0x2   :  { %v2612_v2 = vld [vmem:[%s3927_s0 + $0xf8] sm:$0xff]   ;;  %2288 = vmatprep.subr.bf16.mxu0 %v2611_v0  ;;  %v2616_v6 = vld [vmem:[%s3927_s0 + $0xf0] sm:$0xff]   ;;  %v2620_v10 = vld [vmem:[%s3927_s0 + $0xe8] sm:$0xff]  }
   0x3   :  { %v2613_v3 = vld [vmem:[%s3927_s0 + $0x38] sm:$0xff]   ;;  %2352 = vmatprep.subr.bf16.mxu1 %v2612_v2  ;;  %v2617_v7 = vld [vmem:[%s3927_s0 + $0x30] sm:$0xff]   ;;  %v2621_v11 = vld [vmem:[%s3927_s0 + $0x28] sm:$0xff]  }
   0x4   :  { %v2614_v4 = vld [vmem:[%s3927_s0 + $0xb8] sm:$0xff]   ;;  %2289 = vmatpush3.bf16.msra.mxu0 %v2613_v3  ;;  %v2618_v8 = vld [vmem:[%s3927_s0 + $0xb0] sm:$0xff]   ;;  %v2622_v12 = vld [vmem:[%s3927_s0 + $0xa8] sm:$0xff]  }
   0x5   :  { %2353 = vmatpush3.bf16.msra.mxu1 %v2614_v4  ;;  %2290 = vmatprep.subr.bf16.mxu0 %v2615_v5  ;;  %v2623_v13 = vld [vmem:[%s3927_s0 + $0x60] sm:$0xff]   ;;  %v2627_v17 = vld [vmem:[%s3927_s0 + $0x58] sm:$0xff]   ;;  %v2631_v21 = vld [vmem:[%s3927_s0 + $0x50] sm:$0xff]  }
   0x6   :  { %2354 = vmatprep.subr.bf16.mxu1 %v2616_v6  ;;  %v2624_v14 = vld [vmem:[%s3927_s0 + $0xe0] sm:$0xff]   ;;  %v2628_v18 = vld [vmem:[%s3927_s0 + $0xd8] sm:$0xff]   ;;  %v2632_v22 = vld [vmem:[%s3927_s0 + $0xd0] sm:$0xff]  }
   0x7   :  { %v2625_v15 = vld [vmem:[%s3927_s0 + $0x20] sm:$0xff]   ;;  %v2629_v19 = vld [vmem:[%s3927_s0 + $0x18] sm:$0xff]   ;;  %v2633_v23 = vld [vmem:[%s3927_s0 + $0x10] sm:$0xff]  }
   0x8   :  { %2291 = vmatpush3.bf16.msra.mxu0 %v2617_v7  ;;  %v2626_v16 = vld [vmem:[%s3927_s0 + $0xa0] sm:$0xff]   ;;  %v2630_v20 = vld [vmem:[%s3927_s0 + $0x98] sm:$0xff]   ;;  %v2634_v24 = vld [vmem:[%s3927_s0 + $0x90] sm:$0xff]  }
   0x9   :  { %2355 = vmatpush3.bf16.msra.mxu1 %v2618_v8  ;;  %2292 = vmatprep.subr.bf16.mxu0 %v2619_v9  ;;  %v2635_v25 = vld [vmem:[%s3927_s0 + $0x48] sm:$0xff]   ;;  %v2639_v29 = vld [vmem:[%s3927_s0 + $0x40] sm:$0xff]   ;;  %v2649_v37 = vld [vmem:[%s3927_s0 + $0x178] sm:$0xff]  }
   0xa   :  { %2356 = vmatprep.subr.bf16.mxu1 %v2620_v10  ;;  %v2636_v26 = vld [vmem:[%s3927_s0 + $0xc8] sm:$0xff]   ;;  %v2640_v30 = vld [vmem:[%s3927_s0 + $0xc0] sm:$0xff]   ;;  %v2650_v38 = vld [vmem:[%s3927_s0 + $0x138] sm:$0xff]  }
   0xb   :  { %v2637_v27 = vld [vmem:[%s3927_s0 + $0x8] sm:$0xff]   ;;  %v2641_v31 = vld [vmem:[%s3927_s0] sm:$0xff]   ;;  %v2653_v40 = vld [vmem:[%s3928_s1 + $0x54] ss:$36 sps:$4 sm:$0xff]  }
   0xc   :  { %2293 = vmatpush3.bf16.msra.mxu0 %v2621_v11  ;;  %v2638_v28 = vld [vmem:[%s3927_s0 + $0x88] sm:$0xff]   ;;  %v2642_v32 = vld [vmem:[%s3927_s0 + $0x80] sm:$0xff]   ;;  %v2656_v42 = vld [vmem:[%s3928_s1 + $0x50] ss:$36 sps:$4 sm:$0xff]  }
   0xd   :  { %2357 = vmatpush3.bf16.msra.mxu1 %v2622_v12  ;;  %2294 = vmatprep.subr.bf16.mxu0 %v2623_v13  ;;  %v2643_v33 = vld [vmem:[%s3928_s1] ss:$36 sps:$4 sm:$0xff]   ;;  %v2646_v35 = vld [vmem:[%s3928_s1 + $0x8] ss:$36 sps:$4 sm:$0xff]   ;;  %v2657_v43 = vld [vmem:[%s3927_s0 + $0x170] sm:$0xff]  }
   0xe   :  { %2358 = vmatprep.subr.bf16.mxu1 %v2624_v14  ;;  %v2645_v34 = vld [vmem:[%s3928_s1 + $0x4] ss:$36 sps:$4 sm:$0xff]   ;;  %v2648_v36 = vld [vmem:[%s3928_s1 + $0xc] ss:$36 sps:$4 sm:$0xff]   ;;  %v2658_v44 = vld [vmem:[%s3927_s0 + $0x1f8] sm:$0xff]  }
   0xf   :  { %1173 = vmatprep.mubr.bf16.mxu0 %v2645_v34  ;;  %1270 = vmatprep.mubr.bf16.mxu1 %v2648_v36  ;;  %v2651_v39 = vld [vmem:[%s3928_s1 + $0x4c] ss:$36 sps:$4 sm:$0xff]   ;;  %v2660_v46 = vld [vmem:[%s3927_s0 + $0x1b8] sm:$0xff]   ;;  %v2673_v56 = vld [vmem:[%s3928_s1 + $0xe4] ss:$36 sps:$4 sm:$0xff]  }
  0x10   :  { %2295 = vmatpush3.bf16.msra.mxu0 %v2625_v15  ;;  %v2655_v41 = vld [vmem:[%s3928_s1 + $0x48] ss:$36 sps:$4 sm:$0xff]   ;;  %v2659_v45 = vld [vmem:[%s3927_s0 + $0x130] sm:$0xff]   ;;  %v2663_v48 = vld [vmem:[%s3928_s1 + $0x9c] ss:$36 sps:$4 sm:$0xff]  }
  0x11   :  { %2359 = vmatpush3.bf16.msra.mxu1 %v2626_v16  ;;  %2296 = vmatprep.subr.bf16.mxu0 %v2627_v17  ;;  %v2661_v47 = vld [vmem:[%s3928_s1 + $0x94] ss:$36 sps:$4 sm:$0xff]   ;;  %v2667_v50 = vld [vmem:[%s3927_s0 + $0x168] sm:$0xff]   ;;  %v2671_v55 = vld [vmem:[%s3928_s1 + $0xdc] ss:$36 sps:$4 sm:$0xff]  }
  0x12   :  { %2360 = vmatprep.subr.bf16.mxu1 %v2628_v18  ;;  %v2665_v49 = vld [vmem:[%s3928_s1 + $0x90] ss:$36 sps:$4 sm:$0xff]   ;;  %v2666_v51 = vld [vmem:[%s3928_s1 + $0x98] ss:$36 sps:$4 sm:$0xff]   ;;  %v2669_v53 = vld [vmem:[%s3927_s0 + $0x128] sm:$0xff]  }
  0x13   :  { %v2668_v52 = vld [vmem:[%s3927_s0 + $0x1f0] sm:$0xff]   ;;  %v2677_v57 = vld [vmem:[%s3927_s0 + $0x160] sm:$0xff]   ;;  %v2675_v58 = vld [vmem:[%s3928_s1 + $0xd8] ss:$36 sps:$4 sm:$0xff]  }
  0x14   :  { %2297 = vmatpush3.bf16.msra.mxu0 %v2629_v19  ;;  %v2670_v54 = vld [vmem:[%s3927_s0 + $0x1b0] sm:$0xff]   ;;  %v2678_v59 = vld [vmem:[%s3927_s0 + $0x1e8] sm:$0xff]   ;;  %v2676_v60 = vld [vmem:[%s3928_s1 + $0xe0] ss:$36 sps:$4 sm:$0xff]  }
  0x15   :  { %2361 = vmatpush3.bf16.msra.mxu1 %v2630_v20  ;;  %2298 = vmatprep.subr.bf16.mxu0 %v2631_v21  ;;  %v2679_v61 = vld [vmem:[%s3927_s0 + $0x120] sm:$0xff]   ;;  %v2680_v62 = vld [vmem:[%s3927_s0 + $0x1a8] sm:$0xff]   ;;  %v2687_v1 = vld [vmem:[%s3927_s0 + $0x158] sm:$0xff]  }
  0x16   :  { %2362 = vmatprep.subr.bf16.mxu1 %v2632_v22  ;;  %v2681_v63 = vld [vmem:[%s3928_s1 + $0x124] ss:$36 sps:$4 sm:$0xff]   ;;  %v2683_v0 = vld [vmem:[%s3928_s1 + $0x12c] ss:$36 sps:$4 sm:$0xff]   ;;  %v2689_v3 = vld [vmem:[%s3927_s0 + $0x118] sm:$0xff]  }
  0x17   :  { %v2688_v2 = vld [vmem:[%s3927_s0 + $0x1e0] sm:$0xff]   ;;  %v2686_v6 = vld [vmem:[%s3928_s1 + $0x128] ss:$36 sps:$4 sm:$0xff]   ;;  %v2693_v8 = vld [vmem:[%s3928_s1 + $0x174] ss:$36 sps:$4 sm:$0xff]  }
  0x18   :  { %2299 = vmatpush3.bf16.msra.mxu0 %v2633_v23  ;;  %v2690_v4 = vld [vmem:[%s3927_s0 + $0x1a0] sm:$0xff]   ;;  %v2691_v7 = vld [vmem:[%s3928_s1 + $0x16c] ss:$36 sps:$4 sm:$0xff]   ;;  %v2698_v10 = vld [vmem:[%s3927_s0 + $0x1d8] sm:$0xff]  }
  0x19   :  { %2363 = vmatpush3.bf16.msra.mxu1 %v2634_v24  ;;  %2300 = vmatprep.subr.bf16.mxu0 %v2635_v25  ;;  %v2685_v5 = vld [vmem:[%s3928_s1 + $0x120] ss:$36 sps:$4 sm:$0xff]   ;;  %v2697_v9 = vld [vmem:[%s3927_s0 + $0x150] sm:$0xff]   ;;  %v2700_v12 = vld [vmem:[%s3927_s0 + $0x198] sm:$0xff]  }
  0x1a   :  { %2364 = vmatprep.subr.bf16.mxu1 %v2636_v26  ;;  %v2699_v11 = vld [vmem:[%s3927_s0 + $0x110] sm:$0xff]   ;;  %v2695_v13 = vld [vmem:[%s3928_s1 + $0x168] ss:$36 sps:$4 sm:$0xff]   ;;  %v2703_v16 = vld [vmem:[%s3928_s1 + $0x1bc] ss:$36 sps:$4 sm:$0xff]  }
  0x1b   :  { %v2696_v14 = vld [vmem:[%s3928_s1 + $0x170] ss:$36 sps:$4 sm:$0xff]   ;;  %v2707_v17 = vld [vmem:[%s3927_s0 + $0x148] sm:$0xff]   ;;  %v2706_v22 = vld [vmem:[%s3928_s1 + $0x1b8] ss:$36 sps:$4 sm:$0xff]  }
  0x1c   :  { %2301 = vmatpush3.bf16.msra.mxu0 %v2637_v27  ;;  %v2701_v15 = vld [vmem:[%s3928_s1 + $0x1b4] ss:$36 sps:$4 sm:$0xff]   ;;  %v2709_v19 = vld [vmem:[%s3927_s0 + $0x108] sm:$0xff]   ;;  %v2711_v23 = vld [vmem:[%s3928_s1 + $0x1fc] ss:$36 sps:$4 sm:$0xff]  }
  0x1d   :  { %2365 = vmatpush3.bf16.msra.mxu1 %v2638_v28  ;;  %2302 = vmatprep.subr.bf16.mxu0 %v2639_v29  ;;  %v2708_v18 = vld [vmem:[%s3927_s0 + $0x1d0] sm:$0xff]   ;;  %v2713_v24 = vld [vmem:[%s3928_s1 + $0x204] ss:$36 sps:$4 sm:$0xff]  }
  0x1e   :  { %2366 = vmatprep.subr.bf16.mxu1 %v2640_v30  ;;  %v2710_v20 = vld [vmem:[%s3927_s0 + $0x190] sm:$0xff]   ;;  %v2717_v25 = vld [vmem:[%s3927_s0 + $0x140] sm:$0xff]   ;;  %v2718_v26 = vld [vmem:[%s3927_s0 + $0x1c8] sm:$0xff]  }
  0x1f   :  { %v2705_v21 = vld [vmem:[%s3928_s1 + $0x1b0] ss:$36 sps:$4 sm:$0xff]   ;;  %v2719_v27 = vld [vmem:[%s3927_s0 + $0x100] sm:$0xff]   ;;  %v2720_v28 = vld [vmem:[%s3927_s0 + $0x188] sm:$0xff]  }
  0x20   :  { %2303 = vmatpush3.bf16.msra.mxu0 %v2641_v31  ;;  %v2721_v29 = vld [vmem:[%s3927_s0 + $0x1c0] sm:$0xff]   ;;  %v2715_v30 = vld [vmem:[%s3928_s1 + $0x1f8] ss:$36 sps:$4 sm:$0xff]  }
  0x21   :  { %2367 = vmatpush3.bf16.msra.mxu1 %v2642_v32  ;;  %2416 = vmatprep.subr.bf16.mxu0 %v2649_v37  ;;  %v2716_v31 = vld [vmem:[%s3928_s1 + $0x200] ss:$36 sps:$4 sm:$0xff]   ;;  %v2725_v34 = vld [vmem:[%s3928_s1 + $0x14] ss:$36 sps:$4 sm:$0xff]  }
  0x22   :  { %2480 = vmatprep.subr.bf16.mxu1 %v2658_v44  ;;  %v2722_v32 = vld [vmem:[%s3927_s0 + $0x180] sm:$0xff]   ;;  %v2723_v37 = vld [vmem:[%s3928_s1 + $0x10] ss:$36 sps:$4 sm:$0xff]   ;;  %v2743_v44 = vld [vmem:[%s3927_s0 + $0x228] sm:$0xff]  }
  0x23   :  { %1174 = vmatmul.mubr.bf16.vlgmr.msra.gmra.mxu0 %v2643_v33  ;;  %v2729_v33 = vld [vmem:[%s3927_s0 + $0x238] sm:$0xff]   ;;  %v245_v36 = vld [vmem:[%s3929_s2] sm:$0xff] }
  0x24   :  { %1271 = vmatmul.mubr.bf16.vlgmr.msra.gmra.mxu1 %v2646_v35  ;;  %2417 = vmatpush3.bf16.msra.mxu0 %v2650_v38  ;;  %v2728_v35 = vld [vmem:[%s3928_s1 + $0x1c] ss:$36 sps:$4 sm:$0xff]   ;;  %v246_v38 = vld [vmem:[%s3929_s2 + $0x8] sm:$0xff] }
  0x25   :  { %1181 = vmatprep.mubr.bf16.mxu0 %v2651_v39  ;;  %1278 = vmatprep.mubr.bf16.mxu1 %v2653_v40  ;;  %v2726_v39 = vld [vmem:[%s3928_s1 + $0x18] ss:$36 sps:$4 sm:$0xff]  }
  0x26   :  { %2418 = vmatprep.subr.bf16.mxu0 %v2657_v43  ;;  %2481 = vmatpush3.bf16.msra.mxu1 %v2660_v46  ;;  %v2730_v40 = vld [vmem:[%s3928_s1 + $0x5c] ss:$36 sps:$4 sm:$0xff]   ;;  %v2736_v43 = vld [vmem:[%s3927_s0 + $0x230] sm:$0xff]  }
  0x27   :  { %2482 = vmatprep.subr.bf16.mxu1 %v2668_v52  ;;  %263 = vperm.xlu0 %2609, %v245_v36   ;;  %v249_v46 = vld [vmem:[%s3929_s2 + $0x20] sm:$0xff]  ;;  %v250_v52 = vld [vmem:[%s3929_s2 + $0x28] sm:$0xff] }
  0x28   :  { %2419 = vmatpush3.bf16.msra.mxu0 %v2659_v45  ;;  %v248_v45 = vld [vmem:[%s3929_s2 + $0x18] sm:$0xff]  ;;  %v2780_v36 = vld [vmem:[%s3928_s1 + $0x140] ss:$36 sps:$4 sm:$0xff]  }
  0x29   :  { %2420 = vmatprep.subr.bf16.mxu0 %v2667_v50  ;;  %v2739_v50 = vld [vmem:[%s3928_s1 + $0xac] ss:$36 sps:$4 sm:$0xff]  }
  0x2a   :  { %2483 = vmatpush3.bf16.msra.mxu1 %v2670_v54  ;;  %v251_v54 = vld [vmem:[%s3929_s2 + $0x30] sm:$0xff] }
  0x2b   :  { %1182 = vmatmul.mubr.bf16.gmra.mxu0 %v2655_v41  ;;  %2484 = vmatprep.subr.bf16.mxu1 %v2678_v59  ;;  %v247_v41 = vld [vmem:[%s3929_s2 + $0x10] sm:$0xff] }
  0x2c   :  { %1279 = vmatmul.mubr.bf16.gmra.mxu1 %v2656_v42  ;;  %1189 = vmatprep.mubr.bf16.mxu0 %v2661_v47  ;;  %v2732_v42 = vld [vmem:[%s3928_s1 + $0x64] ss:$36 sps:$4 sm:$0xff]   ;;  %v2734_v47 = vld [vmem:[%s3928_s1 + $0x58] ss:$36 sps:$4 sm:$0xff]  }
  0x2d   :  { %1286 = vmatprep.mubr.bf16.mxu1 %v2663_v48  ;;  %2421 = vmatpush3.bf16.msra.mxu0 %v2669_v53  ;;  %v2735_v48 = vld [vmem:[%s3928_s1 + $0x60] ss:$36 sps:$4 sm:$0xff]   ;;  %v2746_v59 = vld [vmem:[%s3928_s1 + $0xf4] ss:$36 sps:$4 sm:$0xff]  }
  0x2e   :  { %2422 = vmatprep.subr.bf16.mxu0 %v2677_v57  ;;  %2485 = vmatpush3.bf16.msra.mxu1 %v2680_v62  ;;  %v2741_v53 = vld [vmem:[%s3928_s1 + $0xa0] ss:$36 sps:$4 sm:$0xff]   ;;  %v2744_v57 = vld [vmem:[%s3928_s1 + $0xec] ss:$36 sps:$4 sm:$0xff]  }
  0x2f   :  { %2486 = vmatprep.subr.bf16.mxu1 %v2688_v2  ;;  %268 = vperm.xlu0 %2609, %v246_v38   ;;  %v254_v62 = vld [vmem:[%s3929_s2 + $0x48] sm:$0xff]  ;;  %v2751_v2 = vld [vmem:[%s3928_s1 + $0x134] ss:$36 sps:$4 sm:$0xff]   ;;  %v1912_v38 = vld [vmem:[%s3930_s3 + $0x60] sm:$0xff] }
  0x30   :  { %273 = vperm.xlu1 %2610, %v247_v41   ;;  %v1914_v41 = vld [vmem:[%s3930_s3 + $0x70] sm:$0xff] }
  0x31   :  { %2423 = vmatpush3.bf16.msra.mxu0 %v2679_v61  ;;  %v253_v61 = vld [vmem:[%s3929_s2 + $0x40] sm:$0xff] }
  0x32   :  { %2424 = vmatprep.subr.bf16.mxu0 %v2687_v1  ;;  %2487 = vmatpush3.bf16.msra.mxu1 %v2690_v4  ;;  %v2771_v1 = vld [vmem:[%s3927_s0 + $0x208] sm:$0xff]   ;;  %v2753_v4 = vld [vmem:[%s3928_s1 + $0x13c] ss:$36 sps:$4 sm:$0xff]  }
  0x33   :  { %1190 = vmatmul.mubr.bf16.gmra.mxu0 %v2665_v49  ;;  %2488 = vmatprep.subr.bf16.mxu1 %v2698_v10  ;;  %v2737_v49 = vld [vmem:[%s3928_s1 + $0xa4] ss:$36 sps:$4 sm:$0xff]   ;;  %v2756_v10 = vld [vmem:[%s3928_s1 + $0x138] ss:$36 sps:$4 sm:$0xff]  }
  0x34   :  { %1287 = vmatmul.mubr.bf16.gmra.mxu1 %v2666_v51  ;;  %1197 = vmatprep.mubr.bf16.mxu0 %v2671_v55  ;;  %v2750_v51 = vld [vmem:[%s3927_s0 + $0x220] sm:$0xff]   ;;  %v2757_v55 = vld [vmem:[%s3927_s0 + $0x218] sm:$0xff]  }
  0x35   :  { %1294 = vmatprep.mubr.bf16.mxu1 %v2673_v56  ;;  %2425 = vmatpush3.bf16.msra.mxu0 %v2689_v3  ;;  %v2742_v56 = vld [vmem:[%s3928_s1 + $0xa8] ss:$36 sps:$4 sm:$0xff]   ;;  %v255_v3 = vld [vmem:[%s3929_s2 + $0x50] sm:$0xff] }
  0x36   :  { %2426 = vmatprep.subr.bf16.mxu0 %v2697_v9  ;;  %2489 = vmatpush3.bf16.msra.mxu1 %v2700_v12  ;;  %v258_v9 = vld [vmem:[%s3929_s2 + $0x68] sm:$0xff] }
  0x37   :  { %2490 = vmatprep.subr.bf16.mxu1 %v2708_v18  ;;  %278 = vperm.xlu1 %2610, %v248_v45   ;;  %v2760_v12 = vld [vmem:[%s3928_s1 + $0x184] ss:$36 sps:$4 sm:$0xff]  }
  0x38   :  { %283 = vperm.xlu0 %2609, %v249_v46   ;;  %v2763_v18 = vld [vmem:[%s3928_s1 + $0x180] ss:$36 sps:$4 sm:$0xff]   ;;  %v1913_v45 = vld [vmem:[%s3930_s3 + $0x68] sm:$0xff] }
  0x39   :  { %2427 = vmatpush3.bf16.msra.mxu0 %v2699_v11  ;;  %v2758_v11 = vld [vmem:[%s3928_s1 + $0x17c] ss:$36 sps:$4 sm:$0xff]  }
  0x3a   :  { %2428 = vmatprep.subr.bf16.mxu0 %v2707_v17  ;;  %2491 = vmatpush3.bf16.msra.mxu1 %v2710_v20  ;;  %v1901_v17 = vld [vmem:[%s3930_s3 + $0x8] sm:$0xff]  ;;  %v2012_v46 = vld [vmem:[%s3931_s4] sm:$0xff] }
  0x3b   :  { %1198 = vmatmul.mubr.bf16.gmra.mxu0 %v2675_v58  ;;  %2492 = vmatprep.subr.bf16.mxu1 %v2718_v26  ;;  %v252_v58 = vld [vmem:[%s3929_s2 + $0x38] sm:$0xff]  ;;  %v2767_v20 = vld [vmem:[%s3928_s1 + $0x1cc] ss:$36 sps:$4 sm:$0xff]  }
  0x3c   :  { %1295 = vmatmul.mubr.bf16.gmra.mxu1 %v2676_v60  ;;  %1205 = vmatprep.mubr.bf16.mxu0 %v2681_v63  ;;  %v2764_v60 = vld [vmem:[%s3927_s0 + $0x210] sm:$0xff]   ;;  %v2748_v63 = vld [vmem:[%s3928_s1 + $0xe8] ss:$36 sps:$4 sm:$0xff]  }
  0x3d   :  { %1302 = vmatprep.mubr.bf16.mxu1 %v2683_v0  ;;  %2429 = vmatpush3.bf16.msra.mxu0 %v2709_v19  ;;  %v2749_v0 = vld [vmem:[%s3928_s1 + $0xf0] ss:$36 sps:$4 sm:$0xff]   ;;  %v2765_v19 = vld [vmem:[%s3928_s1 + $0x1c4] ss:$36 sps:$4 sm:$0xff]  }
  0x3e   :  { %2430 = vmatprep.subr.bf16.mxu0 %v2717_v25  ;;  %2493 = vmatpush3.bf16.msra.mxu1 %v2720_v28  ;;  %v1906_v25 = vld [vmem:[%s3930_s3 + $0x30] sm:$0xff]  ;;  %v2770_v26 = vld [vmem:[%s3928_s1 + $0x1c8] ss:$36 sps:$4 sm:$0xff]  }
  0x3f   :  { %2494 = vmatprep.subr.bf16.mxu1 %v2721_v29  ;;  %288 = vperm.xlu1 %2610, %v250_v52   ;;  %v2774_v28 = vld [vmem:[%s3928_s1 + $0x214] ss:$36 sps:$4 sm:$0xff]   ;;  %v1905_v29 = vld [vmem:[%s3930_s3 + $0x28] sm:$0xff]  ;;  %v2016_v52 = vld [vmem:[%s3931_s4 + $0x20] sm:$0xff] }
  0x40   :  { %293 = vperm.xlu0 %2609, %v251_v54   ;;  %v2018_v54 = vld [vmem:[%s3931_s4 + $0x30] sm:$0xff] }
  0x41   :  { %2431 = vmatpush3.bf16.msra.mxu0 %v2719_v27  ;;  %v2772_v27 = vld [vmem:[%s3928_s1 + $0x20c] ss:$36 sps:$4 sm:$0xff]  }
  0x42   :  { %2560 = vmatprep.subr.bf16.mxu0 %v2729_v33  ;;  %2495 = vmatpush3.bf16.msra.mxu1 %v2722_v32  ;;  %v1907_v32 = vld [vmem:[%s3930_s3 + $0x38] sm:$0xff] }
  0x43   :  { %1206 = vmatmul.mubr.bf16.gmra.mxu0 %v2685_v5  ;;  %2592 = vmatprep.subr.bf16.mxu1 %v2729_v33  ;;  %v256_v5 = vld [vmem:[%s3929_s2 + $0x58] sm:$0xff] }
  0x44   :  { %1303 = vmatmul.mubr.bf16.gmra.mxu1 %v2686_v6  ;;  %1213 = vmatprep.mubr.bf16.mxu0 %v2691_v7  ;;  %v2778_v6 = vld [vmem:[%s3927_s0 + $0x200] sm:$0xff]  }
  0x45   :  { %1310 = vmatprep.mubr.bf16.mxu1 %v2693_v8  ;;  %298 = vperm.xlu1 %2610, %v252_v58   ;;  %v257_v7 = vld [vmem:[%s3929_s2 + $0x60] sm:$0xff]  ;;  %v2755_v8 = vld [vmem:[%s3928_s1 + $0x130] ss:$36 sps:$4 sm:$0xff]  }
  0x46   :  { %303 = vperm.xlu0 %2609, %v253_v61   ;;  %v2022_v58 = vld [vmem:[%s3931_s4 + $0x50] sm:$0xff] }
  0x49   :  { %308 = vperm.xlu1 %2610, %v254_v62  }
  0x4a   :  { %313 = vperm.xlu0 %2609, %v255_v3  }
  0x4b   :  { %1214 = vmatmul.mubr.bf16.gmra.mxu0 %v2695_v13  ;;  %v260_v13 = vld [vmem:[%s3929_s2 + $0x78] sm:$0xff] }
  0x4c   :  { %1311 = vmatmul.mubr.bf16.gmra.mxu1 %v2696_v14  ;;  %1221 = vmatprep.mubr.bf16.mxu0 %v2701_v15  ;;  %v259_v14 = vld [vmem:[%s3929_s2 + $0x70] sm:$0xff]  ;;  %v2762_v15 = vld [vmem:[%s3928_s1 + $0x178] ss:$36 sps:$4 sm:$0xff]  }
  0x4d   :  { %1318 = vmatprep.mubr.bf16.mxu1 %v2703_v16  ;;  %318 = vperm.xlu1 %2610, %v256_v5   ;;  %v1900_v16 = vld [vmem:[%s3930_s3] sm:$0xff] }
  0x4e   :  { %323 = vperm.xlu0 %2609, %v257_v7  }
  0x51   :  { %328 = vperm.xlu1 %2610, %v258_v9  }
  0x52   :  { %333 = vperm.xlu0 %2609, %v259_v14  }
  0x53   :  { %1222 = vmatmul.mubr.bf16.gmra.mxu0 %v2705_v21  ;;  %v1902_v21 = vld [vmem:[%s3930_s3 + $0x10] sm:$0xff] }
  0x54   :  { %1319 = vmatmul.mubr.bf16.gmra.mxu1 %v2706_v22  ;;  %1229 = vmatprep.mubr.bf16.mxu0 %v2711_v23  ;;  %v1904_v22 = vld [vmem:[%s3930_s3 + $0x20] sm:$0xff] }
  0x55   :  { %1326 = vmatprep.mubr.bf16.mxu1 %v2713_v24  ;;  %338 = vperm.xlu1 %2610, %v260_v13   ;;  %v2769_v23 = vld [vmem:[%s3928_s1 + $0x1c0] ss:$36 sps:$4 sm:$0xff]   ;;  %v1903_v24 = vld [vmem:[%s3930_s3 + $0x18] sm:$0xff] }
  0x56   :  { %1923 = vperm.xlu0 %2609, %v1901_v17  }
  0x59   :  { %1918 = vperm.xlu1 %2610, %v1900_v16  }
  0x5a   :  { %1938 = vperm.xlu0 %2609, %v1904_v22  }
  0x5b   :  { %1230 = vmatmul.mubr.bf16.gmra.mxu0 %v2715_v30  ;;  %v1908_v30 = vld [vmem:[%s3930_s3 + $0x40] sm:$0xff] }
  0x5c   :  { %1327 = vmatmul.mubr.bf16.gmra.mxu1 %v2716_v31  ;;  %1367 = vmatprep.mubr.bf16.mxu0 %v2725_v34  ;;  %v2776_v31 = vld [vmem:[%s3928_s1 + $0x208] ss:$36 sps:$4 sm:$0xff]   ;;  %v2777_v34 = vld [vmem:[%s3928_s1 + $0x210] ss:$36 sps:$4 sm:$0xff]  }
  0x5d   :  { %1464 = vmatprep.mubr.bf16.mxu1 %v2728_v35  ;;  %1928 = vperm.xlu1 %2610, %v1902_v21   ;;  %v2779_v35 = vld [vmem:[%s3928_s1 + $0x20] ss:$36 sps:$4 sm:$0xff]  }
  0x5e   :  { %1948 = vperm.xlu0 %2609, %v1906_v25  }
  0x61   :  { %1933 = vperm.xlu1 %2610, %v1903_v24  }
  0x62   :  { %1958 = vperm.xlu0 %2609, %v1908_v30  }
  0x63   :  { %1368 = vmatmul.mubr.bf16.vlgmr.msra.gmra.mxu0 %v2723_v37  ;;  %v1909_v37 = vld [vmem:[%s3930_s3 + $0x48] sm:$0xff] }
  0x64   :  { %1465 = vmatmul.mubr.bf16.vlgmr.msra.gmra.mxu1 %v2726_v39  ;;  %2561 = vmatpush3.bf16.msra.mxu0 %v2729_v33  ;;  %v2781_v39 = vld [vmem:[%s3928_s1 + $0x68] ss:$36 sps:$4 sm:$0xff]  }
  0x65   :  { %1375 = vmatprep.mubr.bf16.mxu0 %v2730_v40  ;;  %1472 = vmatprep.mubr.bf16.mxu1 %v2732_v42  ;;  %v1911_v40 = vld [vmem:[%s3930_s3 + $0x58] sm:$0xff]  ;;  %v2782_v42 = vld [vmem:[%s3928_s1 + $0x188] ss:$36 sps:$4 sm:$0xff]  }
  0x66   :  { %2562 = vmatprep.subr.bf16.mxu0 %v2736_v43  ;;  %2600 = vmatpush3.bf16.msra.mxu1 %v2729_v33  ;;  %v1910_v33 = vld [vmem:[%s3930_s3 + $0x50] sm:$0xff] }
  0x67   :  { %2593 = vmatprep.subr.bf16.mxu1 %v2736_v43  ;;  %1943 = vperm.xlu1 %2610, %v1905_v29  }
  0x68   :  { %2563 = vmatpush3.bf16.msra.mxu0 %v2736_v43  ;;  %1968 = vperm.xlu0 %2609, %v1910_v33  }
  0x69   :  { %2564 = vmatprep.subr.bf16.mxu0 %v2743_v44 }
  0x6a   :  { %2601 = vmatpush3.bf16.msra.mxu1 %v2736_v43  ;;  %v2783_v43 = vld [vmem:[%s3928_s1 + $0xb0] ss:$36 sps:$4 sm:$0xff]  }
  0x6b   :  { %1376 = vmatmul.mubr.bf16.gmra.mxu0 %v2734_v47  ;;  %2594 = vmatprep.subr.bf16.mxu1 %v2743_v44  ;;  %v2785_v47 = vld [vmem:[%s3928_s1 + $0xf8] ss:$36 sps:$4 sm:$0xff]  }
  0x6c   :  { %1473 = vmatmul.mubr.bf16.gmra.mxu1 %v2735_v48  ;;  %1383 = vmatprep.mubr.bf16.mxu0 %v2737_v49  ;;  %v1915_v48 = vld [vmem:[%s3930_s3 + $0x78] sm:$0xff]  ;;  %v2014_v49 = vld [vmem:[%s3931_s4 + $0x10] sm:$0xff] }
  0x6d   :  { %1480 = vmatprep.mubr.bf16.mxu1 %v2739_v50  ;;  %2565 = vmatpush3.bf16.msra.mxu0 %v2743_v44  ;;  %v2786_v50 = vld [vmem:[%s3928_s1 + $0x218] ss:$36 sps:$4 sm:$0xff]  }
  0x6e   :  { %2566 = vmatprep.subr.bf16.mxu0 %v2750_v51  ;;  %2602 = vmatpush3.bf16.msra.mxu1 %v2743_v44  ;;  %v2784_v44 = vld [vmem:[%s3928_s1 + $0x1d0] ss:$36 sps:$4 sm:$0xff]  }
  0x6f   :  { %2595 = vmatprep.subr.bf16.mxu1 %v2750_v51  ;;  %1953 = vperm.xlu1 %2610, %v1907_v32  }
  0x70   :  { %1978 = vperm.xlu0 %2609, %v1912_v38  }
  0x71   :  { %2567 = vmatpush3.bf16.msra.mxu0 %v2750_v51 }
  0x72   :  { %2568 = vmatprep.subr.bf16.mxu0 %v2757_v55  ;;  %2603 = vmatpush3.bf16.msra.mxu1 %v2750_v51  ;;  %v2013_v51 = vld [vmem:[%s3931_s4 + $0x8] sm:$0xff] }
  0x73   :  { %1384 = vmatmul.mubr.bf16.gmra.mxu0 %v2741_v53  ;;  %2596 = vmatprep.subr.bf16.mxu1 %v2757_v55  ;;  %v2015_v53 = vld [vmem:[%s3931_s4 + $0x18] sm:$0xff] }
  0x74   :  { %1481 = vmatmul.mubr.bf16.gmra.mxu1 %v2742_v56  ;;  %1391 = vmatprep.mubr.bf16.mxu0 %v2744_v57  ;;  %v2020_v56 = vld [vmem:[%s3931_s4 + $0x40] sm:$0xff]  ;;  %v2019_v57 = vld [vmem:[%s3931_s4 + $0x38] sm:$0xff] }
  0x75   :  { %1488 = vmatprep.mubr.bf16.mxu1 %v2746_v59  ;;  %2569 = vmatpush3.bf16.msra.mxu0 %v2757_v55  ;;  %v2021_v59 = vld [vmem:[%s3931_s4 + $0x48] sm:$0xff] }
  0x76   :  { %2570 = vmatprep.subr.bf16.mxu0 %v2764_v60  ;;  %2604 = vmatpush3.bf16.msra.mxu1 %v2757_v55  ;;  %v2017_v55 = vld [vmem:[%s3931_s4 + $0x28] sm:$0xff] }
  0x77   :  { %2597 = vmatprep.subr.bf16.mxu1 %v2764_v60  ;;  %1963 = vperm.xlu1 %2610, %v1909_v37  }
  0x78   :  { %1988 = vperm.xlu0 %2609, %v1914_v41  }
  0x79   :  { %2571 = vmatpush3.bf16.msra.mxu0 %v2764_v60 }
  0x7a   :  { %2572 = vmatprep.subr.bf16.mxu0 %v2771_v1  ;;  %2605 = vmatpush3.bf16.msra.mxu1 %v2764_v60  ;;  %v2023_v60 = vld [vmem:[%s3931_s4 + $0x58] sm:$0xff] }
  0x7b   :  { %1392 = vmatmul.mubr.bf16.gmra.mxu0 %v2748_v63  ;;  %2598 = vmatprep.subr.bf16.mxu1 %v2771_v1 }
  0x7c   :  { %1489 = vmatmul.mubr.bf16.gmra.mxu1 %v2749_v0  ;;  %1399 = vmatprep.mubr.bf16.mxu0 %v2751_v2 }
  0x7d   :  { %1496 = vmatprep.mubr.bf16.mxu1 %v2753_v4  ;;  %2573 = vmatpush3.bf16.msra.mxu0 %v2771_v1 }
  0x7e   :  { %2574 = vmatprep.subr.bf16.mxu0 %v2778_v6  ;;  %2606 = vmatpush3.bf16.msra.mxu1 %v2771_v1 }
  0x7f   :  { %2599 = vmatprep.subr.bf16.mxu1 %v2778_v6  ;;  %1973 = vperm.xlu1 %2610, %v1911_v40  }
  0x80   :  { %2030 = vperm.xlu0 %2609, %v2012_v46  }
  0x81   :  { %2575 = vmatpush3.bf16.msra.mxu0 %v2778_v6 }
  0x82   :  { %2607 = vmatpush3.bf16.msra.mxu1 %v2778_v6 }
  0x83   :  { %1400 = vmatmul.mubr.bf16.gmra.mxu0 %v2755_v8  ;;  %1983 = vperm.xlu1 %2610, %v1913_v45  }
  0x84   :  { %1497 = vmatmul.mubr.bf16.gmra.mxu1 %v2756_v10  ;;  %1407 = vmatprep.mubr.bf16.mxu0 %v2758_v11 }
  0x85   :  { %1504 = vmatprep.mubr.bf16.mxu1 %v2760_v12  ;;  %2040 = vperm.xlu0 %2609, %v2014_v49  }
  0x87   :  { %1993 = vperm.xlu1 %2610, %v1915_v48  }
  0x89   :  { %2050 = vperm.xlu0 %2609, %v2016_v52  }
  0x8b   :  { %1408 = vmatmul.mubr.bf16.gmra.mxu0 %v2762_v15  ;;  %2035 = vperm.xlu1 %2610, %v2013_v51  }
  0x8c   :  { %1505 = vmatmul.mubr.bf16.gmra.mxu1 %v2763_v18  ;;  %1415 = vmatprep.mubr.bf16.mxu0 %v2765_v19 }
  0x8d   :  { %1512 = vmatprep.mubr.bf16.mxu1 %v2767_v20  ;;  %2060 = vperm.xlu0 %2609, %v2018_v54  }
  0x8f   :  { %2045 = vperm.xlu1 %2610, %v2015_v53  }
  0x91   :  { %2070 = vperm.xlu0 %2609, %v2020_v56  }
  0x93   :  { %1416 = vmatmul.mubr.bf16.gmra.mxu0 %v2769_v23  ;;  %2055 = vperm.xlu1 %2610, %v2017_v55  }
  0x94   :  { %1513 = vmatmul.mubr.bf16.gmra.mxu1 %v2770_v26  ;;  %1423 = vmatprep.mubr.bf16.mxu0 %v2772_v27 }
  0x95   :  { %1520 = vmatprep.mubr.bf16.mxu1 %v2774_v28  ;;  %2080 = vperm.xlu0 %2609, %v2022_v58  }
  0x97   :  { %2065 = vperm.xlu1 %2610, %v2019_v57  }
  0x9b   :  { %1424 = vmatmul.mubr.bf16.gmra.mxu0 %v2776_v31  ;;  %2075 = vperm.xlu1 %2610, %v2021_v59  }
  0x9c   :  { %1521 = vmatmul.mubr.bf16.gmra.mxu1 %v2777_v34  ;;  %2576 = vmatprep.mubr.bf16.mxu0 %v2779_v35 }
  0x9d   :  { %2584 = vmatprep.mubr.bf16.mxu1 %v2780_v36 }
  0x9f   :  { %2085 = vperm.xlu1 %2610, %v2023_v60  }
  0xa2   :  { %v264_v62 = vpop.permute.xlu0 %263 }
  0xa3   :  { %2577 = vmatmul.mubr.bf16.vlgmr.msra.gmra.mxu0 %v2781_v39 }
  0xa4   :  { %2585 = vmatmul.mubr.bf16.vlgmr.msra.gmra.mxu1 %v2782_v42  ;;  %2580 = vmatprep.mubr.bf16.mxu0 %v2783_v43 }
  0xa5   :  { %2588 = vmatprep.mubr.bf16.mxu1 %v2784_v44 }
  0xaa   :  { %v269_v8 = vpop.permute.xlu0 %268 }
  0xab   :  { %2581 = vmatmul.mubr.bf16.gmra.mxu0 %v2785_v47  ;;  %v274_v14 = vpop.permute.xlu1 %273 }
  0xac   :  { %2589 = vmatmul.mubr.bf16.gmra.mxu1 %v2786_v50 }
  0xb2   :  { %v279_v26 = vpop.permute.xlu1 %278 }
  0xb3   :  { %v284_v35 = vpop.permute.xlu0 %283 }
  0xba   :  { %v289_v44 = vpop.permute.xlu1 %288 }
  0xbb   :  { %v294_v53 = vpop.permute.xlu0 %293 }
  0xe3   :  { %v2304_v61 = vpop.f32.mrf.mxu0 }
  0xe4   :  { %v2368_v63 = vpop.f32.mrf.mxu1 }
  0xe5   :  { %v2305_v0 = vpop.f32.mrf.mxu0 }
  0xe6   :  { %v2306_v1 = vadd.f32 %v2305_v0, %v2304_v61  ;;  %v2369_v2 = vpop.f32.mrf.mxu1 }
  0xe7   :  { %v2370_v3 = vadd.f32 %v2369_v2, %v2368_v63  ;;  %v2307_v4 = vpop.f32.mrf.mxu0 }
  0xe8   :  { %v1176_v5 = vadd.f32 %v2306_v1, %v264_v62  ;;  %v2371_v6 = vpop.f32.mrf.mxu1  ;;  %v299_v62 = vpop.permute.xlu1 %298 }
  0xe9   :  { %v2308_v7 = vpop.f32.mrf.mxu0 }
  0xea   :  { %v3414_v9 = vadd.f32 %v2370_v3, %v1176_v5  ;;  %v2309_v10 = vadd.f32 %v2308_v7, %v2307_v4  ;;  %v2372_v11 = vpop.f32.mrf.mxu1  ;;  %v304_v7 = vpop.permute.xlu0 %303 }
  0xeb   :  { %v2373_v12 = vadd.f32 %v2372_v11, %v2371_v6  ;;  %v2310_v13 = vpop.f32.mrf.mxu0 }
  0xec   :  { %v1179_v15 = vadd.f32 %v2309_v10, %v269_v8  ;;  %v2374_v16 = vpop.f32.mrf.mxu1 }
  0xed   :  { %v2311_v17 = vpop.f32.mrf.mxu0 }
  0xee   :  { %v3416_v18 = vadd.f32 %v2373_v12, %v1179_v15  ;;  %v2312_v19 = vadd.f32 %v2311_v17, %v2310_v13  ;;  %v2375_v20 = vpop.f32.mrf.mxu1  ;;  %v309_v17 = vpop.permute.xlu1 %308 }
  0xef   :  { %v2376_v21 = vadd.f32 %v2375_v20, %v2374_v16  ;;  %v2313_v22 = vpop.f32.mrf.mxu0 }
  0xf0   :  { %v1184_v23 = vadd.f32 %v2312_v19, %v274_v14  ;;  %v2377_v24 = vpop.f32.mrf.mxu1 }
  0xf1   :  { %v2314_v25 = vpop.f32.mrf.mxu0 }
  0xf2   :  { %v3418_v27 = vadd.f32 %v2376_v21, %v1184_v23  ;;  %v2315_v28 = vadd.f32 %v2314_v25, %v2313_v22  ;;  %v2378_v29 = vpop.f32.mrf.mxu1 }
  0xf3   :  { %v2379_v30 = vadd.f32 %v2378_v29, %v2377_v24  ;;  %v2316_v31 = vpop.f32.mrf.mxu0 }
  0xf4   :  { %v1187_v32 = vadd.f32 %v2315_v28, %v279_v26  ;;  %v2380_v33 = vpop.f32.mrf.mxu1  ;;  %v314_v28 = vpop.permute.xlu0 %313 }
  0xf5   :  { %v2317_v34 = vpop.f32.mrf.mxu0 }
  0xf6   :  { %v3420_v36 = vadd.f32 %v2379_v30, %v1187_v32  ;;  %v2318_v37 = vadd.f32 %v2317_v34, %v2316_v31  ;;  %v2381_v38 = vpop.f32.mrf.mxu1 }
  0xf7   :  { %v2382_v39 = vadd.f32 %v2381_v38, %v2380_v33  ;;  %v2319_v40 = vpop.f32.mrf.mxu0 }
  0xf8   :  { %v1192_v41 = vadd.f32 %v2318_v37, %v284_v35  ;;  %v2383_v42 = vpop.f32.mrf.mxu1 }
  0xf9   :  { %v2320_v43 = vpop.f32.mrf.mxu0 }
  0xfa   :  { %v3422_v45 = vadd.f32 %v2382_v39, %v1192_v41  ;;  %v2321_v46 = vadd.f32 %v2320_v43, %v2319_v40  ;;  %v2384_v47 = vpop.f32.mrf.mxu1  ;;  %v319_v41 = vpop.permute.xlu1 %318 }
  0xfb   :  { %v2385_v48 = vadd.f32 %v2384_v47, %v2383_v42  ;;  %v2322_v49 = vpop.f32.mrf.mxu0 }
  0xfc   :  { %v1195_v50 = vadd.f32 %v2321_v46, %v289_v44  ;;  %v2386_v51 = vpop.f32.mrf.mxu1 }
  0xfd   :  { %v2323_v52 = vpop.f32.mrf.mxu0 }
  0xfe   :  { %v3424_v54 = vadd.f32 %v2385_v48, %v1195_v50  ;;  %v2324_v55 = vadd.f32 %v2323_v52, %v2322_v49  ;;  %v2387_v56 = vpop.f32.mrf.mxu1  ;;  %v324_v48 = vpop.permute.xlu0 %323 }
  0xff   :  { %v2388_v57 = vadd.f32 %v2387_v56, %v2386_v51  ;;  %v2325_v58 = vpop.f32.mrf.mxu0 }
 0x100   :  { %v1200_v59 = vadd.f32 %v2324_v55, %v294_v53  ;;  %v2389_v60 = vpop.f32.mrf.mxu1 }
 0x101   :  { %v2326_v61 = vpop.f32.mrf.mxu0 }
 0x102   :  { %v3426_v63 = vadd.f32 %v2388_v57, %v1200_v59  ;;  %v2327_v0 = vadd.f32 %v2326_v61, %v2325_v58  ;;  %v2390_v1 = vpop.f32.mrf.mxu1  ;;  %v329_v61 = vpop.permute.xlu1 %328 }
 0x103   :  { %v2391_v2 = vadd.f32 %v2390_v1, %v2389_v60  ;;  %v2328_v3 = vpop.f32.mrf.mxu0 }
 0x104   :  { %v1203_v4 = vadd.f32 %v2327_v0, %v299_v62  ;;  %v2392_v5 = vpop.f32.mrf.mxu1 }
 0x105   :  { %v2329_v6 = vpop.f32.mrf.mxu0 }
 0x106   :  { %v3428_v8 = vadd.f32 %v2391_v2, %v1203_v4  ;;  %v2330_v10 = vadd.f32 %v2329_v6, %v2328_v3  ;;  %v2393_v11 = vpop.f32.mrf.mxu1 }
 0x107   :  { %v2394_v12 = vadd.f32 %v2393_v11, %v2392_v5  ;;  %v2331_v13 = vpop.f32.mrf.mxu0 }
 0x108   :  { %v1208_v14 = vadd.f32 %v2330_v10, %v304_v7  ;;  %v2395_v15 = vpop.f32.mrf.mxu1  ;;  %v334_v7 = vpop.permute.xlu0 %333 }
 0x109   :  { %v2332_v16 = vpop.f32.mrf.mxu0 }
 0x10a   :  { %v3430_v19 = vadd.f32 %v2394_v12, %v1208_v14  ;;  %v2333_v20 = vadd.f32 %v2332_v16, %v2331_v13  ;;  %v2396_v21 = vpop.f32.mrf.mxu1 }
 0x10b   :  { %v2397_v22 = vadd.f32 %v2396_v21, %v2395_v15  ;;  %v2334_v23 = vpop.f32.mrf.mxu0 }
 0x10c   :  { %v1211_v24 = vadd.f32 %v2333_v20, %v309_v17  ;;  %v2398_v25 = vpop.f32.mrf.mxu1  ;;  %v339_v20 = vpop.permute.xlu1 %338 }
 0x10d   :  { %v2335_v26 = vpop.f32.mrf.mxu0 }
 0x10e   :  { %v3432_v29 = vadd.f32 %v2397_v22, %v1211_v24  ;;  %v2336_v30 = vadd.f32 %v2335_v26, %v2334_v23  ;;  %v2399_v31 = vpop.f32.mrf.mxu1 }
 0x10f   :  { %v2400_v32 = vadd.f32 %v2399_v31, %v2398_v25  ;;  %v2337_v33 = vpop.f32.mrf.mxu0 }
 0x110   :  { %v1216_v34 = vadd.f32 %v2336_v30, %v314_v28  ;;  %v2401_v35 = vpop.f32.mrf.mxu1 }
 0x111   :  { %v2338_v37 = vpop.f32.mrf.mxu0 }
 0x112   :  { %v3434_v38 = vadd.f32 %v2400_v32, %v1216_v34  ;;  %v2339_v39 = vadd.f32 %v2338_v37, %v2337_v33  ;;  %v2402_v40 = vpop.f32.mrf.mxu1 }
 0x113   :  { %v2403_v42 = vadd.f32 %v2402_v40, %v2401_v35  ;;  %v2340_v43 = vpop.f32.mrf.mxu0 }
 0x114   :  { %v1219_v44 = vadd.f32 %v2339_v39, %v319_v41  ;;  %v2404_v46 = vpop.f32.mrf.mxu1 }
 0x115   :  { %v2341_v47 = vpop.f32.mrf.mxu0 }
 0x116   :  { %v3436_v49 = vadd.f32 %v2403_v42, %v1219_v44  ;;  %v2342_v50 = vadd.f32 %v2341_v47, %v2340_v43  ;;  %v2405_v51 = vpop.f32.mrf.mxu1 }
 0x117   :  { %v2406_v52 = vadd.f32 %v2405_v51, %v2404_v46  ;;  %v2343_v53 = vpop.f32.mrf.mxu0 }
 0x118   :  { %v1224_v55 = vadd.f32 %v2342_v50, %v324_v48  ;;  %v2407_v56 = vpop.f32.mrf.mxu1 }
 0x119   :  { %v2344_v57 = vpop.f32.mrf.mxu0 }
 0x11a   :  { %v3438_v58 = vadd.f32 %v2406_v52, %v1224_v55  ;;  %v2345_v59 = vadd.f32 %v2344_v57, %v2343_v53  ;;  %v2408_v60 = vpop.f32.mrf.mxu1 }
 0x11b   :  { %v2409_v62 = vadd.f32 %v2408_v60, %v2407_v56  ;;  %v2346_v0 = vpop.f32.mrf.mxu0 }
 0x11c   :  { %v1227_v1 = vadd.f32 %v2345_v59, %v329_v61  ;;  %v2410_v2 = vpop.f32.mrf.mxu1 }
 0x11d   :  { %v2347_v3 = vpop.f32.mrf.mxu0 }
 0x11e   :  { %v3440_v4 = vadd.f32 %v2409_v62, %v1227_v1  ;;  %v2348_v5 = vadd.f32 %v2347_v3, %v2346_v0  ;;  %v2411_v6 = vpop.f32.mrf.mxu1 }
 0x11f   :  { %v2412_v10 = vadd.f32 %v2411_v6, %v2410_v2  ;;  %v2349_v11 = vpop.f32.mrf.mxu0 }
 0x120   :  { %v1232_v12 = vadd.f32 %v2348_v5, %v334_v7  ;;  %v2413_v13 = vpop.f32.mrf.mxu1 }
 0x121   :  { %v2350_v14 = vpop.f32.mrf.mxu0 }
 0x122   :  { %v3442_v15 = vadd.f32 %v2412_v10, %v1232_v12  ;;  %v2351_v16 = vadd.f32 %v2350_v14, %v2349_v11  ;;  %v2414_v17 = vpop.f32.mrf.mxu1 }
 0x123   :  { %v2415_v21 = vadd.f32 %v2414_v17, %v2413_v13  ;;  %v3444_v22 = vpop.f32.mrf.mxu0 }
 0x124   :  { %v1235_v23 = vadd.f32 %v2351_v16, %v339_v20  ;;  %v3446_v24 = vpop.f32.mrf.mxu1 }
 0x125   :  { %v3448_v25 = vpop.f32.mrf.mxu0 }
 0x126   :  { %v3450_v26 = vadd.f32 %v2415_v21, %v1235_v23  ;;  %v3452_v28 = vpop.f32.mrf.mxu1 }
 0x127   :  { %v2435_v30 = vpop.f32.mrf.mxu0 }
 0x128   :  { %v2499_v31 = vpop.f32.mrf.mxu1 }
 0x129   :  { %v2436_v32 = vpop.f32.mrf.mxu0 }
 0x12a   :  { %v2437_v33 = vadd.f32 %v2436_v32, %v2435_v30  ;;  %v2500_v34 = vpop.f32.mrf.mxu1 }
 0x12b   :  { %v2501_v35 = vadd.f32 %v2500_v34, %v2499_v31  ;;  %v3454_v37 = vpop.f32.mrf.mxu0 }
 0x12c   :  { %v1373_v39 = vadd.f32 %v2437_v33, %v3416_v18  ;;  %v3457_v40 = vpop.f32.mrf.mxu1 }
 0x12d   :  { %v2439_v41 = vpop.f32.mrf.mxu0 }
 0x12e   :  { %v3459_v42 = vpop.f32.mrf.mxu1  ;;  %v3461_v43 = vadd.f32 %v2501_v35, %v1373_v39 }
 0x12f   :  { %v3463_v44 = vpop.f32.mrf.mxu0 }
 0x130   :  { %v3465_v46 = vpop.f32.mrf.mxu1 }
 0x131   :  { %v3467_v47 = vpop.f32.mrf.mxu0 }
 0x132   :  { %v3469_v48 = vpop.f32.mrf.mxu1 }
 0x133   :  { %v2444_v50 = vpop.f32.mrf.mxu0 }
 0x134   :  { %v2508_v51 = vpop.f32.mrf.mxu1 }
 0x135   :  { %v2445_v52 = vpop.f32.mrf.mxu0 }
 0x136   :  { %v2446_v53 = vadd.f32 %v2445_v52, %v2444_v50  ;;  %v2509_v18 = vpop.f32.mrf.mxu1 }
 0x137   :  { %v2510_v55 = vadd.f32 %v2509_v18, %v2508_v51  ;;  %v2447_v56 = vpop.f32.mrf.mxu0 }
 0x138   :  { %v1386_v57 = vadd.f32 %v2446_v53, %v3422_v45  ;;  %v2511_v59 = vpop.f32.mrf.mxu1 }
 0x139   :  { %v2448_v60 = vpop.f32.mrf.mxu0 }
 0x13a   :  { %v2449_v61 = vadd.f32 %v2448_v60, %v2447_v56  ;;  %v2512_v62 = vpop.f32.mrf.mxu1  ;;  %v3472_v0 = vadd.f32 %v2510_v55, %v1386_v57 }
 0x13b   :  { %v2513_v1 = vadd.f32 %v2512_v62, %v2511_v59  ;;  %v2450_v2 = vpop.f32.mrf.mxu0 }
 0x13c   :  { %v1389_v3 = vadd.f32 %v2449_v61, %v3424_v54  ;;  %v2514_v5 = vpop.f32.mrf.mxu1 }
 0x13d   :  { %v2451_v6 = vpop.f32.mrf.mxu0 }
 0x13e   :  { %v2452_v7 = vadd.f32 %v2451_v6, %v2450_v2  ;;  %v2515_v10 = vpop.f32.mrf.mxu1  ;;  %v3475_v11 = vadd.f32 %v2513_v1, %v1389_v3 }
 0x13f   :  { %v2516_v12 = vadd.f32 %v2515_v10, %v2514_v5  ;;  %v2453_v13 = vpop.f32.mrf.mxu0  ;;  %v2440_v5 = vadd.f32 %v2439_v41, %v3454_v37  ;;  %v2504_v37 = vadd.f32 %v3459_v42, %v3457_v40 }
 0x140   :  { %v1394_v45 = vadd.f32 %v2452_v7, %v3426_v63  ;;  %v2517_v14 = vpop.f32.mrf.mxu1 }
 0x141   :  { %v2454_v16 = vpop.f32.mrf.mxu0 }
 0x142   :  { %v2455_v17 = vadd.f32 %v2454_v16, %v2453_v13  ;;  %v2518_v20 = vpop.f32.mrf.mxu1  ;;  %v3478_v21 = vadd.f32 %v2516_v12, %v1394_v45  ;;  %v2434_v12 = vadd.f32 %v3448_v25, %v3444_v22  ;;  %v2443_v45 = vadd.f32 %v3467_v47, %v3463_v44 }
 0x143   :  { %v2519_v23 = vadd.f32 %v2518_v20, %v2517_v14  ;;  %v2456_v30 = vpop.f32.mrf.mxu0  ;;  %v2498_v25 = vadd.f32 %v3452_v28, %v3446_v24 }
 0x144   :  { %v1397_v54 = vadd.f32 %v2455_v17, %v3428_v8  ;;  %v2520_v31 = vpop.f32.mrf.mxu1  ;;  %v1378_v17 = vadd.f32 %v2440_v5, %v3418_v27  ;;  %v1370_v22 = vadd.f32 %v2434_v12, %v3414_v9  ;;  %v1381_v47 = vadd.f32 %v2443_v45, %v3420_v36 }
 0x145   :  { %v2457_v32 = vpop.f32.mrf.mxu0  ;;  %v2507_v27 = vadd.f32 %v3469_v48, %v3465_v46 }
 0x146   :  { %v2521_v33 = vpop.f32.mrf.mxu1  ;;  %v3481_v34 = vadd.f32 %v2519_v23, %v1397_v54  ;;  %v2458_v14 = vadd.f32 %v2457_v32, %v2456_v30  ;;  %v1467_v28 = vadd.f32 %v2498_v25, %v1370_v22 }
 0x147   :  { %v2459_v35 = vpop.f32.mrf.mxu0  ;;  %v2522_v42 = vadd.f32 %v2521_v33, %v2520_v31  ;;  %v1478_v46 = vadd.f32 %v2507_v27, %v1381_v47 }
 0x148   :  { %v3483_v39 = vpop.f32.mrf.mxu1  ;;  %v1402_v40 = vadd.f32 %v2458_v14, %v3430_v19 }
 0x149   :  { %v2460_v50 = vpop.f32.mrf.mxu0 }
 0x14a   :  { %v3485_v63 = vpop.f32.mrf.mxu1 }
 0x14b   :  { %v2462_v51 = vpop.f32.mrf.mxu0 }
 0x14c   :  { %v2526_v52 = vpop.f32.mrf.mxu1 }
 0x14d   :  { %v2463_v53 = vpop.f32.mrf.mxu0 }
 0x14e   :  { %v2527_v18 = vpop.f32.mrf.mxu1  ;;  %v2464_v7 = vadd.f32 %v2463_v53, %v2462_v51  ;;  %v1475_v51 = vadd.f32 %v2504_v37, %v1378_v17 }
 0x14f   :  { %v2465_v55 = vpop.f32.mrf.mxu0  ;;  %v2528_v23 = vadd.f32 %v2527_v18, %v2526_v52  ;;  %v2461_v18 = vadd.f32 %v2460_v50, %v2459_v35 }
 0x150   :  { %v2529_v56 = vpop.f32.mrf.mxu1  ;;  %v1410_v20 = vadd.f32 %v2464_v7, %v3434_v38  ;;  %v1499_v7 = vadd.f32 %v2522_v42, %v1402_v40 }
 0x151   :  { %v2466_v57 = vpop.f32.mrf.mxu0 }
 0x152   :  { %v2530_v59 = vpop.f32.mrf.mxu1  ;;  %v2467_v38 = vadd.f32 %v2466_v57, %v2465_v55  ;;  %v1507_v52 = vadd.f32 %v2528_v23, %v1410_v20 }
 0x153   :  { %v3487_v8 = vpop.f32.mrf.mxu0  ;;  %v2531_v48 = vadd.f32 %v2530_v59, %v2529_v56  ;;  %v1405_v56 = vadd.f32 %v2461_v18, %v3432_v29  ;;  %v2525_v59 = vadd.f32 %v3485_v63, %v3483_v39 }
 0x154   :  { %v3489_v60 = vpop.f32.mrf.mxu1  ;;  %v1413_v19 = vadd.f32 %v2467_v38, %v3436_v49 }
 0x155   :  { %v3491_v61 = vpop.f32.mrf.mxu0  ;;  %v1502_v29 = vadd.f32 %v2525_v59, %v1405_v56 }
 0x156   :  { %v3493_v62 = vpop.f32.mrf.mxu1  ;;  %v1510_v20 = vadd.f32 %v2531_v48, %v1413_v19 }
 0x157   :  { %v3495_v1 = vpop.f32.mrf.mxu0 }
 0x158   :  { %v3497_v2 = vpop.f32.mrf.mxu1 }
 0x159   :  { %v3499_v3 = vpop.f32.mrf.mxu0 }
 0x15a   :  { %v3502_v6 = vpop.f32.mrf.mxu1 }
 0x15b   :  { %v3504_v10 = vpop.f32.mrf.mxu0 }
 0x15c   :  { %v3508_v13 = vpop.f32.mrf.mxu1 }
 0x15d   :  { %v3512_v16 = vpop.f32.mrf.mxu0 }
 0x15e   :  { %v3517_v41 = vpop.f32.mrf.mxu1  ;;  %v2476_v18 = vadd.f32 %v3512_v16, %v3504_v10 }
 0x15f   :  { %v3520_v54 = vpop.f32.mrf.mxu0  ;;  %v2540_v10 = vadd.f32 %v3517_v41, %v3508_v13  ;;  %v2470_v13 = vadd.f32 %v3491_v61, %v3487_v8 }
 0x160   :  { %v3525_v44 = vpop.f32.mrf.mxu1 }
 0x161   :  { %v3531_v30 = vpop.f32.mrf.mxu0  ;;  %v1418_v61 = vadd.f32 %v2470_v13, %v3438_v58  ;;  %v2473_v58 = vadd.f32 %v3499_v3, %v3495_v1  ;;  %v2537_v1 = vadd.f32 %v3502_v6, %v3497_v2 }
 0x162   :  { %v3533_v32 = vpop.f32.mrf.mxu1 }
 0x163   :  { %v2578_v9 = vpop.f32.mrf.mxu0  ;;  %v2543_v8 = vadd.f32 %v3533_v32, %v3525_v44 }
 0x164   :  { %v1572_v53 = vadd.f32 %v2578_v9, %v1475_v51  ;;  %v2586_v24 = vpop.f32.mrf.mxu1 }
 0x165   :  { %v1604_v36 = vadd.f32 %v2586_v24, %v1507_v52  ;;  %v1563_v5 = vpop.f32.mrf.mxu0 }
 0x166   :  { %v3536_v31 = vmax.f32 %v1572_v53, 0.0  ;;  %v1564_v33 = vadd.f32 %v1563_v5, %v1467_v28  ;;  %v1595_v55 = vpop.f32.mrf.mxu1 }
 0x167   :  { %v3538_v57 = vmax.f32 %v1604_v36, 0.0  ;;  %v1596_v12 = vadd.f32 %v1595_v55, %v1499_v7  ;;  %v2579_v45 = vpop.f32.mrf.mxu0 }
 0x168   :  { %v3540_v14 = vmax.f32 %v1564_v33, 0.0  ;;  %v1575_v17 = vadd.f32 %v2579_v45, %v1478_v46  ;;  %v1649_v35 = vsel %vm1642_vm0, %v3536_v31, 0.0  ;;  %v2587_v37 = vpop.f32.mrf.mxu1  ;;  %v1710_v40 = vmul.f32 %v3536_v31, %v3536_v31 }
 0x169   :  { %v3544_v50 = vmax.f32 %v1596_v12, 0.0  ;;  %v1673_v49 = vsel %vm1642_vm0, %v3538_v57, 0.0  ;;  %1650 = vadd.xlane.f32.xlu0 %v1649_v35  ;;  %v1607_v22 = vadd.f32 %v2587_v37, %v1510_v20  ;;  %v1718_v51 = vmul.f32 %v3538_v57, %v3538_v57  ;;  %v1566_v53 = vpop.f32.mrf.mxu0 }
 0x16a   :  { %1674 = vadd.xlane.f32.xlu1 %v1673_v49  ;;  %v3551_v23 = vmax.f32 %v1575_v17, 0.0  ;;  %v1643_v25 = vsel %vm1642_vm0, %v3540_v14, 0.0  ;;  %v1598_v47 = vpop.f32.mrf.mxu1  ;;  %v1730_v38 = vsel %vm1642_vm0, %v1710_v40, 0.0  ;;  %v1708_v28 = vmul.f32 %v3540_v14, %v3540_v14 }
 0x16b   :  { %v1667_v27 = vsel %vm1642_vm0, %v3544_v50, 0.0  ;;  %v3559_v42 = vmax.f32 %v1607_v22, 0.0  ;;  %v1599_v39 = vadd.f32 %v1598_v47, %v1502_v29  ;;  %v1754_v24 = vsel %vm1642_vm0, %v1718_v51, 0.0  ;;  %v2582_v46 = vpop.f32.mrf.mxu0 }
 0x16c   :  { %v1652_v63 = vsel %vm1642_vm0, %v3551_v23, 0.0  ;;  %v1567_v36 = vadd.f32 %v1566_v53, %v3461_v43  ;;  %v1711_v7 = vmul.f32 %v3551_v23, %v3551_v23  ;;  %v1724_v19 = vsel %vm1642_vm0, %v1708_v28, 0.0  ;;  %v2590_v45 = vpop.f32.mrf.mxu1 }
 0x16d   :  { %1644 = vadd.xlane.f32.xlu0 %v1643_v25  ;;  %v3566_v9 = vmax.f32 %v1599_v39, 0.0  ;;  %v1676_v52 = vsel %vm1642_vm0, %v3559_v42, 0.0  ;;  %v1716_v48 = vmul.f32 %v3544_v50, %v3544_v50  ;;  %v1426_v33 = vadd.f32 %v2476_v18, %v3442_v15  ;;  %v1579_v17 = vpop.f32.mrf.mxu0 }
 0x16e   :  { %1668 = vadd.xlane.f32.xlu1 %v1667_v27  ;;  %v3586_v43 = vmax.f32 %v1567_v36, 0.0  ;;  %v1733_v16 = vsel %vm1642_vm0, %v1711_v7, 0.0  ;;  %v1719_v55 = vmul.f32 %v3559_v42, %v3559_v42  ;;  %v1588_v12 = vadd.f32 %v2582_v46, %v3478_v21  ;;  %v1611_v59 = vpop.f32.mrf.mxu1 }
 0x16f   :  { %v1670_v5 = vsel %vm1642_vm0, %v3566_v9, 0.0  ;;  %v1748_v35 = vsel %vm1642_vm0, %v1716_v48, 0.0  ;;  %v2479_v15 = vadd.f32 %v3531_v30, %v3520_v54  ;;  %v1523_v41 = vadd.f32 %v2540_v10, %v1426_v33  ;;  %v2583_v20 = vpop.f32.mrf.mxu0 }
 0x170   :  { %v1757_v37 = vsel %vm1642_vm0, %v1719_v55, 0.0  ;;  %v1709_v49 = vmul.f32 %v3586_v43, %v3586_v43  ;;  %v3600_v56 = vmax.f32 %v1588_v12, 0.0  ;;  %v1646_v22 = vsel %vm1642_vm0, %v3586_v43, 0.0  ;;  %v2591_v29 = vpop.f32.mrf.mxu1 }
 0x171   :  { %1653 = vadd.xlane.f32.xlu0 %v1652_v63  ;;  %v1620_v21 = vadd.f32 %v2590_v45, %v1523_v41  ;;  %v1429_v54 = vadd.f32 %v2479_v15, %v3450_v26  ;;  %v2534_v30 = vadd.f32 %v3493_v62, %v3489_v60  ;;  %v1591_v25 = vadd.f32 %v2583_v20, %v3481_v34  ;;  %v3662_v45 = vpop.permute.xlu1 %1918 }
 0x172   :  { %1731 = vadd.xlane.f32.xlu1 %v1730_v38  ;;  %v1727_v47 = vsel %vm1642_vm0, %v1709_v49, 0.0  ;;  %v1717_v27 = vmul.f32 %v3566_v9, %v3566_v9  ;;  %v1580_v26 = vadd.f32 %v1579_v17, %v3472_v0  ;;  %v1661_v44 = vsel %vm1642_vm0, %v3600_v56, 0.0  ;;  %v1582_v0 = vpop.f32.mrf.mxu0  ;;  %v1614_v18 = vpop.f32.mrf.mxu1 }
 0x173   :  { %v3614_v40 = vmax.f32 %v1620_v21, 0.0  ;;  %v1526_v60 = vadd.f32 %v2543_v8, %v1429_v54  ;;  %v1515_v34 = vadd.f32 %v2534_v30, %v1418_v61  ;;  %v3621_v62 = vmax.f32 %v1591_v25, 0.0  ;;  %v2025_v25 = vld [vmem:[%s3931_s4 + $0x68] sm:$0xff] }
 0x174   :  { %v1751_v39 = vsel %vm1642_vm0, %v1717_v27, 0.0  ;;  %v3624_v63 = vmax.f32 %v1580_v26, 0.0  ;;  %v1583_v53 = vadd.f32 %v1582_v0, %v3475_v11  ;;  %v1714_v7 = vmul.f32 %v3600_v56, %v3600_v56  ;;  %v2027_v26 = vld [vmem:[%s3931_s4 + $0x78] sm:$0xff] }
 0x175   :  { %1677 = vadd.xlane.f32.xlu0 %v1676_v52  ;;  %v1623_v32 = vadd.f32 %v2591_v29, %v1526_v60  ;;  %v1612_v38 = vadd.f32 %v1611_v59, %v1515_v34  ;;  %v1685_v51 = vsel %vm1642_vm0, %v3614_v40, 0.0  ;;  %v1421_v52 = vadd.f32 %v2473_v58, %v3440_v4  ;;  %v3673_v49 = vpop.permute.xlu1 %1928  ;;  %v2024_v58 = vld [vmem:[%s3931_s4 + $0x60] sm:$0xff] }
 0x176   :  { %1755 = vadd.xlane.f32.xlu1 %v1754_v24  ;;  %v1664_v24 = vsel %vm1642_vm0, %v3621_v62, 0.0  ;;  %v1655_v36 = vsel %vm1642_vm0, %v3624_v63, 0.0  ;;  %v3640_v4 = vmax.f32 %v1583_v53, 0.0  ;;  %v1742_v48 = vsel %vm1642_vm0, %v1714_v7, 0.0 }
 0x177   :  { %v3631_v3 = vmax.f32 %v1623_v32, 0.0  ;;  %v3636_v28 = vmax.f32 %v1612_v38, 0.0  ;;  %v1722_v33 = vmul.f32 %v3614_v40, %v3614_v40  ;;  %v1712_v12 = vmul.f32 %v3624_v63, %v3624_v63  ;;  %v2026_v32 = vld [vmem:[%s3931_s4 + $0x70] sm:$0xff] }
 0x178   :  { %3935 = vst [vmem:[#allocation2_spill] sm:$0xff] %v3640_v4 }
 0x179   :  { %1671 = vadd.xlane.f32.xlu0 %v1670_v5  ;;  %v1518_v5 = vadd.f32 %v2537_v1, %v1421_v52  ;;  %v1688_v6 = vsel %vm1642_vm0, %v3631_v3, 0.0  ;;  %v1679_v11 = vsel %vm1642_vm0, %v3636_v28, 0.0  ;;  %v1766_v55 = vsel %vm1642_vm0, %v1722_v33, 0.0  ;;  %v3681_v54 = vpop.permute.xlu1 %1933 }
 0x17a   :  { %1725 = vadd.xlane.f32.xlu1 %v1724_v19  ;;  %v1658_v19 = vsel %vm1642_vm0, %v3640_v4, 0.0  ;;  %v1736_v15 = vsel %vm1642_vm0, %v1712_v12, 0.0  ;;  %v1720_v13 = vmul.f32 %v3636_v28, %v3636_v28 }
 0x17b   :  { %v1615_v2 = vadd.f32 %v1614_v18, %v1518_v5 }
 0x17c   :  { %v1760_v21 = vsel %vm1642_vm0, %v1720_v13, 0.0 }
 0x17d   :  { %1734 = vadd.xlane.f32.xlu0 %v1733_v16  ;;  %v3648_v46 = vmax.f32 %v1615_v2, 0.0  ;;  %v1715_v16 = vmul.f32 %v3621_v62, %v3621_v62  ;;  %v3686_v30 = vpop.permute.xlu1 %1943 }
 0x17e   :  { %1749 = vadd.xlane.f32.xlu1 %v1748_v35  ;;  %v1723_v35 = vmul.f32 %v3631_v3, %v3631_v3  ;;  %3937 = vst [vmem:[#allocation4_spill] sm:$0xff] %v3686_v30 }
 0x17f   :  { %3936 = vst [vmem:[#allocation3_spill] sm:$0xff] %v3648_v46  ;;  %v1682_v10 = vsel %vm1642_vm0, %v3648_v46, 0.0  ;;  %v1745_v17 = vsel %vm1642_vm0, %v1715_v16, 0.0  ;;  %v1721_v20 = vmul.f32 %v3648_v46, %v3648_v46 }
 0x180   :  { %v1769_v41 = vsel %vm1642_vm0, %v1723_v35, 0.0 }
 0x181   :  { %1758 = vadd.xlane.f32.xlu0 %v1757_v37  ;;  %v1713_v37 = vmul.f32 %v3640_v4, %v3640_v4  ;;  %v1763_v8 = vsel %vm1642_vm0, %v1721_v20, 0.0  ;;  %v3693_v27 = vpop.permute.xlu1 %1953 }
 0x182   :  { %1647 = vadd.xlane.f32.xlu1 %v1646_v22  ;;  %v3679_v22 = vpop.permute.xlu0 %1923 }
 0x183   :  { %v1739_v59 = vsel %vm1642_vm0, %v1713_v37, 0.0 }
 0x185   :  { %1728 = vadd.xlane.f32.xlu0 %v1727_v47 }
 0x186   :  { %1662 = vadd.xlane.f32.xlu1 %v1661_v44  ;;  %v3684_v61 = vpop.permute.xlu0 %1938  ;;  %v3700_v44 = vpop.permute.xlu1 %1963 }
 0x189   :  { %1752 = vadd.xlane.f32.xlu0 %v1751_v39 }
 0x18a   :  { %1686 = vadd.xlane.f32.xlu1 %v1685_v51  ;;  %v3691_v47 = vpop.permute.xlu0 %1948  ;;  %v3707_v34 = vpop.permute.xlu1 %1973 }
 0x18d   :  { %1665 = vadd.xlane.f32.xlu0 %v1664_v24 }
 0x18e   :  { %1656 = vadd.xlane.f32.xlu1 %v1655_v36  ;;  %v3698_v29 = vpop.permute.xlu0 %1958  ;;  %v3714_v38 = vpop.permute.xlu1 %1983 }
 0x18f   :  { %3939 = vst [vmem:[#allocation6_spill] sm:$0xff] %v3714_v38 }
 0x191   :  { %1689 = vadd.xlane.f32.xlu0 %v1688_v6 }
 0x192   :  { %1680 = vadd.xlane.f32.xlu1 %v1679_v11  ;;  %v3705_v60 = vpop.permute.xlu0 %1968  ;;  %v3718_v51 = vpop.permute.xlu1 %1993 }
 0x193   :  { %3940 = vst [vmem:[#allocation7_spill] sm:$0xff] %v3718_v51 }
 0x195   :  { %1659 = vadd.xlane.f32.xlu0 %v1658_v19 }
 0x196   :  { %1743 = vadd.xlane.f32.xlu1 %v1742_v48  ;;  %v3712_v39 = vpop.permute.xlu0 %1978  ;;  %v3722_v1 = vpop.permute.xlu1 %2035 }
 0x197   :  { %3938 = vst [vmem:[#allocation5_spill] sm:$0xff] %v3712_v39 }
 0x199   :  { %1683 = vadd.xlane.f32.xlu0 %v1682_v10 }
 0x19a   :  { %1767 = vadd.xlane.f32.xlu1 %v1766_v55  ;;  %v3716_v0 = vpop.permute.xlu0 %1988  ;;  %v3726_v24 = vpop.permute.xlu1 %2045 }
 0x19d   :  { %1746 = vadd.xlane.f32.xlu0 %v1745_v17 }
 0x19e   :  { %1737 = vadd.xlane.f32.xlu1 %v1736_v15  ;;  %v3720_v52 = vpop.permute.xlu0 %2030  ;;  %v3730_v36 = vpop.permute.xlu1 %2055 }
 0x19f   :  { %3942 = vst [vmem:[#allocation9_spill] sm:$0xff] %v3730_v36 }
 0x1a1   :  { %1770 = vadd.xlane.f32.xlu0 %v1769_v41 }
 0x1a2   :  { %1761 = vadd.xlane.f32.xlu1 %v1760_v21  ;;  %v3724_v53 = vpop.permute.xlu0 %2040  ;;  %v3734_v2 = vpop.permute.xlu1 %2065 }
 0x1a5   :  { %1740 = vadd.xlane.f32.xlu0 %v1739_v59 }
 0x1a6   :  { %v3728_v18 = vpop.permute.xlu0 %2050  ;;  %v3738_v11 = vpop.permute.xlu1 %2075 }
 0x1a7   :  { %3941 = vst [vmem:[#allocation8_spill] sm:$0xff] %v3728_v18 }
 0x1a9   :  { %1764 = vadd.xlane.f32.xlu0 %v1763_v8 }
 0x1aa   :  { %v3732_v5 = vpop.permute.xlu0 %2060  ;;  %v3742_v19 = vpop.permute.xlu1 %2085 }
 0x1ae   :  { %v3736_v6 = vpop.permute.xlu0 %2070 }
 0x1b2   :  { %v3740_v7 = vpop.permute.xlu0 %2080 }
 0x1b3   :  { %2095 = vperm.xlu1 %2610, %v2025_v25  }
 0x1b7   :  { %2105 = vperm.xlu1 %2610, %v2027_v26  }
 0x1bf   :  { %2090 = vperm.xlu0 %2609, %v2024_v58  }
 0x1c3   :  { %2100 = vperm.xlu0 %2609, %v2026_v32  }
 0x1f2   :  { %v1651_v48 = vpop.xlane.xlu0 %1650 }
 0x1f3   :  { %v1675_v33 = vpop.xlane.xlu1 %1674  ;;  %v1694_v55 = vmul.f32 0.125, %v1651_v48 }
 0x1f4   :  { %v3744_v35 = vmul.f32 0.125, %v1675_v33 }
 0x1f5   :  { %v1790_v15 = vmul.f32 %v1694_v55, %v1694_v55 }
 0x1f6   :  { %v1645_v10 = vpop.xlane.xlu0 %1644  ;;  %v1798_v59 = vmul.f32 %v3744_v35, %v3744_v35 }
 0x1f7   :  { %v1669_v16 = vpop.xlane.xlu1 %1668  ;;  %v3748_v20 = vmul.f32 0.125, %v1645_v10 }
 0x1f8   :  { %v3750_v48 = vmul.f32 0.125, %v1669_v16 }
 0x1fa   :  { %v1654_v12 = vpop.xlane.xlu0 %1653 }
 0x1fb   :  { %v1732_v17 = vpop.xlane.xlu1 %1731  ;;  %v3752_v38 = vmul.f32 0.125, %v1654_v12  ;;  %v1796_v12 = vmul.f32 %v3750_v48, %v3750_v48 }
 0x1fc   :  { %v1774_v13 = vmul.f32 0.125, %v1732_v17  ;;  %v1788_v17 = vmul.f32 %v3748_v20, %v3748_v20 }
 0x1fe   :  { %v1806_v41 = vsub.f32 %v1774_v13, %v1790_v15  ;;  %v1678_v37 = vpop.xlane.xlu0 %1677 }
 0x1ff   :  { %v1756_v21 = vpop.xlane.xlu1 %1755 }
 0x200   :  { %v1822_v8 = vmax.f32 %v1806_v41, 0.0  ;;  %v1782_v25 = vmul.f32 0.125, %v1756_v21  ;;  %v1791_v41 = vmul.f32 %v3752_v38, %v3752_v38  ;;  %v3758_v21 = vmul.f32 0.125, %v1678_v37 }
 0x202   :  { %v1854_v26 = vadd.f32 1e-05, %v1822_v8  ;;  %v1814_v58 = vsub.f32 %v1782_v25, %v1798_v59  ;;  %v1672_v32 = vpop.xlane.xlu0 %1671 }
 0x203   :  { %v1726_v33 = vpop.xlane.xlu1 %1725  ;;  %v3766_v18 = vmul.f32 0.125, %v1672_v32 }
 0x204   :  { %2787 = vrsqrt.f32 %v1854_v26  ;;  %v1830_v15 = vmax.f32 %v1814_v58, 0.0  ;;  %v1772_v13 = vmul.f32 0.125, %v1726_v33 }
 0x206   :  { %v1862_v36 = vadd.f32 1e-05, %v1830_v15  ;;  %v1804_v30 = vsub.f32 %v1772_v13, %v1788_v17  ;;  %v1735_v10 = vpop.xlane.xlu0 %1734  ;;  %v1799_v17 = vmul.f32 %v3758_v21, %v3758_v21 }
 0x207   :  { %v1750_v59 = vpop.xlane.xlu1 %1749  ;;  %v1775_v16 = vmul.f32 0.125, %v1735_v10 }
 0x208   :  { %2789 = vrsqrt.f32 %v1862_v36  ;;  %v1820_v8 = vmax.f32 %v1804_v30, 0.0  ;;  %v1780_v25 = vmul.f32 0.125, %v1750_v59 }
 0x209   :  { %v1807_v46 = vsub.f32 %v1775_v16, %v1791_v41 }
 0x20a   :  { %v1852_v26 = vadd.f32 1e-05, %v1820_v8  ;;  %v1812_v58 = vsub.f32 %v1780_v25, %v1796_v12  ;;  %v1759_v33 = vpop.xlane.xlu0 %1758 }
 0x20b   :  { %v1823_v15 = vmax.f32 %v1807_v46, 0.0  ;;  %v1648_v13 = vpop.xlane.xlu1 %1647  ;;  %v1783_v39 = vmul.f32 0.125, %v1759_v33  ;;  %v1838_v46 = vsub.f32 %v3536_v31, %v1694_v55 }
 0x20c   :  { %2791 = vrsqrt.f32 %v1852_v26  ;;  %v1828_v37 = vmax.f32 %v1812_v58, 0.0  ;;  %v3764_v51 = vmul.f32 0.125, %v1648_v13 }
 0x20d   :  { %v1855_v10 = vadd.f32 1e-05, %v1823_v15  ;;  %v1815_v4 = vsub.f32 %v1783_v39, %v1799_v17  ;;  %v1797_v39 = vmul.f32 %v3766_v18, %v3766_v18 }
 0x20e   :  { %v1860_v30 = vadd.f32 1e-05, %v1828_v37  ;;  %v1729_v36 = vpop.xlane.xlu0 %1728  ;;  %v1789_v41 = vmul.f32 %v3764_v51, %v3764_v51 }
 0x20f   :  { %2793 = vrsqrt.f32 %v1855_v10  ;;  %v1831_v59 = vmax.f32 %v1815_v4, 0.0  ;;  %v1663_v16 = vpop.xlane.xlu1 %1662  ;;  %v1773_v12 = vmul.f32 0.125, %v1729_v36  ;;  %v1846_v4 = vsub.f32 %v3538_v57, %v3744_v35 }
 0x210   :  { %2795 = vrsqrt.f32 %v1860_v30 }
 0x211   :  { %v2788_v8 = vpop.eup %2787  ;;  %v1863_v25 = vadd.f32 1e-05, %v1831_v59  ;;  %v1805_v26 = vsub.f32 %v1773_v12, %v1789_v41  ;;  %v1836_v12 = vsub.f32 %v3540_v14, %v3748_v20  ;;  %v1844_v14 = vsub.f32 %v3544_v50, %v3750_v48 }
 0x212   :  { %v1886_v58 = vmul.f32 %v2788_v8, %v1838_v46  ;;  %v1753_v33 = vpop.xlane.xlu0 %1752  ;;  %v3794_v20 = vmul.f32 0.125, %v1663_v16 }
 0x213   :  { %2797 = vrsqrt.f32 %v1863_v25  ;;  %v1821_v32 = vmax.f32 %v1805_v26, 0.0  ;;  %v1687_v17 = vpop.xlane.xlu1 %1686  ;;  %v1781_v15 = vmul.f32 0.125, %v1753_v33  ;;  %v1839_v25 = vsub.f32 %v3551_v23, %v3752_v38 }
 0x214   :  { %v1998_v13 = vmul.f32 %v3673_v49, %v1886_v58  ;;  %v1794_v16 = vmul.f32 %v3794_v20, %v3794_v20 }
 0x215   :  { %v2790_v37 = vpop.eup %2789  ;;  %v1853_v31 = vadd.f32 1e-05, %v1821_v32  ;;  %v1813_v55 = vsub.f32 %v1781_v15, %v1797_v39  ;;  %v1847_v32 = vsub.f32 %v3559_v42, %v3758_v21 }
 0x216   :  { %v2110_v10 = vadd.f32 %v3724_v53, %v1998_v13  ;;  %v1894_v30 = vmul.f32 %v2790_v37, %v1846_v4  ;;  %v1666_v36 = vpop.xlane.xlu0 %1665 }
 0x217   :  { %2799 = vrsqrt.f32 %v1853_v31  ;;  %v1829_v41 = vmax.f32 %v1813_v55, 0.0  ;;  %v1657_v59 = vpop.xlane.xlu1 %1656  ;;  %v3811_v21 = vmul.f32 0.125, %v1666_v36 }
 0x218   :  { %2126 = vst.msk [vmem:[%s3932_s5 + $0x10] sm:$0xff] %vm1642_vm0, %v2110_v10  ;;  %v2006_v57 = vmul.f32 %v3705_v60, %v1894_v30  ;;  %v3820_v55 = vmul.f32 0.125, %v1657_v59 }
 0x219   :  { %v2792_v49 = vpop.eup %2791  ;;  %v1861_v35 = vadd.f32 1e-05, %v1829_v41 }
 0x21a   :  { %v2118_v46 = vadd.f32 %v3740_v7, %v2006_v57  ;;  %v1884_v53 = vmul.f32 %v2792_v49, %v1836_v12  ;;  %v1690_v8 = vpop.xlane.xlu0 %1689 }
 0x21b   :  { %2801 = vrsqrt.f32 %v1861_v35  ;;  %v1681_v26 = vpop.xlane.xlu1 %1680  ;;  %v3840_v35 = vmul.f32 0.125, %v1690_v8 }
 0x21c   :  { %v2794_v58 = vpop.eup %2793  ;;  %2134 = vst.msk [vmem:[%s3932_s5 + $0x50] sm:$0xff] %vm1642_vm0, %v2118_v46  ;;  %v1996_v60 = vmul.f32 %v3662_v45, %v1884_v53  ;;  %v3842_v53 = vmul.f32 0.125, %v1681_v26 }
 0x21d   :  { %v2796_v7 = vpop.eup %2795  ;;  %v1887_v33 = vmul.f32 %v2794_v58, %v1839_v25  ;;  %v1803_v26 = vmul.f32 %v3840_v35, %v3840_v35 }
 0x21e   :  { %v2108_v39 = vadd.f32 %v3720_v52, %v1996_v60  ;;  %v1892_v23 = vmul.f32 %v2796_v7, %v1844_v14  ;;  %v1660_v38 = vpop.xlane.xlu0 %1659  ;;  %v3807_v52 = vmul.f32 0.125, %v1687_v17 }
 0x21f   :  { %v1999_v50 = vmul.f32 %v3681_v54, %v1887_v33  ;;  %v1744_v48 = vpop.xlane.xlu1 %1743  ;;  %v3845_v33 = vmul.f32 0.125, %v1660_v38  ;;  %v1800_v38 = vmul.f32 %v3842_v53, %v3842_v53 }
 0x220   :  { %v2798_v15 = vpop.eup %2797  ;;  %2124 = vst.msk [vmem:[%s3932_s5] sm:$0xff] %vm1642_vm0, %v2108_v39  ;;  %v2004_v45 = vmul.f32 %v3698_v29, %v1892_v23  ;;  %v1778_v4 = vmul.f32 0.125, %v1744_v48  ;;  %v1837_v29 = vsub.f32 %v3586_v43, %v3764_v51  ;;  %v1845_v43 = vsub.f32 %v3566_v9, %v3766_v18 }
 0x221   :  { %v2111_v13 = vadd.f32 %v3726_v24, %v1999_v50  ;;  %v1895_v42 = vmul.f32 %v2798_v15, %v1847_v32 }
 0x222   :  { %v2116_v54 = vadd.f32 %v3736_v6, %v2004_v45  ;;  %v1810_v37 = vsub.f32 %v1778_v4, %v1794_v16  ;;  %v1684_v31 = vpop.xlane.xlu0 %1683  ;;  %v1802_v6 = vmul.f32 %v3807_v52, %v3807_v52 }
 0x223   :  { %2127 = vst.msk [vmem:[%s3932_s5 + $0x18] sm:$0xff] %vm1642_vm0, %v2111_v13  ;;  %v2007_v17 = vmul.f32 %v3707_v34, %v1895_v42  ;;  %v1768_v24 = vpop.xlane.xlu1 %1767  ;;  %v1795_v34 = vmul.f32 %v3811_v21, %v3811_v21  ;;  %v1793_v13 = vmul.f32 %v3845_v33, %v3845_v33 }
 0x224   :  { %v2800_v10 = vpop.eup %2799  ;;  %2132 = vst.msk [vmem:[%s3932_s5 + $0x40] sm:$0xff] %vm1642_vm0, %v2116_v54  ;;  %v1826_v30 = vmax.f32 %v1810_v37, 0.0  ;;  %v1786_v36 = vmul.f32 0.125, %v1768_v24  ;;  %v3863_v37 = vmul.f32 0.125, %v1684_v31 }
 0x225   :  { %v2119_v41 = vadd.f32 %v3742_v19, %v2007_v17  ;;  %v1885_v12 = vmul.f32 %v2800_v10, %v1837_v29  ;;  %v1792_v19 = vmul.f32 %v3820_v55, %v3820_v55 }
 0x226   :  { %v1858_v51 = vadd.f32 1e-05, %v1826_v30  ;;  %v1818_v59 = vsub.f32 %v1786_v36, %v1802_v6  ;;  %v1747_v57 = vpop.xlane.xlu0 %1746  ;;  %v1801_v36 = vmul.f32 %v3863_v37, %v3863_v37 }
 0x227   :  { %2135 = vst.msk [vmem:[%s3932_s5 + $0x58] sm:$0xff] %vm1642_vm0, %v2119_v41  ;;  %v1997_v49 = vmul.f32 %v3679_v22, %v1885_v12  ;;  %v1738_v46 = vpop.xlane.xlu1 %1737  ;;  %v1779_v9 = vmul.f32 0.125, %v1747_v57 }
 0x228   :  { %v2802_v18 = vpop.eup %2801  ;;  %2803 = vrsqrt.f32 %v1858_v51  ;;  %v1834_v25 = vmax.f32 %v1818_v59, 0.0  ;;  %v1776_v58 = vmul.f32 0.125, %v1738_v46 }
 0x229   :  { %v2109_v14 = vadd.f32 %v3722_v1, %v1997_v49  ;;  %v1893_v60 = vmul.f32 %v2802_v18, %v1845_v43  ;;  %v1811_v7 = vsub.f32 %v1779_v9, %v1795_v34  ;;  %v1842_v43 = vsub.f32 %v3600_v56, %v3794_v20 }
 0x22a   :  { %v1866_v22 = vadd.f32 1e-05, %v1834_v25  ;;  %v1808_v39 = vsub.f32 %v1776_v58, %v1792_v19  ;;  %v1771_v23 = vpop.xlane.xlu0 %1770  ;;  %v1850_v49 = vsub.f32 %v3614_v40, %v3807_v52  ;;  %v1843_v56 = vsub.f32 %v3621_v62, %v3811_v21 }
 0x22b   :  { %2125 = vst.msk [vmem:[%s3932_s5 + $0x8] sm:$0xff] %vm1642_vm0, %v2109_v14  ;;  %v2005_v8 = vmul.f32 %v3700_v44, %v1893_v60  ;;  %v1827_v32 = vmax.f32 %v1811_v7, 0.0  ;;  %v1762_v50 = vpop.xlane.xlu1 %1761  ;;  %v1787_v1 = vmul.f32 0.125, %v1771_v23  ;;  %v1840_v14 = vsub.f32 %v3624_v63, %v3820_v55 }
 0x22c   :  { %2805 = vrsqrt.f32 %v1866_v22  ;;  %v1824_v48 = vmax.f32 %v1808_v39, 0.0  ;;  %v1784_v15 = vmul.f32 0.125, %v1762_v50  ;;  %v1851_v62 = vsub.f32 %v3631_v3, %v3840_v35  ;;  %v3946_v50 = vld [vmem:[#allocation5_spill] sm:$0xff] }
 0x22d   :  { %v2117_v45 = vadd.f32 %v3738_v11, %v2005_v8  ;;  %v1859_v16 = vadd.f32 1e-05, %v1827_v32  ;;  %v1819_v4 = vsub.f32 %v1787_v1, %v1803_v26  ;;  %v1848_v63 = vsub.f32 %v3636_v28, %v3842_v53  ;;  %v3945_v28 = vld [vmem:[#allocation7_spill] sm:$0xff] }
 0x22e   :  { %v1856_v44 = vadd.f32 1e-05, %v1824_v48  ;;  %v1816_v42 = vsub.f32 %v1784_v15, %v1800_v38  ;;  %v1741_v54 = vpop.xlane.xlu0 %1740 }
 0x22f   :  { %2133 = vst.msk [vmem:[%s3932_s5 + $0x48] sm:$0xff] %vm1642_vm0, %v2117_v45  ;;  %2807 = vrsqrt.f32 %v1859_v16  ;;  %v1835_v29 = vmax.f32 %v1819_v4, 0.0  ;;  %v1777_v17 = vmul.f32 0.125, %v1741_v54  ;;  %v2096_v60 = vpop.permute.xlu1 %2095  ;;  %v3948_v16 = vld [vmem:[#allocation4_spill] sm:$0xff] }
 0x230   :  { %2809 = vrsqrt.f32 %v1856_v44  ;;  %v1832_v11 = vmax.f32 %v1816_v42, 0.0  ;;  %v3949_v44 = vld [vmem:[#allocation9_spill] sm:$0xff] }
 0x231   :  { %v1867_v24 = vadd.f32 1e-05, %v1835_v29  ;;  %v1809_v10 = vsub.f32 %v1777_v17, %v1793_v13 }
 0x232   :  { %v1864_v6 = vadd.f32 1e-05, %v1832_v11  ;;  %v1765_v30 = vpop.xlane.xlu0 %1764 }
 0x233   :  { %2811 = vrsqrt.f32 %v1867_v24  ;;  %v1825_v41 = vmax.f32 %v1809_v10, 0.0  ;;  %v1785_v12 = vmul.f32 0.125, %v1765_v30  ;;  %v2106_v53 = vpop.permute.xlu1 %2105 }
 0x234   :  { %2813 = vrsqrt.f32 %v1864_v6 }
 0x235   :  { %v2804_v31 = vpop.eup %2803  ;;  %v1857_v34 = vadd.f32 1e-05, %v1825_v41  ;;  %v1817_v51 = vsub.f32 %v1785_v12, %v1801_v36 }
 0x236   :  { %v1890_v59 = vmul.f32 %v2804_v31, %v1842_v43 }
 0x237   :  { %2815 = vrsqrt.f32 %v1857_v34  ;;  %v1833_v57 = vmax.f32 %v1817_v51, 0.0 }
 0x238   :  { %v2002_v19 = vmul.f32 %v3691_v47, %v1890_v59 }
 0x239   :  { %v2806_v46 = vpop.eup %2805  ;;  %v1865_v9 = vadd.f32 1e-05, %v1833_v57 }
 0x23a   :  { %v2114_v18 = vadd.f32 %v3732_v5, %v2002_v19  ;;  %v2091_v25 = vpop.permute.xlu0 %2090  ;;  %v1898_v58 = vmul.f32 %v2806_v46, %v1850_v49 }
 0x23b   :  { %2817 = vrsqrt.f32 %v1865_v9 }
 0x23c   :  { %v2808_v20 = vpop.eup %2807  ;;  %2130 = vst.msk [vmem:[%s3932_s5 + $0x30] sm:$0xff] %vm1642_vm0, %v2114_v18  ;;  %v2010_v52 = vmul.f32 %v3716_v0, %v1898_v58  ;;  %v3943_v0 = vld [vmem:[#allocation8_spill] sm:$0xff] }
 0x23d   :  { %v2810_v40 = vpop.eup %2809  ;;  %v1891_v47 = vmul.f32 %v2808_v20, %v1843_v56 }
 0x23e   :  { %v1888_v5 = vmul.f32 %v2810_v40, %v1840_v14  ;;  %v2101_v7 = vpop.permute.xlu0 %2100 }
 0x23f   :  { %v2003_v21 = vmul.f32 %v3693_v27, %v1891_v47  ;;  %v2122_v22 = vadd.f32 %v2101_v7, %v2010_v52  ;;  %v3944_v27 = vld [vmem:[#allocation2_spill] sm:$0xff] }
 0x240   :  { %v2812_v39 = vpop.eup %2811  ;;  %v2000_v55 = vmul.f32 %v3684_v61, %v1888_v5  ;;  %v1841_v32 = vsub.f32 %v3944_v27, %v3845_v33  ;;  %v3947_v33 = vld [vmem:[#allocation3_spill] sm:$0xff] }
 0x241   :  { %v2814_v23 = vpop.eup %2813  ;;  %v2115_v8 = vadd.f32 %v3734_v2, %v2003_v21  ;;  %v1899_v26 = vmul.f32 %v2812_v39, %v1851_v62  ;;  %2138 = vst.msk [vmem:[%s3932_s5 + $0x70] sm:$0xff] %vm1642_vm0, %v2122_v22  ;;  %v1849_v45 = vsub.f32 %v3947_v33, %v3863_v37  ;;  %v3950_v37 = vld [vmem:[#allocation6_spill] sm:$0xff] }
 0x242   :  { %v2112_v3 = vadd.f32 %v3943_v0, %v2000_v55  ;;  %v1896_v35 = vmul.f32 %v2814_v23, %v1848_v63 }
 0x243   :  { %2131 = vst.msk [vmem:[%s3932_s5 + $0x38] sm:$0xff] %vm1642_vm0, %v2115_v8  ;;  %v2011_v61 = vmul.f32 %v3945_v28, %v1899_v26 }
 0x244   :  { %v2816_v2 = vpop.eup %2815  ;;  %2128 = vst.msk [vmem:[%s3932_s5 + $0x20] sm:$0xff] %vm1642_vm0, %v2112_v3  ;;  %v2008_v1 = vmul.f32 %v3946_v50, %v1896_v35 }
 0x245   :  { %v1889_v38 = vmul.f32 %v2816_v2, %v1841_v32  ;;  %v2123_v48 = vadd.f32 %v2106_v53, %v2011_v61 }
 0x246   :  { %v2120_v15 = vadd.f32 %v2091_v25, %v2008_v1 }
 0x247   :  { %v2001_v4 = vmul.f32 %v3948_v16, %v1889_v38  ;;  %2139 = vst.msk [vmem:[%s3932_s5 + $0x78] sm:$0xff] %vm1642_vm0, %v2123_v48 }
 0x248   :  { %v2818_v13 = vpop.eup %2817  ;;  %2136 = vst.msk [vmem:[%s3932_s5 + $0x60] sm:$0xff] %vm1642_vm0, %v2120_v15 }
 0x249   :  { %v2113_v42 = vadd.f32 %v3949_v44, %v2001_v4  ;;  %v1897_v54 = vmul.f32 %v2818_v13, %v1849_v45 }
 0x24b   :  { %2129 = vst.msk [vmem:[%s3932_s5 + $0x28] sm:$0xff] %vm1642_vm0, %v2113_v42  ;;  %v2009_v29 = vmul.f32 %v3950_v37, %v1897_v54 }
 0x24d   :  { %v2121_v17 = vadd.f32 %v2096_v60, %v2009_v29 }
 0x24f   :  { %2137 = vst.msk [vmem:[%s3932_s5 + $0x68] sm:$0xff] %vm1642_vm0, %v2121_v17 }

// kernel: pb_fcn2_forward.27
= control target key start
LH: loop header
LB: loop body
LE: loop exit
PB: predicated region body
PF: predicated region fallthrough
CT: control target
= control target key end

     0   :  { %v1919_v1 = vmov 0   ;;  %vm1202_vm0 = vcmask 64512   ;;  %s2582_s0 = inlined_call_operand.vmem [shape: bf16[1152,8], index: 0, kind: input, shape index: {}]   ;;  %s2583_s1 = inlined_call_operand.vmem [shape: bf16[64,1152], index: 1, kind: input, shape index: {}]   ;;  %s2584_s2 = inlined_call_operand.vmem [shape: f32[64,1], index: 2, kind: input, shape index: {}]   ;;  %s2585_s3 = inlined_call_operand.vmem [shape: f32[64,1], index: 3, kind: input, shape index: {}]   ;;  %s2586_s4 = inlined_call_operand.vmem [shape: f32[64,1], index: 4, kind: input, shape index: {}]   ;;  %s2587_s5 = inlined_call_operand.vmem [shape: f32[64,8], index: 5, kind: output, shape index: {}]  }
   0x1   :  { %v1779_v0 = vld [vmem:[%s2582_s0 + $0x78] sm:$0xff]   ;;  %1777 = vset.pattern.permute.xlu0 %v1919_v1  ;;  %1778 = vset.pattern.permute.xlu1 %v1919_v1  ;;  %v1783_v5 = vld [vmem:[%s2582_s0 + $0x70] sm:$0xff]   ;;  %v1787_v9 = vld [vmem:[%s2582_s0 + $0x68] sm:$0xff]  }
   0x2   :  { %v1780_v2 = vld [vmem:[%s2582_s0 + $0xf8] sm:$0xff]   ;;  %1564 = vmatprep.subr.bf16.mxu0 %v1779_v0  ;;  %v1784_v6 = vld [vmem:[%s2582_s0 + $0xf0] sm:$0xff]   ;;  %v1788_v10 = vld [vmem:[%s2582_s0 + $0xe8] sm:$0xff]  }
   0x3   :  { %v1781_v3 = vld [vmem:[%s2582_s0 + $0x38] sm:$0xff]   ;;  %1604 = vmatprep.subr.bf16.mxu1 %v1780_v2  ;;  %v1785_v7 = vld [vmem:[%s2582_s0 + $0x30] sm:$0xff]   ;;  %v1789_v11 = vld [vmem:[%s2582_s0 + $0x28] sm:$0xff]  }
   0x4   :  { %v1782_v4 = vld [vmem:[%s2582_s0 + $0xb8] sm:$0xff]   ;;  %1565 = vmatpush3.bf16.msra.mxu0 %v1781_v3  ;;  %v1786_v8 = vld [vmem:[%s2582_s0 + $0xb0] sm:$0xff]   ;;  %v1790_v12 = vld [vmem:[%s2582_s0 + $0xa8] sm:$0xff]  }
   0x5   :  { %1605 = vmatpush3.bf16.msra.mxu1 %v1782_v4  ;;  %1566 = vmatprep.subr.bf16.mxu0 %v1783_v5  ;;  %v1791_v13 = vld [vmem:[%s2582_s0 + $0x60] sm:$0xff]   ;;  %v1795_v17 = vld [vmem:[%s2582_s0 + $0x58] sm:$0xff]   ;;  %v1799_v21 = vld [vmem:[%s2582_s0 + $0x50] sm:$0xff]  }
   0x6   :  { %1606 = vmatprep.subr.bf16.mxu1 %v1784_v6  ;;  %v1792_v14 = vld [vmem:[%s2582_s0 + $0xe0] sm:$0xff]   ;;  %v1796_v18 = vld [vmem:[%s2582_s0 + $0xd8] sm:$0xff]   ;;  %v1800_v22 = vld [vmem:[%s2582_s0 + $0xd0] sm:$0xff]  }
   0x7   :  { %v1793_v15 = vld [vmem:[%s2582_s0 + $0x20] sm:$0xff]   ;;  %v1797_v19 = vld [vmem:[%s2582_s0 + $0x18] sm:$0xff]   ;;  %v1801_v23 = vld [vmem:[%s2582_s0 + $0x10] sm:$0xff]  }
   0x8   :  { %1567 = vmatpush3.bf16.msra.mxu0 %v1785_v7  ;;  %v1794_v16 = vld [vmem:[%s2582_s0 + $0xa0] sm:$0xff]   ;;  %v1798_v20 = vld [vmem:[%s2582_s0 + $0x98] sm:$0xff]   ;;  %v1802_v24 = vld [vmem:[%s2582_s0 + $0x90] sm:$0xff]  }
   0x9   :  { %1607 = vmatpush3.bf16.msra.mxu1 %v1786_v8  ;;  %1568 = vmatprep.subr.bf16.mxu0 %v1787_v9  ;;  %v1803_v25 = vld [vmem:[%s2582_s0 + $0x48] sm:$0xff]   ;;  %v1807_v29 = vld [vmem:[%s2582_s0 + $0x40] sm:$0xff]   ;;  %v1817_v37 = vld [vmem:[%s2582_s0 + $0x178] sm:$0xff]  }
   0xa   :  { %1608 = vmatprep.subr.bf16.mxu1 %v1788_v10  ;;  %v1804_v26 = vld [vmem:[%s2582_s0 + $0xc8] sm:$0xff]   ;;  %v1808_v30 = vld [vmem:[%s2582_s0 + $0xc0] sm:$0xff]   ;;  %v1818_v38 = vld [vmem:[%s2582_s0 + $0x1f8] sm:$0xff]  }
   0xb   :  { %v1805_v27 = vld [vmem:[%s2582_s0 + $0x8] sm:$0xff]   ;;  %v1809_v31 = vld [vmem:[%s2582_s0] sm:$0xff]   ;;  %v1819_v39 = vld [vmem:[%s2582_s0 + $0x138] sm:$0xff]  }
   0xc   :  { %1569 = vmatpush3.bf16.msra.mxu0 %v1789_v11  ;;  %v1806_v28 = vld [vmem:[%s2582_s0 + $0x88] sm:$0xff]   ;;  %v1810_v32 = vld [vmem:[%s2582_s0 + $0x80] sm:$0xff]   ;;  %v1820_v40 = vld [vmem:[%s2582_s0 + $0x1b8] sm:$0xff]  }
   0xd   :  { %1609 = vmatpush3.bf16.msra.mxu1 %v1790_v12  ;;  %1570 = vmatprep.subr.bf16.mxu0 %v1791_v13  ;;  %v1811_v33 = vld [vmem:[%s2583_s1] ss:$36 sps:$4 sm:$0xff]   ;;  %v1814_v35 = vld [vmem:[%s2583_s1 + $0x8] ss:$36 sps:$4 sm:$0xff]   ;;  %v1821_v41 = vld [vmem:[%s2582_s0 + $0x170] sm:$0xff]  }
   0xe   :  { %1610 = vmatprep.subr.bf16.mxu1 %v1792_v14  ;;  %v1813_v34 = vld [vmem:[%s2583_s1 + $0x4] ss:$36 sps:$4 sm:$0xff]   ;;  %v1816_v36 = vld [vmem:[%s2583_s1 + $0xc] ss:$36 sps:$4 sm:$0xff]   ;;  %v1827_v46 = vld [vmem:[%s2583_s1 + $0x54] ss:$36 sps:$4 sm:$0xff]  }
   0xf   :  { %901 = vmatprep.mubr.bf16.mxu0 %v1813_v34  ;;  %966 = vmatprep.mubr.bf16.mxu1 %v1816_v36  ;;  %v1822_v42 = vld [vmem:[%s2582_s0 + $0x1f0] sm:$0xff]   ;;  %v1829_v47 = vld [vmem:[%s2583_s1 + $0x48] ss:$36 sps:$4 sm:$0xff]   ;;  %v1835_v53 = vld [vmem:[%s2582_s0 + $0x160] sm:$0xff]  }
  0x10   :  { %1571 = vmatpush3.bf16.msra.mxu0 %v1793_v15  ;;  %v1823_v43 = vld [vmem:[%s2582_s0 + $0x130] sm:$0xff]   ;;  %v1831_v49 = vld [vmem:[%s2582_s0 + $0x168] sm:$0xff]   ;;  %v1836_v54 = vld [vmem:[%s2582_s0 + $0x1e0] sm:$0xff]  }
  0x11   :  { %1611 = vmatpush3.bf16.msra.mxu1 %v1794_v16  ;;  %1572 = vmatprep.subr.bf16.mxu0 %v1795_v17  ;;  %v1824_v44 = vld [vmem:[%s2582_s0 + $0x1b0] sm:$0xff]   ;;  %v1832_v50 = vld [vmem:[%s2582_s0 + $0x1e8] sm:$0xff]   ;;  %v1837_v55 = vld [vmem:[%s2582_s0 + $0x120] sm:$0xff]  }
  0x12   :  { %1612 = vmatprep.subr.bf16.mxu1 %v1796_v18  ;;  %v1825_v45 = vld [vmem:[%s2583_s1 + $0x4c] ss:$36 sps:$4 sm:$0xff]   ;;  %v1838_v56 = vld [vmem:[%s2582_s0 + $0x1a0] sm:$0xff]   ;;  %v1839_v57 = vld [vmem:[%s2583_s1 + $0x94] ss:$36 sps:$4 sm:$0xff]  }
  0x13   :  { %v1830_v48 = vld [vmem:[%s2583_s1 + $0x50] ss:$36 sps:$4 sm:$0xff]   ;;  %v1833_v51 = vld [vmem:[%s2582_s0 + $0x128] sm:$0xff]   ;;  %v1841_v58 = vld [vmem:[%s2583_s1 + $0x9c] ss:$36 sps:$4 sm:$0xff]  }
  0x14   :  { %1573 = vmatpush3.bf16.msra.mxu0 %v1797_v19  ;;  %v1834_v52 = vld [vmem:[%s2582_s0 + $0x1a8] sm:$0xff]   ;;  %v1843_v59 = vld [vmem:[%s2583_s1 + $0x90] ss:$36 sps:$4 sm:$0xff]   ;;  %v1844_v60 = vld [vmem:[%s2583_s1 + $0x98] ss:$36 sps:$4 sm:$0xff]  }
  0x15   :  { %1613 = vmatpush3.bf16.msra.mxu1 %v1798_v20  ;;  %1574 = vmatprep.subr.bf16.mxu0 %v1799_v21  ;;  %v1845_v61 = vld [vmem:[%s2582_s0 + $0x158] sm:$0xff]   ;;  %v1849_v1 = vld [vmem:[%s2582_s0 + $0x150] sm:$0xff]   ;;  %v1855_v6 = vld [vmem:[%s2583_s1 + $0xe4] ss:$36 sps:$4 sm:$0xff]  }
  0x16   :  { %1614 = vmatprep.subr.bf16.mxu1 %v1800_v22  ;;  %v1846_v62 = vld [vmem:[%s2582_s0 + $0x1d8] sm:$0xff]   ;;  %v1850_v2 = vld [vmem:[%s2582_s0 + $0x1d0] sm:$0xff]   ;;  %v1858_v8 = vld [vmem:[%s2583_s1 + $0xe0] ss:$36 sps:$4 sm:$0xff]  }
  0x17   :  { %v1847_v63 = vld [vmem:[%s2582_s0 + $0x118] sm:$0xff]   ;;  %v1851_v3 = vld [vmem:[%s2582_s0 + $0x110] sm:$0xff]   ;;  %v1859_v9 = vld [vmem:[%s2582_s0 + $0x148] sm:$0xff]  }
  0x18   :  { %1575 = vmatpush3.bf16.msra.mxu0 %v1801_v23  ;;  %v1848_v0 = vld [vmem:[%s2582_s0 + $0x198] sm:$0xff]   ;;  %v1852_v4 = vld [vmem:[%s2582_s0 + $0x190] sm:$0xff]   ;;  %v1860_v10 = vld [vmem:[%s2582_s0 + $0x1c8] sm:$0xff]  }
  0x19   :  { %1615 = vmatpush3.bf16.msra.mxu1 %v1802_v24  ;;  %1576 = vmatprep.subr.bf16.mxu0 %v1803_v25  ;;  %v1853_v5 = vld [vmem:[%s2583_s1 + $0xdc] ss:$36 sps:$4 sm:$0xff]   ;;  %v1861_v11 = vld [vmem:[%s2582_s0 + $0x108] sm:$0xff]   ;;  %v1867_v17 = vld [vmem:[%s2583_s1 + $0x10] ss:$36 sps:$4 sm:$0xff]  }
  0x1a   :  { %1616 = vmatprep.subr.bf16.mxu1 %v1804_v26  ;;  %v1857_v7 = vld [vmem:[%s2583_s1 + $0xd8] ss:$36 sps:$4 sm:$0xff]   ;;  %v1862_v12 = vld [vmem:[%s2582_s0 + $0x188] sm:$0xff]   ;;  %v1863_v13 = vld [vmem:[%s2582_s0 + $0x140] sm:$0xff]  }
  0x1b   :  { %v1864_v14 = vld [vmem:[%s2582_s0 + $0x1c0] sm:$0xff]   ;;  %v1869_v18 = vld [vmem:[%s2583_s1 + $0x14] ss:$36 sps:$4 sm:$0xff]   ;;  %v1891_v34 = vld [vmem:[%s2583_s1 + $0xec] ss:$36 sps:$4 sm:$0xff]  }
  0x1c   :  { %1577 = vmatpush3.bf16.msra.mxu0 %v1805_v27  ;;  %v1865_v15 = vld [vmem:[%s2582_s0 + $0x100] sm:$0xff]   ;;  %v1870_v19 = vld [vmem:[%s2583_s1 + $0x18] ss:$36 sps:$4 sm:$0xff]   ;;  %v1874_v22 = vld [vmem:[%s2582_s0 + $0x230] sm:$0xff]  }
  0x1d   :  { %1617 = vmatpush3.bf16.msra.mxu1 %v1806_v28  ;;  %1578 = vmatprep.subr.bf16.mxu0 %v1807_v29  ;;  %v1866_v16 = vld [vmem:[%s2582_s0 + $0x180] sm:$0xff]   ;;  %v1873_v21 = vld [vmem:[%s2582_s0 + $0x238] sm:$0xff]   ;;  %v1881_v27 = vld [vmem:[%s2582_s0 + $0x228] sm:$0xff]  }
  0x1e   :  { %1618 = vmatprep.subr.bf16.mxu1 %v1808_v30  ;;  %v1872_v20 = vld [vmem:[%s2583_s1 + $0x1c] ss:$36 sps:$4 sm:$0xff]   ;;  %v1877_v24 = vld [vmem:[%s2583_s1 + $0x64] ss:$36 sps:$4 sm:$0xff]   ;;  %v1885_v29 = vld [vmem:[%s2583_s1 + $0xac] ss:$36 sps:$4 sm:$0xff]  }
  0x1f   :  { %v1875_v23 = vld [vmem:[%s2583_s1 + $0x5c] ss:$36 sps:$4 sm:$0xff]   ;;  %v1883_v28 = vld [vmem:[%s2583_s1 + $0xa4] ss:$36 sps:$4 sm:$0xff]   ;;  %v1890_v36 = vld [vmem:[%s2582_s0 + $0x210] sm:$0xff]  }
  0x20   :  { %1579 = vmatpush3.bf16.msra.mxu0 %v1809_v31  ;;  %v1879_v25 = vld [vmem:[%s2583_s1 + $0x58] ss:$36 sps:$4 sm:$0xff]   ;;  %v1880_v26 = vld [vmem:[%s2583_s1 + $0x60] ss:$36 sps:$4 sm:$0xff]  }
  0x21   :  { %1619 = vmatpush3.bf16.msra.mxu1 %v1810_v32  ;;  %1644 = vmatprep.subr.bf16.mxu0 %v1817_v37  ;;  %v1882_v30 = vld [vmem:[%s2582_s0 + $0x220] sm:$0xff]   ;;  %v1888_v32 = vld [vmem:[%s2583_s1 + $0xa8] ss:$36 sps:$4 sm:$0xff]  }
  0x22   :  { %1684 = vmatprep.subr.bf16.mxu1 %v1818_v38  ;;  %v1887_v31 = vld [vmem:[%s2583_s1 + $0xa0] ss:$36 sps:$4 sm:$0xff]   ;;  %v1895_v38 = vld [vmem:[%s2583_s1 + $0xe8] ss:$36 sps:$4 sm:$0xff]  }
  0x23   :  { %902 = vmatmul.mubr.bf16.vlgmr.msra.gmra.mxu0 %v1811_v33  ;;  %v1889_v33 = vld [vmem:[%s2582_s0 + $0x218] sm:$0xff]   ;;  %v205_v37 = vld [vmem:[%s2584_s2] sm:$0xff] }
  0x24   :  { %967 = vmatmul.mubr.bf16.vlgmr.msra.gmra.mxu1 %v1814_v35  ;;  %1645 = vmatpush3.bf16.msra.mxu0 %v1819_v39  ;;  %v1893_v35 = vld [vmem:[%s2583_s1 + $0xf4] ss:$36 sps:$4 sm:$0xff]  }
  0x25   :  { %1685 = vmatpush3.bf16.msra.mxu1 %v1820_v40  ;;  %1646 = vmatprep.subr.bf16.mxu0 %v1821_v41  ;;  %v207_v39 = vld [vmem:[%s2584_s2 + $0x10] sm:$0xff]  ;;  %v1897_v40 = vld [vmem:[%s2582_s0 + $0x208] sm:$0xff]  }
  0x26   :  { %1686 = vmatprep.subr.bf16.mxu1 %v1822_v42  ;;  %909 = vmatprep.mubr.bf16.mxu0 %v1825_v45  ;;  %v1896_v41 = vld [vmem:[%s2583_s1 + $0xf0] ss:$36 sps:$4 sm:$0xff]   ;;  %v1899_v42 = vld [vmem:[%s2583_s1 + $0x20] ss:$36 sps:$4 sm:$0xff]   ;;  %v206_v45 = vld [vmem:[%s2584_s2 + $0x8] sm:$0xff] }
  0x27   :  { %974 = vmatprep.mubr.bf16.mxu1 %v1827_v46  ;;  %215 = vperm.xlu0 %1777, %v205_v37   ;;  %v208_v46 = vld [vmem:[%s2584_s2 + $0x18] sm:$0xff] }
  0x28   :  { %1647 = vmatpush3.bf16.msra.mxu0 %v1823_v43  ;;  %225 = vperm.xlu1 %1778, %v207_v39   ;;  %v1900_v43 = vld [vmem:[%s2583_s1 + $0xb0] ss:$36 sps:$4 sm:$0xff]  }
  0x29   :  { %1687 = vmatpush3.bf16.msra.mxu1 %v1824_v44  ;;  %1648 = vmatprep.subr.bf16.mxu0 %v1831_v49  ;;  %v1898_v44 = vld [vmem:[%s2582_s0 + $0x200] sm:$0xff]   ;;  %v1902_v49 = vld [vmem:[%s2583_s1 + $0xf8] ss:$36 sps:$4 sm:$0xff]  }
  0x2a   :  { %1688 = vmatprep.subr.bf16.mxu1 %v1832_v50  ;;  %v210_v50 = vld [vmem:[%s2584_s2 + $0x28] sm:$0xff] }
  0x2b   :  { %910 = vmatmul.mubr.bf16.gmra.mxu0 %v1829_v47  ;;  %220 = vperm.xlu0 %1777, %v206_v45   ;;  %v1901_v47 = vld [vmem:[%s2583_s1 + $0x68] ss:$36 sps:$4 sm:$0xff]  }
  0x2c   :  { %975 = vmatmul.mubr.bf16.gmra.mxu1 %v1830_v48  ;;  %1649 = vmatpush3.bf16.msra.mxu0 %v1833_v51  ;;  %v209_v48 = vld [vmem:[%s2584_s2 + $0x20] sm:$0xff]  ;;  %v211_v51 = vld [vmem:[%s2584_s2 + $0x30] sm:$0xff] }
  0x2d   :  { %1689 = vmatpush3.bf16.msra.mxu1 %v1834_v52  ;;  %1650 = vmatprep.subr.bf16.mxu0 %v1835_v53  ;;  %v212_v52 = vld [vmem:[%s2584_s2 + $0x38] sm:$0xff]  ;;  %v1333_v53 = vld [vmem:[%s2585_s3 + $0x8] sm:$0xff] }
  0x2e   :  { %1690 = vmatprep.subr.bf16.mxu1 %v1836_v54  ;;  %917 = vmatprep.mubr.bf16.mxu0 %v1839_v57  ;;  %v1332_v54 = vld [vmem:[%s2585_s3] sm:$0xff]  ;;  %v1338_v57 = vld [vmem:[%s2585_s3 + $0x30] sm:$0xff] }
  0x2f   :  { %982 = vmatprep.mubr.bf16.mxu1 %v1841_v58  ;;  %230 = vperm.xlu1 %1778, %v208_v46   ;;  %v1335_v58 = vld [vmem:[%s2585_s3 + $0x18] sm:$0xff] }
  0x30   :  { %1651 = vmatpush3.bf16.msra.mxu0 %v1837_v55  ;;  %235 = vperm.xlu0 %1777, %v209_v48   ;;  %v1336_v55 = vld [vmem:[%s2585_s3 + $0x20] sm:$0xff] }
  0x31   :  { %1691 = vmatpush3.bf16.msra.mxu1 %v1838_v56  ;;  %1652 = vmatprep.subr.bf16.mxu0 %v1845_v61  ;;  %v1334_v56 = vld [vmem:[%s2585_s3 + $0x10] sm:$0xff] }
  0x32   :  { %1692 = vmatprep.subr.bf16.mxu1 %v1846_v62  ;;  %v1390_v61 = vld [vmem:[%s2586_s4 + $0x10] sm:$0xff]  ;;  %v1339_v62 = vld [vmem:[%s2585_s3 + $0x38] sm:$0xff] }
  0x33   :  { %918 = vmatmul.mubr.bf16.gmra.mxu0 %v1843_v59  ;;  %240 = vperm.xlu1 %1778, %v210_v50   ;;  %v1388_v59 = vld [vmem:[%s2586_s4] sm:$0xff] }
  0x34   :  { %983 = vmatmul.mubr.bf16.gmra.mxu1 %v1844_v60  ;;  %1653 = vmatpush3.bf16.msra.mxu0 %v1847_v63  ;;  %v1337_v60 = vld [vmem:[%s2585_s3 + $0x28] sm:$0xff] }
  0x35   :  { %1693 = vmatpush3.bf16.msra.mxu1 %v1848_v0  ;;  %1654 = vmatprep.subr.bf16.mxu0 %v1849_v1  ;;  %v1389_v63 = vld [vmem:[%s2586_s4 + $0x8] sm:$0xff]  ;;  %v1391_v0 = vld [vmem:[%s2586_s4 + $0x18] sm:$0xff] }
  0x36   :  { %1694 = vmatprep.subr.bf16.mxu1 %v1850_v2  ;;  %925 = vmatprep.mubr.bf16.mxu0 %v1853_v5 }
  0x37   :  { %990 = vmatprep.mubr.bf16.mxu1 %v1855_v6  ;;  %245 = vperm.xlu0 %1777, %v211_v51  }
  0x38   :  { %1655 = vmatpush3.bf16.msra.mxu0 %v1851_v3  ;;  %250 = vperm.xlu1 %1778, %v212_v52  }
  0x39   :  { %1695 = vmatpush3.bf16.msra.mxu1 %v1852_v4  ;;  %1656 = vmatprep.subr.bf16.mxu0 %v1859_v9 }
  0x3a   :  { %1696 = vmatprep.subr.bf16.mxu1 %v1860_v10 }
  0x3b   :  { %926 = vmatmul.mubr.bf16.gmra.mxu0 %v1857_v7  ;;  %1347 = vperm.xlu0 %1777, %v1333_v53  }
  0x3c   :  { %991 = vmatmul.mubr.bf16.gmra.mxu1 %v1858_v8  ;;  %1657 = vmatpush3.bf16.msra.mxu0 %v1861_v11 }
  0x3d   :  { %1697 = vmatpush3.bf16.msra.mxu1 %v1862_v12  ;;  %1658 = vmatprep.subr.bf16.mxu0 %v1863_v13 }
  0x3e   :  { %1698 = vmatprep.subr.bf16.mxu1 %v1864_v14  ;;  %1031 = vmatprep.mubr.bf16.mxu0 %v1869_v18 }
  0x3f   :  { %1096 = vmatprep.mubr.bf16.mxu1 %v1872_v20  ;;  %1342 = vperm.xlu1 %1778, %v1332_v54  }
  0x40   :  { %1659 = vmatpush3.bf16.msra.mxu0 %v1865_v15  ;;  %1362 = vperm.xlu0 %1777, %v1336_v55  }
  0x41   :  { %1699 = vmatpush3.bf16.msra.mxu1 %v1866_v16  ;;  %1736 = vmatprep.subr.bf16.mxu0 %v1873_v21 }
  0x42   :  { %1760 = vmatprep.subr.bf16.mxu1 %v1873_v21 }
  0x43   :  { %1032 = vmatmul.mubr.bf16.vlgmr.msra.gmra.mxu0 %v1867_v17  ;;  %1352 = vperm.xlu1 %1778, %v1334_v56  }
  0x44   :  { %1097 = vmatmul.mubr.bf16.vlgmr.msra.gmra.mxu1 %v1870_v19  ;;  %1737 = vmatpush3.bf16.msra.mxu0 %v1873_v21 }
  0x45   :  { %1768 = vmatpush3.bf16.msra.mxu1 %v1873_v21  ;;  %1738 = vmatprep.subr.bf16.mxu0 %v1874_v22 }
  0x46   :  { %1761 = vmatprep.subr.bf16.mxu1 %v1874_v22  ;;  %1039 = vmatprep.mubr.bf16.mxu0 %v1875_v23 }
  0x47   :  { %1104 = vmatprep.mubr.bf16.mxu1 %v1877_v24  ;;  %1372 = vperm.xlu0 %1777, %v1338_v57  }
  0x48   :  { %1739 = vmatpush3.bf16.msra.mxu0 %v1874_v22  ;;  %1357 = vperm.xlu1 %1778, %v1335_v58  }
  0x49   :  { %1769 = vmatpush3.bf16.msra.mxu1 %v1874_v22  ;;  %1740 = vmatprep.subr.bf16.mxu0 %v1881_v27 }
  0x4a   :  { %1762 = vmatprep.subr.bf16.mxu1 %v1881_v27 }
  0x4b   :  { %1040 = vmatmul.mubr.bf16.gmra.mxu0 %v1879_v25  ;;  %1398 = vperm.xlu0 %1777, %v1388_v59  }
  0x4c   :  { %1105 = vmatmul.mubr.bf16.gmra.mxu1 %v1880_v26  ;;  %1047 = vmatprep.mubr.bf16.mxu0 %v1883_v28 }
  0x4d   :  { %1741 = vmatpush3.bf16.msra.mxu0 %v1881_v27  ;;  %1112 = vmatprep.mubr.bf16.mxu1 %v1885_v29 }
  0x4e   :  { %1770 = vmatpush3.bf16.msra.mxu1 %v1881_v27  ;;  %1742 = vmatprep.subr.bf16.mxu0 %v1882_v30 }
  0x4f   :  { %1763 = vmatprep.subr.bf16.mxu1 %v1882_v30  ;;  %1367 = vperm.xlu1 %1778, %v1337_v60  }
  0x50   :  { %1408 = vperm.xlu0 %1777, %v1390_v61  }
  0x51   :  { %1743 = vmatpush3.bf16.msra.mxu0 %v1882_v30 }
  0x52   :  { %1771 = vmatpush3.bf16.msra.mxu1 %v1882_v30  ;;  %1744 = vmatprep.subr.bf16.mxu0 %v1889_v33 }
  0x53   :  { %1048 = vmatmul.mubr.bf16.gmra.mxu0 %v1887_v31  ;;  %1764 = vmatprep.subr.bf16.mxu1 %v1889_v33 }
  0x54   :  { %1113 = vmatmul.mubr.bf16.gmra.mxu1 %v1888_v32  ;;  %1055 = vmatprep.mubr.bf16.mxu0 %v1891_v34 }
  0x55   :  { %1745 = vmatpush3.bf16.msra.mxu0 %v1889_v33  ;;  %1120 = vmatprep.mubr.bf16.mxu1 %v1893_v35 }
  0x56   :  { %1772 = vmatpush3.bf16.msra.mxu1 %v1889_v33  ;;  %1746 = vmatprep.subr.bf16.mxu0 %v1890_v36 }
  0x57   :  { %1765 = vmatprep.subr.bf16.mxu1 %v1890_v36  ;;  %1377 = vperm.xlu1 %1778, %v1339_v62  }
  0x59   :  { %1747 = vmatpush3.bf16.msra.mxu0 %v1890_v36 }
  0x5a   :  { %1773 = vmatpush3.bf16.msra.mxu1 %v1890_v36  ;;  %1748 = vmatprep.subr.bf16.mxu0 %v1897_v40 }
  0x5b   :  { %1056 = vmatmul.mubr.bf16.gmra.mxu0 %v1895_v38  ;;  %1766 = vmatprep.subr.bf16.mxu1 %v1897_v40 }
  0x5c   :  { %1121 = vmatmul.mubr.bf16.gmra.mxu1 %v1896_v41  ;;  %1752 = vmatprep.mubr.bf16.mxu0 %v1899_v42 }
  0x5d   :  { %1749 = vmatpush3.bf16.msra.mxu0 %v1897_v40  ;;  %1756 = vmatprep.mubr.bf16.mxu1 %v1900_v43 }
  0x5e   :  { %1774 = vmatpush3.bf16.msra.mxu1 %v1897_v40  ;;  %1750 = vmatprep.subr.bf16.mxu0 %v1898_v44 }
  0x5f   :  { %1767 = vmatprep.subr.bf16.mxu1 %v1898_v44  ;;  %1403 = vperm.xlu1 %1778, %v1389_v63  }
  0x61   :  { %1751 = vmatpush3.bf16.msra.mxu0 %v1898_v44 }
  0x62   :  { %1775 = vmatpush3.bf16.msra.mxu1 %v1898_v44 }
  0x63   :  { %1413 = vperm.xlu1 %1778, %v1391_v0  }
  0x64   :  { %1753 = vmatmul.mubr.bf16.vlgmr.msra.gmra.mxu0 %v1901_v47 }
  0x65   :  { %1757 = vmatmul.mubr.bf16.vlgmr.msra.gmra.mxu1 %v1902_v49 }
  0xa2   :  { %v2334_v2 = vpop.permute.xlu0 %215 }
  0xa3   :  { %v226_v50 = vpop.permute.xlu1 %225 }
  0xa6   :  { %v221_v9 = vpop.permute.xlu0 %220 }
  0xaa   :  { %v231_v58 = vpop.permute.xlu1 %230 }
  0xab   :  { %v236_v55 = vpop.permute.xlu0 %235 }
  0xb2   :  { %v246_v0 = vpop.permute.xlu0 %245 }
  0xe3   :  { %v1580_v1 = vpop.f32.mrf.mxu0 }
  0xe4   :  { %v2336_v3 = vpop.f32.mrf.mxu1 }
  0xe5   :  { %v1581_v4 = vpop.f32.mrf.mxu0 }
  0xe6   :  { %v2338_v5 = vpop.f32.mrf.mxu1  ;;  %v1582_v59 = vadd.f32 %v1581_v4, %v1580_v1 }
  0xe7   :  { %v1583_v6 = vpop.f32.mrf.mxu0 }
  0xe8   :  { %v1623_v7 = vpop.f32.mrf.mxu1 }
  0xe9   :  { %v1584_v8 = vpop.f32.mrf.mxu0 }
  0xea   :  { %v1585_v10 = vadd.f32 %v1584_v8, %v1583_v6  ;;  %v1624_v11 = vpop.f32.mrf.mxu1  ;;  %v241_v8 = vpop.permute.xlu1 %240 }
  0xeb   :  { %v1625_v12 = vadd.f32 %v1624_v11, %v1623_v7  ;;  %v1586_v14 = vpop.f32.mrf.mxu0 }
  0xec   :  { %v907_v13 = vadd.f32 %v1585_v10, %v221_v9  ;;  %v1626_v16 = vpop.f32.mrf.mxu1  ;;  %v1622_v9 = vadd.f32 %v2338_v5, %v2336_v3  ;;  %v904_v10 = vadd.f32 %v1582_v59, %v2334_v2 }
  0xed   :  { %v1587_v17 = vpop.f32.mrf.mxu0 }
  0xee   :  { %v2340_v15 = vadd.f32 %v1625_v12, %v907_v13  ;;  %v1627_v18 = vpop.f32.mrf.mxu1  ;;  %v1588_v62 = vadd.f32 %v1587_v17, %v1586_v14 }
  0xef   :  { %v1589_v19 = vpop.f32.mrf.mxu0  ;;  %v1628_v1 = vadd.f32 %v1627_v18, %v1626_v16 }
  0xf0   :  { %2588 = vst [vmem:[#allocation2_spill] sm:$0xff] %v2340_v15  ;;  %v2342_v20 = vpop.f32.mrf.mxu1  ;;  %v912_v4 = vadd.f32 %v1588_v62, %v226_v50 }
  0xf1   :  { %v1590_v21 = vpop.f32.mrf.mxu0 }
  0xf2   :  { %v2344_v22 = vpop.f32.mrf.mxu1  ;;  %v1591_v11 = vadd.f32 %v1590_v21, %v1589_v19  ;;  %v977_v19 = vadd.f32 %v1628_v1, %v912_v4 }
  0xf3   :  { %v1592_v23 = vpop.f32.mrf.mxu0  ;;  %v1631_v16 = vadd.f32 %v2344_v22, %v2342_v20 }
  0xf4   :  { %v1632_v24 = vpop.f32.mrf.mxu1 }
  0xf5   :  { %v1593_v25 = vpop.f32.mrf.mxu0 }
  0xf6   :  { %v1633_v26 = vpop.f32.mrf.mxu1  ;;  %v1594_v12 = vadd.f32 %v1593_v25, %v1592_v23  ;;  %v251_v23 = vpop.permute.xlu1 %250 }
  0xf7   :  { %v2346_v27 = vpop.f32.mrf.mxu0 }
  0xf8   :  { %v2348_v28 = vpop.f32.mrf.mxu1  ;;  %v920_v3 = vadd.f32 %v1594_v12, %v236_v55 }
  0xf9   :  { %v2350_v29 = vpop.f32.mrf.mxu0 }
  0xfa   :  { %v2352_v30 = vpop.f32.mrf.mxu1 }
  0xfb   :  { %v1598_v31 = vpop.f32.mrf.mxu0 }
  0xfc   :  { %v1638_v32 = vpop.f32.mrf.mxu1 }
  0xfd   :  { %v1599_v33 = vpop.f32.mrf.mxu0 }
  0xfe   :  { %v1639_v34 = vpop.f32.mrf.mxu1  ;;  %v1600_v63 = vadd.f32 %v1599_v33, %v1598_v31 }
  0xff   :  { %v1601_v35 = vpop.f32.mrf.mxu0 }
 0x100   :  { %v2354_v36 = vpop.f32.mrf.mxu1  ;;  %v928_v14 = vadd.f32 %v1600_v63, %v246_v0 }
 0x101   :  { %v1602_v37 = vpop.f32.mrf.mxu0 }
 0x102   :  { %v2356_v38 = vpop.f32.mrf.mxu1  ;;  %v1603_v17 = vadd.f32 %v1602_v37, %v1601_v35 }
 0x103   :  { %v1660_v39 = vpop.f32.mrf.mxu0 }
 0x104   :  { %v2358_v40 = vpop.f32.mrf.mxu1  ;;  %v931_v18 = vadd.f32 %v1603_v17, %v251_v23 }
 0x105   :  { %v1661_v41 = vpop.f32.mrf.mxu0 }
 0x106   :  { %v2360_v42 = vpop.f32.mrf.mxu1  ;;  %v1662_v25 = vadd.f32 %v1661_v41, %v1660_v39  ;;  %v1643_v41 = vadd.f32 %v2356_v38, %v2354_v36 }
 0x107   :  { %v2362_v43 = vpop.f32.mrf.mxu0  ;;  %v1702_v22 = vadd.f32 %v2360_v42, %v2358_v40  ;;  %v1637_v40 = vadd.f32 %v2352_v30, %v2348_v28 }
 0x108   :  { %2589 = vst [vmem:[#allocation3_spill] sm:$0xff] %v2362_v43  ;;  %v2364_v44 = vpop.f32.mrf.mxu1  ;;  %v915_v43 = vadd.f32 %v1591_v11, %v231_v58 }
 0x109   :  { %2590 = vst [vmem:[#allocation4_spill] sm:$0xff] %v2364_v44  ;;  %v2366_v45 = vpop.f32.mrf.mxu0  ;;  %v1640_v44 = vadd.f32 %v1639_v34, %v1638_v32 }
 0x10a   :  { %2591 = vst [vmem:[#allocation5_spill] sm:$0xff] %v2366_v45  ;;  %v2368_v46 = vpop.f32.mrf.mxu1  ;;  %v969_v45 = vadd.f32 %v1622_v9, %v904_v10 }
 0x10b   :  { %2592 = vst [vmem:[#allocation6_spill] sm:$0xff] %v2368_v46  ;;  %v1666_v47 = vpop.f32.mrf.mxu0  ;;  %v993_v21 = vadd.f32 %v1640_v44, %v928_v14  ;;  %v1597_v44 = vadd.f32 %v2350_v29, %v2346_v27 }
 0x10c   :  { %v1706_v48 = vpop.f32.mrf.mxu1  ;;  %v1034_v20 = vadd.f32 %v1662_v25, %v969_v45 }
 0x10d   :  { %v1667_v49 = vpop.f32.mrf.mxu0  ;;  %v923_v62 = vadd.f32 %v1597_v44, %v241_v8 }
 0x10e   :  { %v1707_v51 = vpop.f32.mrf.mxu1  ;;  %v1668_v15 = vadd.f32 %v1667_v49, %v1666_v47  ;;  %v1099_v38 = vadd.f32 %v1702_v22, %v1034_v20 }
 0x10f   :  { %v1669_v52 = vpop.f32.mrf.mxu0  ;;  %v1708_v49 = vadd.f32 %v1707_v51, %v1706_v48 }
 0x110   :  { %v2370_v53 = vpop.f32.mrf.mxu1  ;;  %v1042_v47 = vadd.f32 %v1668_v15, %v977_v19 }
 0x111   :  { %v1670_v54 = vpop.f32.mrf.mxu0 }
 0x112   :  { %v2372_v56 = vpop.f32.mrf.mxu1  ;;  %v1671_v32 = vadd.f32 %v1670_v54, %v1669_v52 }
 0x113   :  { %v1672_v57 = vpop.f32.mrf.mxu0  ;;  %v1711_v27 = vadd.f32 %v2372_v56, %v2370_v53  ;;  %v988_v56 = vadd.f32 %v1637_v40, %v923_v62 }
 0x114   :  { %v1712_v60 = vpop.f32.mrf.mxu1 }
 0x115   :  { %v1673_v61 = vpop.f32.mrf.mxu0 }
 0x116   :  { %v1713_v6 = vpop.f32.mrf.mxu1  ;;  %v1674_v34 = vadd.f32 %v1673_v61, %v1672_v57  ;;  %v1107_v61 = vadd.f32 %v1708_v49, %v1042_v47 }
 0x117   :  { %v2374_v7 = vpop.f32.mrf.mxu0  ;;  %v1714_v48 = vadd.f32 %v1713_v6, %v1712_v60 }
 0x118   :  { %2593 = vst [vmem:[#allocation7_spill] sm:$0xff] %v2374_v7  ;;  %v2379_v13 = vpop.f32.mrf.mxu1  ;;  %v1634_v7 = vadd.f32 %v1633_v26, %v1632_v24  ;;  %v980_v26 = vadd.f32 %v1631_v16, %v915_v43  ;;  %v996_v43 = vadd.f32 %v1643_v41, %v931_v18  ;;  %v2595_v18 = vld [vmem:[#allocation3_spill] sm:$0xff] }
 0x119   :  { %v1676_v46 = vpop.f32.mrf.mxu0 }
 0x11a   :  { %v2381_v31 = vpop.f32.mrf.mxu1  ;;  %v985_v55 = vadd.f32 %v1634_v7, %v920_v3  ;;  %v1045_v54 = vadd.f32 %v1671_v32, %v980_v26  ;;  %v2596_v32 = vld [vmem:[#allocation5_spill] sm:$0xff]  ;;  %v2598_v26 = vld [vmem:[#allocation4_spill] sm:$0xff] }
 0x11b   :  { %v1678_v33 = vpop.f32.mrf.mxu0 }
 0x11c   :  { %v1718_v5 = vpop.f32.mrf.mxu1  ;;  %v1050_v15 = vadd.f32 %v1674_v34, %v985_v55  ;;  %v1110_v6 = vadd.f32 %v1711_v27, %v1045_v54  ;;  %v1665_v34 = vadd.f32 %v2596_v32, %v2595_v18  ;;  %v2599_v55 = vld [vmem:[#allocation6_spill] sm:$0xff] }
 0x11d   :  { %v1679_v2 = vpop.f32.mrf.mxu0  ;;  %v1705_v44 = vadd.f32 %v2599_v55, %v2598_v26 }
 0x11e   :  { %v1680_v59 = vadd.f32 %v1679_v2, %v1678_v33  ;;  %v1719_v35 = vpop.f32.mrf.mxu1  ;;  %v1115_v60 = vadd.f32 %v1714_v48, %v1050_v15  ;;  %v1717_v2 = vadd.f32 %v2381_v31, %v2379_v13 }
 0x11f   :  { %v1681_v37 = vpop.f32.mrf.mxu0  ;;  %v1720_v24 = vadd.f32 %v1719_v35, %v1718_v5  ;;  %v2594_v7 = vld [vmem:[#allocation7_spill] sm:$0xff] }
 0x120   :  { %v1058_v50 = vadd.f32 %v1680_v59, %v993_v21  ;;  %v1721_v58 = vpop.f32.mrf.mxu1  ;;  %v1677_v9 = vadd.f32 %v1676_v46, %v2594_v7  ;;  %v2471_v7 = vpop.permute.xlu1 %1342 }
 0x121   :  { %v1682_v39 = vpop.f32.mrf.mxu0 }
 0x122   :  { %v1683_v52 = vadd.f32 %v1682_v39, %v1681_v37  ;;  %v1722_v51 = vpop.f32.mrf.mxu1  ;;  %v1123_v57 = vadd.f32 %v1720_v24, %v1058_v50  ;;  %v1053_v5 = vadd.f32 %v1677_v9, %v988_v56  ;;  %v2597_v50 = vld [vmem:[#allocation2_spill] sm:$0xff] }
 0x123   :  { %v1723_v10 = vadd.f32 %v1722_v51, %v1721_v58  ;;  %v1037_v24 = vadd.f32 %v1665_v34, %v2597_v50 }
 0x124   :  { %v1754_v29 = vpop.f32.mrf.mxu0  ;;  %v1061_v63 = vadd.f32 %v1683_v52, %v996_v43  ;;  %v1118_v35 = vadd.f32 %v1717_v2, %v1053_v5  ;;  %v2473_v9 = vpop.permute.xlu1 %1352 }
 0x125   :  { %v1172_v0 = vadd.f32 %v1754_v29, %v1107_v61  ;;  %v1758_v36 = vpop.f32.mrf.mxu1  ;;  %v1102_v52 = vadd.f32 %v1705_v44, %v1037_v24 }
 0x126   :  { %v1188_v42 = vadd.f32 %v1758_v36, %v1123_v57  ;;  %v1163_v45 = vpop.f32.mrf.mxu0  ;;  %v1126_v28 = vadd.f32 %v1723_v10, %v1061_v63  ;;  %v2475_v10 = vpop.permute.xlu0 %1347 }
 0x127   :  { %v2396_v8 = vmax.f32 %v1172_v0, 0.0  ;;  %v1164_v11 = vadd.f32 %v1163_v45, %v1099_v38  ;;  %v1179_v53 = vpop.f32.mrf.mxu1  ;;  %v1395_v45 = vld [vmem:[%s2586_s4 + $0x38] sm:$0xff] }
 0x128   :  { %v2398_v12 = vmax.f32 %v1188_v42, 0.0  ;;  %v1180_v1 = vadd.f32 %v1179_v53, %v1115_v60  ;;  %v1755_v4 = vpop.f32.mrf.mxu0  ;;  %v1393_v42 = vld [vmem:[%s2586_s4 + $0x28] sm:$0xff]  ;;  %v1392_v60 = vld [vmem:[%s2586_s4 + $0x20] sm:$0xff] }
 0x129   :  { %v2400_v14 = vmax.f32 %v1164_v11, 0.0  ;;  %v1175_v17 = vadd.f32 %v1755_v4, %v1110_v6  ;;  %v1209_v30 = vsel %vm1202_vm0, %v2396_v8, 0.0  ;;  %v1759_v46 = vpop.f32.mrf.mxu1  ;;  %v1238_v16 = vmul.f32 %v2396_v8, %v2396_v8  ;;  %v1394_v6 = vld [vmem:[%s2586_s4 + $0x30] sm:$0xff]  ;;  %v2477_v11 = vpop.permute.xlu1 %1357 }
 0x12a   :  { %v2404_v33 = vmax.f32 %v1180_v1, 0.0  ;;  %v1221_v3 = vsel %vm1202_vm0, %v2398_v12, 0.0  ;;  %1210 = vadd.xlane.f32.xlu0 %v1209_v30  ;;  %v1191_v21 = vadd.f32 %v1759_v46, %v1126_v28  ;;  %v1242_v49 = vmul.f32 %v2398_v12, %v2398_v12  ;;  %v1166_v41 = vpop.f32.mrf.mxu0  ;;  %v2479_v53 = vpop.permute.xlu0 %1362 }
 0x12b   :  { %1222 = vadd.xlane.f32.xlu1 %v1221_v3  ;;  %v2410_v19 = vmax.f32 %v1175_v17, 0.0  ;;  %v1203_v23 = vsel %vm1202_vm0, %v2400_v14, 0.0  ;;  %v1182_v25 = vpop.f32.mrf.mxu1  ;;  %v1250_v47 = vsel %vm1202_vm0, %v1238_v16, 0.0  ;;  %v1236_v22 = vmul.f32 %v2400_v14, %v2400_v14 }
 0x12c   :  { %v1215_v59 = vsel %vm1202_vm0, %v2404_v33, 0.0  ;;  %v2420_v13 = vmax.f32 %v1191_v21, 0.0  ;;  %v1183_v31 = vadd.f32 %v1182_v25, %v1118_v35  ;;  %v1262_v20 = vsel %vm1202_vm0, %v1242_v49, 0.0 }
 0x12d   :  { %v1212_v37 = vsel %vm1202_vm0, %v2410_v19, 0.0  ;;  %v1167_v54 = vadd.f32 %v1166_v41, %v1102_v52  ;;  %v1239_v48 = vmul.f32 %v2410_v19, %v2410_v19  ;;  %v1244_v51 = vsel %vm1202_vm0, %v1236_v22, 0.0  ;;  %v2481_v56 = vpop.permute.xlu1 %1367 }
 0x12e   :  { %1204 = vadd.xlane.f32.xlu0 %v1203_v23  ;;  %v2430_v58 = vmax.f32 %v1183_v31, 0.0  ;;  %v1224_v39 = vsel %vm1202_vm0, %v2420_v13, 0.0  ;;  %v1240_v57 = vmul.f32 %v2404_v33, %v2404_v33  ;;  %v1243_v62 = vmul.f32 %v2420_v13, %v2420_v13  ;;  %v2483_v1 = vpop.permute.xlu0 %1372 }
 0x12f   :  { %1216 = vadd.xlane.f32.xlu1 %v1215_v59  ;;  %v2444_v43 = vmax.f32 %v1167_v54, 0.0  ;;  %v1253_v61 = vsel %vm1202_vm0, %v1239_v48, 0.0 }
 0x130   :  { %v1218_v15 = vsel %vm1202_vm0, %v2430_v58, 0.0  ;;  %v1256_v27 = vsel %vm1202_vm0, %v1240_v57, 0.0  ;;  %v1265_v29 = vsel %vm1202_vm0, %v1243_v62, 0.0  ;;  %v1241_v38 = vmul.f32 %v2430_v58, %v2430_v58 }
 0x131   :  { %v1237_v63 = vmul.f32 %v2444_v43, %v2444_v43  ;;  %v1206_v0 = vsel %vm1202_vm0, %v2444_v43, 0.0  ;;  %v2485_v4 = vpop.permute.xlu1 %1377 }
 0x132   :  { %1213 = vadd.xlane.f32.xlu0 %v1212_v37  ;;  %v1259_v40 = vsel %vm1202_vm0, %v1241_v38, 0.0  ;;  %v2487_v17 = vpop.permute.xlu0 %1398 }
 0x133   :  { %1251 = vadd.xlane.f32.xlu1 %v1250_v47  ;;  %v1247_v36 = vsel %vm1202_vm0, %v1237_v63, 0.0 }
 0x135   :  { %v2489_v28 = vpop.permute.xlu1 %1403 }
 0x136   :  { %1225 = vadd.xlane.f32.xlu0 %v1224_v39  ;;  %v2491_v30 = vpop.permute.xlu0 %1408 }
 0x137   :  { %1263 = vadd.xlane.f32.xlu1 %v1262_v20 }
 0x139   :  { %v2493_v46 = vpop.permute.xlu1 %1413 }
 0x13a   :  { %1219 = vadd.xlane.f32.xlu0 %v1218_v15 }
 0x13b   :  { %1245 = vadd.xlane.f32.xlu1 %v1244_v51 }
 0x13e   :  { %1254 = vadd.xlane.f32.xlu0 %v1253_v61 }
 0x13f   :  { %1257 = vadd.xlane.f32.xlu1 %v1256_v27 }
 0x142   :  { %1266 = vadd.xlane.f32.xlu0 %v1265_v29 }
 0x143   :  { %1207 = vadd.xlane.f32.xlu1 %v1206_v0 }
 0x146   :  { %1248 = vadd.xlane.f32.xlu0 %v1247_v36 }
 0x14a   :  { %1260 = vadd.xlane.f32.xlu0 %v1259_v40 }
 0x154   :  { %1423 = vperm.xlu1 %1778, %v1393_v42  }
 0x158   :  { %1433 = vperm.xlu1 %1778, %v1395_v45  }
 0x160   :  { %1418 = vperm.xlu0 %1777, %v1392_v60  }
 0x164   :  { %1428 = vperm.xlu0 %1777, %v1394_v6  }
 0x1b3   :  { %v1211_v3 = vpop.xlane.xlu0 %1210 }
 0x1b4   :  { %v1223_v5 = vpop.xlane.xlu1 %1222  ;;  %v1230_v23 = vmul.f32 0.125, %v1211_v3 }
 0x1b5   :  { %v2495_v16 = vmul.f32 0.125, %v1223_v5 }
 0x1b6   :  { %v1278_v18 = vmul.f32 %v1230_v23, %v1230_v23 }
 0x1b7   :  { %v1205_v2 = vpop.xlane.xlu0 %1204  ;;  %v1282_v37 = vmul.f32 %v2495_v16, %v2495_v16 }
 0x1b8   :  { %v1217_v21 = vpop.xlane.xlu1 %1216  ;;  %v2499_v47 = vmul.f32 0.125, %v1205_v2 }
 0x1b9   :  { %v2501_v44 = vmul.f32 0.125, %v1217_v21 }
 0x1ba   :  { %v1276_v20 = vmul.f32 %v2499_v47, %v2499_v47 }
 0x1bb   :  { %v1214_v25 = vpop.xlane.xlu0 %1213  ;;  %v1280_v27 = vmul.f32 %v2501_v44, %v2501_v44 }
 0x1bc   :  { %v1252_v59 = vpop.xlane.xlu1 %1251  ;;  %v2503_v39 = vmul.f32 0.125, %v1214_v25 }
 0x1bd   :  { %v1270_v32 = vmul.f32 0.125, %v1252_v59 }
 0x1be   :  { %v1279_v51 = vmul.f32 %v2503_v39, %v2503_v39 }
 0x1bf   :  { %v1286_v34 = vsub.f32 %v1270_v32, %v1278_v18  ;;  %v1226_v35 = vpop.xlane.xlu0 %1225 }
 0x1c0   :  { %v1264_v31 = vpop.xlane.xlu1 %1263  ;;  %v2509_v57 = vmul.f32 0.125, %v1226_v35 }
 0x1c1   :  { %v1294_v49 = vmax.f32 %v1286_v34, 0.0  ;;  %v1274_v50 = vmul.f32 0.125, %v1264_v31  ;;  %v1302_v31 = vsub.f32 %v2396_v8, %v1230_v23  ;;  %v1306_v8 = vsub.f32 %v2398_v12, %v2495_v16 }
 0x1c2   :  { %v1283_v42 = vmul.f32 %v2509_v57, %v2509_v57  ;;  %v1304_v16 = vsub.f32 %v2404_v33, %v2501_v44 }
 0x1c3   :  { %v1310_v24 = vadd.f32 1e-05, %v1294_v49  ;;  %v1290_v26 = vsub.f32 %v1274_v50, %v1282_v37  ;;  %v1220_v55 = vpop.xlane.xlu0 %1219 }
 0x1c4   :  { %v1246_v41 = vpop.xlane.xlu1 %1245  ;;  %v2517_v25 = vmul.f32 0.125, %v1220_v55 }
 0x1c5   :  { %1903 = vrsqrt.f32 %v1310_v24  ;;  %v1298_v22 = vmax.f32 %v1290_v26, 0.0  ;;  %v1268_v52 = vmul.f32 0.125, %v1246_v41 }
 0x1c6   :  { %v1281_v55 = vmul.f32 %v2517_v25, %v2517_v25 }
 0x1c7   :  { %v1314_v54 = vadd.f32 1e-05, %v1298_v22  ;;  %v1284_v15 = vsub.f32 %v1268_v52, %v1276_v20  ;;  %v1255_v48 = vpop.xlane.xlu0 %1254 }
 0x1c8   :  { %v1258_v61 = vpop.xlane.xlu1 %1257  ;;  %v1271_v62 = vmul.f32 0.125, %v1255_v48 }
 0x1c9   :  { %v1292_v29 = vmax.f32 %v1284_v15, 0.0  ;;  %v1272_v63 = vmul.f32 0.125, %v1258_v61  ;;  %1905 = vrsqrt.f32 %v1314_v54 }
 0x1ca   :  { %v1287_v0 = vsub.f32 %v1271_v62, %v1279_v51  ;;  %v1300_v51 = vsub.f32 %v2400_v14, %v2499_v47 }
 0x1cb   :  { %v1308_v36 = vadd.f32 1e-05, %v1292_v29  ;;  %v1288_v38 = vsub.f32 %v1272_v63, %v1280_v27  ;;  %v1267_v40 = vpop.xlane.xlu0 %1266 }
 0x1cc   :  { %v1295_v45 = vmax.f32 %v1287_v0, 0.0  ;;  %v1208_v60 = vpop.xlane.xlu1 %1207  ;;  %v1275_v6 = vmul.f32 0.125, %v1267_v40 }
 0x1cd   :  { %1907 = vrsqrt.f32 %v1308_v36  ;;  %v1296_v3 = vmax.f32 %v1288_v38, 0.0  ;;  %v2515_v5 = vmul.f32 0.125, %v1208_v60 }
 0x1ce   :  { %v1311_v2 = vadd.f32 1e-05, %v1295_v45  ;;  %v1291_v21 = vsub.f32 %v1275_v6, %v1283_v42  ;;  %v1307_v45 = vsub.f32 %v2420_v13, %v2509_v57  ;;  %v1305_v6 = vsub.f32 %v2430_v58, %v2517_v25 }
 0x1cf   :  { %v1312_v59 = vadd.f32 1e-05, %v1296_v3  ;;  %v1249_v18 = vpop.xlane.xlu0 %1248  ;;  %v1277_v32 = vmul.f32 %v2515_v5, %v2515_v5 }
 0x1d0   :  { %1909 = vrsqrt.f32 %v1311_v2  ;;  %v1299_v34 = vmax.f32 %v1291_v21, 0.0  ;;  %v1269_v35 = vmul.f32 0.125, %v1249_v18  ;;  %v1424_v38 = vpop.permute.xlu1 %1423 }
 0x1d1   :  { %1911 = vrsqrt.f32 %v1312_v59 }
 0x1d2   :  { %v1904_v37 = vpop.eup %1903  ;;  %v1315_v49 = vadd.f32 1e-05, %v1299_v34  ;;  %v1285_v50 = vsub.f32 %v1269_v35, %v1277_v32 }
 0x1d3   :  { %v1326_v24 = vmul.f32 %v1904_v37, %v1302_v31  ;;  %v1261_v26 = vpop.xlane.xlu0 %1260 }
 0x1d4   :  { %1913 = vrsqrt.f32 %v1315_v49  ;;  %v1293_v41 = vmax.f32 %v1285_v50, 0.0  ;;  %v1273_v20 = vmul.f32 0.125, %v1261_v26  ;;  %v1434_v44 = vpop.permute.xlu1 %1433 }
 0x1d5   :  { %v1382_v22 = vmul.f32 %v2473_v9, %v1326_v24 }
 0x1d6   :  { %v1309_v52 = vadd.f32 1e-05, %v1293_v41  ;;  %v1289_v54 = vsub.f32 %v1273_v20, %v1281_v55  ;;  %v1906_v15 = vpop.eup %1905 }
 0x1d7   :  { %v1438_v48 = vadd.f32 %v2491_v30, %v1382_v22  ;;  %v1330_v62 = vmul.f32 %v1906_v15, %v1306_v8  ;;  %v1303_v30 = vsub.f32 %v2410_v19, %v2503_v39 }
 0x1d8   :  { %1915 = vrsqrt.f32 %v1309_v52  ;;  %v1297_v23 = vmax.f32 %v1289_v54, 0.0 }
 0x1d9   :  { %1446 = vst.msk [vmem:[%s2587_s5 + $0x10] sm:$0xff] %vm1202_vm0, %v1438_v48  ;;  %v1386_v0 = vmul.f32 %v2483_v1, %v1330_v62 }
 0x1da   :  { %v1908_v61 = vpop.eup %1907  ;;  %v1313_v9 = vadd.f32 1e-05, %v1297_v23 }
 0x1db   :  { %v1324_v27 = vmul.f32 %v1908_v61, %v1300_v51  ;;  %v1419_v29 = vpop.permute.xlu0 %1418 }
 0x1dc   :  { %1917 = vrsqrt.f32 %v1313_v9 }
 0x1dd   :  { %v1910_v12 = vpop.eup %1909  ;;  %v1380_v14 = vmul.f32 %v2471_v7, %v1324_v27 }
 0x1de   :  { %v1912_v47 = vpop.eup %1911  ;;  %v1327_v63 = vmul.f32 %v1910_v12, %v1303_v30 }
 0x1df   :  { %v1436_v36 = vadd.f32 %v2487_v17, %v1380_v14  ;;  %v1328_v40 = vmul.f32 %v1912_v47, %v1304_v16  ;;  %v1429_v42 = vpop.permute.xlu0 %1428 }
 0x1e0   :  { %v1383_v19 = vmul.f32 %v2477_v11, %v1327_v63  ;;  %v1442_v39 = vadd.f32 %v1429_v42, %v1386_v0  ;;  %v1301_v11 = vsub.f32 %v2444_v43, %v2515_v5 }
 0x1e1   :  { %v1914_v60 = vpop.eup %1913  ;;  %1444 = vst.msk [vmem:[%s2587_s5] sm:$0xff] %vm1202_vm0, %v1436_v36  ;;  %v1384_v33 = vmul.f32 %v2479_v53, %v1328_v40 }
 0x1e2   :  { %v1439_v7 = vadd.f32 %v2493_v46, %v1383_v19  ;;  %v1331_v1 = vmul.f32 %v1914_v60, %v1307_v45  ;;  %1450 = vst.msk [vmem:[%s2587_s5 + $0x30] sm:$0xff] %vm1202_vm0, %v1442_v39 }
 0x1e3   :  { %v1440_v13 = vadd.f32 %v1419_v29, %v1384_v33 }
 0x1e4   :  { %v1387_v17 = vmul.f32 %v2485_v4, %v1331_v1  ;;  %1447 = vst.msk [vmem:[%s2587_s5 + $0x18] sm:$0xff] %vm1202_vm0, %v1439_v7 }
 0x1e5   :  { %v1916_v53 = vpop.eup %1915  ;;  %1448 = vst.msk [vmem:[%s2587_s5 + $0x20] sm:$0xff] %vm1202_vm0, %v1440_v13 }
 0x1e6   :  { %v1325_v46 = vmul.f32 %v1916_v53, %v1301_v11  ;;  %v1443_v57 = vadd.f32 %v1434_v44, %v1387_v17 }
 0x1e8   :  { %v1381_v43 = vmul.f32 %v2475_v10, %v1325_v46  ;;  %1451 = vst.msk [vmem:[%s2587_s5 + $0x38] sm:$0xff] %vm1202_vm0, %v1443_v57 }
 0x1e9   :  { %v1918_v4 = vpop.eup %1917 }
 0x1ea   :  { %v1437_v3 = vadd.f32 %v2489_v28, %v1381_v43  ;;  %v1329_v5 = vmul.f32 %v1918_v4, %v1305_v6 }
 0x1ec   :  { %1445 = vst.msk [vmem:[%s2587_s5 + $0x8] sm:$0xff] %vm1202_vm0, %v1437_v3  ;;  %v1385_v2 = vmul.f32 %v2481_v56, %v1329_v5 }
 0x1ee   :  { %v1441_v21 = vadd.f32 %v1424_v38, %v1385_v2 }
 0x1f0   :  { %1449 = vst.msk [vmem:[%s2587_s5 + $0x28] sm:$0xff] %vm1202_vm0, %v1441_v21 }

// kernel: pb_fcn2_forward.28
= control target key start
LH: loop header
LB: loop body
LE: loop exit
PB: predicated region body
PF: predicated region fallthrough
CT: control target
= control target key end

     0   :  { %v877_v1 = vmov 0   ;;  %vm398_vm0 = vcmask 523264   ;;  %vm552_vm1 = vcmask 261120   ;;  %s1152_s0 = inlined_call_operand.vmem [shape: bf16[576,32], index: 0, kind: input, shape index: {}]   ;;  %s1153_s1 = inlined_call_operand.vmem [shape: bf16[32,576], index: 1, kind: input, shape index: {}]   ;;  %s1154_s2 = inlined_call_operand.vmem [shape: f32[32,1], index: 2, kind: input, shape index: {}]   ;;  %s1155_s3 = inlined_call_operand.vmem [shape: f32[32,1], index: 3, kind: input, shape index: {}]   ;;  %s1156_s4 = inlined_call_operand.vmem [shape: f32[32,1], index: 4, kind: input, shape index: {}]   ;;  %s1157_s5 = inlined_call_operand.vmem [shape: f32[32,32], index: 5, kind: input, shape index: {}]   ;;  %s1158_s6 = inlined_call_operand.vmem [shape: f32[32,32], index: 6, kind: output, shape index: {}]  }
   0x1   :  { %v819_v0 = vld [vmem:[%s1152_s0 + $0x78] sm:$0xff]   ;;  %818 = vset.pattern.permute.xlu1 %v877_v1  ;;  %817 = vset.pattern.permute.xlu0 %v877_v1  ;;  %v823_v5 = vld [vmem:[%s1152_s0 + $0x70] sm:$0xff]   ;;  %v827_v9 = vld [vmem:[%s1152_s0 + $0x68] sm:$0xff]  }
   0x2   :  { %v820_v2 = vld [vmem:[%s1152_s0 + $0xf8] sm:$0xff]   ;;  %742 = vmatprep.subr.bf16.mxu0 %v819_v0  ;;  %v824_v6 = vld [vmem:[%s1152_s0 + $0xf0] sm:$0xff]   ;;  %v828_v10 = vld [vmem:[%s1152_s0 + $0xe8] sm:$0xff]  }
   0x3   :  { %v821_v3 = vld [vmem:[%s1152_s0 + $0x38] sm:$0xff]   ;;  %770 = vmatprep.subr.bf16.mxu1 %v820_v2  ;;  %v825_v7 = vld [vmem:[%s1152_s0 + $0x30] sm:$0xff]   ;;  %v829_v11 = vld [vmem:[%s1152_s0 + $0x28] sm:$0xff]  }
   0x4   :  { %v822_v4 = vld [vmem:[%s1152_s0 + $0xb8] sm:$0xff]   ;;  %743 = vmatpush3.bf16.msra.mxu0 %v821_v3  ;;  %v826_v8 = vld [vmem:[%s1152_s0 + $0xb0] sm:$0xff]   ;;  %v830_v12 = vld [vmem:[%s1152_s0 + $0xa8] sm:$0xff]  }
   0x5   :  { %771 = vmatpush3.bf16.msra.mxu1 %v822_v4  ;;  %744 = vmatprep.subr.bf16.mxu0 %v823_v5  ;;  %v831_v13 = vld [vmem:[%s1152_s0 + $0x60] sm:$0xff]   ;;  %v835_v17 = vld [vmem:[%s1152_s0 + $0x58] sm:$0xff]   ;;  %v839_v21 = vld [vmem:[%s1152_s0 + $0x50] sm:$0xff]  }
   0x6   :  { %772 = vmatprep.subr.bf16.mxu1 %v824_v6  ;;  %v832_v14 = vld [vmem:[%s1152_s0 + $0xe0] sm:$0xff]   ;;  %v836_v18 = vld [vmem:[%s1152_s0 + $0xd8] sm:$0xff]   ;;  %v840_v22 = vld [vmem:[%s1152_s0 + $0xd0] sm:$0xff]  }
   0x7   :  { %v833_v15 = vld [vmem:[%s1152_s0 + $0x20] sm:$0xff]   ;;  %v837_v19 = vld [vmem:[%s1152_s0 + $0x18] sm:$0xff]   ;;  %v841_v23 = vld [vmem:[%s1152_s0 + $0x10] sm:$0xff]  }
   0x8   :  { %745 = vmatpush3.bf16.msra.mxu0 %v825_v7  ;;  %v834_v16 = vld [vmem:[%s1152_s0 + $0xa0] sm:$0xff]   ;;  %v838_v20 = vld [vmem:[%s1152_s0 + $0x98] sm:$0xff]   ;;  %v842_v24 = vld [vmem:[%s1152_s0 + $0x90] sm:$0xff]  }
   0x9   :  { %773 = vmatpush3.bf16.msra.mxu1 %v826_v8  ;;  %746 = vmatprep.subr.bf16.mxu0 %v827_v9  ;;  %v843_v25 = vld [vmem:[%s1152_s0 + $0x48] sm:$0xff]   ;;  %v847_v29 = vld [vmem:[%s1152_s0 + $0x40] sm:$0xff]   ;;  %v857_v37 = vld [vmem:[%s1152_s0 + $0x118] sm:$0xff]  }
   0xa   :  { %774 = vmatprep.subr.bf16.mxu1 %v828_v10  ;;  %v844_v26 = vld [vmem:[%s1152_s0 + $0xc8] sm:$0xff]   ;;  %v848_v30 = vld [vmem:[%s1152_s0 + $0xc0] sm:$0xff]   ;;  %v858_v38 = vld [vmem:[%s1152_s0 + $0x110] sm:$0xff]  }
   0xb   :  { %v845_v27 = vld [vmem:[%s1152_s0 + $0x8] sm:$0xff]   ;;  %v849_v31 = vld [vmem:[%s1152_s0] sm:$0xff]   ;;  %v110_v46 = vld [vmem:[%s1154_s2 + $0x10] sm:$0xff] }
   0xc   :  { %747 = vmatpush3.bf16.msra.mxu0 %v829_v11  ;;  %v846_v28 = vld [vmem:[%s1152_s0 + $0x88] sm:$0xff]   ;;  %v850_v32 = vld [vmem:[%s1152_s0 + $0x80] sm:$0xff]   ;;  %124 = vperm.xlu1 %818, %v110_v46   ;;  %v111_v48 = vld [vmem:[%s1154_s2 + $0x18] sm:$0xff] }
   0xd   :  { %775 = vmatpush3.bf16.msra.mxu1 %v830_v12  ;;  %748 = vmatprep.subr.bf16.mxu0 %v831_v13  ;;  %v851_v33 = vld [vmem:[%s1153_s1] ss:$20 sps:$4 sm:$0xff]   ;;  %v853_v34 = vld [vmem:[%s1153_s1 + $0x4] ss:$20 sps:$4 sm:$0xff]   ;;  %v854_v35 = vld [vmem:[%s1153_s1 + $0x8] ss:$20 sps:$4 sm:$0xff]  }
   0xe   :  { %776 = vmatprep.subr.bf16.mxu1 %v832_v14  ;;  %v856_v36 = vld [vmem:[%s1153_s1 + $0xc] ss:$20 sps:$4 sm:$0xff]   ;;  %437 = vmatprep.mubr.bf16.mxu0 %v853_v34  ;;  %v861_v40 = vld [vmem:[%s1153_s1 + $0x34] ss:$20 sps:$4 sm:$0xff]   ;;  %v864_v43 = vld [vmem:[%s1153_s1 + $0x30] ss:$20 sps:$4 sm:$0xff]  }
   0xf   :  { %486 = vmatprep.mubr.bf16.mxu1 %v856_v36  ;;  %v859_v39 = vld [vmem:[%s1153_s1 + $0x2c] ss:$20 sps:$4 sm:$0xff]   ;;  %v863_v41 = vld [vmem:[%s1153_s1 + $0x28] ss:$20 sps:$4 sm:$0xff]   ;;  %v867_v44 = vld [vmem:[%s1153_s1 + $0x10] ss:$20 sps:$4 sm:$0xff]  }
  0x10   :  { %749 = vmatpush3.bf16.msra.mxu0 %v833_v15  ;;  %v865_v42 = vld [vmem:[%s1152_s0 + $0x108] sm:$0xff]   ;;  %v866_v45 = vld [vmem:[%s1152_s0 + $0x100] sm:$0xff]   ;;  %129 = vperm.xlu1 %818, %v111_v48   ;;  %v620_v53 = vld [vmem:[%s1155_s3 + $0x10] sm:$0xff] }
  0x11   :  { %777 = vmatpush3.bf16.msra.mxu1 %v834_v16  ;;  %750 = vmatprep.subr.bf16.mxu0 %v835_v17  ;;  %v108_v47 = vld [vmem:[%s1154_s2] sm:$0xff]  ;;  %v109_v49 = vld [vmem:[%s1154_s2 + $0x8] sm:$0xff]  ;;  %v621_v54 = vld [vmem:[%s1155_s3 + $0x18] sm:$0xff] }
  0x12   :  { %778 = vmatprep.subr.bf16.mxu1 %v836_v18  ;;  %114 = vperm.xlu0 %817, %v108_v47   ;;  %v868_v50 = vld [vmem:[%s1153_s1 + $0x38] ss:$20 sps:$4 sm:$0xff]   ;;  %v618_v51 = vld [vmem:[%s1155_s3] sm:$0xff] }
  0x13   :  { %v619_v52 = vld [vmem:[%s1155_s3 + $0x8] sm:$0xff]  ;;  %v649_v48 = vld [vmem:[%s1156_s4 + $0x18] sm:$0xff] }
  0x14   :  { %751 = vmatpush3.bf16.msra.mxu0 %v837_v19  ;;  %624 = vperm.xlu1 %818, %v618_v51   ;;  %v647_v47 = vld [vmem:[%s1156_s4 + $0x8] sm:$0xff] }
  0x15   :  { %779 = vmatpush3.bf16.msra.mxu1 %v838_v20  ;;  %752 = vmatprep.subr.bf16.mxu0 %v839_v21 }
  0x16   :  { %780 = vmatprep.subr.bf16.mxu1 %v840_v22  ;;  %119 = vperm.xlu0 %817, %v109_v49   ;;  %v646_v49 = vld [vmem:[%s1156_s4] sm:$0xff] }
  0x18   :  { %753 = vmatpush3.bf16.msra.mxu0 %v841_v23  ;;  %634 = vperm.xlu1 %818, %v620_v53  }
  0x19   :  { %781 = vmatpush3.bf16.msra.mxu1 %v842_v24  ;;  %754 = vmatprep.subr.bf16.mxu0 %v843_v25 }
  0x1a   :  { %782 = vmatprep.subr.bf16.mxu1 %v844_v26  ;;  %629 = vperm.xlu0 %817, %v619_v52  }
  0x1c   :  { %755 = vmatpush3.bf16.msra.mxu0 %v845_v27  ;;  %639 = vperm.xlu1 %818, %v621_v54  }
  0x1d   :  { %783 = vmatpush3.bf16.msra.mxu1 %v846_v28  ;;  %756 = vmatprep.subr.bf16.mxu0 %v847_v29 }
  0x1e   :  { %784 = vmatprep.subr.bf16.mxu1 %v848_v30 }
  0x20   :  { %757 = vmatpush3.bf16.msra.mxu0 %v849_v31 }
  0x21   :  { %785 = vmatpush3.bf16.msra.mxu1 %v850_v32  ;;  %804 = vmatprep.subr.bf16.mxu0 %v857_v37 }
  0x23   :  { %438 = vmatmul.mubr.bf16.vlgmr.msra.gmra.mxu0 %v851_v33 }
  0x24   :  { %487 = vmatmul.mubr.bf16.vlgmr.msra.gmra.mxu1 %v854_v35  ;;  %805 = vmatpush3.bf16.msra.mxu0 %v857_v37 }
  0x25   :  { %806 = vmatprep.subr.bf16.mxu0 %v858_v38  ;;  %445 = vmatprep.mubr.bf16.mxu0 %v859_v39 }
  0x26   :  { %494 = vmatprep.mubr.bf16.mxu1 %v861_v40 }
  0x28   :  { %807 = vmatpush3.bf16.msra.mxu0 %v858_v38 }
  0x29   :  { %808 = vmatprep.subr.bf16.mxu0 %v865_v42 }
  0x2b   :  { %446 = vmatmul.mubr.bf16.gmra.mxu0 %v863_v41 }
  0x2c   :  { %495 = vmatmul.mubr.bf16.gmra.mxu1 %v864_v43  ;;  %812 = vmatprep.mubr.msk.bf16.mxu0 %vm398_vm0, %v867_v44 }
  0x2d   :  { %809 = vmatpush3.bf16.msra.mxu0 %v865_v42 }
  0x2e   :  { %810 = vmatprep.subr.bf16.mxu0 %v866_v45 }
  0x31   :  { %811 = vmatpush3.bf16.msra.mxu0 %v866_v45 }
  0x34   :  { %813 = vmatmul.mubr.msk.bf16.vlgmr.msra.gmra.mxu0 %vm398_vm0, %v868_v50  ;;  %v648_v50 = vld [vmem:[%s1156_s4 + $0x10] sm:$0xff] }
  0x87   :  { %v125_v0 = vpop.permute.xlu1 %124 }
  0x8b   :  { %v130_v17 = vpop.permute.xlu1 %129 }
  0x8d   :  { %v115_v3 = vpop.permute.xlu0 %114 }
  0x8f   :  { %v625_v51 = vpop.permute.xlu1 %624 }
  0x91   :  { %v120_v19 = vpop.permute.xlu0 %119 }
  0x93   :  { %v635_v52 = vpop.permute.xlu1 %634 }
  0x95   :  { %v1117_v53 = vpop.permute.xlu0 %629 }
  0x97   :  { %v640_v54 = vpop.permute.xlu1 %639 }
  0xe3   :  { %v758_v55 = vpop.f32.mrf.mxu0 }
  0xe4   :  { %v786_v56 = vpop.f32.mrf.mxu1 }
  0xe5   :  { %v759_v57 = vpop.f32.mrf.mxu0 }
  0xe6   :  { %v787_v58 = vpop.f32.mrf.mxu1  ;;  %v760_v2 = vadd.f32 %v759_v57, %v758_v55 }
  0xe7   :  { %v761_v59 = vpop.f32.mrf.mxu0  ;;  %v788_v18 = vadd.f32 %v787_v58, %v786_v56 }
  0xe8   :  { %v789_v60 = vpop.f32.mrf.mxu1  ;;  %v440_v11 = vadd.f32 %v760_v2, %v115_v3 }
  0xe9   :  { %v762_v61 = vpop.f32.mrf.mxu0 }
  0xea   :  { %v790_v62 = vpop.f32.mrf.mxu1  ;;  %v763_v13 = vadd.f32 %v762_v61, %v761_v59  ;;  %v489_v24 = vadd.f32 %v788_v18, %v440_v11 }
  0xeb   :  { %v764_v63 = vpop.f32.mrf.mxu0  ;;  %v791_v32 = vadd.f32 %v790_v62, %v789_v60 }
  0xec   :  { %v792_v1 = vpop.f32.mrf.mxu1  ;;  %v443_v25 = vadd.f32 %v763_v13, %v120_v19 }
  0xed   :  { %v765_v4 = vpop.f32.mrf.mxu0 }
  0xee   :  { %v766_v5 = vadd.f32 %v765_v4, %v764_v63  ;;  %v793_v6 = vpop.f32.mrf.mxu1  ;;  %v492_v37 = vadd.f32 %v791_v32, %v443_v25 }
  0xef   :  { %v767_v7 = vpop.f32.mrf.mxu0  ;;  %v794_v9 = vadd.f32 %v793_v6, %v792_v1 }
  0xf0   :  { %v448_v8 = vadd.f32 %v766_v5, %v125_v0  ;;  %v795_v10 = vpop.f32.mrf.mxu1 }
  0xf1   :  { %v768_v12 = vpop.f32.mrf.mxu0 }
  0xf2   :  { %v769_v14 = vadd.f32 %v768_v12, %v767_v7  ;;  %v796_v15 = vpop.f32.mrf.mxu1  ;;  %v497_v16 = vadd.f32 %v794_v9, %v448_v8 }
  0xf3   :  { %v797_v22 = vadd.f32 %v796_v15, %v795_v10 }
  0xf4   :  { %v451_v20 = vadd.f32 %v769_v14, %v130_v17  ;;  %v814_v21 = vpop.f32.mrf.mxu0 }
  0xf5   :  { %v1077_v23 = vadd.f32 %v814_v21, %v497_v16 }
  0xf6   :  { %v537_v26 = vpop.f32.mrf.mxu0  ;;  %v500_v28 = vadd.f32 %v797_v22, %v451_v20 }
  0xf7   :  { %v1079_v27 = vadd.f32 %v537_v26, %v489_v24  ;;  %v559_v29 = vsel %vm552_vm1, %v1077_v23, 0.0  ;;  %v572_v30 = vmul.f32 %v1077_v23, %v1077_v23 }
  0xf8   :  { %v815_v31 = vpop.f32.mrf.mxu0  ;;  %560 = vadd.xlane.f32.xlu0 %v559_v29 }
  0xf9   :  { %v580_v33 = vsel %vm552_vm1, %v572_v30, 0.0  ;;  %v570_v34 = vmul.f32 %v1079_v27, %v1079_v27  ;;  %v1088_v36 = vadd.f32 %v815_v31, %v500_v28  ;;  %v553_v38 = vsel %vm552_vm1, %v1079_v27, 0.0 }
  0xfa   :  { %v540_v35 = vpop.f32.mrf.mxu0  ;;  %581 = vadd.xlane.f32.xlu1 %v580_v33 }
  0xfb   :  { %v1092_v39 = vadd.f32 %v540_v35, %v492_v37  ;;  %v574_v40 = vsel %vm552_vm1, %v570_v34, 0.0  ;;  %v562_v41 = vsel %vm552_vm1, %v1088_v36, 0.0  ;;  %v573_v42 = vmul.f32 %v1088_v36, %v1088_v36  ;;  %v680_v35 = vld [vmem:[%s1157_s5 + $0x10] sm:$0xff] }
  0xfc   :  { %554 = vadd.xlane.f32.xlu0 %v553_v38 }
  0xfd   :  { %v556_v43 = vsel %vm552_vm1, %v1092_v39, 0.0  ;;  %v583_v44 = vsel %vm552_vm1, %v573_v42, 0.0  ;;  %v571_v45 = vmul.f32 %v1092_v39, %v1092_v39 }
  0xfe   :  { %575 = vadd.xlane.f32.xlu1 %v574_v40 }
  0xff   :  { %v577_v46 = vsel %vm552_vm1, %v571_v45, 0.0 }
 0x100   :  { %563 = vadd.xlane.f32.xlu0 %v562_v41 }
 0x102   :  { %557 = vadd.xlane.f32.xlu1 %v556_v43 }
 0x104   :  { %584 = vadd.xlane.f32.xlu0 %v583_v44 }
 0x108   :  { %578 = vadd.xlane.f32.xlu0 %v577_v46 }
 0x113   :  { %657 = vperm.xlu1 %818, %v647_v47  }
 0x117   :  { %667 = vperm.xlu1 %818, %v649_v48  }
 0x11e   :  { %652 = vperm.xlu0 %817, %v646_v49  }
 0x122   :  { %662 = vperm.xlu0 %817, %v648_v50  }
 0x181   :  { %v561_v55 = vpop.xlane.xlu0 %560 }
 0x182   :  { %v568_v56 = vmul.f32 0.03125, %v561_v55 }
 0x183   :  { %v582_v57 = vpop.xlane.xlu1 %581 }
 0x184   :  { %v592_v58 = vmul.f32 %v568_v56, %v568_v56  ;;  %v588_v59 = vmul.f32 0.03125, %v582_v57  ;;  %v604_v22 = vsub.f32 %v1077_v23, %v568_v56 }
 0x185   :  { %v555_v60 = vpop.xlane.xlu0 %554 }
 0x186   :  { %v596_v61 = vsub.f32 %v588_v59, %v592_v58  ;;  %v566_v62 = vmul.f32 0.03125, %v555_v60 }
 0x187   :  { %v576_v63 = vpop.xlane.xlu1 %575 }
 0x188   :  { %v600_v0 = vmax.f32 %v596_v61, 0.0  ;;  %v590_v1 = vmul.f32 %v566_v62, %v566_v62  ;;  %v586_v2 = vmul.f32 0.03125, %v576_v63  ;;  %v602_v29 = vsub.f32 %v1079_v27, %v566_v62  ;;  %v678_v27 = vld [vmem:[%s1157_s5] sm:$0xff] }
 0x189   :  { %v564_v3 = vpop.xlane.xlu0 %563 }
 0x18a   :  { %v608_v4 = vadd.f32 1e-05, %v600_v0  ;;  %v594_v5 = vsub.f32 %v586_v2, %v590_v1  ;;  %v569_v6 = vmul.f32 0.03125, %v564_v3 }
 0x18b   :  { %v558_v7 = vpop.xlane.xlu1 %557 }
 0x18c   :  { %869 = vrsqrt.f32 %v608_v4  ;;  %v598_v8 = vmax.f32 %v594_v5, 0.0  ;;  %v593_v11 = vmul.f32 %v569_v6, %v569_v6  ;;  %v567_v12 = vmul.f32 0.03125, %v558_v7 }
 0x18d   :  { %v585_v9 = vpop.xlane.xlu0 %584  ;;  %v605_v23 = vsub.f32 %v1088_v36, %v569_v6 }
 0x18e   :  { %v606_v10 = vadd.f32 1e-05, %v598_v8  ;;  %v589_v13 = vmul.f32 0.03125, %v585_v9  ;;  %v591_v16 = vmul.f32 %v567_v12, %v567_v12  ;;  %v603_v46 = vsub.f32 %v1092_v39, %v567_v12 }
 0x18f   :  { %v658_v40 = vpop.permute.xlu1 %657 }
 0x190   :  { %871 = vrsqrt.f32 %v606_v10  ;;  %v597_v14 = vsub.f32 %v589_v13, %v593_v11 }
 0x191   :  { %v579_v15 = vpop.xlane.xlu0 %578 }
 0x192   :  { %v601_v17 = vmax.f32 %v597_v14, 0.0  ;;  %v587_v18 = vmul.f32 0.03125, %v579_v15 }
 0x193   :  { %v668_v36 = vpop.permute.xlu1 %667 }
 0x194   :  { %v609_v19 = vadd.f32 1e-05, %v601_v17  ;;  %v595_v20 = vsub.f32 %v587_v18, %v591_v16 }
 0x196   :  { %873 = vrsqrt.f32 %v609_v19  ;;  %v599_v21 = vmax.f32 %v595_v20, 0.0 }
 0x198   :  { %v607_v24 = vadd.f32 1e-05, %v599_v21 }
 0x199   :  { %v870_v25 = vpop.eup %869  ;;  %v653_v26 = vpop.permute.xlu0 %652 }
 0x19a   :  { %875 = vrsqrt.f32 %v607_v24  ;;  %v616_v28 = vmul.f32 %v870_v25, %v604_v22 }
 0x19c   :  { %v644_v30 = vmul.f32 %v635_v52, %v616_v28  ;;  %v681_v52 = vld [vmem:[%s1157_s5 + $0x18] sm:$0xff] }
 0x19d   :  { %v872_v31 = vpop.eup %871  ;;  %v663_v32 = vpop.permute.xlu0 %662 }
 0x19e   :  { %v614_v33 = vmul.f32 %v872_v31, %v602_v29  ;;  %v672_v34 = vadd.f32 %v663_v32, %v644_v30 }
 0x1a0   :  { %v642_v37 = vmul.f32 %v625_v51, %v614_v33  ;;  %v676_v38 = vmax.f32 %v672_v34, 0.0 }
 0x1a2   :  { %v670_v41 = vadd.f32 %v653_v26, %v642_v37  ;;  %v684_v42 = vadd.f32 %v680_v35, %v676_v38 }
 0x1a3   :  { %v874_v43 = vpop.eup %873 }
 0x1a4   :  { %v617_v44 = vmul.f32 %v874_v43, %v605_v23  ;;  %v674_v45 = vmax.f32 %v670_v41, 0.0  ;;  %688 = vst.msk [vmem:[%s1158_s6 + $0x10] sm:$0xff] %vm552_vm1, %v684_v42 }
 0x1a6   :  { %v645_v47 = vmul.f32 %v640_v54, %v617_v44  ;;  %v682_v48 = vadd.f32 %v678_v27, %v674_v45  ;;  %v679_v54 = vld [vmem:[%s1157_s5 + $0x8] sm:$0xff] }
 0x1a7   :  { %v876_v49 = vpop.eup %875 }
 0x1a8   :  { %v615_v50 = vmul.f32 %v876_v49, %v603_v46  ;;  %v673_v51 = vadd.f32 %v668_v36, %v645_v47  ;;  %686 = vst.msk [vmem:[%s1158_s6] sm:$0xff] %vm552_vm1, %v682_v48 }
 0x1aa   :  { %v643_v55 = vmul.f32 %v1117_v53, %v615_v50  ;;  %v677_v56 = vmax.f32 %v673_v51, 0.0 }
 0x1ac   :  { %v671_v57 = vadd.f32 %v658_v40, %v643_v55  ;;  %v685_v39 = vadd.f32 %v681_v52, %v677_v56 }
 0x1ae   :  { %v675_v58 = vmax.f32 %v671_v57, 0.0  ;;  %689 = vst.msk [vmem:[%s1158_s6 + $0x18] sm:$0xff] %vm552_vm1, %v685_v39 }
 0x1b0   :  { %v683_v59 = vadd.f32 %v679_v54, %v675_v58 }
 0x1b2   :  { %687 = vst.msk [vmem:[%s1158_s6 + $0x8] sm:$0xff] %vm552_vm1, %v683_v59 }

// kernel: pb_fcn2_forward.29
= control target key start
LH: loop header
LB: loop body
LE: loop exit
PB: predicated region body
PF: predicated region fallthrough
CT: control target
= control target key end

     0   :  { %v440_v1 = vmov 0.0   ;;  %vm441_vm0 = vmmov 0   ;;  %v442_v3 = vmov 0   ;;  %vm199_vm1 = vcmask 261120   ;;  %s571_s0 = inlined_call_operand.vmem [shape: bf16[288,128], index: 0, kind: input, shape index: {}]   ;;  %s572_s1 = inlined_call_operand.vmem [shape: bf16[16,288], index: 1, kind: input, shape index: {}]   ;;  %s573_s2 = inlined_call_operand.vmem [shape: f32[16,1], index: 2, kind: input, shape index: {}]   ;;  %s574_s3 = inlined_call_operand.vmem [shape: f32[16,1], index: 3, kind: input, shape index: {}]   ;;  %s575_s4 = inlined_call_operand.vmem [shape: f32[16,1], index: 4, kind: input, shape index: {}]   ;;  %s576_s5 = inlined_call_operand.vmem [shape: f32[16,128], index: 5, kind: input, shape index: {}]   ;;  %s577_s6 = inlined_call_operand.vmem [shape: f32[16,128], index: 6, kind: output, shape index: {}]  }
   0x1   :  { %v414_v0 = vld [vmem:[%s571_s0 + $0x78] sm:$0xff]   ;;  %401 = vmatprep.subr.bf16.mxu1 %v440_v1  ;;  %405 = vmatprep.mubr.msk.bf16.mxu1 %vm441_vm0, %v440_v1  ;;  %v416_v4 = vld [vmem:[%s571_s0 + $0x70] sm:$0xff]   ;;  %v418_v6 = vld [vmem:[%s571_s0 + $0x68] sm:$0xff]  }
   0x2   :  { %v415_v2 = vld [vmem:[%s571_s0 + $0x38] sm:$0xff]   ;;  %412 = vset.pattern.permute.xlu0 %v442_v3  ;;  %413 = vset.pattern.permute.xlu1 %v442_v3  ;;  %v417_v5 = vld [vmem:[%s571_s0 + $0x30] sm:$0xff]   ;;  %v419_v7 = vld [vmem:[%s571_s0 + $0x28] sm:$0xff]  }
   0x3   :  { %376 = vmatprep.subr.bf16.mxu0 %v414_v0  ;;  %v420_v8 = vld [vmem:[%s571_s0 + $0x60] sm:$0xff]   ;;  %v422_v10 = vld [vmem:[%s571_s0 + $0x58] sm:$0xff]   ;;  %v428_v11 = vld [vmem:[%s571_s0 + $0x88] sm:$0xff]  }
   0x4   :  { %377 = vmatpush3.bf16.msra.mxu0 %v415_v2  ;;  %v421_v9 = vld [vmem:[%s571_s0 + $0x20] sm:$0xff]   ;;  %v423_v12 = vld [vmem:[%s571_s0 + $0x18] sm:$0xff]   ;;  %v424_v13 = vld [vmem:[%s571_s0 + $0x50] sm:$0xff]   ;;  %402 = vmatpush3.bf16.msra.mxu1 %v428_v11 }
   0x5   :  { %378 = vmatprep.subr.bf16.mxu0 %v416_v4  ;;  %403 = vmatprep.subr.bf16.mxu1 %v440_v1  ;;  %v431_v14 = vld [vmem:[%s571_s0 + $0x80] sm:$0xff]   ;;  %v425_v15 = vld [vmem:[%s571_s0 + $0x10] sm:$0xff]   ;;  %v426_v17 = vld [vmem:[%s571_s0 + $0x48] sm:$0xff]  }
   0x6   :  { %v434_v16 = vld [vmem:[%s572_s1 + $0x4] ss:$12 sps:$4 sm:$0xff]   ;;  %v435_v18 = vld [vmem:[%s572_s1 + $0x8] ss:$12 sps:$4 sm:$0xff]   ;;  %v432_v24 = vld [vmem:[%s572_s1] ss:$12 sps:$4 sm:$0xff]  }
   0x7   :  { %v64_v19 = vld [vmem:[%s573_s2] sm:$0xff]  ;;  %235 = vmatprep.mubr.bf16.mxu0 %v434_v16  ;;  %v65_v20 = vld [vmem:[%s573_s2 + $0x8] sm:$0xff] }
   0x8   :  { %379 = vmatpush3.bf16.msra.mxu0 %v417_v5  ;;  %404 = vmatpush3.bf16.msra.mxu1 %v431_v14  ;;  %v427_v21 = vld [vmem:[%s571_s0 + $0x8] sm:$0xff]   ;;  %v429_v22 = vld [vmem:[%s571_s0 + $0x40] sm:$0xff]  }
   0x9   :  { %380 = vmatprep.subr.bf16.mxu0 %v418_v6  ;;  %68 = vperm.xlu0 %412, %v64_v19   ;;  %v430_v23 = vld [vmem:[%s571_s0] sm:$0xff]   ;;  %v315_v37 = vld [vmem:[%s574_s3 + $0x8] sm:$0xff] }
   0xa   :  { %v314_v36 = vld [vmem:[%s574_s3] sm:$0xff]  ;;  %v329_v46 = vld [vmem:[%s575_s4 + $0x8] sm:$0xff] }
   0xb   :  { %406 = vmatmul.mubr.msk.bf16.vlgmr.msra.gmra.mxu1 %vm199_vm1, %v435_v18  ;;  %v328_v38 = vld [vmem:[%s575_s4] sm:$0xff]  ;;  %v345_v16 = vld [vmem:[%s576_s5 + $0x8] sm:$0xff] }
   0xc   :  { %381 = vmatpush3.bf16.msra.mxu0 %v419_v7  ;;  %v344_v63 = vld [vmem:[%s576_s5] sm:$0xff] }
   0xd   :  { %382 = vmatprep.subr.bf16.mxu0 %v420_v8  ;;  %73 = vperm.xlu0 %412, %v65_v20  }
  0x10   :  { %383 = vmatpush3.bf16.msra.mxu0 %v421_v9 }
  0x11   :  { %384 = vmatprep.subr.bf16.mxu0 %v422_v10 }
  0x14   :  { %385 = vmatpush3.bf16.msra.mxu0 %v423_v12 }
  0x15   :  { %386 = vmatprep.subr.bf16.mxu0 %v424_v13 }
  0x18   :  { %387 = vmatpush3.bf16.msra.mxu0 %v425_v15 }
  0x19   :  { %388 = vmatprep.subr.bf16.mxu0 %v426_v17 }
  0x1c   :  { %389 = vmatpush3.bf16.msra.mxu0 %v427_v21 }
  0x1d   :  { %390 = vmatprep.subr.bf16.mxu0 %v429_v22 }
  0x20   :  { %391 = vmatpush3.bf16.msra.mxu0 %v430_v23 }
  0x23   :  { %236 = vmatmul.mubr.bf16.vlgmr.msra.gmra.mxu0 %v432_v24 }
  0x84   :  { %v69_v32 = vpop.permute.xlu0 %68 }
  0x88   :  { %v74_v42 = vpop.permute.xlu0 %73 }
  0xcb   :  { %v278_v25 = vpop.f32.mrf.mxu1 }
  0xcd   :  { %v407_v26 = vpop.f32.mrf.mxu1 }
  0xcf   :  { %v281_v27 = vpop.f32.mrf.mxu1 }
  0xd1   :  { %v408_v28 = vpop.f32.mrf.mxu1 }
  0xe3   :  { %v392_v29 = vpop.f32.mrf.mxu0 }
  0xe5   :  { %v393_v30 = vpop.f32.mrf.mxu0 }
  0xe6   :  { %v394_v31 = vadd.f32 %v393_v30, %v392_v29 }
  0xe7   :  { %v395_v39 = vpop.f32.mrf.mxu0 }
  0xe8   :  { %v238_v33 = vadd.f32 %v394_v31, %v69_v32 }
  0xe9   :  { %v396_v40 = vpop.f32.mrf.mxu0 }
  0xea   :  { %v279_v34 = vadd.f32 %v278_v25, %v238_v33  ;;  %v397_v41 = vadd.f32 %v396_v40, %v395_v39 }
  0xec   :  { %285 = vadd.xlane.f32.xlu1 %v279_v34  ;;  %v292_v35 = vmul.f32 %v279_v34, %v279_v34  ;;  %v241_v43 = vadd.f32 %v397_v41, %v74_v42 }
  0xee   :  { %294 = vadd.xlane.f32.xlu0 %v292_v35  ;;  %v282_v44 = vadd.f32 %v281_v27, %v241_v43 }
  0xf0   :  { %v293_v45 = vmul.f32 %v282_v44, %v282_v44 }
  0xfd   :  { %318 = vperm.xlu1 %413, %v314_v36  }
 0x101   :  { %323 = vperm.xlu1 %413, %v315_v37  }
 0x105   :  { %332 = vperm.xlu1 %413, %v328_v38  }
 0x129   :  { %287 = vadd.xlane.f32.xlu1 %v282_v44 }
 0x12d   :  { %296 = vadd.xlane.f32.xlu1 %v293_v45 }
 0x13e   :  { %337 = vperm.xlu1 %413, %v329_v46  }
 0x175   :  { %v286_v47 = vpop.xlane.xlu1 %285 }
 0x176   :  { %v290_v48 = vmul.f32 0.0078125, %v286_v47 }
 0x177   :  { %v295_v49 = vpop.xlane.xlu0 %294 }
 0x178   :  { %v300_v50 = vmul.f32 %v290_v48, %v290_v48  ;;  %v298_v51 = vmul.f32 0.0078125, %v295_v49  ;;  %v306_v57 = vsub.f32 %v279_v34, %v290_v48 }
 0x179   :  { %v319_v55 = vpop.permute.xlu1 %318 }
 0x17a   :  { %v302_v52 = vsub.f32 %v298_v51, %v300_v50 }
 0x17c   :  { %v304_v53 = vmax.f32 %v302_v52, 0.0 }
 0x17d   :  { %v324_v56 = vpop.permute.xlu1 %323 }
 0x17e   :  { %v308_v54 = vadd.f32 1e-05, %v304_v53 }
 0x180   :  { %436 = vrsqrt.f32 %v308_v54 }
 0x181   :  { %v333_v61 = vpop.permute.xlu1 %332 }
 0x18d   :  { %v437_v58 = vpop.eup %436 }
 0x18e   :  { %v312_v59 = vmul.f32 %v437_v58, %v306_v57 }
 0x190   :  { %v326_v60 = vmul.f32 %v319_v55, %v312_v59 }
 0x192   :  { %v340_v62 = vadd.f32 %v333_v61, %v326_v60 }
 0x194   :  { %v342_v0 = vmax.f32 %v340_v62, 0.0 }
 0x196   :  { %v346_v1 = vadd.f32 %v344_v63, %v342_v0 }
 0x198   :  { %348 = vst [vmem:[%s577_s6] sm:$0xff] %v346_v1 }
 0x1b2   :  { %v288_v2 = vpop.xlane.xlu1 %287 }
 0x1b3   :  { %v291_v3 = vmul.f32 0.0078125, %v288_v2 }
 0x1b5   :  { %v301_v5 = vmul.f32 %v291_v3, %v291_v3  ;;  %v307_v10 = vsub.f32 %v282_v44, %v291_v3 }
 0x1b6   :  { %v297_v4 = vpop.xlane.xlu1 %296 }
 0x1b7   :  { %v299_v6 = vmul.f32 0.0078125, %v297_v4 }
 0x1b9   :  { %v303_v7 = vsub.f32 %v299_v6, %v301_v5 }
 0x1ba   :  { %v338_v14 = vpop.permute.xlu1 %337 }
 0x1bb   :  { %v305_v8 = vmax.f32 %v303_v7, 0.0 }
 0x1bd   :  { %v309_v9 = vadd.f32 1e-05, %v305_v8 }
 0x1bf   :  { %438 = vrsqrt.f32 %v309_v9 }
 0x1cc   :  { %v439_v11 = vpop.eup %438 }
 0x1cd   :  { %v313_v12 = vmul.f32 %v439_v11, %v307_v10 }
 0x1cf   :  { %v327_v13 = vmul.f32 %v324_v56, %v313_v12 }
 0x1d1   :  { %v341_v15 = vadd.f32 %v338_v14, %v327_v13 }
 0x1d3   :  { %v343_v17 = vmax.f32 %v341_v15, 0.0 }
 0x1d5   :  { %v347_v18 = vadd.f32 %v345_v16, %v343_v17 }
 0x1d7   :  { %349 = vst [vmem:[%s577_s6 + $0x8] sm:$0xff] %v347_v18 }

// kernel: pb_fcn2_forward.31
= control target key start
LH: loop header
LB: loop body
LE: loop exit
PB: predicated region body
PF: predicated region fallthrough
CT: control target
= control target key end

     0   :  { %vm38_vm0 = vcmask 1043456   ;;  %v155_v2 = vmov 0   ;;  %vm34_vm1 = vcmask 64512   ;;  %s204_s0 = inlined_call_operand.vmem [shape: bf16[8,512], index: 0, kind: input, shape index: {}]   ;;  %s205_s2 = inlined_call_operand.vmem [shape: f32[5,1], index: 2, kind: input, shape index: {}]   ;;  %s206_s1 = inlined_call_operand.vmem [shape: bf16[5,8], index: 1, kind: input, shape index: {}]   ;;  %s207_s3 = inlined_call_operand.vmem [shape: f32[5,512], index: 3, kind: output, shape index: {}]  }
   0x1   :  { %v16_v0 = vld [vmem:[%s204_s0] sm:$0xff]  ;;  %v17_v1 = vld [vmem:[%s204_s0 + $0x8] sm:$0xff]  ;;  %83 = vmatprep.mubr.bf16.mxu0 %v155_v2  ;;  %124 = vmatprep.mubr.bf16.mxu1 %v155_v2 }
   0x2   :  { %v142_v3 = vcombine.high %v16_v0, %v16_v0  ;;  %v144_v4 = vcombine.high %v17_v1, %v17_v1  ;;  %v141_v5 = vcombine.low %v16_v0, %v16_v0  ;;  %v143_v6 = vcombine.low %v17_v1, %v17_v1  ;;  %150 = vset.pattern.permute.xlu0 %v155_v2  ;;  %v18_v7 = vld [vmem:[%s205_s2] sm:$0x1f] }
   0x3   :  { %21 = vperm.xlu0 %150, %v18_v7   ;;  %v15_v10 = vld [vmem:[%s206_s1] sm:$0x7] }
   0x4   :  { %145 = vmatprep.subr.msk.bf16.mxu0 %vm38_vm0, %v142_v3  ;;  %147 = vmatprep.subr.msk.bf16.mxu1 %vm38_vm0, %v144_v4  ;;  %v40_v8 = vsel %vm38_vm0, %v141_v5, 0  ;;  %v46_v9 = vsel %vm38_vm0, %v143_v6, 0 }
   0x5   :  { %66 = vmatpush1.bf16.msra.mxu0 %v40_v8  ;;  %107 = vmatpush1.bf16.msra.mxu1 %v46_v9 }
   0x8   :  { %146 = vmatmul.mubr.msk.bf16.vlgmr.msra.gmra.mxu0 %vm34_vm1, %v15_v10  ;;  %148 = vmatmul.mubr.msk.bf16.vlgmr.msra.gmra.mxu1 %vm34_vm1, %v15_v10 }
  0x7e   :  { %v22_v11 = vpop.permute.xlu0 %21 }
  0xc8   :  { %v85_v12 = vpop.f32.mrf.mxu0  ;;  %v126_v13 = vpop.f32.mrf.mxu1 }
  0xc9   :  { %v86_v14 = vadd.f32 %v85_v12, %v22_v11  ;;  %v127_v15 = vadd.f32 %v126_v13, %v22_v11 }
  0xca   :  { %v87_v16 = vpop.f32.mrf.mxu0  ;;  %v128_v17 = vpop.f32.mrf.mxu1 }
  0xcb   :  { %133 = vst [vmem:[%s207_s3] sm:$0x1f] %v86_v14  ;;  %135 = vst [vmem:[%s207_s3 + $0x10] sm:$0x1f] %v127_v15  ;;  %v88_v18 = vadd.f32 %v87_v16, %v22_v11  ;;  %v129_v19 = vadd.f32 %v128_v17, %v22_v11 }
  0xcc   :  { %v89_v20 = vpop.f32.mrf.mxu0  ;;  %v130_v21 = vpop.f32.mrf.mxu1 }
  0xcd   :  { %134 = vst [vmem:[%s207_s3 + $0x8] sm:$0x1f] %v88_v18  ;;  %136 = vst [vmem:[%s207_s3 + $0x18] sm:$0x1f] %v129_v19 }
  0xce   :  { %v90_v22 = vpop.f32.mrf.mxu0  ;;  %v131_v23 = vpop.f32.mrf.mxu1 }

// kernel: pb_fcn2_forward.30
= control target key start
LH: loop header
LB: loop body
LE: loop exit
PB: predicated region body
PF: predicated region fallthrough
CT: control target
= control target key end

     0   :  { %v510_v1 = vmov 0   ;;  %vm253_vm0 = vcmask 130048   ;;  %s690_s0 = inlined_call_operand.vmem [shape: bf16[144,512], index: 0, kind: input, shape index: {}]   ;;  %s691_s1 = inlined_call_operand.vmem [shape: bf16[8,144], index: 1, kind: input, shape index: {}]   ;;  %s692_s2 = inlined_call_operand.vmem [shape: f32[8,1], index: 2, kind: input, shape index: {}]   ;;  %s693_s3 = inlined_call_operand.vmem [shape: f32[8,1], index: 3, kind: input, shape index: {}]   ;;  %s694_s4 = inlined_call_operand.vmem [shape: f32[8,1], index: 4, kind: input, shape index: {}]   ;;  %s695_s5 = inlined_call_operand.vmem [shape: f32[8,512], index: 5, kind: input, shape index: {}]   ;;  %s696_s6 = inlined_call_operand.vmem [shape: f32[8,512], index: 6, kind: output, shape index: {}]  }
   0x1   :  { %v452_v0 = vld [vmem:[%s690_s0 + $0xe4] ss:$16 sps:$4 sm:$0xff]   ;;  %450 = vset.pattern.permute.xlu0 %v510_v1  ;;  %451 = vset.pattern.permute.xlu1 %v510_v1  ;;  %v454_v2 = vld [vmem:[%s690_s0 + $0xec] ss:$16 sps:$4 sm:$0xff]   ;;  %v456_v3 = vld [vmem:[%s690_s0 + $0xe0] ss:$16 sps:$4 sm:$0xff]  }
   0x2   :  { %257 = vmatprep.subr.bf16.mxu0 %v452_v0  ;;  %v457_v4 = vld [vmem:[%s690_s0 + $0xe8] ss:$16 sps:$4 sm:$0xff]   ;;  %298 = vmatprep.subr.bf16.mxu1 %v454_v2  ;;  %v458_v5 = vld [vmem:[%s690_s0 + $0xc4] ss:$16 sps:$4 sm:$0xff]   ;;  %v460_v6 = vld [vmem:[%s690_s0 + $0xcc] ss:$16 sps:$4 sm:$0xff]  }
   0x3   :  { %258 = vmatpush1.bf16.msra.mxu0 %v456_v3  ;;  %299 = vmatpush1.bf16.msra.mxu1 %v457_v4  ;;  %v462_v7 = vld [vmem:[%s690_s0 + $0xc0] ss:$16 sps:$4 sm:$0xff]   ;;  %v463_v8 = vld [vmem:[%s690_s0 + $0xc8] ss:$16 sps:$4 sm:$0xff]   ;;  %v464_v9 = vld [vmem:[%s690_s0 + $0xa4] ss:$16 sps:$4 sm:$0xff]  }
   0x4   :  { %259 = vmatprep.subr.bf16.mxu0 %v458_v5  ;;  %300 = vmatprep.subr.bf16.mxu1 %v460_v6  ;;  %v466_v10 = vld [vmem:[%s690_s0 + $0xac] ss:$16 sps:$4 sm:$0xff]   ;;  %v468_v11 = vld [vmem:[%s690_s0 + $0xa0] ss:$16 sps:$4 sm:$0xff]   ;;  %v469_v12 = vld [vmem:[%s690_s0 + $0xa8] ss:$16 sps:$4 sm:$0xff]  }
   0x5   :  { %v470_v13 = vld [vmem:[%s690_s0 + $0x84] ss:$16 sps:$4 sm:$0xff]   ;;  %v472_v14 = vld [vmem:[%s690_s0 + $0x8c] ss:$16 sps:$4 sm:$0xff]   ;;  %v474_v15 = vld [vmem:[%s690_s0 + $0x80] ss:$16 sps:$4 sm:$0xff]  }
   0x6   :  { %v475_v16 = vld [vmem:[%s690_s0 + $0x88] ss:$16 sps:$4 sm:$0xff]   ;;  %v476_v17 = vld [vmem:[%s690_s0 + $0x64] ss:$16 sps:$4 sm:$0xff]   ;;  %v478_v18 = vld [vmem:[%s690_s0 + $0x6c] ss:$16 sps:$4 sm:$0xff]  }
   0x7   :  { %260 = vmatpush1.bf16.msra.mxu0 %v462_v7  ;;  %301 = vmatpush1.bf16.msra.mxu1 %v463_v8  ;;  %v480_v19 = vld [vmem:[%s690_s0 + $0x60] ss:$16 sps:$4 sm:$0xff]   ;;  %v481_v20 = vld [vmem:[%s690_s0 + $0x68] ss:$16 sps:$4 sm:$0xff]   ;;  %v482_v21 = vld [vmem:[%s690_s0 + $0x44] ss:$16 sps:$4 sm:$0xff]  }
   0x8   :  { %261 = vmatprep.subr.bf16.mxu0 %v464_v9  ;;  %302 = vmatprep.subr.bf16.mxu1 %v466_v10  ;;  %v484_v22 = vld [vmem:[%s690_s0 + $0x4c] ss:$16 sps:$4 sm:$0xff]   ;;  %v486_v23 = vld [vmem:[%s690_s0 + $0x40] ss:$16 sps:$4 sm:$0xff]   ;;  %v487_v24 = vld [vmem:[%s690_s0 + $0x48] ss:$16 sps:$4 sm:$0xff]  }
   0x9   :  { %v488_v25 = vld [vmem:[%s690_s0 + $0x24] ss:$16 sps:$4 sm:$0xff]   ;;  %v490_v26 = vld [vmem:[%s690_s0 + $0x2c] ss:$16 sps:$4 sm:$0xff]   ;;  %v492_v27 = vld [vmem:[%s690_s0 + $0x20] ss:$16 sps:$4 sm:$0xff]  }
   0xa   :  { %v493_v28 = vld [vmem:[%s690_s0 + $0x28] ss:$16 sps:$4 sm:$0xff]   ;;  %v24_v29 = vld [vmem:[%s691_s1] sm:$0xff]  ;;  %v496_v33 = vld [vmem:[%s690_s0 + $0xc] ss:$16 sps:$4 sm:$0xff]  }
   0xb   :  { %262 = vmatpush1.bf16.msra.mxu0 %v468_v11  ;;  %303 = vmatpush1.bf16.msra.mxu1 %v469_v12  ;;  %v61_v30 = vld [vmem:[%s692_s2] sm:$0xff]  ;;  %v410_v34 = vcombine.high %v24_v29, %v24_v29  ;;  %v499_v36 = vld [vmem:[%s690_s0 + $0x8] ss:$16 sps:$4 sm:$0xff]   ;;  %v502_v38 = vld [vmem:[%s690_s0 + $0x10c] ss:$16 sps:$4 sm:$0xff]   ;;  %v409_v41 = vcombine.low %v24_v29, %v24_v29 }
   0xc   :  { %263 = vmatprep.subr.bf16.mxu0 %v470_v13  ;;  %304 = vmatprep.subr.bf16.mxu1 %v472_v14  ;;  %v369_v31 = vld [vmem:[%s693_s3] sm:$0xff]  ;;  %v505_v40 = vld [vmem:[%s690_s0 + $0x108] ss:$16 sps:$4 sm:$0xff]  }
   0xd   :  { %v494_v32 = vld [vmem:[%s690_s0 + $0x4] ss:$16 sps:$4 sm:$0xff]   ;;  %64 = vperm.xlu0 %450, %v61_v30   ;;  %372 = vperm.xlu1 %451, %v369_v31   ;;  %v498_v35 = vld [vmem:[%s690_s0] ss:$16 sps:$4 sm:$0xff]   ;;  %v394_v30 = vld [vmem:[%s695_s5 + $0x8] sm:$0xff] }
   0xe   :  { %447 = vmatprep.mubr.msk.bf16.mxu0 %vm253_vm0, %v410_v34  ;;  %448 = vmatprep.mubr.msk.bf16.mxu1 %vm253_vm0, %v410_v34  ;;  %v500_v37 = vld [vmem:[%s690_s0 + $0x104] ss:$16 sps:$4 sm:$0xff]   ;;  %v504_v39 = vld [vmem:[%s690_s0 + $0x100] ss:$16 sps:$4 sm:$0xff]  }
   0xf   :  { %264 = vmatpush1.bf16.msra.mxu0 %v474_v15  ;;  %305 = vmatpush1.bf16.msra.mxu1 %v475_v16  ;;  %v379_v1 = vld [vmem:[%s694_s4] sm:$0xff]  ;;  %v395_v31 = vld [vmem:[%s695_s5 + $0x10] sm:$0xff] }
  0x10   :  { %265 = vmatprep.subr.bf16.mxu0 %v476_v17  ;;  %306 = vmatprep.subr.bf16.mxu1 %v478_v18 }
  0x13   :  { %266 = vmatpush1.bf16.msra.mxu0 %v480_v19  ;;  %307 = vmatpush1.bf16.msra.mxu1 %v481_v20 }
  0x14   :  { %267 = vmatprep.subr.bf16.mxu0 %v482_v21  ;;  %308 = vmatprep.subr.bf16.mxu1 %v484_v22 }
  0x17   :  { %268 = vmatpush1.bf16.msra.mxu0 %v486_v23  ;;  %309 = vmatpush1.bf16.msra.mxu1 %v487_v24 }
  0x18   :  { %269 = vmatprep.subr.bf16.mxu0 %v488_v25  ;;  %310 = vmatprep.subr.bf16.mxu1 %v490_v26  ;;  %v393_v25 = vld [vmem:[%s695_s5] sm:$0xff] }
  0x1b   :  { %270 = vmatpush1.bf16.msra.mxu0 %v492_v27  ;;  %311 = vmatpush1.bf16.msra.mxu1 %v493_v28 }
  0x1c   :  { %271 = vmatprep.subr.bf16.mxu0 %v494_v32  ;;  %312 = vmatprep.subr.bf16.mxu1 %v496_v33  ;;  %v396_v32 = vld [vmem:[%s695_s5 + $0x18] sm:$0xff] }
  0x1f   :  { %272 = vmatpush1.bf16.msra.mxu0 %v498_v35  ;;  %313 = vmatpush1.bf16.msra.mxu1 %v499_v36 }
  0x20   :  { %287 = vmatprep.subr.bf16.mxu0 %v500_v37  ;;  %328 = vmatprep.subr.bf16.mxu1 %v502_v38 }
  0x23   :  { %288 = vmatpush2.bf16.msra.mxu0 %v504_v39  ;;  %329 = vmatpush2.bf16.msra.mxu1 %v505_v40 }
  0x26   :  { %290 = vmatmul.mubr.bf16.vlgmr.msra.gmra.mxu0 %v409_v41  ;;  %331 = vmatmul.mubr.bf16.vlgmr.msra.gmra.mxu1 %v409_v41 }
  0x88   :  { %v65_v42 = vpop.permute.xlu0 %64  ;;  %v373_v2 = vpop.permute.xlu1 %372 }
  0xe6   :  { %v291_v43 = vpop.f32.mrf.mxu0  ;;  %v332_v44 = vpop.f32.mrf.mxu1 }
  0xe7   :  { %v292_v45 = vadd.f32 %v291_v43, %v65_v42  ;;  %v333_v48 = vadd.f32 %v332_v44, %v65_v42 }
  0xe8   :  { %v293_v46 = vpop.f32.mrf.mxu0  ;;  %v334_v47 = vpop.f32.mrf.mxu1 }
  0xe9   :  { %v294_v49 = vadd.f32 %v293_v46, %v65_v42  ;;  %v346_v52 = vmul.f32 %v292_v45, %v292_v45  ;;  %v335_v55 = vadd.f32 %v334_v47, %v65_v42  ;;  %v348_v58 = vmul.f32 %v333_v48, %v333_v48 }
  0xea   :  { %v295_v50 = vpop.f32.mrf.mxu0  ;;  %v336_v51 = vpop.f32.mrf.mxu1 }
  0xeb   :  { %v339_v53 = vadd.f32 %v294_v49, %v292_v45  ;;  %v347_v54 = vmul.f32 %v294_v49, %v294_v49  ;;  %v349_v62 = vmul.f32 %v335_v55, %v335_v55 }
  0xec   :  { %v296_v56 = vpop.f32.mrf.mxu0  ;;  %v337_v57 = vpop.f32.mrf.mxu1 }
  0xed   :  { %v340_v59 = vadd.f32 %v339_v53, %v333_v48  ;;  %v350_v60 = vadd.f32 %v347_v54, %v346_v52 }
  0xef   :  { %v341_v61 = vadd.f32 %v340_v59, %v335_v55  ;;  %v351_v63 = vadd.f32 %v350_v60, %v348_v58 }
  0xf1   :  { %342 = vadd.xlane.f32.xlu0 %v341_v61  ;;  %v352_v0 = vadd.f32 %v351_v63, %v349_v62 }
  0xf3   :  { %353 = vadd.xlane.f32.xlu1 %v352_v0 }
 0x104   :  { %382 = vperm.xlu1 %451, %v379_v1  }
 0x17a   :  { %v343_v3 = vpop.xlane.xlu0 %342 }
 0x17b   :  { %v345_v4 = vmul.f32 0.001953125, %v343_v3 }
 0x17c   :  { %v354_v5 = vpop.xlane.xlu1 %353 }
 0x17d   :  { %v355_v6 = vmul.f32 0.001953125, %v354_v5  ;;  %v356_v7 = vmul.f32 %v345_v4, %v345_v4  ;;  %v359_v11 = vsub.f32 %v292_v45, %v345_v4  ;;  %v360_v12 = vsub.f32 %v294_v49, %v345_v4 }
 0x17e   :  { %v361_v13 = vsub.f32 %v333_v48, %v345_v4  ;;  %v362_v14 = vsub.f32 %v335_v55, %v345_v4 }
 0x17f   :  { %v357_v8 = vsub.f32 %v355_v6, %v356_v7 }
 0x180   :  { %v383_v24 = vpop.permute.xlu1 %382 }
 0x181   :  { %v358_v9 = vmax.f32 %v357_v8, 0.0 }
 0x183   :  { %v363_v10 = vadd.f32 1e-05, %v358_v9 }
 0x185   :  { %508 = vrsqrt.f32 %v363_v10 }
 0x192   :  { %v509_v15 = vpop.eup %508 }
 0x193   :  { %v365_v16 = vmul.f32 %v509_v15, %v359_v11  ;;  %v366_v17 = vmul.f32 %v509_v15, %v360_v12  ;;  %v367_v18 = vmul.f32 %v509_v15, %v361_v13  ;;  %v368_v19 = vmul.f32 %v509_v15, %v362_v14 }
 0x195   :  { %v375_v20 = vmul.f32 %v373_v2, %v365_v16  ;;  %v376_v21 = vmul.f32 %v373_v2, %v366_v17  ;;  %v377_v22 = vmul.f32 %v373_v2, %v367_v18  ;;  %v378_v23 = vmul.f32 %v373_v2, %v368_v19 }
 0x197   :  { %v385_v26 = vadd.f32 %v383_v24, %v375_v20  ;;  %v386_v27 = vadd.f32 %v383_v24, %v376_v21  ;;  %v387_v28 = vadd.f32 %v383_v24, %v377_v22  ;;  %v388_v29 = vadd.f32 %v383_v24, %v378_v23 }
 0x199   :  { %v389_v33 = vmax.f32 %v385_v26, 0.0  ;;  %v390_v34 = vmax.f32 %v386_v27, 0.0  ;;  %v391_v35 = vmax.f32 %v387_v28, 0.0  ;;  %v392_v36 = vmax.f32 %v388_v29, 0.0 }
 0x19b   :  { %v397_v37 = vadd.f32 %v393_v25, %v389_v33  ;;  %v398_v38 = vadd.f32 %v394_v30, %v390_v34  ;;  %v399_v39 = vadd.f32 %v395_v31, %v391_v35  ;;  %v400_v40 = vadd.f32 %v396_v32, %v392_v36 }
 0x19d   :  { %401 = vst [vmem:[%s696_s6] sm:$0xff] %v397_v37  ;;  %402 = vst [vmem:[%s696_s6 + $0x8] sm:$0xff] %v398_v38 }
 0x19e   :  { %403 = vst [vmem:[%s696_s6 + $0x10] sm:$0xff] %v399_v39  ;;  %404 = vst [vmem:[%s696_s6 + $0x18] sm:$0xff] %v400_v40 }

</bundles_post_ra>
